<compile_context>
chip_gen: v5e
topology: v5e:2x2
jax: 0.10.0
libtpu: 0.0.40
codegen_flags: <defaults>
</compile_context>

<pallas_src>
import functools

import jax
import jax.numpy as jnp
from jax import lax
from jax.experimental import pallas as pl
from jax.experimental.pallas import tpu as pltpu


# ---------------------------------------------------------------------------
# Fused Pallas kernel
# ---------------------------------------------------------------------------
def _unet_dec_block_kernel(x_c, x_p, x_n, s_c, s_p, s_n,
                           w1, b1, w2, b2, wt, bt,
                           o_ref,
                           xpad, p1, h1, p2):
    """One (batch, row-tile) grid step of the fused UnetDecBlock forward.

    x_c/s_c : (1, TH, W, C)   centre rows of x / skip
    x_p/s_p : (1, 2,  W, C)   two halo rows above the tile (clamped at i==0)
    x_n/s_n : (1, 2,  W, C)   two halo rows below the tile (clamped at i==last)
    w1      : (9*2C, C)       conv1 im2col weight, b1: (1, C)
    w2      : (9*C,  C)       conv2 im2col weight, b2: (1, C)
    wt      : (C, 4*Cout)     conv-transpose weight, cols ordered (ky, kx, o)
    bt      : (1, 4*Cout)
    o_ref   : (1, 2*TH, 2*W, Cout)
    scratch : xpad (TH+4, W+4, 2C), p1 (TH+2, W+2, 18C),
              h1 (TH+2, W+2, C),    p2 (TH, W, 9C)
    """
    TH, W, C = x_c.shape[1], x_c.shape[2], x_c.shape[3]
    Cout = o_ref.shape[3]
    cdt = x_c.dtype
    i = pl.program_id(1)
    n_h = pl.num_programs(1)

    # ----- assemble zero-padded, channel-concatenated input tile -----------
    # xpad[r, c, :] = concat(x, skip) at global (row0 - 2 + r, col - 2 + c),
    # zero outside the image.
    xpad[...] = jnp.zeros(xpad.shape, xpad.dtype)
    xpad[2:2 + TH, 2:2 + W, 0:C] = x_c[0]
    xpad[2:2 + TH, 2:2 + W, C:2 * C] = s_c[0]

    @pl.when(i > 0)                       # two halo rows above the tile
    def _():
        xpad[0:2, 2:2 + W, 0:C] = x_p[0]
        xpad[0:2, 2:2 + W, C:2 * C] = s_p[0]

    @pl.when(i < n_h - 1)                 # two halo rows below the tile
    def _():
        xpad[2 + TH:4 + TH, 2:2 + W, 0:C] = x_n[0]
        xpad[2 + TH:4 + TH, 2:2 + W, C:2 * C] = s_n[0]

    # ----- conv #1: 3x3 'same' + ReLU as ONE im2col matmul (K = 9*2C) ------
    for k in range(9):
        kh, kw = divmod(k, 3)
        p1[:, :, k * 2 * C:(k + 1) * 2 * C] = xpad[kh:kh + TH + 2,
                                                   kw:kw + W + 2, :]
    a1 = jnp.dot(p1[...].reshape((TH + 2) * (W + 2), 18 * C), w1[...],
                 preferred_element_type=jnp.float32)
    a1 = jnp.maximum(a1 + b1[...], 0.0).reshape(TH + 2, W + 2, C)
    # conv #2 must see the ZERO-padded conv #1 output: zero the extended
    # positions that fall outside the image.
    row = lax.broadcasted_iota(jnp.int32, (TH + 2, W + 2, C), 0)
    col = lax.broadcasted_iota(jnp.int32, (TH + 2, W + 2, C), 1)
    valid = (col >= 1) & (col <= W)
    valid &= jnp.logical_or(i > 0, row >= 1)
    valid &= jnp.logical_or(i < n_h - 1, row <= TH)
    h1[...] = jnp.where(valid, a1, 0.0).astype(cdt)

    # ----- conv #2: 3x3 'same' + ReLU as ONE im2col matmul (K = 9*C) -------
    for k in range(9):
        kh, kw = divmod(k, 3)
        p2[:, :, k * C:(k + 1) * C] = h1[kh:kh + TH, kw:kw + W, :]
    a2 = jnp.dot(p2[...].reshape(TH * W, 9 * C), w2[...],
                 preferred_element_type=jnp.float32)
    h2 = jnp.maximum(a2 + b2[...], 0.0).astype(cdt)          # (TH*W, C)

    # ----- ConvTranspose2d(kernel=2, stride=2): matmul + interleave --------
    y = jnp.dot(h2, wt[...], preferred_element_type=jnp.float32) + bt[...]
    y = y.astype(o_ref.dtype)              # (TH*W, 4*Cout), cols = (ky, kx, o)
    y00 = y[:, 0 * Cout:1 * Cout].reshape(TH * W, 1, Cout)   # ky=0, kx=0
    y01 = y[:, 1 * Cout:2 * Cout].reshape(TH * W, 1, Cout)   # ky=0, kx=1
    y10 = y[:, 2 * Cout:3 * Cout].reshape(TH * W, 1, Cout)   # ky=1, kx=0
    y11 = y[:, 3 * Cout:4 * Cout].reshape(TH * W, 1, Cout)   # ky=1, kx=1
    # width interleave (2j + kx), then height interleave (2i + ky)
    top = jnp.concatenate([y00, y01], axis=1).reshape(TH, 1, 2 * W, Cout)
    bot = jnp.concatenate([y10, y11], axis=1).reshape(TH, 1, 2 * W, Cout)
    o_ref[0] = jnp.concatenate([top, bot], axis=1).reshape(2 * TH, 2 * W, Cout)


# ---------------------------------------------------------------------------
# Wrapper
# ---------------------------------------------------------------------------
def crop(x_nchw, shape):
    """Center crop, matching UnetDecBlock.crop (NCHW)."""
    _, _, h, w = x_nchw.shape
    h_new, w_new = shape
    ch, cw = h // 2, w // 2
    ch_new, cw_new = h_new // 2, w_new // 2
    x1, y1 = int(cw - cw_new), int(ch - ch_new)
    return x_nchw[:, :, y1:y1 + h_new, x1:x1 + w_new]


def _pick_tile_h(H, W, C, itemsize, budget_bytes=8 * 1024 * 1024):
    """Largest even divisor of H whose per-tile VMEM scratch fits the budget
    (sized for v7x's 64 MiB physical / 32 MiB default-scoped VMEM)."""
    best = 2
    for th in range(2, H + 1, 2):
        if H % th:
            continue
        scratch = itemsize * ((th + 4) * (W + 4) * 2 * C      # padded input
                              + (th + 2) * (W + 2) * 19 * C   # im2col #1 + h1
                              + th * W * 9 * C)               # im2col #2
        if scratch <= budget_bytes:
            best = th
    return best


def unet_dec_block_forward(x_nchw, skip_nchw, params, *, tile_h=None):
    """UnetDecBlock.forward.  NCHW in / NCHW out (PyTorch semantics)."""
    if x_nchw.shape != skip_nchw.shape:
        # Faithful to the reference: skip is cropped to its *own* spatial
        # size (a no-op) before concat.
        skip_nchw = crop(skip_nchw, (skip_nchw.shape[2], skip_nchw.shape[3]))

    B, C, H, W = x_nchw.shape
    Cout = params["wt_pt"].shape[1]
    assert H % 2 == 0, "UnetDecBlock assumes even spatial sizes"

    if tile_h is None:
        tile_h = _pick_tile_h(H, W, C, jnp.dtype(x_nchw.dtype).itemsize)
    assert tile_h % 2 == 0 and H % tile_h == 0, (tile_h, H)
    n_h = H // tile_h

    # TODO(synk): keeping the public interface NCHW costs these boundary
    # transposes; an NHWC end-to-end model would drop them entirely.
    x = jnp.transpose(x_nchw, (0, 2, 3, 1))
    s = jnp.transpose(skip_nchw, (0, 2, 3, 1))
    cdt = x.dtype

    # Weight prep (tiny, constant-folded): conv kernels -> im2col matrices.
    w1 = jnp.transpose(params["w1_oihw"], (2, 3, 1, 0)).reshape(9 * 2 * C, C)
    w2 = jnp.transpose(params["w2_oihw"], (2, 3, 1, 0)).reshape(9 * C, C)
    b1 = params["b1"].reshape(1, C)
    b2 = params["b2"].reshape(1, C)
    # ConvTranspose2d weight (C, Cout, 2, 2) -> (C, (ky, kx, o)) matmul form.
    wt = jnp.transpose(params["wt_pt"], (0, 2, 3, 1)).reshape(C, 4 * Cout)
    bt = jnp.tile(params["bt"], 4).reshape(1, 4 * Cout)

    half = tile_h // 2  # halo blocks are 2 rows; H is blocked in 2-row units

    def center_map(b, i):
        return (b, i, 0, 0)

    def prev_map(b, i):       # 2 rows just above the tile (clamped at top)
        return (b, jnp.maximum(i * half - 1, 0), 0, 0)

    def next_map(b, i):       # 2 rows just below the tile (clamped at bottom)
        return (b, jnp.minimum((i + 1) * half, H // 2 - 1), 0, 0)

    def const_map(b, i):      # weights/bias stay VMEM resident across tiles
        return (0, 0)

    center_spec = pl.BlockSpec((1, tile_h, W, C), center_map)
    prev_spec = pl.BlockSpec((1, 2, W, C), prev_map)
    next_spec = pl.BlockSpec((1, 2, W, C), next_map)

    out = pl.pallas_call(
        _unet_dec_block_kernel,
        out_shape=jax.ShapeDtypeStruct((B, 2 * H, 2 * W, Cout), cdt),
        grid_spec=pltpu.PrefetchScalarGridSpec(
            num_scalar_prefetch=0,
            grid=(B, n_h),
            in_specs=[
                center_spec, prev_spec, next_spec,          # x
                center_spec, prev_spec, next_spec,          # skip
                pl.BlockSpec((9 * 2 * C, C), const_map),    # w1
                pl.BlockSpec((1, C), const_map),            # b1
                pl.BlockSpec((9 * C, C), const_map),        # w2
                pl.BlockSpec((1, C), const_map),            # b2
                pl.BlockSpec((C, 4 * Cout), const_map),     # wt
                pl.BlockSpec((1, 4 * Cout), const_map),     # bt
            ],
            out_specs=pl.BlockSpec((1, 2 * tile_h, 2 * W, Cout),
                                   lambda b, i: (b, i, 0, 0)),
            scratch_shapes=[
                pltpu.VMEM((tile_h + 4, W + 4, 2 * C), cdt),    # padded input
                pltpu.VMEM((tile_h + 2, W + 2, 18 * C), cdt),   # im2col conv1
                pltpu.VMEM((tile_h + 2, W + 2, C), cdt),        # conv1 output
                pltpu.VMEM((tile_h, W, 9 * C), cdt),            # im2col conv2
            ]),
        compiler_params=pltpu.CompilerParams(
            dimension_semantics=("parallel", "parallel"),
            vmem_limit_bytes=48 * 1024 * 1024),
    )(x, x, x, s, s, s, w1, b1, w2, b2, wt, bt)

    # TODO(synk): with very small out_features the NHWC store is lane-sparse;
    # a (W*Cout)-packed output layout would make the final stores lane-dense.
    return jnp.transpose(out, (0, 3, 1, 2))


# ---------------------------------------------------------------------------
# Pure-JAX reference (NCHW, PyTorch semantics) for validation
# ---------------------------------------------------------------------------
def reference_forward(x_nchw, skip_nchw, params):
    if x_nchw.shape != skip_nchw.shape:
        skip_nchw = crop(skip_nchw, (skip_nchw.shape[2], skip_nchw.shape[3]))
    xc = jnp.concatenate([x_nchw, skip_nchw], axis=1)

    def conv_relu(h, w_oihw, b):
        h = lax.conv_general_dilated(
            h, w_oihw, window_strides=(1, 1), padding=((1, 1), (1, 1)),
            dimension_numbers=("NCHW", "OIHW", "NCHW"))
        return jnp.maximum(h + b[None, :, None, None], 0.0)

    h = conv_relu(xc, params["w1_oihw"], params["b1"])
    h = conv_relu(h, params["w2_oihw"], params["b2"])

    # ConvTranspose2d(k=2, s=2): out[b,o,2i+y,2j+x] = sum_c h[b,c,i,j]*W[c,o,y,x]
    B, C, H, W = h.shape
    wt = params["wt_pt"]
    Cout = wt.shape[1]
    t = jnp.einsum("bcij,coyx->boiyjx", h, wt).reshape(B, Cout, 2 * H, 2 * W)
    return t + params["bt"][None, :, None, None]


# ---------------------------------------------------------------------------
# Main
# ---------------------------------------------------------------------------
if __name__ == "__main__":
    key = jax.random.PRNGKey(0)
    B, C_in, C_out, H, W = 2, 4, 2, 16, 16   # in_features=4, out_features=2

    keys = jax.random.split(key, 8)
    x = jax.random.normal(keys[0], (B, C_in, H, W), jnp.float32)
    skip = jax.random.normal(keys[1], (B, C_in, H, W), jnp.float32)

    params = {
        "w1_oihw": 0.1 * jax.random.normal(keys[2], (C_in, 2 * C_in, 3, 3), jnp.float32),
        "b1": 0.05 * jax.random.normal(keys[3], (C_in,), jnp.float32),
        "w2_oihw": 0.1 * jax.random.normal(keys[4], (C_in, C_in, 3, 3), jnp.float32),
        "b2": 0.05 * jax.random.normal(keys[5], (C_in,), jnp.float32),
        "wt_pt": 0.1 * jax.random.normal(keys[6], (C_in, C_out, 2, 2), jnp.float32),
        "bt": 0.05 * jax.random.normal(keys[7], (C_out,), jnp.float32),
    }

    # tile_h=8 -> grid (B, 2): exercises both the image-border and the
    # interior-halo paths of the row tiling.
    fwd = jax.jit(functools.partial(unet_dec_block_forward, tile_h=8))
    out = jax.block_until_ready(fwd(x, skip, params))
    assert out.shape == (B, C_out, 2 * H, 2 * W), out.shape

    ref = jax.block_until_ready(reference_forward(x, skip, params))
    max_err = float(jnp.max(jnp.abs(out - ref)))
    if max_err > 1e-3:
        raise AssertionError(f"mismatch vs reference, max abs err = {max_err}")

    print("KERNEL_OK")
</pallas_src>

<mosaic_0001>
module attributes {stable_mosaic.version = 11 : i64} {
  func.func @_unet_dec_block_kernel(%arg0: i32, %arg1: i32, %arg2: memref<1x8x16x4xf32, #tpu.memory_space<vmem>>, %arg3: memref<1x2x16x4xf32, #tpu.memory_space<vmem>>, %arg4: memref<1x2x16x4xf32, #tpu.memory_space<vmem>>, %arg5: memref<1x8x16x4xf32, #tpu.memory_space<vmem>>, %arg6: memref<1x2x16x4xf32, #tpu.memory_space<vmem>>, %arg7: memref<1x2x16x4xf32, #tpu.memory_space<vmem>>, %arg8: memref<72x4xf32, #tpu.memory_space<vmem>>, %arg9: memref<1x4xf32, #tpu.memory_space<vmem>>, %arg10: memref<36x4xf32, #tpu.memory_space<vmem>>, %arg11: memref<1x4xf32, #tpu.memory_space<vmem>>, %arg12: memref<4x8xf32, #tpu.memory_space<vmem>>, %arg13: memref<1x8xf32, #tpu.memory_space<vmem>>, %arg14: memref<1x16x32x2xf32, #tpu.memory_space<vmem>>, %arg15: memref<12x20x8xf32, #tpu.memory_space<vmem>>, %arg16: memref<10x18x72xf32, #tpu.memory_space<vmem>>, %arg17: memref<10x18x4xf32, #tpu.memory_space<vmem>>, %arg18: memref<8x16x36xf32, #tpu.memory_space<vmem>>) attributes {dimension_semantics = [#tpu.dimension_semantics<parallel>, #tpu.dimension_semantics<parallel>], iteration_bounds = array<i64: 2, 2>, scalar_prefetch = 0 : i64, scratch_operands = 4 : i64, tpu.core_type = #tpu.core_type<tc>, window_params = [{transform_indices = @transform_0, window_bounds = array<i64: 1, 8, 16, 4>}, {transform_indices = @transform_1, window_bounds = array<i64: 1, 2, 16, 4>}, {transform_indices = @transform_2, window_bounds = array<i64: 1, 2, 16, 4>}, {transform_indices = @transform_3, window_bounds = array<i64: 1, 8, 16, 4>}, {transform_indices = @transform_4, window_bounds = array<i64: 1, 2, 16, 4>}, {transform_indices = @transform_5, window_bounds = array<i64: 1, 2, 16, 4>}, {pipeline_mode = #tpu.pipeline_mode<synchronous>, transform_indices = @transform_6, window_bounds = array<i64: 72, 4>}, {pipeline_mode = #tpu.pipeline_mode<synchronous>, transform_indices = @transform_7, window_bounds = array<i64: 1, 4>}, {pipeline_mode = #tpu.pipeline_mode<synchronous>, transform_indices = @transform_8, window_bounds = array<i64: 36, 4>}, {pipeline_mode = #tpu.pipeline_mode<synchronous>, transform_indices = @transform_9, window_bounds = array<i64: 1, 4>}, {pipeline_mode = #tpu.pipeline_mode<synchronous>, transform_indices = @transform_10, window_bounds = array<i64: 4, 8>}, {pipeline_mode = #tpu.pipeline_mode<synchronous>, transform_indices = @transform_11, window_bounds = array<i64: 1, 8>}, {transform_indices = @transform_12, window_bounds = array<i64: 1, 16, 32, 2>}]} {
    %cst = arith.constant 0.000000e+00 : f32
    %0 = vector.broadcast %cst : f32 to vector<12x20x8xf32>
    %c0 = arith.constant 0 : index
    %c0_0 = arith.constant 0 : index
    %c0_1 = arith.constant 0 : index
    %1 = vector.load %arg15[%c0, %c0_0, %c0_1] : memref<12x20x8xf32, #tpu.memory_space<vmem>>, vector<12x20x8xf32>
    tpu.vector_store %arg15[%c0, %c0_0, %c0_1], %0 {strides = array<i32>} : memref<12x20x8xf32, #tpu.memory_space<vmem>>, vector<12x20x8xf32>,
    %c0_2 = arith.constant 0 : index
    %c0_3 = arith.constant 0 : index
    %c0_4 = arith.constant 0 : index
    %c0_5 = arith.constant 0 : index
    %2 = vector.load %arg2[%c0_2, %c0_3, %c0_4, %c0_5] : memref<1x8x16x4xf32, #tpu.memory_space<vmem>>, vector<1x8x16x4xf32>
    %3 = vector.shape_cast %2 : vector<1x8x16x4xf32> to vector<8x16x4xf32>
    %c2 = arith.constant 2 : index
    %c2_6 = arith.constant 2 : index
    %c0_7 = arith.constant 0 : index
    %4 = vector.load %arg15[%c2, %c2_6, %c0_7] : memref<12x20x8xf32, #tpu.memory_space<vmem>>, vector<8x16x4xf32>
    tpu.vector_store %arg15[%c2, %c2_6, %c0_7], %3 {strides = array<i32>} : memref<12x20x8xf32, #tpu.memory_space<vmem>>, vector<8x16x4xf32>,
    %c0_8 = arith.constant 0 : index
    %c0_9 = arith.constant 0 : index
    %c0_10 = arith.constant 0 : index
    %c0_11 = arith.constant 0 : index
    %5 = vector.load %arg5[%c0_8, %c0_9, %c0_10, %c0_11] : memref<1x8x16x4xf32, #tpu.memory_space<vmem>>, vector<1x8x16x4xf32>
    %6 = vector.shape_cast %5 : vector<1x8x16x4xf32> to vector<8x16x4xf32>
    %c2_12 = arith.constant 2 : index
    %c2_13 = arith.constant 2 : index
    %c4 = arith.constant 4 : index
    %7 = vector.load %arg15[%c2_12, %c2_13, %c4] : memref<12x20x8xf32, #tpu.memory_space<vmem>>, vector<8x16x4xf32>
    tpu.vector_store %arg15[%c2_12, %c2_13, %c4], %6 {strides = array<i32>} : memref<12x20x8xf32, #tpu.memory_space<vmem>>, vector<8x16x4xf32>,
    %c0_i32 = arith.constant 0 : i32
    %8 = arith.cmpi sgt, %arg1, %c0_i32 : i32
    %9 = arith.extui %8 : i1 to i32
    %c0_i32_14 = arith.constant 0 : i32
    %10 = arith.cmpi ne, %9, %c0_i32_14 : i32
    scf.if %10 {
      %c0_147 = arith.constant 0 : index
      %c0_148 = arith.constant 0 : index
      %c0_149 = arith.constant 0 : index
      %c0_150 = arith.constant 0 : index
      %113 = vector.load %arg3[%c0_147, %c0_148, %c0_149, %c0_150] : memref<1x2x16x4xf32, #tpu.memory_space<vmem>>, vector<1x2x16x4xf32>
      %114 = vector.shape_cast %113 : vector<1x2x16x4xf32> to vector<2x16x4xf32>
      %c0_151 = arith.constant 0 : index
      %c2_152 = arith.constant 2 : index
      %c0_153 = arith.constant 0 : index
      %115 = vector.load %arg15[%c0_151, %c2_152, %c0_153] : memref<12x20x8xf32, #tpu.memory_space<vmem>>, vector<2x16x4xf32>
      tpu.vector_store %arg15[%c0_151, %c2_152, %c0_153], %114 {strides = array<i32>} : memref<12x20x8xf32, #tpu.memory_space<vmem>>, vector<2x16x4xf32>,
      %c0_154 = arith.constant 0 : index
      %c0_155 = arith.constant 0 : index
      %c0_156 = arith.constant 0 : index
      %c0_157 = arith.constant 0 : index
      %116 = vector.load %arg6[%c0_154, %c0_155, %c0_156, %c0_157] : memref<1x2x16x4xf32, #tpu.memory_space<vmem>>, vector<1x2x16x4xf32>
      %117 = vector.shape_cast %116 : vector<1x2x16x4xf32> to vector<2x16x4xf32>
      %c0_158 = arith.constant 0 : index
      %c2_159 = arith.constant 2 : index
      %c4_160 = arith.constant 4 : index
      %118 = vector.load %arg15[%c0_158, %c2_159, %c4_160] : memref<12x20x8xf32, #tpu.memory_space<vmem>>, vector<2x16x4xf32>
      tpu.vector_store %arg15[%c0_158, %c2_159, %c4_160], %117 {strides = array<i32>} : memref<12x20x8xf32, #tpu.memory_space<vmem>>, vector<2x16x4xf32>,
    } else {
    }
    %c1_i32 = arith.constant 1 : i32
    %11 = arith.cmpi slt, %arg1, %c1_i32 : i32
    %12 = arith.extui %11 : i1 to i32
    %c0_i32_15 = arith.constant 0 : i32
    %13 = arith.cmpi ne, %12, %c0_i32_15 : i32
    scf.if %13 {
      %c0_147 = arith.constant 0 : index
      %c0_148 = arith.constant 0 : index
      %c0_149 = arith.constant 0 : index
      %c0_150 = arith.constant 0 : index
      %113 = vector.load %arg4[%c0_147, %c0_148, %c0_149, %c0_150] : memref<1x2x16x4xf32, #tpu.memory_space<vmem>>, vector<1x2x16x4xf32>
      %114 = vector.shape_cast %113 : vector<1x2x16x4xf32> to vector<2x16x4xf32>
      %c10 = arith.constant 10 : index
      %c2_151 = arith.constant 2 : index
      %c0_152 = arith.constant 0 : index
      %115 = vector.load %arg15[%c10, %c2_151, %c0_152] : memref<12x20x8xf32, #tpu.memory_space<vmem>>, vector<2x16x4xf32>
      tpu.vector_store %arg15[%c10, %c2_151, %c0_152], %114 {strides = array<i32>} : memref<12x20x8xf32, #tpu.memory_space<vmem>>, vector<2x16x4xf32>,
      %c0_153 = arith.constant 0 : index
      %c0_154 = arith.constant 0 : index
      %c0_155 = arith.constant 0 : index
      %c0_156 = arith.constant 0 : index
      %116 = vector.load %arg7[%c0_153, %c0_154, %c0_155, %c0_156] : memref<1x2x16x4xf32, #tpu.memory_space<vmem>>, vector<1x2x16x4xf32>
      %117 = vector.shape_cast %116 : vector<1x2x16x4xf32> to vector<2x16x4xf32>
      %c10_157 = arith.constant 10 : index
      %c2_158 = arith.constant 2 : index
      %c4_159 = arith.constant 4 : index
      %118 = vector.load %arg15[%c10_157, %c2_158, %c4_159] : memref<12x20x8xf32, #tpu.memory_space<vmem>>, vector<2x16x4xf32>
      tpu.vector_store %arg15[%c10_157, %c2_158, %c4_159], %117 {strides = array<i32>} : memref<12x20x8xf32, #tpu.memory_space<vmem>>, vector<2x16x4xf32>,
    } else {
    }
    %c0_16 = arith.constant 0 : index
    %c0_17 = arith.constant 0 : index
    %c0_18 = arith.constant 0 : index
    %14 = vector.load %arg15[%c0_16, %c0_17, %c0_18] : memref<12x20x8xf32, #tpu.memory_space<vmem>>, vector<10x18x8xf32>
    %c0_19 = arith.constant 0 : index
    %c0_20 = arith.constant 0 : index
    %c0_21 = arith.constant 0 : index
    %15 = vector.load %arg16[%c0_19, %c0_20, %c0_21] : memref<10x18x72xf32, #tpu.memory_space<vmem>>, vector<10x18x8xf32>
    tpu.vector_store %arg16[%c0_19, %c0_20, %c0_21], %14 {strides = array<i32>} : memref<10x18x72xf32, #tpu.memory_space<vmem>>, vector<10x18x8xf32>,
    %c0_22 = arith.constant 0 : index
    %c1 = arith.constant 1 : index
    %c0_23 = arith.constant 0 : index
    %16 = vector.load %arg15[%c0_22, %c1, %c0_23] : memref<12x20x8xf32, #tpu.memory_space<vmem>>, vector<10x18x8xf32>
    %c0_24 = arith.constant 0 : index
    %c0_25 = arith.constant 0 : index
    %c8 = arith.constant 8 : index
    %17 = vector.load %arg16[%c0_24, %c0_25, %c8] : memref<10x18x72xf32, #tpu.memory_space<vmem>>, vector<10x18x8xf32>
    tpu.vector_store %arg16[%c0_24, %c0_25, %c8], %16 {strides = array<i32>} : memref<10x18x72xf32, #tpu.memory_space<vmem>>, vector<10x18x8xf32>,
    %c0_26 = arith.constant 0 : index
    %c2_27 = arith.constant 2 : index
    %c0_28 = arith.constant 0 : index
    %18 = vector.load %arg15[%c0_26, %c2_27, %c0_28] : memref<12x20x8xf32, #tpu.memory_space<vmem>>, vector<10x18x8xf32>
    %c0_29 = arith.constant 0 : index
    %c0_30 = arith.constant 0 : index
    %c16 = arith.constant 16 : index
    %19 = vector.load %arg16[%c0_29, %c0_30, %c16] : memref<10x18x72xf32, #tpu.memory_space<vmem>>, vector<10x18x8xf32>
    tpu.vector_store %arg16[%c0_29, %c0_30, %c16], %18 {strides = array<i32>} : memref<10x18x72xf32, #tpu.memory_space<vmem>>, vector<10x18x8xf32>,
    %c1_31 = arith.constant 1 : index
    %c0_32 = arith.constant 0 : index
    %c0_33 = arith.constant 0 : index
    %20 = vector.load %arg15[%c1_31, %c0_32, %c0_33] : memref<12x20x8xf32, #tpu.memory_space<vmem>>, vector<10x18x8xf32>
    %c0_34 = arith.constant 0 : index
    %c0_35 = arith.constant 0 : index
    %c24 = arith.constant 24 : index
    %21 = vector.load %arg16[%c0_34, %c0_35, %c24] : memref<10x18x72xf32, #tpu.memory_space<vmem>>, vector<10x18x8xf32>
    tpu.vector_store %arg16[%c0_34, %c0_35, %c24], %20 {strides = array<i32>} : memref<10x18x72xf32, #tpu.memory_space<vmem>>, vector<10x18x8xf32>,
    %c1_36 = arith.constant 1 : index
    %c1_37 = arith.constant 1 : index
    %c0_38 = arith.constant 0 : index
    %22 = vector.load %arg15[%c1_36, %c1_37, %c0_38] : memref<12x20x8xf32, #tpu.memory_space<vmem>>, vector<10x18x8xf32>
    %c0_39 = arith.constant 0 : index
    %c0_40 = arith.constant 0 : index
    %c32 = arith.constant 32 : index
    %23 = vector.load %arg16[%c0_39, %c0_40, %c32] : memref<10x18x72xf32, #tpu.memory_space<vmem>>, vector<10x18x8xf32>
    tpu.vector_store %arg16[%c0_39, %c0_40, %c32], %22 {strides = array<i32>} : memref<10x18x72xf32, #tpu.memory_space<vmem>>, vector<10x18x8xf32>,
    %c1_41 = arith.constant 1 : index
    %c2_42 = arith.constant 2 : index
    %c0_43 = arith.constant 0 : index
    %24 = vector.load %arg15[%c1_41, %c2_42, %c0_43] : memref<12x20x8xf32, #tpu.memory_space<vmem>>, vector<10x18x8xf32>
    %c0_44 = arith.constant 0 : index
    %c0_45 = arith.constant 0 : index
    %c40 = arith.constant 40 : index
    %25 = vector.load %arg16[%c0_44, %c0_45, %c40] : memref<10x18x72xf32, #tpu.memory_space<vmem>>, vector<10x18x8xf32>
    tpu.vector_store %arg16[%c0_44, %c0_45, %c40], %24 {strides = array<i32>} : memref<10x18x72xf32, #tpu.memory_space<vmem>>, vector<10x18x8xf32>,
    %c2_46 = arith.constant 2 : index
    %c0_47 = arith.constant 0 : index
    %c0_48 = arith.constant 0 : index
    %26 = vector.load %arg15[%c2_46, %c0_47, %c0_48] : memref<12x20x8xf32, #tpu.memory_space<vmem>>, vector<10x18x8xf32>
    %c0_49 = arith.constant 0 : index
    %c0_50 = arith.constant 0 : index
    %c48 = arith.constant 48 : index
    %27 = vector.load %arg16[%c0_49, %c0_50, %c48] : memref<10x18x72xf32, #tpu.memory_space<vmem>>, vector<10x18x8xf32>
    tpu.vector_store %arg16[%c0_49, %c0_50, %c48], %26 {strides = array<i32>} : memref<10x18x72xf32, #tpu.memory_space<vmem>>, vector<10x18x8xf32>,
    %c2_51 = arith.constant 2 : index
    %c1_52 = arith.constant 1 : index
    %c0_53 = arith.constant 0 : index
    %28 = vector.load %arg15[%c2_51, %c1_52, %c0_53] : memref<12x20x8xf32, #tpu.memory_space<vmem>>, vector<10x18x8xf32>
    %c0_54 = arith.constant 0 : index
    %c0_55 = arith.constant 0 : index
    %c56 = arith.constant 56 : index
    %29 = vector.load %arg16[%c0_54, %c0_55, %c56] : memref<10x18x72xf32, #tpu.memory_space<vmem>>, vector<10x18x8xf32>
    tpu.vector_store %arg16[%c0_54, %c0_55, %c56], %28 {strides = array<i32>} : memref<10x18x72xf32, #tpu.memory_space<vmem>>, vector<10x18x8xf32>,
    %c2_56 = arith.constant 2 : index
    %c2_57 = arith.constant 2 : index
    %c0_58 = arith.constant 0 : index
    %30 = vector.load %arg15[%c2_56, %c2_57, %c0_58] : memref<12x20x8xf32, #tpu.memory_space<vmem>>, vector<10x18x8xf32>
    %c0_59 = arith.constant 0 : index
    %c0_60 = arith.constant 0 : index
    %c64 = arith.constant 64 : index
    %31 = vector.load %arg16[%c0_59, %c0_60, %c64] : memref<10x18x72xf32, #tpu.memory_space<vmem>>, vector<10x18x8xf32>
    tpu.vector_store %arg16[%c0_59, %c0_60, %c64], %30 {strides = array<i32>} : memref<10x18x72xf32, #tpu.memory_space<vmem>>, vector<10x18x8xf32>,
    %c0_61 = arith.constant 0 : index
    %c0_62 = arith.constant 0 : index
    %c0_63 = arith.constant 0 : index
    %32 = vector.load %arg16[%c0_61, %c0_62, %c0_63] : memref<10x18x72xf32, #tpu.memory_space<vmem>>, vector<10x18x72xf32>
    %33 = vector.shape_cast %32 : vector<10x18x72xf32> to vector<180x72xf32>
    %c0_64 = arith.constant 0 : index
    %c0_65 = arith.constant 0 : index
    %34 = vector.load %arg8[%c0_64, %c0_65] : memref<72x4xf32, #tpu.memory_space<vmem>>, vector<72x4xf32>
    %cst_66 = arith.constant dense<0.000000e+00> : vector<180x4xf32>
    %35 = tpu.matmul %33, %34, %cst_66 {dimension_numbers = #tpu.dot_dimension_numbers<[1], [0], [0], [1], [0, 0, 1, 1], [], []>} : vector<180x72xf32>, vector<72x4xf32>, vector<180x4xf32> -> vector<180x4xf32>
    %c0_67 = arith.constant 0 : index
    %c0_68 = arith.constant 0 : index
    %36 = vector.load %arg9[%c0_67, %c0_68] : memref<1x4xf32, #tpu.memory_space<vmem>>, vector<1x4xf32>
    %37 = vector.broadcast %36 : vector<1x4xf32> to vector<180x4xf32>
    %38 = arith.addf %35, %37 : vector<180x4xf32>
    %cst_69 = arith.constant 0.000000e+00 : f32
    %39 = vector.broadcast %cst_69 : f32 to vector<180x4xf32>
    %40 = arith.maximumf %38, %39 : vector<180x4xf32>
    %41 = vector.shape_cast %40 : vector<180x4xf32> to vector<10x18x4xf32>
    %42 = tpu.iota {dimensions = array<i32: 0>} : vector<10x18x4xi32>
    %43 = tpu.iota {dimensions = array<i32: 1>} : vector<10x18x4xi32>
    %c1_i32_70 = arith.constant 1 : i32
    %44 = vector.broadcast %c1_i32_70 : i32 to vector<10x18x4xi32>
    %45 = arith.cmpi sge, %43, %44 : vector<10x18x4xi32>
    %c16_i32 = arith.constant 16 : i32
    %46 = vector.broadcast %c16_i32 : i32 to vector<10x18x4xi32>
    %47 = arith.cmpi sle, %43, %46 : vector<10x18x4xi32>
    %48 = arith.andi %45, %47 : vector<10x18x4xi1>
    %c0_i32_71 = arith.constant 0 : i32
    %49 = arith.cmpi sgt, %arg1, %c0_i32_71 : i32
    %c1_i32_72 = arith.constant 1 : i32
    %50 = vector.broadcast %c1_i32_72 : i32 to vector<10x18x4xi32>
    %51 = arith.cmpi sge, %42, %50 : vector<10x18x4xi32>
    %52 = vector.broadcast %49 : i1 to vector<10x18x4xi1>
    %53 = arith.ori %52, %51 : vector<10x18x4xi1>
    %54 = arith.andi %48, %53 : vector<10x18x4xi1>
    %c1_i32_73 = arith.constant 1 : i32
    %55 = arith.cmpi slt, %arg1, %c1_i32_73 : i32
    %c8_i32 = arith.constant 8 : i32
    %56 = vector.broadcast %c8_i32 : i32 to vector<10x18x4xi32>
    %57 = arith.cmpi sle, %42, %56 : vector<10x18x4xi32>
    %58 = vector.broadcast %55 : i1 to vector<10x18x4xi1>
    %59 = arith.ori %58, %57 : vector<10x18x4xi1>
    %60 = arith.andi %54, %59 : vector<10x18x4xi1>
    %cst_74 = arith.constant 0.000000e+00 : f32
    %61 = vector.broadcast %cst_74 : f32 to vector<10x18x4xf32>
    %62 = arith.select %60, %41, %61 : vector<10x18x4xi1>, vector<10x18x4xf32>
    %c0_75 = arith.constant 0 : index
    %c0_76 = arith.constant 0 : index
    %c0_77 = arith.constant 0 : index
    %63 = vector.load %arg17[%c0_75, %c0_76, %c0_77] : memref<10x18x4xf32, #tpu.memory_space<vmem>>, vector<10x18x4xf32>
    tpu.vector_store %arg17[%c0_75, %c0_76, %c0_77], %62 {strides = array<i32>} : memref<10x18x4xf32, #tpu.memory_space<vmem>>, vector<10x18x4xf32>,
    %c0_78 = arith.constant 0 : index
    %c0_79 = arith.constant 0 : index
    %c0_80 = arith.constant 0 : index
    %64 = vector.load %arg17[%c0_78, %c0_79, %c0_80] : memref<10x18x4xf32, #tpu.memory_space<vmem>>, vector<8x16x4xf32>
    %c0_81 = arith.constant 0 : index
    %c0_82 = arith.constant 0 : index
    %c0_83 = arith.constant 0 : index
    %65 = vector.load %arg18[%c0_81, %c0_82, %c0_83] : memref<8x16x36xf32, #tpu.memory_space<vmem>>, vector<8x16x4xf32>
    tpu.vector_store %arg18[%c0_81, %c0_82, %c0_83], %64 {strides = array<i32>} : memref<8x16x36xf32, #tpu.memory_space<vmem>>, vector<8x16x4xf32>,
    %c0_84 = arith.constant 0 : index
    %c1_85 = arith.constant 1 : index
    %c0_86 = arith.constant 0 : index
    %66 = vector.load %arg17[%c0_84, %c1_85, %c0_86] : memref<10x18x4xf32, #tpu.memory_space<vmem>>, vector<8x16x4xf32>
    %c0_87 = arith.constant 0 : index
    %c0_88 = arith.constant 0 : index
    %c4_89 = arith.constant 4 : index
    %67 = vector.load %arg18[%c0_87, %c0_88, %c4_89] : memref<8x16x36xf32, #tpu.memory_space<vmem>>, vector<8x16x4xf32>
    tpu.vector_store %arg18[%c0_87, %c0_88, %c4_89], %66 {strides = array<i32>} : memref<8x16x36xf32, #tpu.memory_space<vmem>>, vector<8x16x4xf32>,
    %c0_90 = arith.constant 0 : index
    %c2_91 = arith.constant 2 : index
    %c0_92 = arith.constant 0 : index
    %68 = vector.load %arg17[%c0_90, %c2_91, %c0_92] : memref<10x18x4xf32, #tpu.memory_space<vmem>>, vector<8x16x4xf32>
    %c0_93 = arith.constant 0 : index
    %c0_94 = arith.constant 0 : index
    %c8_95 = arith.constant 8 : index
    %69 = vector.load %arg18[%c0_93, %c0_94, %c8_95] : memref<8x16x36xf32, #tpu.memory_space<vmem>>, vector<8x16x4xf32>
    tpu.vector_store %arg18[%c0_93, %c0_94, %c8_95], %68 {strides = array<i32>} : memref<8x16x36xf32, #tpu.memory_space<vmem>>, vector<8x16x4xf32>,
    %c1_96 = arith.constant 1 : index
    %c0_97 = arith.constant 0 : index
    %c0_98 = arith.constant 0 : index
    %70 = vector.load %arg17[%c1_96, %c0_97, %c0_98] : memref<10x18x4xf32, #tpu.memory_space<vmem>>, vector<8x16x4xf32>
    %c0_99 = arith.constant 0 : index
    %c0_100 = arith.constant 0 : index
    %c12 = arith.constant 12 : index
    %71 = vector.load %arg18[%c0_99, %c0_100, %c12] : memref<8x16x36xf32, #tpu.memory_space<vmem>>, vector<8x16x4xf32>
    tpu.vector_store %arg18[%c0_99, %c0_100, %c12], %70 {strides = array<i32>} : memref<8x16x36xf32, #tpu.memory_space<vmem>>, vector<8x16x4xf32>,
    %c1_101 = arith.constant 1 : index
    %c1_102 = arith.constant 1 : index
    %c0_103 = arith.constant 0 : index
    %72 = vector.load %arg17[%c1_101, %c1_102, %c0_103] : memref<10x18x4xf32, #tpu.memory_space<vmem>>, vector<8x16x4xf32>
    %c0_104 = arith.constant 0 : index
    %c0_105 = arith.constant 0 : index
    %c16_106 = arith.constant 16 : index
    %73 = vector.load %arg18[%c0_104, %c0_105, %c16_106] : memref<8x16x36xf32, #tpu.memory_space<vmem>>, vector<8x16x4xf32>
    tpu.vector_store %arg18[%c0_104, %c0_105, %c16_106], %72 {strides = array<i32>} : memref<8x16x36xf32, #tpu.memory_space<vmem>>, vector<8x16x4xf32>,
    %c1_107 = arith.constant 1 : index
    %c2_108 = arith.constant 2 : index
    %c0_109 = arith.constant 0 : index
    %74 = vector.load %arg17[%c1_107, %c2_108, %c0_109] : memref<10x18x4xf32, #tpu.memory_space<vmem>>, vector<8x16x4xf32>
    %c0_110 = arith.constant 0 : index
    %c0_111 = arith.constant 0 : index
    %c20 = arith.constant 20 : index
    %75 = vector.load %arg18[%c0_110, %c0_111, %c20] : memref<8x16x36xf32, #tpu.memory_space<vmem>>, vector<8x16x4xf32>
    tpu.vector_store %arg18[%c0_110, %c0_111, %c20], %74 {strides = array<i32>} : memref<8x16x36xf32, #tpu.memory_space<vmem>>, vector<8x16x4xf32>,
    %c2_112 = arith.constant 2 : index
    %c0_113 = arith.constant 0 : index
    %c0_114 = arith.constant 0 : index
    %76 = vector.load %arg17[%c2_112, %c0_113, %c0_114] : memref<10x18x4xf32, #tpu.memory_space<vmem>>, vector<8x16x4xf32>
    %c0_115 = arith.constant 0 : index
    %c0_116 = arith.constant 0 : index
    %c24_117 = arith.constant 24 : index
    %77 = vector.load %arg18[%c0_115, %c0_116, %c24_117] : memref<8x16x36xf32, #tpu.memory_space<vmem>>, vector<8x16x4xf32>
    tpu.vector_store %arg18[%c0_115, %c0_116, %c24_117], %76 {strides = array<i32>} : memref<8x16x36xf32, #tpu.memory_space<vmem>>, vector<8x16x4xf32>,
    %c2_118 = arith.constant 2 : index
    %c1_119 = arith.constant 1 : index
    %c0_120 = arith.constant 0 : index
    %78 = vector.load %arg17[%c2_118, %c1_119, %c0_120] : memref<10x18x4xf32, #tpu.memory_space<vmem>>, vector<8x16x4xf32>
    %c0_121 = arith.constant 0 : index
    %c0_122 = arith.constant 0 : index
    %c28 = arith.constant 28 : index
    %79 = vector.load %arg18[%c0_121, %c0_122, %c28] : memref<8x16x36xf32, #tpu.memory_space<vmem>>, vector<8x16x4xf32>
    tpu.vector_store %arg18[%c0_121, %c0_122, %c28], %78 {strides = array<i32>} : memref<8x16x36xf32, #tpu.memory_space<vmem>>, vector<8x16x4xf32>,
    %c2_123 = arith.constant 2 : index
    %c2_124 = arith.constant 2 : index
    %c0_125 = arith.constant 0 : index
    %80 = vector.load %arg17[%c2_123, %c2_124, %c0_125] : memref<10x18x4xf32, #tpu.memory_space<vmem>>, vector<8x16x4xf32>
    %c0_126 = arith.constant 0 : index
    %c0_127 = arith.constant 0 : index
    %c32_128 = arith.constant 32 : index
    %81 = vector.load %arg18[%c0_126, %c0_127, %c32_128] : memref<8x16x36xf32, #tpu.memory_space<vmem>>, vector<8x16x4xf32>
    tpu.vector_store %arg18[%c0_126, %c0_127, %c32_128], %80 {strides = array<i32>} : memref<8x16x36xf32, #tpu.memory_space<vmem>>, vector<8x16x4xf32>,
    %c0_129 = arith.constant 0 : index
    %c0_130 = arith.constant 0 : index
    %c0_131 = arith.constant 0 : index
    %82 = vector.load %arg18[%c0_129, %c0_130, %c0_131] : memref<8x16x36xf32, #tpu.memory_space<vmem>>, vector<8x16x36xf32>
    %83 = vector.shape_cast %82 : vector<8x16x36xf32> to vector<128x36xf32>
    %c0_132 = arith.constant 0 : index
    %c0_133 = arith.constant 0 : index
    %84 = vector.load %arg10[%c0_132, %c0_133] : memref<36x4xf32, #tpu.memory_space<vmem>>, vector<36x4xf32>
    %cst_134 = arith.constant dense<0.000000e+00> : vector<128x4xf32>
    %85 = tpu.matmul %83, %84, %cst_134 {dimension_numbers = #tpu.dot_dimension_numbers<[1], [0], [0], [1], [0, 0, 1, 1], [], []>} : vector<128x36xf32>, vector<36x4xf32>, vector<128x4xf32> -> vector<128x4xf32>
    %c0_135 = arith.constant 0 : index
    %c0_136 = arith.constant 0 : index
    %86 = vector.load %arg11[%c0_135, %c0_136] : memref<1x4xf32, #tpu.memory_space<vmem>>, vector<1x4xf32>
    %87 = vector.broadcast %86 : vector<1x4xf32> to vector<128x4xf32>
    %88 = arith.addf %85, %87 : vector<128x4xf32>
    %cst_137 = arith.constant 0.000000e+00 : f32
    %89 = vector.broadcast %cst_137 : f32 to vector<128x4xf32>
    %90 = arith.maximumf %88, %89 : vector<128x4xf32>
    %c0_138 = arith.constant 0 : index
    %c0_139 = arith.constant 0 : index
    %91 = vector.load %arg12[%c0_138, %c0_139] : memref<4x8xf32, #tpu.memory_space<vmem>>, vector<4x8xf32>
    %cst_140 = arith.constant dense<0.000000e+00> : vector<128x8xf32>
    %92 = tpu.matmul %90, %91, %cst_140 {dimension_numbers = #tpu.dot_dimension_numbers<[1], [0], [0], [1], [0, 0, 1, 1], [], []>} : vector<128x4xf32>, vector<4x8xf32>, vector<128x8xf32> -> vector<128x8xf32>
    %c0_141 = arith.constant 0 : index
    %c0_142 = arith.constant 0 : index
    %93 = vector.load %arg13[%c0_141, %c0_142] : memref<1x8xf32, #tpu.memory_space<vmem>>, vector<1x8xf32>
    %94 = vector.broadcast %93 : vector<1x8xf32> to vector<128x8xf32>
    %95 = arith.addf %92, %94 : vector<128x8xf32>
    %96 = vector.extract_strided_slice %95 {offsets = [0, 0], sizes = [128, 2], strides = [1, 1]} : vector<128x8xf32> to vector<128x2xf32>
    %97 = vector.shape_cast %96 : vector<128x2xf32> to vector<128x1x2xf32>
    %98 = vector.extract_strided_slice %95 {offsets = [0, 2], sizes = [128, 2], strides = [1, 1]} : vector<128x8xf32> to vector<128x2xf32>
    %99 = vector.shape_cast %98 : vector<128x2xf32> to vector<128x1x2xf32>
    %100 = vector.extract_strided_slice %95 {offsets = [0, 4], sizes = [128, 2], strides = [1, 1]} : vector<128x8xf32> to vector<128x2xf32>
    %101 = vector.shape_cast %100 : vector<128x2xf32> to vector<128x1x2xf32>
    %102 = vector.extract_strided_slice %95 {offsets = [0, 6], sizes = [128, 2], strides = [1, 1]} : vector<128x8xf32> to vector<128x2xf32>
    %103 = vector.shape_cast %102 : vector<128x2xf32> to vector<128x1x2xf32>
    %104 = tpu.concatenate %97, %99 in 1 : vector<128x1x2xf32>, vector<128x1x2xf32> -> vector<128x2x2xf32>
    %105 = vector.shape_cast %104 : vector<128x2x2xf32> to vector<8x1x32x2xf32>
    %106 = tpu.concatenate %101, %103 in 1 : vector<128x1x2xf32>, vector<128x1x2xf32> -> vector<128x2x2xf32>
    %107 = vector.shape_cast %106 : vector<128x2x2xf32> to vector<8x1x32x2xf32>
    %108 = tpu.concatenate %105, %107 in 1 : vector<8x1x32x2xf32>, vector<8x1x32x2xf32> -> vector<8x2x32x2xf32>
    %109 = vector.shape_cast %108 : vector<8x2x32x2xf32> to vector<16x32x2xf32>
    %c0_143 = arith.constant 0 : index
    %c0_144 = arith.constant 0 : index
    %c0_145 = arith.constant 0 : index
    %c0_146 = arith.constant 0 : index
    %110 = vector.load %arg14[%c0_143, %c0_144, %c0_145, %c0_146] : memref<1x16x32x2xf32, #tpu.memory_space<vmem>>, vector<1x16x32x2xf32>
    %111 = vector.shape_cast %110 : vector<1x16x32x2xf32> to vector<16x32x2xf32>
    %112 = vector.shape_cast %109 : vector<16x32x2xf32> to vector<1x16x32x2xf32>
    tpu.vector_store %arg14[%c0_143, %c0_144, %c0_145, %c0_146], %112 {strides = array<i32>} : memref<1x16x32x2xf32, #tpu.memory_space<vmem>>, vector<1x16x32x2xf32>,
    return
  }
  func.func @transform_0(%arg0: i32, %arg1: i32) -> (i32, i32, i32, i32) {
    %c0_i32 = arith.constant 0 : i32
    %c0_i32_0 = arith.constant 0 : i32
    %c0_i32_1 = arith.constant 0 : i32
    return %arg0, %arg1, %c0_i32, %c0_i32_0 : i32, i32, i32, i32
  }
  func.func @transform_1(%arg0: i32, %arg1: i32) -> (i32, i32, i32, i32) {
    %c4_i32 = arith.constant 4 : i32
    %0 = arith.muli %arg1, %c4_i32 : i32
    %c1_i32 = arith.constant 1 : i32
    %1 = arith.subi %0, %c1_i32 : i32
    %c0_i32 = arith.constant 0 : i32
    %2 = arith.maxsi %1, %c0_i32 : i32
    %c0_i32_0 = arith.constant 0 : i32
    %c0_i32_1 = arith.constant 0 : i32
    %c0_i32_2 = arith.constant 0 : i32
    return %arg0, %2, %c0_i32_0, %c0_i32_1 : i32, i32, i32, i32
  }
  func.func @transform_2(%arg0: i32, %arg1: i32) -> (i32, i32, i32, i32) {
    %c1_i32 = arith.constant 1 : i32
    %0 = arith.addi %arg1, %c1_i32 : i32
    %c4_i32 = arith.constant 4 : i32
    %1 = arith.muli %0, %c4_i32 : i32
    %c7_i32 = arith.constant 7 : i32
    %2 = arith.minsi %1, %c7_i32 : i32
    %c0_i32 = arith.constant 0 : i32
    %c0_i32_0 = arith.constant 0 : i32
    %c0_i32_1 = arith.constant 0 : i32
    return %arg0, %2, %c0_i32, %c0_i32_0 : i32, i32, i32, i32
  }
  func.func @transform_3(%arg0: i32, %arg1: i32) -> (i32, i32, i32, i32) {
    %c0_i32 = arith.constant 0 : i32
    %c0_i32_0 = arith.constant 0 : i32
    %c0_i32_1 = arith.constant 0 : i32
    return %arg0, %arg1, %c0_i32, %c0_i32_0 : i32, i32, i32, i32
  }
  func.func @transform_4(%arg0: i32, %arg1: i32) -> (i32, i32, i32, i32) {
    %c4_i32 = arith.constant 4 : i32
    %0 = arith.muli %arg1, %c4_i32 : i32
    %c1_i32 = arith.constant 1 : i32
    %1 = arith.subi %0, %c1_i32 : i32
    %c0_i32 = arith.constant 0 : i32
    %2 = arith.maxsi %1, %c0_i32 : i32
    %c0_i32_0 = arith.constant 0 : i32
    %c0_i32_1 = arith.constant 0 : i32
    %c0_i32_2 = arith.constant 0 : i32
    return %arg0, %2, %c0_i32_0, %c0_i32_1 : i32, i32, i32, i32
  }
  func.func @transform_5(%arg0: i32, %arg1: i32) -> (i32, i32, i32, i32) {
    %c1_i32 = arith.constant 1 : i32
    %0 = arith.addi %arg1, %c1_i32 : i32
    %c4_i32 = arith.constant 4 : i32
    %1 = arith.muli %0, %c4_i32 : i32
    %c7_i32 = arith.constant 7 : i32
    %2 = arith.minsi %1, %c7_i32 : i32
    %c0_i32 = arith.constant 0 : i32
    %c0_i32_0 = arith.constant 0 : i32
    %c0_i32_1 = arith.constant 0 : i32
    return %arg0, %2, %c0_i32, %c0_i32_0 : i32, i32, i32, i32
  }
  func.func @transform_6(%arg0: i32, %arg1: i32) -> (i32, i32) {
    %c0_i32 = arith.constant 0 : i32
    %c0_i32_0 = arith.constant 0 : i32
    %c0_i32_1 = arith.constant 0 : i32
    return %c0_i32, %c0_i32_0 : i32, i32
  }
  func.func @transform_7(%arg0: i32, %arg1: i32) -> (i32, i32) {
    %c0_i32 = arith.constant 0 : i32
    %c0_i32_0 = arith.constant 0 : i32
    %c0_i32_1 = arith.constant 0 : i32
    return %c0_i32, %c0_i32_0 : i32, i32
  }
  func.func @transform_8(%arg0: i32, %arg1: i32) -> (i32, i32) {
    %c0_i32 = arith.constant 0 : i32
    %c0_i32_0 = arith.constant 0 : i32
    %c0_i32_1 = arith.constant 0 : i32
    return %c0_i32, %c0_i32_0 : i32, i32
  }
  func.func @transform_9(%arg0: i32, %arg1: i32) -> (i32, i32) {
    %c0_i32 = arith.constant 0 : i32
    %c0_i32_0 = arith.constant 0 : i32
    %c0_i32_1 = arith.constant 0 : i32
    return %c0_i32, %c0_i32_0 : i32, i32
  }
  func.func @transform_10(%arg0: i32, %arg1: i32) -> (i32, i32) {
    %c0_i32 = arith.constant 0 : i32
    %c0_i32_0 = arith.constant 0 : i32
    %c0_i32_1 = arith.constant 0 : i32
    return %c0_i32, %c0_i32_0 : i32, i32
  }
  func.func @transform_11(%arg0: i32, %arg1: i32) -> (i32, i32) {
    %c0_i32 = arith.constant 0 : i32
    %c0_i32_0 = arith.constant 0 : i32
    %c0_i32_1 = arith.constant 0 : i32
    return %c0_i32, %c0_i32_0 : i32, i32
  }
  func.func @transform_12(%arg0: i32, %arg1: i32) -> (i32, i32, i32, i32) {
    %c0_i32 = arith.constant 0 : i32
    %c0_i32_0 = arith.constant 0 : i32
    %c0_i32_1 = arith.constant 0 : i32
    return %arg0, %arg1, %c0_i32, %c0_i32_0 : i32, i32, i32, i32
  }
}

</mosaic_0001>

<bundles_post_ra>
// kernel: tile.9
= control target key start
LH: loop header
LB: loop body
LE: loop exit
PB: predicated region body
PF: predicated region fallthrough
CT: control target
= control target key end

     0   :  { %s37_s8 = smov 2   ;;  %s38_s9 = smov 4   ;;  %vm7_vm0 = vcmask 15360   ;;  %vm13_vm1 = vcmask 64560   ;;  %vm19_vm2 = vcmask 48160   ;;  %vm25_vm3 = vcmask 31760   ;;  %s55_s0 = inlined_call_operand.vmem [shape: f32[4,2], index: 0, kind: input, shape index: {}]   ;;  %s56_s1 = inlined_call_operand.vmem [shape: f32[1,8], index: 1, kind: output, shape index: {}]  }
   0x1   :  { %v4_v0 = vld [vmem:[%s55_s0] sm:$0xf]  ;;  %s36_s0 = smov 6  }
   0x2   :  { %5 = vst [vmem:[#allocation1] sm:$0xf] %v4_v0 }
   0x9   :  { %v10_v1 = vld [vmem:[#allocation1 + $0x3] sm:$0x1]   ;;  %v22_v2 = vld [vmem:[#allocation1 + $0x1] sm:$0x1]   ;;  %v16_v3 = vld [vmem:[#allocation1 + $0x2] sm:$0x1]  }
   0xa   :  { %11 = vrot.lane.b32.xlu0 %v10_v1, %s36_s0  ;;  %23 = vrot.lane.b32.xlu1 %v22_v2, %s37_s8  ;;  %v6_v4 = vld [vmem:[#allocation1] sm:$0x1]  }
   0xb   :  { %8 = vst.msk [vmem:[#allocation0] sm:$0x1] %vm7_vm0, %v6_v4  }
  0x12   :  { %17 = vrot.lane.b32.xlu0 %v16_v3, %s38_s9 }
  0x7c   :  { %v12_v5 = vpop.permute.xlu0 %11   ;;  %v24_v6 = vpop.permute.xlu1 %23  }
  0x7d   :  { %14 = vst.msk [vmem:[#allocation0] sm:$0x1] %vm13_vm1, %v12_v5  }
  0x84   :  { %v18_v7 = vpop.permute.xlu0 %17  }
  0x85   :  { %20 = vst.msk [vmem:[#allocation0] sm:$0x1] %vm19_vm2, %v18_v7  }
  0x86   :  { %26 = vst.msk [vmem:[#allocation0] sm:$0x1] %vm25_vm3, %v24_v6  }
  0x8d   :  { %v29_v8 = vld [vmem:[#allocation0] sm:$0x1] }
  0x8e   :  { %32 = vst [vmem:[%s56_s1] sm:$0x1] %v29_v8 }

// kernel: tile.8
= control target key start
LH: loop header
LB: loop body
LE: loop exit
PB: predicated region body
PF: predicated region fallthrough
CT: control target
= control target key end

     0   :  { %2 = vsyncpa [#allocation1], 0  ;;  %s48_s8 = smov [#allocation0]   ;;  %s65_s0 = inlined_call_operand.hbm [shape: f32[2], index: 0, kind: input, shape index: {}]   ;;  %s66_s1 = inlined_call_operand.vmem [shape: f32[4,2], index: 1, kind: output, shape index: {}]  }
   0x1   :  { %s8_s0 = sshll.u32 %s65_s0, 4  ;;  %s10_s9 = sshll.u32 %s48_s8, 4  ;;  %s9_s0 = int_to_ptr.hbm [resolvable:$true] %s8_s0  ;;  %s11_s9 = int_to_ptr.vmem [resolvable:$true] %s10_s9 }
   0x2   :  { %13 = dma.hbm_to_vmem [thread:$0]  %s9_s0, 16, %s11_s9, [#allocation1]  }
   0x3   :  { %46 = dma.done.wait [#allocation1], 16  }
   0x4   :  { %47 = vsyncadd [#allocation1], 4294967280  ;;  %v18_v0 = vld [vmem:[#allocation0] ss:$0 sm:$0xff] }
   0x5   :  { %19 = vst [vmem:[%s66_s1] sm:$0xf] %v18_v0 }
   0x6   :  { %20 = vsyncpa [#allocation1], 1 }

// kernel: unet_dec_block_forward.1
= control target key start
LH: loop header
LB: loop body
LE: loop exit
PB: predicated region body
PF: predicated region fallthrough
CT: control target
= control target key end

     0   :  { %s6608_s21 = smov 0   ;;  %s6610_s22 = smov 0   ;;  %s10398_s0 = inlined_call_operand.vmem [shape: f32[2,16,16,4], index: 0, kind: input, shape index: {}, may-alias: {0,1,2}]   ;;  %s10399_s1 = inlined_call_operand.vmem [shape: f32[2,16,16,4], index: 1, kind: input, shape index: {}, may-alias: {0,1,2}]   ;;  %s10400_s2 = inlined_call_operand.vmem [shape: f32[2,16,16,4], index: 2, kind: input, shape index: {}, may-alias: {0,1,2}]   ;;  %s10401_s3 = inlined_call_operand.vmem [shape: f32[2,16,16,4], index: 3, kind: input, shape index: {}, may-alias: {3,4,5}]   ;;  %s10402_s4 = inlined_call_operand.vmem [shape: f32[2,16,16,4], index: 4, kind: input, shape index: {}, may-alias: {3,4,5}]   ;;  %s10403_s5 = inlined_call_operand.vmem [shape: f32[2,16,16,4], index: 5, kind: input, shape index: {}, may-alias: {3,4,5}]   ;;  %s10404_s6 = inlined_call_operand.vmem [shape: f32[72,4], index: 6, kind: input, shape index: {}]   ;;  %s10405_s7 = inlined_call_operand.vmem [shape: f32[1,4], index: 7, kind: input, shape index: {}]   ;;  %s10406_s8 = inlined_call_operand.vmem [shape: f32[36,4], index: 8, kind: input, shape index: {}]   ;;  %s10407_s9 = inlined_call_operand.vmem [shape: f32[1,4], index: 9, kind: input, shape index: {}]   ;;  %s10408_s10 = inlined_call_operand.vmem [shape: f32[4,8], index: 10, kind: input, shape index: {}]   ;;  %s10409_s11 = inlined_call_operand.vmem [shape: f32[1,8], index: 11, kind: input, shape index: {}]   ;;  %s10410_s12 = inlined_call_operand.vmem [shape: f32[2,32,32,2], index: 12, kind: output, shape index: {}]  }
   0x1   :  { %10546 = sst [smem:[#allocation84_spill]] %s10401_s3  ;;  %s6612_s23 = smov 0  }
   0x2   :  { %10547 = sst [smem:[#allocation85_spill]] %s10407_s9  ;;  %s6614_s24 = smov 0  }
   0x3   :  { %10548 = sst [smem:[#allocation86_spill]] %s10408_s10  ;;  %s6616_s25 = smov 0  }
   0x4   :  { %10549 = sst [smem:[#allocation87_spill]] %s10409_s11 }
   0x5 LB: > { %10550 = sst [smem:[#allocation6_spill]] %s6516_s23  ;;  %s31_s26 = sadd.s32 1, %s6516_s23  ;;  %s6524_s25 = sphi %s6616_s25, %s22_s25   ;;  %s6520_s24 = sphi %s6614_s24, %s10838_s24   ;;  %s6516_s23 = sphi %s6612_s23, %s10837_s23   ;;  %s6512_s22 = sphi %s6610_s22, %s10836_s22   ;;  %s6508_s21 = sphi %s6608_s21, %s10835_s21  }
   0x6   : > { %10551 = sst [smem:[#allocation7_spill]] %s6520_s24  ;;  %s34_s27 = sadd.s32 1, %s6520_s24 }
   0x7   : > { %10552 = sst [smem:[#allocation8_spill]] %s6524_s25  ;;  %p32_p0 = scmp.ge.s32.totalorder %s31_s26, 2 }
   0x8   : > { %p6303_p1 = scmp.ge.s32.totalorder %s6524_s25, 1  ;;  %p538_p2 = scmp.lt.s32.totalorder %s6524_s25, 5 }
   0x9   : > { %s10840_s26 = smov (%p32_p0, %s31_s26), 0  ;;  %s10842_s27 = smov (!%p32_p0, %s34_s27), %s6520_s24 }
   0xa   : > { %10553 = sst [smem:[#allocation9_spill]] %s10840_s26  ;;  %p539_p3 = pnand %p6303_p1, %p538_p2 }
   0xb   : > { %p36_p4 = scmp.ge.s32.totalorder %s10842_s27, 2 }
   0xc   : > { %542 = sbr.rel (%p539_p3) target bundleno = 2931 (0xb73), region = 68 }
   0xd   : > { %s10844_s27 = smov (%p36_p4, %s10842_s27), 0 }
   0xe   : > { %10554 = sst [smem:[#allocation10_spill]] %s10844_s27 }
  0x11   : > { %s6304_s28 = sshll.u32 %s6508_s21, 3  ;;  %p657_p5 = scmp.lt.s32.totalorder %s6512_s22, 1  ;;  %vm765_vm0 = vcmask 64512   ;;  %v6527_v6 = vmov 0.0   ;;  %vm820_vm1 = vcmask 31744   ;;  %vm768_vm2 = vcmask 60416  }
  0x12   : > { %p659_p6 = scmp.lt.s32.totalorder %s6304_s28, 15  ;;  %s6308_s29 = sshll.u32 %s6508_s21, 2  ;;  %766 = vst.msk [vmem:[#allocation2] sm:$0xff] %vm765_vm0, %v6527_v6  ;;  %vm917_vm3 = vcmask 64544  }
  0x13   : > { %s10846_s22 = smov (!%p657_p5, %s6512_s22), 1  ;;  %s6309_s13 = sadd.s32 4294967295, %s6308_s29  ;;  %767 = vst.msk [vmem:[#allocation2 + $0x8] sm:$0xff] %vm765_vm0, %v6527_v6 }
  0x14   : > { %s10848_s28 = smov (!%p659_p6, %s6304_s28), 15  ;;  %s6306_s30 = sshll.u32 %s10846_s22, 5  ;;  %770 = vst.msk [vmem:[#allocation2 + $0x18] sm:$0xff] %vm765_vm0, %v6527_v6 }
  0x15   : > { %s6305_s14 = sshll.u32 %s10848_s28, 1  ;;  %p669_p7 = scmp.gt.s32.totalorder %s6309_s13, 0  ;;  %771 = vst.msk [vmem:[#allocation2 + $0x20] sm:$0xff] %vm765_vm0, %v6527_v6 }
  0x16   : > { %s6645_s15 = sadd.s32 %s6306_s30, %s6305_s14  ;;  %s6408_s16 = sadd.s32 4, %s6308_s29  ;;  %773 = vst.msk [vmem:[#allocation2 + $0x30] sm:$0xff] %vm765_vm0, %v6527_v6 }
  0x17   : > { %s10414_s17 = sshll.u32 %s6645_s15, 3  ;;  %p688_p8 = scmp.lt.s32.totalorder %s6408_s16, 7  ;;  %774 = vst.msk [vmem:[#allocation2 + $0x38] sm:$0xff] %vm765_vm0, %v6527_v6 }
  0x18   : > { %s10850_s13 = smov (!%p669_p7, %s6309_s13), 0  ;;  %s10555_s3 = sld [smem:[#allocation84_spill]]  ;;  %797 = vst.msk [vmem:[#allocation2 + $0xf0] sm:$0xff] %vm765_vm0, %v6527_v6 }
  0x19   : > { %s10852_s16 = smov (!%p688_p8, %s6408_s16), 7  ;;  %s6310_s18 = sshll.u32 %s10850_s13, 1  ;;  %798 = vst.msk [vmem:[#allocation2 + $0xf8] sm:$0xff] %vm765_vm0, %v6527_v6 }
  0x1a   : > { %p674_p9 = scmp.lt.s32.totalorder %s6310_s18, 15  ;;  %s6315_s26 = sshll.u32 %s10852_s16, 1  ;;  %800 = vst.msk [vmem:[#allocation2 + $0x108] sm:$0xff] %vm765_vm0, %v6527_v6 }
  0x1b   : > { %p693_p10 = scmp.lt.s32.totalorder %s6315_s26, 15  ;;  %s6334_s28 = sshll.u32 %s6508_s21, 4  ;;  %801 = vst.msk [vmem:[#allocation2 + $0x110] sm:$0xff] %vm765_vm0, %v6527_v6 }
  0x1c   : > { %s10854_s18 = smov (!%p674_p9, %s6310_s18), 15  ;;  %p757_p11 = scmp.lt.s32.totalorder %s6334_s28, 31  ;;  %776 = vst.msk [vmem:[#allocation2 + $0x48] sm:$0xff] %vm765_vm0, %v6527_v6 }
  0x1d   : > { %s10856_s26 = smov (!%p693_p10, %s6315_s26), 15  ;;  %s6311_s29 = sshll.u32 %s10854_s18, 1  ;;  %777 = vst.msk [vmem:[#allocation2 + $0x50] sm:$0xff] %vm765_vm0, %v6527_v6 }
  0x1e   : > { %s6653_s27 = scalar_lea.vmem %s10555_s3, %s10414_s17  ;;  %s678_s14 = sadd.s32 %s6311_s29, %s6306_s30  ;;  %779 = vst.msk [vmem:[#allocation2 + $0x60] sm:$0xff] %vm765_vm0, %v6527_v6 }
  0x1f   : > { %s6316_s13 = sshll.u32 %s10856_s26, 1  ;;  %s6313_s24 = sshll.u32 %s678_s14, 3  ;;  %v837_v0 = vld [vmem:[%s6653_s27] sm:$0xff]  ;;  %v839_v1 = vld [vmem:[%s6653_s27 + $0x10] sm:$0xff]  ;;  %v838_v3 = vld [vmem:[%s6653_s27 + $0x8] sm:$0xff]  ;;  %780 = vst.msk [vmem:[#allocation2 + $0x68] sm:$0xff] %vm765_vm0, %v6527_v6 }
  0x20   : > { %s697_s23 = sadd.s32 %s6316_s13, %s6306_s30  ;;  %s6659_s20 = scalar_lea.vmem %s10399_s1, %s6313_s24  ;;  %v841_v2 = vld [vmem:[%s6653_s27 + $0x20] sm:$0xff]  ;;  %v840_v4 = vld [vmem:[%s6653_s27 + $0x18] sm:$0xff]  ;;  %v842_v5 = vld [vmem:[%s6653_s27 + $0x28] sm:$0xff]  ;;  %782 = vst.msk [vmem:[#allocation2 + $0x78] sm:$0xff] %vm765_vm0, %v6527_v6 }
  0x21   : > { %s6318_s16 = sshll.u32 %s697_s23, 3  ;;  %s6669_s18 = scalar_lea.vmem %s10402_s4, %s6313_s24  ;;  %v843_v7 = vld [vmem:[%s6653_s27 + $0x30] sm:$0xff]  ;;  %v844_v8 = vld [vmem:[%s6653_s27 + $0x38] sm:$0xff]  ;;  %v845_v9 = vld [vmem:[%s6653_s27 + $0x40] sm:$0xff]  ;;  %783 = vst.msk [vmem:[#allocation2 + $0x80] sm:$0xff] %vm765_vm0, %v6527_v6 }
  0x22   : > { %s6664_s11 = scalar_lea.vmem %s10400_s2, %s6318_s16  ;;  %s6674_s30 = scalar_lea.vmem %s10403_s5, %s6318_s16  ;;  %v846_v10 = vld [vmem:[%s6653_s27 + $0x48] sm:$0xff]  ;;  %v847_v11 = vld [vmem:[%s6653_s27 + $0x50] sm:$0xff]  ;;  %v848_v12 = vld [vmem:[%s6653_s27 + $0x58] sm:$0xff]  ;;  %785 = vst.msk [vmem:[#allocation2 + $0x90] sm:$0xff] %vm765_vm0, %v6527_v6 }
  0x23   : > { %s6336_s25 = sshll.u32 %s10846_s22, 7  ;;  %s10858_s28 = smov (!%p757_p11, %s6334_s28), 31  ;;  %786 = vst.msk [vmem:[#allocation2 + $0x98] sm:$0xff] %vm765_vm0, %v6527_v6  ;;  %v849_v13 = vld [vmem:[%s6653_s27 + $0x60] sm:$0xff]  ;;  %v850_v14 = vld [vmem:[%s6653_s27 + $0x68] sm:$0xff]  ;;  %v851_v15 = vld [vmem:[%s6653_s27 + $0x70] sm:$0xff] }
  0x24   : > { %s6335_s3 = sshll.u32 %s10858_s28, 2  ;;  %s6526_s23 = smov 4   ;;  %788 = vst.msk [vmem:[#allocation2 + $0xa8] sm:$0xff] %vm765_vm0, %v6527_v6  ;;  %v852_v16 = vld [vmem:[%s6653_s27 + $0x78] sm:$0xff] }
  0x25   : > { %869 = vrot.lane.b32.xlu0 %v837_v0, %s6526_s23  ;;  %873 = vrot.lane.b32.xlu1 %v839_v1, %s6526_s23  ;;  %s761_s9 = sadd.s32 %s6336_s25, %s6335_s3  ;;  %p934_p12 = scmp.gt.s32.totalorder %s6508_s21, 0  ;;  %789 = vst.msk [vmem:[#allocation2 + $0xb0] sm:$0xff] %vm765_vm0, %v6527_v6 }
  0x26   : > { %877 = vrot.lane.b32.xlu2 %v841_v2, %s6526_s23  ;;  %s6337_s10 = sshll.u32 %s761_s9, 3  ;;  %791 = vst.msk [vmem:[#allocation2 + $0xc0] sm:$0xff] %vm765_vm0, %v6527_v6  ;;  %s10556_s28 = sshll.u32 %s6645_s15, 3 }
  0x27   : > { %s6686_s22 = scalar_lea.vmem %s10410_s12, %s6337_s10  ;;  %792 = vst.msk [vmem:[#allocation2 + $0xc8] sm:$0xff] %vm765_vm0, %v6527_v6  ;;  %s6768_s19 = scalar_lea.vmem %s10398_s0, %s10556_s28 }
  0x28   : > { %794 = vst.msk [vmem:[#allocation2 + $0xd8] sm:$0xff] %vm765_vm0, %v6527_v6  ;;  %v803_v17 = vld [vmem:[%s6768_s19] sm:$0xff]  ;;  %v805_v19 = vld [vmem:[%s6768_s19 + $0x10] sm:$0xff]  ;;  %v804_v20 = vld [vmem:[%s6768_s19 + $0x8] sm:$0xff]  ;;  %p6338_p13 = scmp.le.s32.totalorder %s6508_s21, 0 }
  0x29   : > { %795 = vst.msk [vmem:[#allocation2 + $0xe0] sm:$0xff] %vm765_vm0, %v6527_v6  ;;  %v807_v18 = vld [vmem:[%s6768_s19 + $0x20] sm:$0xff]  ;;  %v808_v22 = vld [vmem:[%s6768_s19 + $0x28] sm:$0xff]  ;;  %v806_v24 = vld [vmem:[%s6768_s19 + $0x18] sm:$0xff]  ;;  %s6528_s27 = smov (!%p6338_p13), 4  }
  0x2a   : > { %821 = vst.msk [vmem:[#allocation2 + $0x32] sm:$0xff] %vm820_vm1, %v803_v17  ;;  %v809_v25 = vld [vmem:[%s6768_s19 + $0x30] sm:$0xff]  ;;  %v811_v26 = vld [vmem:[%s6768_s19 + $0x40] sm:$0xff]  ;;  %v810_v27 = vld [vmem:[%s6768_s19 + $0x38] sm:$0xff] }
  0x2b   : > { %825 = vst.msk [vmem:[#allocation2 + $0x62] sm:$0xff] %vm820_vm1, %v807_v18  ;;  %v812_v28 = vld [vmem:[%s6768_s19 + $0x48] sm:$0xff]  ;;  %v814_v30 = vld [vmem:[%s6768_s19 + $0x58] sm:$0xff]  ;;  %v813_v31 = vld [vmem:[%s6768_s19 + $0x50] sm:$0xff] }
  0x2c   : > { %823 = vst.msk [vmem:[#allocation2 + $0x4a] sm:$0xff] %vm820_vm1, %v805_v19  ;;  %v815_v32 = vld [vmem:[%s6768_s19 + $0x60] sm:$0xff]  ;;  %v817_v36 = vld [vmem:[%s6768_s19 + $0x70] sm:$0xff]  ;;  %v816_v37 = vld [vmem:[%s6768_s19 + $0x68] sm:$0xff] }
  0x2d   : > { %871 = vrot.lane.b32.xlu0 %v838_v3, %s6526_s23  ;;  %875 = vrot.lane.b32.xlu1 %v840_v4, %s6526_s23  ;;  %769 = vst.msk [vmem:[#allocation2 + $0x10] sm:$0xf] %vm768_vm2, %v6527_v6  ;;  %v818_v38 = vld [vmem:[%s6768_s19 + $0x78] sm:$0xff] }
  0x2e   : > { %879 = vrot.lane.b32.xlu2 %v842_v5, %s6526_s23  ;;  %772 = vst.msk [vmem:[#allocation2 + $0x28] sm:$0xf] %vm768_vm2, %v6527_v6 }
  0x2f   : > { %775 = vst.msk [vmem:[#allocation2 + $0x40] sm:$0xf] %vm768_vm2, %v6527_v6 }
  0x30   : > { %799 = vst.msk [vmem:[#allocation2 + $0x100] sm:$0xf] %vm768_vm2, %v6527_v6 }
  0x31   : > { %802 = vst.msk [vmem:[#allocation2 + $0x118] sm:$0xf] %vm768_vm2, %v6527_v6 }
  0x32   : > { %822 = vst.msk [vmem:[#allocation2 + $0x3a] sm:$0xff] %vm820_vm1, %v804_v20 }
  0x33   : > { %778 = vst.msk [vmem:[#allocation2 + $0x58] sm:$0xf] %vm768_vm2, %v6527_v6 }
  0x34   : > { %781 = vst.msk [vmem:[#allocation2 + $0x70] sm:$0xf] %vm768_vm2, %v6527_v6 }
  0x35   : > { %881 = vrot.lane.b32.xlu0 %v843_v7, %s6526_s23  ;;  %883 = vrot.lane.b32.xlu1 %v844_v8, %s6526_s23  ;;  %784 = vst.msk [vmem:[#allocation2 + $0x88] sm:$0xf] %vm768_vm2, %v6527_v6 }
  0x36   : > { %885 = vrot.lane.b32.xlu2 %v845_v9, %s6526_s23  ;;  %787 = vst.msk [vmem:[#allocation2 + $0xa0] sm:$0xf] %vm768_vm2, %v6527_v6 }
  0x37   : > { %790 = vst.msk [vmem:[#allocation2 + $0xb8] sm:$0xf] %vm768_vm2, %v6527_v6 }
  0x38   : > { %793 = vst.msk [vmem:[#allocation2 + $0xd0] sm:$0xf] %vm768_vm2, %v6527_v6 }
  0x39   : > { %796 = vst.msk [vmem:[#allocation2 + $0xe8] sm:$0xf] %vm768_vm2, %v6527_v6 }
  0x3a   : > { %826 = vst.msk [vmem:[#allocation2 + $0x6a] sm:$0xff] %vm820_vm1, %v808_v22 }
  0x3b   : > { %824 = vst.msk [vmem:[#allocation2 + $0x52] sm:$0xff] %vm820_vm1, %v806_v24 }
  0x3c   : > { %827 = vst.msk [vmem:[#allocation2 + $0x7a] sm:$0xff] %vm820_vm1, %v809_v25 }
  0x3d   : > { %887 = vrot.lane.b32.xlu0 %v846_v10, %s6526_s23  ;;  %889 = vrot.lane.b32.xlu1 %v847_v11, %s6526_s23  ;;  %829 = vst.msk [vmem:[#allocation2 + $0x92] sm:$0xff] %vm820_vm1, %v811_v26 }
  0x3e   : > { %891 = vrot.lane.b32.xlu2 %v848_v12, %s6526_s23  ;;  %828 = vst.msk [vmem:[#allocation2 + $0x82] sm:$0xff] %vm820_vm1, %v810_v27 }
  0x3f   : > { %830 = vst.msk [vmem:[#allocation2 + $0x9a] sm:$0xff] %vm820_vm1, %v812_v28 }
  0x40   : > { %832 = vst.msk [vmem:[#allocation2 + $0xb2] sm:$0xff] %vm820_vm1, %v814_v30 }
  0x41   : > { %831 = vst.msk [vmem:[#allocation2 + $0xaa] sm:$0xff] %vm820_vm1, %v813_v31 }
  0x42   : > { %833 = vst.msk [vmem:[#allocation2 + $0xc2] sm:$0xff] %vm820_vm1, %v815_v32 }
  0x43   : > { %835 = vst.msk [vmem:[#allocation2 + $0xda] sm:$0xff] %vm820_vm1, %v817_v36 }
  0x44   : > { %834 = vst.msk [vmem:[#allocation2 + $0xca] sm:$0xff] %vm820_vm1, %v816_v37 }
  0x45   : > { %893 = vrot.lane.b32.xlu0 %v849_v13, %s6526_s23  ;;  %895 = vrot.lane.b32.xlu1 %v850_v14, %s6526_s23  ;;  %836 = vst.msk [vmem:[#allocation2 + $0xe2] sm:$0xff] %vm820_vm1, %v818_v38 }
  0x46   : > { %897 = vrot.lane.b32.xlu2 %v851_v15, %s6526_s23 }
  0x4d   : > { %899 = vrot.lane.b32.xlu0 %v852_v16, %s6526_s23 }
  0x80   : > { %v878_v21 = vpop.permute.xlu2 %877 }
  0x81   : > { %922 = vst.msk [vmem:[#allocation2 + $0x62] sm:$0xff] %vm917_vm3, %v878_v21 }
  0x88   : > { %v880_v23 = vpop.permute.xlu2 %879 }
  0x89   : > { %923 = vst.msk [vmem:[#allocation2 + $0x6a] sm:$0xff] %vm917_vm3, %v880_v23 }
  0x90   : > { %v886_v29 = vpop.permute.xlu2 %885 }
  0x91   : > { %926 = vst.msk [vmem:[#allocation2 + $0x92] sm:$0xff] %vm917_vm3, %v886_v29 }
  0x97   : > { %v870_v33 = vpop.permute.xlu0 %869  ;;  %v874_v34 = vpop.permute.xlu1 %873 }
  0x98   : > { %918 = vst.msk [vmem:[#allocation2 + $0x32] sm:$0xff] %vm917_vm3, %v870_v33  ;;  %v892_v35 = vpop.permute.xlu2 %891 }
  0x99   : > { %920 = vst.msk [vmem:[#allocation2 + $0x4a] sm:$0xff] %vm917_vm3, %v874_v34 }
  0x9a   : > { %929 = vst.msk [vmem:[#allocation2 + $0xb2] sm:$0xff] %vm917_vm3, %v892_v35 }
  0x9f   : > { %v872_v39 = vpop.permute.xlu0 %871  ;;  %v876_v40 = vpop.permute.xlu1 %875 }
  0xa0   : > { %919 = vst.msk [vmem:[#allocation2 + $0x3a] sm:$0xff] %vm917_vm3, %v872_v39  ;;  %v898_v41 = vpop.permute.xlu2 %897 }
  0xa1   : > { %921 = vst.msk [vmem:[#allocation2 + $0x52] sm:$0xff] %vm917_vm3, %v876_v40 }
  0xa2   : > { %932 = vst.msk [vmem:[#allocation2 + $0xda] sm:$0xff] %vm917_vm3, %v898_v41 }
  0xa7   : > { %v882_v42 = vpop.permute.xlu0 %881  ;;  %v884_v43 = vpop.permute.xlu1 %883 }
  0xa8   : > { %924 = vst.msk [vmem:[#allocation2 + $0x7a] sm:$0xff] %vm917_vm3, %v882_v42 }
  0xa9   : > { %925 = vst.msk [vmem:[#allocation2 + $0x82] sm:$0xff] %vm917_vm3, %v884_v43 }
  0xaf   : > { %v888_v44 = vpop.permute.xlu0 %887  ;;  %v890_v45 = vpop.permute.xlu1 %889 }
  0xb0   : > { %927 = vst.msk [vmem:[#allocation2 + $0x9a] sm:$0xff] %vm917_vm3, %v888_v44 }
  0xb1   : > { %928 = vst.msk [vmem:[#allocation2 + $0xaa] sm:$0xff] %vm917_vm3, %v890_v45 }
  0xb7   : > { %v894_v46 = vpop.permute.xlu0 %893  ;;  %v896_v47 = vpop.permute.xlu1 %895 }
  0xb8   : > { %930 = vst.msk [vmem:[#allocation2 + $0xc2] sm:$0xff] %vm917_vm3, %v894_v46 }
  0xb9   : > { %931 = vst.msk [vmem:[#allocation2 + $0xca] sm:$0xff] %vm917_vm3, %v896_v47 }
  0xbc   : > { %937 = sbr.rel (%p6338_p13) target bundleno = 319 (0x13f), region = 72 }
  0xbf   : > { %v900_v48 = vpop.permute.xlu0 %899 }
  0xc0   : > { %933 = vst.msk [vmem:[#allocation2 + $0xe2] sm:$0xff] %vm917_vm3, %v900_v48 }
  0xc1   : > { %v948_v49 = vld [vmem:[%s6669_s18 + $0x10] sm:$0xff]  ;;  %v946_v50 = vld [vmem:[%s6669_s18] sm:$0xff]  ;;  %v949_v51 = vld [vmem:[%s6669_s18 + $0x18] sm:$0xff] }
  0xc2   : > { %958 = vrot.lane.b32.xlu1 %v948_v49, %s6528_s27  ;;  %954 = vrot.lane.b32.xlu0 %v946_v50, %s6528_s27  ;;  %v947_v52 = vld [vmem:[%s6669_s18 + $0x8] sm:$0xff]  ;;  %v940_v53 = vld [vmem:[%s6659_s20 + $0x10] sm:$0xff] }
  0xc3   : > { %v938_v54 = vld [vmem:[%s6659_s20] sm:$0xff]  ;;  %944 = vst.msk [vmem:[#allocation2 + $0x1a] sm:$0xff] %vm820_vm1, %v940_v53  ;;  %v941_v55 = vld [vmem:[%s6659_s20 + $0x18] sm:$0xff]  ;;  %v939_v56 = vld [vmem:[%s6659_s20 + $0x8] sm:$0xff] }
  0xc4   : > { %942 = vst.msk [vmem:[#allocation2 + $0x2] sm:$0xff] %vm820_vm1, %v938_v54 }
  0xc5   : > { %945 = vst.msk [vmem:[#allocation2 + $0x22] sm:$0xff] %vm820_vm1, %v941_v55 }
  0xc6   : > { %943 = vst.msk [vmem:[#allocation2 + $0xa] sm:$0xff] %vm820_vm1, %v939_v56 }
  0xca   : > { %960 = vrot.lane.b32.xlu1 %v949_v51, %s6528_s27  ;;  %956 = vrot.lane.b32.xlu0 %v947_v52, %s6528_s27 }
 0x134   : > { %v959_v57 = vpop.permute.xlu1 %958  ;;  %v955_v58 = vpop.permute.xlu0 %954 }
 0x135   : > { %968 = vst.msk [vmem:[#allocation2 + $0x1a] sm:$0xff] %vm917_vm3, %v959_v57 }
 0x136   : > { %966 = vst.msk [vmem:[#allocation2 + $0x2] sm:$0xff] %vm917_vm3, %v955_v58 }
 0x13c   : > { %v961_v59 = vpop.permute.xlu1 %960  ;;  %v957_v60 = vpop.permute.xlu0 %956 }
 0x13d   : > { %969 = vst.msk [vmem:[#allocation2 + $0x22] sm:$0xff] %vm917_vm3, %v961_v59 }
 0x13e   : > { %967 = vst.msk [vmem:[#allocation2 + $0xa] sm:$0xff] %vm917_vm3, %v957_v60 }
 0x13f PF: > { %p970_p0 = scmp.lt.s32.totalorder %s6508_s21, 1  ;;  %p6339_p1 = scmp.ge.s32.totalorder %s6508_s21, 1 }
 0x140   : > { %s6529_s15 = smov (!%p6339_p1), 4  }
 0x141   : > { %973 = sbr.rel (%p6339_p1) target bundleno = 452 (0x1c4), region = 76 }
 0x146   : > { %v985_v61 = vld [vmem:[%s6674_s30 + $0x10] sm:$0xff]  ;;  %v983_v62 = vld [vmem:[%s6674_s30] sm:$0xff]  ;;  %v986_v63 = vld [vmem:[%s6674_s30 + $0x18] sm:$0xff] }
 0x147   : > { %995 = vrot.lane.b32.xlu1 %v985_v61, %s6529_s15  ;;  %991 = vrot.lane.b32.xlu0 %v983_v62, %s6529_s15  ;;  %v984_v0 = vld [vmem:[%s6674_s30 + $0x8] sm:$0xff]  ;;  %v976_v1 = vld [vmem:[%s6664_s11 + $0x10] sm:$0xff] }
 0x148   : > { %v974_v2 = vld [vmem:[%s6664_s11] sm:$0xff]  ;;  %981 = vst.msk [vmem:[#allocation2 + $0x10a] sm:$0xff] %vm820_vm1, %v976_v1  ;;  %v977_v3 = vld [vmem:[%s6664_s11 + $0x18] sm:$0xff]  ;;  %v975_v4 = vld [vmem:[%s6664_s11 + $0x8] sm:$0xff] }
 0x149   : > { %979 = vst.msk [vmem:[#allocation2 + $0xf2] sm:$0xff] %vm820_vm1, %v974_v2 }
 0x14a   : > { %982 = vst.msk [vmem:[#allocation2 + $0x112] sm:$0xff] %vm820_vm1, %v977_v3 }
 0x14b   : > { %980 = vst.msk [vmem:[#allocation2 + $0xfa] sm:$0xff] %vm820_vm1, %v975_v4 }
 0x14f   : > { %997 = vrot.lane.b32.xlu1 %v986_v63, %s6529_s15  ;;  %993 = vrot.lane.b32.xlu0 %v984_v0, %s6529_s15 }
 0x1b9   : > { %v996_v5 = vpop.permute.xlu1 %995  ;;  %v992_v6 = vpop.permute.xlu0 %991 }
 0x1ba   : > { %1005 = vst.msk [vmem:[#allocation2 + $0x10a] sm:$0xff] %vm917_vm3, %v996_v5 }
 0x1bb   : > { %1003 = vst.msk [vmem:[#allocation2 + $0xf2] sm:$0xff] %vm917_vm3, %v992_v6 }
 0x1c1   : > { %v998_v7 = vpop.permute.xlu1 %997  ;;  %v994_v8 = vpop.permute.xlu0 %993 }
 0x1c2   : > { %1006 = vst.msk [vmem:[#allocation2 + $0x112] sm:$0xff] %vm917_vm3, %v998_v7 }
 0x1c3   : > { %1004 = vst.msk [vmem:[#allocation2 + $0xfa] sm:$0xff] %vm917_vm3, %v994_v8 }
 0x1c4 PF: > { %v1068_v9 = vld [vmem:[#allocation2 + $0x1] sm:$0xff]  ;;  %v1070_v10 = vld [vmem:[#allocation2 + $0x11] sm:$0x3]  ;;  %s6530_s11 = smov 8   ;;  %v1069_v12 = vld [vmem:[#allocation2 + $0x9] sm:$0xff]  ;;  %s6531_s20 = smov 16  }
 0x1c5   : > { %1128 = vrot.lane.b32.xlu0 %v1068_v9, %s6530_s11  ;;  %1132 = vrot.lane.b32.xlu1 %v1070_v10, %s6530_s11  ;;  %v6879_v11 = vld [vmem:[#allocation2 + $0x21] sm:$0xff]  ;;  %v6883_v13 = vld [vmem:[#allocation2 + $0x19] sm:$0xff]  ;;  %v1073_v14 = vld [vmem:[#allocation2 + $0x29] sm:$0x3]  ;;  %vm1039_vm4 = vcmask 58368   ;;  %vm1218_vm5 = vcmask 130112  }
 0x1c6   : > { %1136 = vrot.lane.b32.xlu2 %v6879_v11, %s6530_s11  ;;  %v6889_v15 = vld [vmem:[#allocation2 + $0x31] sm:$0xff]  ;;  %v6891_v16 = vld [vmem:[#allocation2 + $0x39] sm:$0xff]  ;;  %v1076_v17 = vld [vmem:[#allocation2 + $0x41] sm:$0x3]  ;;  %vm1221_vm6 = vcmask 123968   ;;  %s6532_s16 = smov 24  }
 0x1c7   : > { %v6898_v18 = vld [vmem:[#allocation2 + $0x49] sm:$0xff]  ;;  %v6900_v19 = vld [vmem:[#allocation2 + $0x51] sm:$0xff]  ;;  %v1079_v20 = vld [vmem:[#allocation2 + $0x59] sm:$0x3]  ;;  %vm1403_vm7 = vcmask 189568   ;;  %vm1400_vm8 = vcmask 195712  }
 0x1c8   : > { %v6907_v21 = vld [vmem:[#allocation2 + $0x61] sm:$0xff]  ;;  %v6909_v22 = vld [vmem:[#allocation2 + $0x69] sm:$0xff]  ;;  %v1082_v23 = vld [vmem:[#allocation2 + $0x71] sm:$0x3]  ;;  %s6533_s18 = smov 32   ;;  %vm1586_vm9 = vcmask 255168  }
 0x1c9   : > { %v6916_v24 = vld [vmem:[#allocation2 + $0x79] sm:$0xff]  ;;  %v6918_v25 = vld [vmem:[#allocation2 + $0x81] sm:$0xff]  ;;  %v1085_v26 = vld [vmem:[#allocation2 + $0x89] sm:$0x3]  ;;  %vm1583_vm10 = vcmask 261312   ;;  %s6534_s26 = smov 40  }
 0x1ca   : > { %v6925_v27 = vld [vmem:[#allocation2 + $0x91] sm:$0xff]  ;;  %v6927_v28 = vld [vmem:[#allocation2 + $0x99] sm:$0xff]  ;;  %v1088_v29 = vld [vmem:[#allocation2 + $0xa1] sm:$0x3]  ;;  %vm1768_vm11 = vcmask 320768   ;;  %vm1765_vm12 = vcmask 326912  }
 0x1cb   : > { %v6934_v30 = vld [vmem:[#allocation2 + $0xa9] sm:$0xff]  ;;  %v6936_v31 = vld [vmem:[#allocation2 + $0xb1] sm:$0xff]  ;;  %v1091_v32 = vld [vmem:[#allocation2 + $0xb9] sm:$0x3]  ;;  %s6535_s29 = smov 48   ;;  %vm1950_vm13 = vcmask 386368  }
 0x1cc   : > { %v6943_v33 = vld [vmem:[#allocation2 + $0xc1] sm:$0xff]  ;;  %v6945_v34 = vld [vmem:[#allocation2 + $0xc9] sm:$0xff]  ;;  %v1094_v35 = vld [vmem:[#allocation2 + $0xd1] sm:$0x3]  ;;  %vm1947_vm14 = vcmask 392512   ;;  %s6536_s30 = smov 56  }
 0x1cd   : > { %1130 = vrot.lane.b32.xlu0 %v1069_v12, %s6530_s11  ;;  %1134 = vrot.lane.b32.xlu1 %v6883_v13, %s6530_s11  ;;  %v6952_v36 = vld [vmem:[#allocation2 + $0xd9] sm:$0xff]  ;;  %v6954_v37 = vld [vmem:[#allocation2 + $0xe1] sm:$0xff]  ;;  %v1097_v38 = vld [vmem:[#allocation2 + $0xe9] sm:$0x3]  ;;  %vm2132_vm15 = vcmask 451968   ;;  %s6537_s25 = smov 64  }
 0x1ce   : > { %1138 = vrot.lane.b32.xlu2 %v1073_v14, %s6530_s11  ;;  %v1250_v39 = vld [vmem:[#allocation2 + $0x2] sm:$0xff]  ;;  %v1251_v40 = vld [vmem:[#allocation2 + $0xa] sm:$0xff]  ;;  %v1252_v42 = vld [vmem:[#allocation2 + $0x12] sm:$0x3]  ;;  %vm2314_vm2 = vcmask 517568   ;;  %s6538_s21 = smov 12  }
 0x1cf   : > { %v1007_v41 = vld [vmem:[#allocation2] sm:$0xff]  ;;  %v1009_v43 = vld [vmem:[#allocation2 + $0x10] sm:$0x3]  ;;  %v1008_v46 = vld [vmem:[#allocation2 + $0x8] sm:$0xff]  ;;  %s3037_s28 = scalar_select %p934_p12, 1, 0 }
 0x1d0   : > { %1037 = vst.msk [vmem:[#allocation3] sm:$0xff] %vm765_vm0, %v1007_v41  ;;  %v6965_v44 = vld [vmem:[#allocation2 + $0x1a] sm:$0xff]  ;;  %v6967_v45 = vld [vmem:[#allocation2 + $0x22] sm:$0xff]  ;;  %v1255_v47 = vld [vmem:[#allocation2 + $0x2a] sm:$0x3]  ;;  %s10561_s10 = sld [smem:[#allocation86_spill]] }
 0x1d1   : > { %1040 = vst.msk [vmem:[#allocation3 + $0x10] sm:$0x3] %vm1039_vm4, %v1009_v43  ;;  %v6975_v48 = vld [vmem:[#allocation2 + $0x18] sm:$0xff]  ;;  %v6988_v52 = vld [vmem:[#allocation2 + $0x20] sm:$0xff]  ;;  %v6992_v53 = vld [vmem:[#allocation2 + $0x30] sm:$0xff]  ;;  %s10562_s17 = sld [smem:[#allocation85_spill]] }
 0x1d2   : > { %1038 = vst.msk [vmem:[#allocation3 + $0x8] sm:$0xff] %vm765_vm0, %v1008_v46  ;;  %v6980_v49 = vld [vmem:[#allocation2 + $0x32] sm:$0xff]  ;;  %v6982_v50 = vld [vmem:[#allocation2 + $0x3a] sm:$0xff]  ;;  %v1258_v54 = vld [vmem:[#allocation2 + $0x42] sm:$0x3] }
 0x1d3   : > { %1041 = vst.msk [vmem:[#allocation3 + $0x18] sm:$0xff] %vm765_vm0, %v6975_v48  ;;  %v6997_v55 = vld [vmem:[#allocation2 + $0x38] sm:$0xff]  ;;  %v7002_v56 = vld [vmem:[#allocation2 + $0x4a] sm:$0xff]  ;;  %v1012_v59 = vld [vmem:[#allocation2 + $0x28] sm:$0x3] }
 0x1d4   : > { %1042 = vst.msk [vmem:[#allocation3 + $0x20] sm:$0xff] %vm765_vm0, %v6988_v52  ;;  %v7004_v57 = vld [vmem:[#allocation2 + $0x52] sm:$0xff]  ;;  %v7011_v60 = vld [vmem:[#allocation2 + $0x48] sm:$0xff]  ;;  %v1261_v61 = vld [vmem:[#allocation2 + $0x5a] sm:$0x3] }
 0x1d5   : > { %1140 = vrot.lane.b32.xlu0 %v6889_v15, %s6530_s11  ;;  %1142 = vrot.lane.b32.xlu1 %v6891_v16, %s6530_s11  ;;  %1044 = vst.msk [vmem:[#allocation3 + $0x30] sm:$0xff] %vm765_vm0, %v6992_v53  ;;  %v7016_v62 = vld [vmem:[#allocation2 + $0x50] sm:$0xff]  ;;  %v7021_v63 = vld [vmem:[#allocation2 + $0x62] sm:$0xff]  ;;  %v1015_v2 = vld [vmem:[#allocation2 + $0x40] sm:$0x3] }
 0x1d6   : > { %1144 = vrot.lane.b32.xlu2 %v1076_v17, %s6530_s11  ;;  %1045 = vst.msk [vmem:[#allocation3 + $0x38] sm:$0xff] %vm765_vm0, %v6997_v55  ;;  %v7023_v0 = vld [vmem:[#allocation2 + $0x6a] sm:$0xff]  ;;  %v7031_v5 = vld [vmem:[#allocation2 + $0x60] sm:$0xff]  ;;  %v1264_v6 = vld [vmem:[#allocation2 + $0x72] sm:$0x3] }
 0x1d7   : > { %1043 = vst.msk [vmem:[#allocation3 + $0x28] sm:$0x3] %vm1039_vm4, %v1012_v59  ;;  %v7034_v7 = vld [vmem:[#allocation2 + $0x68] sm:$0xff]  ;;  %v7038_v8 = vld [vmem:[#allocation2 + $0x7a] sm:$0xff]  ;;  %v1018_v12 = vld [vmem:[#allocation2 + $0x58] sm:$0x3] }
 0x1d8   : > { %1047 = vst.msk [vmem:[#allocation3 + $0x48] sm:$0xff] %vm765_vm0, %v7011_v60  ;;  %v7040_v9 = vld [vmem:[#allocation2 + $0x82] sm:$0xff]  ;;  %v7073_v41 = vld [vmem:[#allocation2 + $0x90] sm:$0xff]  ;;  %v7076_v43 = vld [vmem:[#allocation2 + $0x98] sm:$0xff]  ;;  %s3046_s14 = scalar_select %p970_p0, 1, 0 }
 0x1d9   : > { %1048 = vst.msk [vmem:[#allocation3 + $0x50] sm:$0xff] %vm765_vm0, %v7016_v62  ;;  %v7080_v46 = vld [vmem:[#allocation2 + $0xaa] sm:$0xff] }
 0x1da   : > { %1046 = vst.msk [vmem:[#allocation3 + $0x40] sm:$0x3] %vm1039_vm4, %v1015_v2  ;;  %v7097_v2 = vld [vmem:[#allocation2 + $0xb0] sm:$0xff] }
 0x1db   : > { %1050 = vst.msk [vmem:[#allocation3 + $0x60] sm:$0xff] %vm765_vm0, %v7031_v5 }
 0x1dc   : > { %1051 = vst.msk [vmem:[#allocation3 + $0x68] sm:$0xff] %vm765_vm0, %v7034_v7 }
 0x1dd   : > { %1146 = vrot.lane.b32.xlu0 %v6898_v18, %s6530_s11  ;;  %1148 = vrot.lane.b32.xlu1 %v6900_v19, %s6530_s11  ;;  %1049 = vst.msk [vmem:[#allocation3 + $0x58] sm:$0x3] %vm1039_vm4, %v1018_v12 }
 0x1de   : > { %1150 = vrot.lane.b32.xlu2 %v1079_v20, %s6530_s11  ;;  %v7052_v20 = vld [vmem:[#allocation2 + $0x78] sm:$0xff]  ;;  %1056 = vst.msk [vmem:[#allocation3 + $0x90] sm:$0xff] %vm765_vm0, %v7073_v41 }
 0x1df   : > { %1053 = vst.msk [vmem:[#allocation3 + $0x78] sm:$0xff] %vm765_vm0, %v7052_v20 }
 0x1e0   : > { %1057 = vst.msk [vmem:[#allocation3 + $0x98] sm:$0xff] %vm765_vm0, %v7076_v43 }
 0x1e1   : > { %1060 = vst.msk [vmem:[#allocation3 + $0xb0] sm:$0xff] %vm765_vm0, %v7097_v2 }
 0x1e5   : > { %1152 = vrot.lane.b32.xlu0 %v6907_v21, %s6530_s11  ;;  %1154 = vrot.lane.b32.xlu1 %v6909_v22, %s6530_s11 }
 0x1e6   : > { %1156 = vrot.lane.b32.xlu2 %v1082_v23, %s6530_s11  ;;  %v1267_v23 = vld [vmem:[#allocation2 + $0x8a] sm:$0x3] }
 0x1ed   : > { %1158 = vrot.lane.b32.xlu0 %v6916_v24, %s6530_s11  ;;  %1160 = vrot.lane.b32.xlu1 %v6918_v25, %s6530_s11 }
 0x1ee   : > { %1162 = vrot.lane.b32.xlu2 %v1085_v26, %s6530_s11  ;;  %v7055_v26 = vld [vmem:[#allocation2 + $0x80] sm:$0xff] }
 0x1ef   : > { %1054 = vst.msk [vmem:[#allocation3 + $0x80] sm:$0xff] %vm765_vm0, %v7055_v26 }
 0x1f5   : > { %1164 = vrot.lane.b32.xlu0 %v6925_v27, %s6530_s11  ;;  %1166 = vrot.lane.b32.xlu1 %v6927_v28, %s6530_s11 }
 0x1f6   : > { %1168 = vrot.lane.b32.xlu2 %v1088_v29, %s6530_s11  ;;  %v7059_v29 = vld [vmem:[#allocation2 + $0x92] sm:$0xff] }
 0x1fd   : > { %1170 = vrot.lane.b32.xlu0 %v6934_v30, %s6530_s11  ;;  %1172 = vrot.lane.b32.xlu1 %v6936_v31, %s6530_s11 }
 0x1fe   : > { %1174 = vrot.lane.b32.xlu2 %v1091_v32, %s6530_s11  ;;  %v7061_v32 = vld [vmem:[#allocation2 + $0x9a] sm:$0xff] }
 0x205   : > { %1176 = vrot.lane.b32.xlu0 %v6943_v33, %s6530_s11  ;;  %1178 = vrot.lane.b32.xlu1 %v6945_v34, %s6530_s11 }
 0x206   : > { %1180 = vrot.lane.b32.xlu2 %v1094_v35, %s6530_s11 }
 0x20d   : > { %1182 = vrot.lane.b32.xlu0 %v6952_v36, %s6530_s11  ;;  %1184 = vrot.lane.b32.xlu1 %v6954_v37, %s6530_s11 }
 0x20e   : > { %1186 = vrot.lane.b32.xlu2 %v1097_v38, %s6530_s11  ;;  %v1021_v38 = vld [vmem:[#allocation2 + $0x70] sm:$0x3] }
 0x20f   : > { %1052 = vst.msk [vmem:[#allocation3 + $0x70] sm:$0x3] %vm1039_vm4, %v1021_v38  ;;  %v7122_v38 = vld [vmem:[#allocation2 + $0xda] sm:$0xff] }
 0x215   : > { %1310 = vrot.lane.b32.xlu0 %v1250_v39, %s6531_s20  ;;  %1312 = vrot.lane.b32.xlu1 %v1251_v40, %s6531_s20 }
 0x216   : > { %1314 = vrot.lane.b32.xlu2 %v1252_v42, %s6531_s20  ;;  %v1270_v42 = vld [vmem:[#allocation2 + $0xa2] sm:$0x3] }
 0x21d   : > { %1316 = vrot.lane.b32.xlu0 %v6965_v44, %s6531_s20  ;;  %1318 = vrot.lane.b32.xlu1 %v6967_v45, %s6531_s20 }
 0x21e   : > { %1320 = vrot.lane.b32.xlu2 %v1255_v47, %s6531_s20  ;;  %v7082_v47 = vld [vmem:[#allocation2 + $0xb2] sm:$0xff] }
 0x220   : > { %v1137_v51 = vpop.permute.xlu2 %1136 }
 0x221   : > { %1224 = vst.msk [vmem:[#allocation3 + $0x20] sm:$0xff] %vm1218_vm5, %v1137_v51 }
 0x225   : > { %1322 = vrot.lane.b32.xlu0 %v6980_v49, %s6531_s20  ;;  %1324 = vrot.lane.b32.xlu1 %v6982_v50, %s6531_s20 }
 0x226   : > { %1326 = vrot.lane.b32.xlu2 %v1258_v54, %s6531_s20  ;;  %v1024_v54 = vld [vmem:[#allocation2 + $0x88] sm:$0x3] }
 0x227   : > { %1055 = vst.msk [vmem:[#allocation3 + $0x88] sm:$0x3] %vm1039_vm4, %v1024_v54 }
 0x228   : > { %v1139_v58 = vpop.permute.xlu2 %1138 }
 0x229   : > { %1225 = vst.msk [vmem:[#allocation3 + $0x28] sm:$0x3] %vm1221_vm6, %v1139_v58 }
 0x22d   : > { %1328 = vrot.lane.b32.xlu0 %v7002_v56, %s6531_s20  ;;  %1330 = vrot.lane.b32.xlu1 %v7004_v57, %s6531_s20 }
 0x22e   : > { %1332 = vrot.lane.b32.xlu2 %v1261_v61, %s6531_s20  ;;  %v7094_v61 = vld [vmem:[#allocation2 + $0xa8] sm:$0xff] }
 0x22f   : > { %1059 = vst.msk [vmem:[#allocation3 + $0xa8] sm:$0xff] %vm765_vm0, %v7094_v61 }
 0x230   : > { %v1145_v1 = vpop.permute.xlu2 %1144 }
 0x231   : > { %1228 = vst.msk [vmem:[#allocation3 + $0x40] sm:$0x3] %vm1221_vm6, %v1145_v1  ;;  %v1273_v1 = vld [vmem:[#allocation2 + $0xba] sm:$0x3] }
 0x235   : > { %1334 = vrot.lane.b32.xlu0 %v7021_v63, %s6531_s20  ;;  %1336 = vrot.lane.b32.xlu1 %v7023_v0, %s6531_s20 }
 0x236   : > { %1338 = vrot.lane.b32.xlu2 %v1264_v6, %s6531_s20 }
 0x237   : > { %v1129_v3 = vpop.permute.xlu0 %1128  ;;  %v1133_v4 = vpop.permute.xlu1 %1132 }
 0x238   : > { %1219 = vst.msk [vmem:[#allocation3] sm:$0xff] %vm1218_vm5, %v1129_v3  ;;  %v1151_v10 = vpop.permute.xlu2 %1150  ;;  %v7101_v3 = vld [vmem:[#allocation2 + $0xc2] sm:$0xff] }
 0x239   : > { %1222 = vst.msk [vmem:[#allocation3 + $0x10] sm:$0x3] %vm1221_vm6, %v1133_v4  ;;  %v7103_v4 = vld [vmem:[#allocation2 + $0xca] sm:$0xff] }
 0x23a   : > { %1231 = vst.msk [vmem:[#allocation3 + $0x58] sm:$0x3] %vm1221_vm6, %v1151_v10  ;;  %v1027_v10 = vld [vmem:[#allocation2 + $0xa0] sm:$0x3] }
 0x23b   : > { %1058 = vst.msk [vmem:[#allocation3 + $0xa0] sm:$0x3] %vm1039_vm4, %v1027_v10  ;;  %v1033_v10 = vld [vmem:[#allocation2 + $0xd0] sm:$0x3] }
 0x23c   : > { %1064 = vst.msk [vmem:[#allocation3 + $0xd0] sm:$0x3] %vm1039_vm4, %v1033_v10  ;;  %v1441_v10 = vld [vmem:[#allocation2 + $0x58] sm:$0x3] }
 0x23d   : > { %1340 = vrot.lane.b32.xlu0 %v7038_v8, %s6531_s20  ;;  %1342 = vrot.lane.b32.xlu1 %v7040_v9, %s6531_s20 }
 0x23e   : > { %1344 = vrot.lane.b32.xlu2 %v1267_v23, %s6531_s20  ;;  %v1276_v23 = vld [vmem:[#allocation2 + $0xd2] sm:$0x3] }
 0x23f   : > { %v1131_v14 = vpop.permute.xlu0 %1130  ;;  %v1135_v17 = vpop.permute.xlu1 %1134 }
 0x240   : > { %1220 = vst.msk [vmem:[#allocation3 + $0x8] sm:$0xff] %vm1218_vm5, %v1131_v14  ;;  %v1157_v35 = vpop.permute.xlu2 %1156 }
 0x241   : > { %1223 = vst.msk [vmem:[#allocation3 + $0x18] sm:$0xff] %vm1218_vm5, %v1135_v17  ;;  %v7115_v17 = vld [vmem:[#allocation2 + $0xc0] sm:$0xff] }
 0x242   : > { %1234 = vst.msk [vmem:[#allocation3 + $0x70] sm:$0x3] %vm1221_vm6, %v1157_v35  ;;  %v7118_v35 = vld [vmem:[#allocation2 + $0xc8] sm:$0xff] }
 0x243   : > { %1062 = vst.msk [vmem:[#allocation3 + $0xc0] sm:$0xff] %vm765_vm0, %v7115_v17 }
 0x244   : > { %1063 = vst.msk [vmem:[#allocation3 + $0xc8] sm:$0xff] %vm765_vm0, %v7118_v35 }
 0x245   : > { %1346 = vrot.lane.b32.xlu0 %v7059_v29, %s6531_s20  ;;  %1348 = vrot.lane.b32.xlu1 %v7061_v32, %s6531_s20 }
 0x246   : > { %1350 = vrot.lane.b32.xlu2 %v1270_v42, %s6531_s20  ;;  %v1030_v42 = vld [vmem:[#allocation2 + $0xb8] sm:$0x3] }
 0x247   : > { %v1141_v39 = vpop.permute.xlu0 %1140  ;;  %v1143_v40 = vpop.permute.xlu1 %1142  ;;  %1061 = vst.msk [vmem:[#allocation3 + $0xb8] sm:$0x3] %vm1039_vm4, %v1030_v42 }
 0x248   : > { %1226 = vst.msk [vmem:[#allocation3 + $0x30] sm:$0xff] %vm1218_vm5, %v1141_v39  ;;  %v1163_v51 = vpop.permute.xlu2 %1162  ;;  %v7124_v39 = vld [vmem:[#allocation2 + $0xe2] sm:$0xff] }
 0x249   : > { %1227 = vst.msk [vmem:[#allocation3 + $0x38] sm:$0xff] %vm1218_vm5, %v1143_v40 }
 0x24a   : > { %1237 = vst.msk [vmem:[#allocation3 + $0x88] sm:$0x3] %vm1221_vm6, %v1163_v51 }
 0x24d   : > { %1352 = vrot.lane.b32.xlu0 %v7080_v46, %s6531_s20  ;;  %1354 = vrot.lane.b32.xlu1 %v7082_v47, %s6531_s20 }
 0x24e   : > { %1356 = vrot.lane.b32.xlu2 %v1273_v1, %s6531_s20  ;;  %v7139_v1 = vld [vmem:[#allocation2 + $0xe0] sm:$0xff] }
 0x24f   : > { %v1147_v58 = vpop.permute.xlu0 %1146  ;;  %v1149_v59 = vpop.permute.xlu1 %1148  ;;  %1066 = vst.msk [vmem:[#allocation3 + $0xe0] sm:$0xff] %vm765_vm0, %v7139_v1 }
 0x250   : > { %1229 = vst.msk [vmem:[#allocation3 + $0x48] sm:$0xff] %vm1218_vm5, %v1147_v58  ;;  %v1169_v6 = vpop.permute.xlu2 %1168  ;;  %v7136_v58 = vld [vmem:[#allocation2 + $0xd8] sm:$0xff] }
 0x251   : > { %1230 = vst.msk [vmem:[#allocation3 + $0x50] sm:$0xff] %vm1218_vm5, %v1149_v59  ;;  %v1279_v59 = vld [vmem:[#allocation2 + $0xea] sm:$0x3] }
 0x252   : > { %1240 = vst.msk [vmem:[#allocation3 + $0xa0] sm:$0x3] %vm1221_vm6, %v1169_v6 }
 0x253   : > { %1065 = vst.msk [vmem:[#allocation3 + $0xd8] sm:$0xff] %vm765_vm0, %v7136_v58  ;;  %vm2129_vm0 = vcmask 458112  }
 0x255   : > { %1358 = vrot.lane.b32.xlu0 %v7101_v3, %s6531_s20  ;;  %1360 = vrot.lane.b32.xlu1 %v7103_v4, %s6531_s20 }
 0x256   : > { %1362 = vrot.lane.b32.xlu2 %v1276_v23, %s6531_s20  ;;  %v1435_v23 = vld [vmem:[#allocation2 + $0x28] sm:$0x3] }
 0x257   : > { %v1153_v12 = vpop.permute.xlu0 %1152  ;;  %v1155_v14 = vpop.permute.xlu1 %1154 }
 0x258   : > { %1232 = vst.msk [vmem:[#allocation3 + $0x60] sm:$0xff] %vm1218_vm5, %v1153_v12  ;;  %v1175_v40 = vpop.permute.xlu2 %1174 }
 0x259   : > { %1233 = vst.msk [vmem:[#allocation3 + $0x68] sm:$0xff] %vm1218_vm5, %v1155_v14 }
 0x25a   : > { %1243 = vst.msk [vmem:[#allocation3 + $0xb8] sm:$0x3] %vm1221_vm6, %v1175_v40 }
 0x25d   : > { %1364 = vrot.lane.b32.xlu0 %v7122_v38, %s6531_s20  ;;  %1366 = vrot.lane.b32.xlu1 %v7124_v39, %s6531_s20 }
 0x25e   : > { %1368 = vrot.lane.b32.xlu2 %v1279_v59, %s6531_s20 }
 0x25f   : > { %v1159_v51 = vpop.permute.xlu0 %1158  ;;  %v1161_v54 = vpop.permute.xlu1 %1160 }
 0x260   : > { %1235 = vst.msk [vmem:[#allocation3 + $0x78] sm:$0xff] %vm1218_vm5, %v1159_v51  ;;  %v1181_v6 = vpop.permute.xlu2 %1180  ;;  %v1438_v51 = vld [vmem:[#allocation2 + $0x40] sm:$0x3] }
 0x261   : > { %1236 = vst.msk [vmem:[#allocation3 + $0x80] sm:$0xff] %vm1218_vm5, %v1161_v54 }
 0x262   : > { %1246 = vst.msk [vmem:[#allocation3 + $0xd0] sm:$0x3] %vm1221_vm6, %v1181_v6 }
 0x265   : > { %1493 = vrot.lane.b32.xlu0 %v6975_v48, %s6532_s16  ;;  %1495 = vrot.lane.b32.xlu1 %v6988_v52, %s6532_s16  ;;  %v1036_v52 = vld [vmem:[#allocation2 + $0xe8] sm:$0x3] }
 0x266   : > { %1497 = vrot.lane.b32.xlu2 %v1435_v23, %s6532_s16  ;;  %1067 = vst.msk [vmem:[#allocation3 + $0xe8] sm:$0x3] %vm1039_vm4, %v1036_v52  ;;  %vm2311_vm4 = vcmask 523712  }
 0x267   : > { %v1165_v12 = vpop.permute.xlu0 %1164  ;;  %v1167_v14 = vpop.permute.xlu1 %1166 }
 0x268   : > { %1238 = vst.msk [vmem:[#allocation3 + $0x90] sm:$0xff] %vm1218_vm5, %v1165_v12  ;;  %v1187_v48 = vpop.permute.xlu2 %1186 }
 0x269   : > { %1239 = vst.msk [vmem:[#allocation3 + $0x98] sm:$0xff] %vm1218_vm5, %v1167_v14 }
 0x26a   : > { %1249 = vst.msk [vmem:[#allocation3 + $0xe8] sm:$0x3] %vm1221_vm6, %v1187_v48  ;;  %v1444_v48 = vld [vmem:[#allocation2 + $0x70] sm:$0x3]  ;;  %vm2493_vm6 = vcmask 589312  }
 0x26d   : > { %1499 = vrot.lane.b32.xlu0 %v6992_v53, %s6532_s16  ;;  %1501 = vrot.lane.b32.xlu1 %v6997_v55, %s6532_s16 }
 0x26e   : > { %1503 = vrot.lane.b32.xlu2 %v1438_v51, %s6532_s16  ;;  %v1447_v51 = vld [vmem:[#allocation2 + $0x88] sm:$0x3] }
 0x26f   : > { %v1171_v40 = vpop.permute.xlu0 %1170  ;;  %v1173_v42 = vpop.permute.xlu1 %1172 }
 0x270   : > { %1241 = vst.msk [vmem:[#allocation3 + $0xa8] sm:$0xff] %vm1218_vm5, %v1171_v40  ;;  %v1315_v54 = vpop.permute.xlu2 %1314 }
 0x271   : > { %1242 = vst.msk [vmem:[#allocation3 + $0xb0] sm:$0xff] %vm1218_vm5, %v1173_v42 }
 0x272   : > { %1404 = vst.msk [vmem:[#allocation3 + $0x10] sm:$0x3] %vm1403_vm7, %v1315_v54 }
 0x275   : > { %1505 = vrot.lane.b32.xlu0 %v7011_v60, %s6532_s16  ;;  %1507 = vrot.lane.b32.xlu1 %v7016_v62, %s6532_s16 }
 0x276   : > { %1509 = vrot.lane.b32.xlu2 %v1441_v10, %s6532_s16  ;;  %v1450_v10 = vld [vmem:[#allocation2 + $0xa0] sm:$0x3] }
 0x277   : > { %v1177_v59 = vpop.permute.xlu0 %1176  ;;  %v1179_v6 = vpop.permute.xlu1 %1178 }
 0x278   : > { %1244 = vst.msk [vmem:[#allocation3 + $0xc0] sm:$0xff] %vm1218_vm5, %v1177_v59  ;;  %v1321_v12 = vpop.permute.xlu2 %1320 }
 0x279   : > { %1245 = vst.msk [vmem:[#allocation3 + $0xc8] sm:$0xff] %vm1218_vm5, %v1179_v6 }
 0x27a   : > { %1407 = vst.msk [vmem:[#allocation3 + $0x28] sm:$0x3] %vm1403_vm7, %v1321_v12 }
 0x27d   : > { %1511 = vrot.lane.b32.xlu0 %v7031_v5, %s6532_s16  ;;  %1513 = vrot.lane.b32.xlu1 %v7034_v7, %s6532_s16 }
 0x27e   : > { %1515 = vrot.lane.b32.xlu2 %v1444_v48, %s6532_s16  ;;  %v1453_v48 = vld [vmem:[#allocation2 + $0xb8] sm:$0x3] }
 0x27f   : > { %v1183_v14 = vpop.permute.xlu0 %1182  ;;  %v1185_v23 = vpop.permute.xlu1 %1184 }
 0x280   : > { %1247 = vst.msk [vmem:[#allocation3 + $0xd8] sm:$0xff] %vm1218_vm5, %v1183_v14  ;;  %v1327_v52 = vpop.permute.xlu2 %1326 }
 0x281   : > { %1248 = vst.msk [vmem:[#allocation3 + $0xe0] sm:$0xff] %vm1218_vm5, %v1185_v23  ;;  %vm2496_vm5 = vcmask 583168  }
 0x282   : > { %1410 = vst.msk [vmem:[#allocation3 + $0x40] sm:$0x3] %vm1403_vm7, %v1327_v52 }
 0x285   : > { %1517 = vrot.lane.b32.xlu0 %v7052_v20, %s6532_s16  ;;  %1519 = vrot.lane.b32.xlu1 %v7055_v26, %s6532_s16 }
 0x286   : > { %1521 = vrot.lane.b32.xlu2 %v1447_v51, %s6532_s16  ;;  %v1456_v51 = vld [vmem:[#allocation2 + $0xd0] sm:$0x3] }
 0x287   : > { %v1311_v40 = vpop.permute.xlu0 %1310  ;;  %v1313_v42 = vpop.permute.xlu1 %1312 }
 0x288   : > { %1401 = vst.msk [vmem:[#allocation3] sm:$0xff] %vm1400_vm8, %v1311_v40  ;;  %v1333_v54 = vpop.permute.xlu2 %1332 }
 0x289   : > { %1402 = vst.msk [vmem:[#allocation3 + $0x8] sm:$0xff] %vm1400_vm8, %v1313_v42 }
 0x28a   : > { %1413 = vst.msk [vmem:[#allocation3 + $0x58] sm:$0x3] %vm1403_vm7, %v1333_v54 }
 0x28d   : > { %1523 = vrot.lane.b32.xlu0 %v7073_v41, %s6532_s16  ;;  %1525 = vrot.lane.b32.xlu1 %v7076_v43, %s6532_s16 }
 0x28e   : > { %1527 = vrot.lane.b32.xlu2 %v1450_v10, %s6532_s16  ;;  %v1459_v10 = vld [vmem:[#allocation2 + $0xe8] sm:$0x3] }
 0x28f   : > { %v1317_v59 = vpop.permute.xlu0 %1316  ;;  %v1319_v6 = vpop.permute.xlu1 %1318 }
 0x290   : > { %1405 = vst.msk [vmem:[#allocation3 + $0x18] sm:$0xff] %vm1400_vm8, %v1317_v59  ;;  %v1339_v12 = vpop.permute.xlu2 %1338 }
 0x291   : > { %1406 = vst.msk [vmem:[#allocation3 + $0x20] sm:$0xff] %vm1400_vm8, %v1319_v6 }
 0x292   : > { %1416 = vst.msk [vmem:[#allocation3 + $0x70] sm:$0x3] %vm1403_vm7, %v1339_v12  ;;  %v7221_v12 = vld [vmem:[#allocation2 + $0xf0] sm:$0xff] }
 0x295   : > { %1529 = vrot.lane.b32.xlu0 %v7094_v61, %s6532_s16  ;;  %1531 = vrot.lane.b32.xlu1 %v7097_v2, %s6532_s16 }
 0x296   : > { %1533 = vrot.lane.b32.xlu2 %v1453_v48, %s6532_s16 }
 0x297   : > { %v1323_v14 = vpop.permute.xlu0 %1322  ;;  %v1325_v23 = vpop.permute.xlu1 %1324 }
 0x298   : > { %1408 = vst.msk [vmem:[#allocation3 + $0x30] sm:$0xff] %vm1400_vm8, %v1323_v14  ;;  %v1345_v52 = vpop.permute.xlu2 %1344  ;;  %v7223_v14 = vld [vmem:[#allocation2 + $0xf8] sm:$0xff] }
 0x299   : > { %1409 = vst.msk [vmem:[#allocation3 + $0x38] sm:$0xff] %vm1400_vm8, %v1325_v23 }
 0x29a   : > { %1419 = vst.msk [vmem:[#allocation3 + $0x88] sm:$0x3] %vm1403_vm7, %v1345_v52 }
 0x29d   : > { %1535 = vrot.lane.b32.xlu0 %v7115_v17, %s6532_s16  ;;  %1537 = vrot.lane.b32.xlu1 %v7118_v35, %s6532_s16 }
 0x29e   : > { %1539 = vrot.lane.b32.xlu2 %v1456_v51, %s6532_s16 }
 0x29f   : > { %v1329_v40 = vpop.permute.xlu0 %1328  ;;  %v1331_v42 = vpop.permute.xlu1 %1330 }
 0x2a0   : > { %1411 = vst.msk [vmem:[#allocation3 + $0x48] sm:$0xff] %vm1400_vm8, %v1329_v40  ;;  %v1351_v54 = vpop.permute.xlu2 %1350  ;;  %v1462_v40 = vld [vmem:[#allocation2 + $0x100] sm:$0x3] }
 0x2a1   : > { %1412 = vst.msk [vmem:[#allocation3 + $0x50] sm:$0xff] %vm1400_vm8, %v1331_v42 }
 0x2a2   : > { %1422 = vst.msk [vmem:[#allocation3 + $0xa0] sm:$0x3] %vm1403_vm7, %v1351_v54 }
 0x2a5   : > { %1541 = vrot.lane.b32.xlu0 %v7136_v58, %s6532_s16  ;;  %1543 = vrot.lane.b32.xlu1 %v7139_v1, %s6532_s16 }
 0x2a6   : > { %1545 = vrot.lane.b32.xlu2 %v1459_v10, %s6532_s16  ;;  %v1620_v10 = vld [vmem:[#allocation2 + $0x41] sm:$0x3] }
 0x2a7   : > { %v1335_v59 = vpop.permute.xlu0 %1334  ;;  %v1337_v6 = vpop.permute.xlu1 %1336 }
 0x2a8   : > { %1414 = vst.msk [vmem:[#allocation3 + $0x60] sm:$0xff] %vm1400_vm8, %v1335_v59  ;;  %v1357_v23 = vpop.permute.xlu2 %1356  ;;  %v1617_v59 = vld [vmem:[#allocation2 + $0x29] sm:$0x3] }
 0x2a9   : > { %1415 = vst.msk [vmem:[#allocation3 + $0x68] sm:$0xff] %vm1400_vm8, %v1337_v6 }
 0x2aa   : > { %1425 = vst.msk [vmem:[#allocation3 + $0xb8] sm:$0x3] %vm1403_vm7, %v1357_v23 }
 0x2ad   : > { %1547 = vrot.lane.b32.xlu0 %v7221_v12, %s6532_s16  ;;  %1549 = vrot.lane.b32.xlu1 %v7223_v14, %s6532_s16 }
 0x2ae   : > { %1551 = vrot.lane.b32.xlu2 %v1462_v40, %s6532_s16  ;;  %v1626_v40 = vld [vmem:[#allocation2 + $0x71] sm:$0x3] }
 0x2af   : > { %v1341_v48 = vpop.permute.xlu0 %1340  ;;  %v1343_v52 = vpop.permute.xlu1 %1342 }
 0x2b0   : > { %1417 = vst.msk [vmem:[#allocation3 + $0x78] sm:$0xff] %vm1400_vm8, %v1341_v48  ;;  %v1363_v42 = vpop.permute.xlu2 %1362  ;;  %v1623_v48 = vld [vmem:[#allocation2 + $0x59] sm:$0x3] }
 0x2b1   : > { %1418 = vst.msk [vmem:[#allocation3 + $0x80] sm:$0xff] %vm1400_vm8, %v1343_v52 }
 0x2b2   : > { %1428 = vst.msk [vmem:[#allocation3 + $0xd0] sm:$0x3] %vm1403_vm7, %v1363_v42 }
 0x2b5   : > { %1675 = vrot.lane.b32.xlu0 %v6883_v13, %s6533_s18  ;;  %1677 = vrot.lane.b32.xlu1 %v6879_v11, %s6533_s18 }
 0x2b6   : > { %1679 = vrot.lane.b32.xlu2 %v1617_v59, %s6533_s18  ;;  %v1632_v59 = vld [vmem:[#allocation2 + $0xa1] sm:$0x3] }
 0x2b7   : > { %v1347_v51 = vpop.permute.xlu0 %1346  ;;  %v1349_v54 = vpop.permute.xlu1 %1348 }
 0x2b8   : > { %1420 = vst.msk [vmem:[#allocation3 + $0x90] sm:$0xff] %vm1400_vm8, %v1347_v51  ;;  %v1369_v13 = vpop.permute.xlu2 %1368  ;;  %v1629_v51 = vld [vmem:[#allocation2 + $0x89] sm:$0x3] }
 0x2b9   : > { %1421 = vst.msk [vmem:[#allocation3 + $0x98] sm:$0xff] %vm1400_vm8, %v1349_v54 }
 0x2ba   : > { %1431 = vst.msk [vmem:[#allocation3 + $0xe8] sm:$0x3] %vm1403_vm7, %v1369_v13  ;;  %vm2778_vm7 = vcmask 588800  }
 0x2bd   : > { %1681 = vrot.lane.b32.xlu0 %v6889_v15, %s6533_s18  ;;  %1683 = vrot.lane.b32.xlu1 %v6891_v16, %s6533_s18 }
 0x2be   : > { %1685 = vrot.lane.b32.xlu2 %v1620_v10, %s6533_s18  ;;  %v1638_v10 = vld [vmem:[#allocation2 + $0xd1] sm:$0x3] }
 0x2bf   : > { %v1353_v11 = vpop.permute.xlu0 %1352  ;;  %v1355_v6 = vpop.permute.xlu1 %1354 }
 0x2c0   : > { %1423 = vst.msk [vmem:[#allocation3 + $0xa8] sm:$0xff] %vm1400_vm8, %v1353_v11  ;;  %v1498_v15 = vpop.permute.xlu2 %1497  ;;  %v1635_v11 = vld [vmem:[#allocation2 + $0xb9] sm:$0x3] }
 0x2c1   : > { %1424 = vst.msk [vmem:[#allocation3 + $0xb0] sm:$0xff] %vm1400_vm8, %v1355_v6 }
 0x2c2   : > { %1587 = vst.msk [vmem:[#allocation3 + $0x10] sm:$0x3] %vm1586_vm9, %v1498_v15 }
 0x2c5   : > { %1687 = vrot.lane.b32.xlu0 %v6898_v18, %s6533_s18  ;;  %1689 = vrot.lane.b32.xlu1 %v6900_v19, %s6533_s18 }
 0x2c6   : > { %1691 = vrot.lane.b32.xlu2 %v1623_v48, %s6533_s18  ;;  %v7307_v48 = vld [vmem:[#allocation2 + $0xf9] sm:$0xff] }
 0x2c7   : > { %v1359_v16 = vpop.permute.xlu0 %1358  ;;  %v1361_v23 = vpop.permute.xlu1 %1360 }
 0x2c8   : > { %1426 = vst.msk [vmem:[#allocation3 + $0xc0] sm:$0xff] %vm1400_vm8, %v1359_v16  ;;  %v1504_v18 = vpop.permute.xlu2 %1503  ;;  %v1641_v16 = vld [vmem:[#allocation2 + $0xe9] sm:$0x3] }
 0x2c9   : > { %1427 = vst.msk [vmem:[#allocation3 + $0xc8] sm:$0xff] %vm1400_vm8, %v1361_v23  ;;  %v7305_v23 = vld [vmem:[#allocation2 + $0xf1] sm:$0xff] }
 0x2ca   : > { %1590 = vst.msk [vmem:[#allocation3 + $0x28] sm:$0x3] %vm1586_vm9, %v1504_v18 }
 0x2cd   : > { %1693 = vrot.lane.b32.xlu0 %v6907_v21, %s6533_s18  ;;  %1695 = vrot.lane.b32.xlu1 %v6909_v22, %s6533_s18 }
 0x2ce   : > { %1697 = vrot.lane.b32.xlu2 %v1626_v40, %s6533_s18 }
 0x2cf   : > { %v1365_v19 = vpop.permute.xlu0 %1364  ;;  %v1367_v52 = vpop.permute.xlu1 %1366 }
 0x2d0   : > { %1429 = vst.msk [vmem:[#allocation3 + $0xd8] sm:$0xff] %vm1400_vm8, %v1365_v19  ;;  %v1510_v21 = vpop.permute.xlu2 %1509  ;;  %v1644_v19 = vld [vmem:[#allocation2 + $0x101] sm:$0x3] }
 0x2d1   : > { %1430 = vst.msk [vmem:[#allocation3 + $0xe0] sm:$0xff] %vm1400_vm8, %v1367_v52 }
 0x2d2   : > { %1593 = vst.msk [vmem:[#allocation3 + $0x40] sm:$0x3] %vm1586_vm9, %v1510_v21 }
 0x2d5   : > { %1699 = vrot.lane.b32.xlu0 %v6916_v24, %s6533_s18  ;;  %1701 = vrot.lane.b32.xlu1 %v6918_v25, %s6533_s18 }
 0x2d6   : > { %1703 = vrot.lane.b32.xlu2 %v1629_v51, %s6533_s18  ;;  %v1802_v51 = vld [vmem:[#allocation2 + $0x42] sm:$0x3] }
 0x2d7   : > { %v1494_v22 = vpop.permute.xlu0 %1493  ;;  %v1496_v42 = vpop.permute.xlu1 %1495 }
 0x2d8   : > { %1584 = vst.msk [vmem:[#allocation3] sm:$0xff] %vm1583_vm10, %v1494_v22  ;;  %v1516_v24 = vpop.permute.xlu2 %1515  ;;  %v1799_v22 = vld [vmem:[#allocation2 + $0x2a] sm:$0x3] }
 0x2d9   : > { %1585 = vst.msk [vmem:[#allocation3 + $0x8] sm:$0xff] %vm1583_vm10, %v1496_v42 }
 0x2da   : > { %1596 = vst.msk [vmem:[#allocation3 + $0x58] sm:$0x3] %vm1586_vm9, %v1516_v24 }
 0x2dd   : > { %1705 = vrot.lane.b32.xlu0 %v6925_v27, %s6533_s18  ;;  %1707 = vrot.lane.b32.xlu1 %v6927_v28, %s6533_s18 }
 0x2de   : > { %1709 = vrot.lane.b32.xlu2 %v1632_v59, %s6533_s18  ;;  %v1808_v59 = vld [vmem:[#allocation2 + $0x72] sm:$0x3] }
 0x2df   : > { %v1500_v25 = vpop.permute.xlu0 %1499  ;;  %v1502_v54 = vpop.permute.xlu1 %1501 }
 0x2e0   : > { %1588 = vst.msk [vmem:[#allocation3 + $0x18] sm:$0xff] %vm1583_vm10, %v1500_v25  ;;  %v1522_v27 = vpop.permute.xlu2 %1521  ;;  %v1805_v25 = vld [vmem:[#allocation2 + $0x5a] sm:$0x3] }
 0x2e1   : > { %1589 = vst.msk [vmem:[#allocation3 + $0x20] sm:$0xff] %vm1583_vm10, %v1502_v54 }
 0x2e2   : > { %1599 = vst.msk [vmem:[#allocation3 + $0x70] sm:$0x3] %vm1586_vm9, %v1522_v27 }
 0x2e5   : > { %1711 = vrot.lane.b32.xlu0 %v6934_v30, %s6533_s18  ;;  %1713 = vrot.lane.b32.xlu1 %v6936_v31, %s6533_s18 }
 0x2e6   : > { %1715 = vrot.lane.b32.xlu2 %v1635_v11, %s6533_s18  ;;  %v1814_v11 = vld [vmem:[#allocation2 + $0xa2] sm:$0x3] }
 0x2e7   : > { %v1506_v28 = vpop.permute.xlu0 %1505  ;;  %v1508_v13 = vpop.permute.xlu1 %1507 }
 0x2e8   : > { %1591 = vst.msk [vmem:[#allocation3 + $0x30] sm:$0xff] %vm1583_vm10, %v1506_v28  ;;  %v1528_v30 = vpop.permute.xlu2 %1527  ;;  %v1811_v28 = vld [vmem:[#allocation2 + $0x8a] sm:$0x3] }
 0x2e9   : > { %1592 = vst.msk [vmem:[#allocation3 + $0x38] sm:$0xff] %vm1583_vm10, %v1508_v13 }
 0x2ea   : > { %1602 = vst.msk [vmem:[#allocation3 + $0x88] sm:$0x3] %vm1586_vm9, %v1528_v30 }
 0x2ed   : > { %1717 = vrot.lane.b32.xlu0 %v6943_v33, %s6533_s18  ;;  %1719 = vrot.lane.b32.xlu1 %v6945_v34, %s6533_s18 }
 0x2ee   : > { %1721 = vrot.lane.b32.xlu2 %v1638_v10, %s6533_s18  ;;  %v1820_v10 = vld [vmem:[#allocation2 + $0xd2] sm:$0x3] }
 0x2ef   : > { %v1512_v31 = vpop.permute.xlu0 %1511  ;;  %v1514_v6 = vpop.permute.xlu1 %1513 }
 0x2f0   : > { %1594 = vst.msk [vmem:[#allocation3 + $0x48] sm:$0xff] %vm1583_vm10, %v1512_v31  ;;  %v1534_v33 = vpop.permute.xlu2 %1533  ;;  %v1817_v31 = vld [vmem:[#allocation2 + $0xba] sm:$0x3] }
 0x2f1   : > { %1595 = vst.msk [vmem:[#allocation3 + $0x50] sm:$0xff] %vm1583_vm10, %v1514_v6 }
 0x2f2   : > { %1605 = vst.msk [vmem:[#allocation3 + $0xa0] sm:$0x3] %vm1586_vm9, %v1534_v33 }
 0x2f5   : > { %1723 = vrot.lane.b32.xlu0 %v6952_v36, %s6533_s18  ;;  %1725 = vrot.lane.b32.xlu1 %v6954_v37, %s6533_s18 }
 0x2f6   : > { %1727 = vrot.lane.b32.xlu2 %v1641_v16, %s6533_s18  ;;  %v7391_v16 = vld [vmem:[#allocation2 + $0xfa] sm:$0xff] }
 0x2f7   : > { %v1518_v34 = vpop.permute.xlu0 %1517  ;;  %v1520_v15 = vpop.permute.xlu1 %1519 }
 0x2f8   : > { %1597 = vst.msk [vmem:[#allocation3 + $0x60] sm:$0xff] %vm1583_vm10, %v1518_v34  ;;  %v1540_v36 = vpop.permute.xlu2 %1539  ;;  %v1823_v34 = vld [vmem:[#allocation2 + $0xea] sm:$0x3] }
 0x2f9   : > { %1598 = vst.msk [vmem:[#allocation3 + $0x68] sm:$0xff] %vm1583_vm10, %v1520_v15  ;;  %v7389_v15 = vld [vmem:[#allocation2 + $0xf2] sm:$0xff] }
 0x2fa   : > { %1608 = vst.msk [vmem:[#allocation3 + $0xb8] sm:$0x3] %vm1586_vm9, %v1540_v36 }
 0x2fd   : > { %1729 = vrot.lane.b32.xlu0 %v7305_v23, %s6533_s18  ;;  %1731 = vrot.lane.b32.xlu1 %v7307_v48, %s6533_s18 }
 0x2fe   : > { %1733 = vrot.lane.b32.xlu2 %v1644_v19, %s6533_s18 }
 0x2ff   : > { %v1524_v37 = vpop.permute.xlu0 %1523  ;;  %v1526_v18 = vpop.permute.xlu1 %1525 }
 0x300   : > { %1600 = vst.msk [vmem:[#allocation3 + $0x78] sm:$0xff] %vm1583_vm10, %v1524_v37  ;;  %v1546_v52 = vpop.permute.xlu2 %1545  ;;  %v1826_v37 = vld [vmem:[#allocation2 + $0x102] sm:$0x3] }
 0x301   : > { %1601 = vst.msk [vmem:[#allocation3 + $0x80] sm:$0xff] %vm1583_vm10, %v1526_v18 }
 0x302   : > { %1611 = vst.msk [vmem:[#allocation3 + $0xd0] sm:$0x3] %vm1586_vm9, %v1546_v52 }
 0x305   : > { %1857 = vrot.lane.b32.xlu0 %v6965_v44, %s6534_s26  ;;  %1859 = vrot.lane.b32.xlu1 %v6967_v45, %s6534_s26 }
 0x306   : > { %1861 = vrot.lane.b32.xlu2 %v1799_v22, %s6534_s26  ;;  %v1984_v22 = vld [vmem:[#allocation2 + $0x58] sm:$0x3] }
 0x307   : > { %v1530_v40 = vpop.permute.xlu0 %1529  ;;  %v1532_v21 = vpop.permute.xlu1 %1531 }
 0x308   : > { %1603 = vst.msk [vmem:[#allocation3 + $0x90] sm:$0xff] %vm1583_vm10, %v1530_v40  ;;  %v1552_v44 = vpop.permute.xlu2 %1551  ;;  %v1981_v40 = vld [vmem:[#allocation2 + $0x40] sm:$0x3] }
 0x309   : > { %1604 = vst.msk [vmem:[#allocation3 + $0x98] sm:$0xff] %vm1583_vm10, %v1532_v21 }
 0x30a   : > { %1614 = vst.msk [vmem:[#allocation3 + $0xe8] sm:$0x3] %vm1586_vm9, %v1552_v44 }
 0x30d   : > { %1863 = vrot.lane.b32.xlu0 %v6980_v49, %s6534_s26  ;;  %1865 = vrot.lane.b32.xlu1 %v6982_v50, %s6534_s26 }
 0x30e   : > { %1867 = vrot.lane.b32.xlu2 %v1802_v51, %s6534_s26  ;;  %v1990_v51 = vld [vmem:[#allocation2 + $0x88] sm:$0x3] }
 0x30f   : > { %v1536_v45 = vpop.permute.xlu0 %1535  ;;  %v1538_v42 = vpop.permute.xlu1 %1537 }
 0x310   : > { %1606 = vst.msk [vmem:[#allocation3 + $0xa8] sm:$0xff] %vm1583_vm10, %v1536_v45  ;;  %v1680_v49 = vpop.permute.xlu2 %1679  ;;  %v1987_v45 = vld [vmem:[#allocation2 + $0x70] sm:$0x3] }
 0x311   : > { %1607 = vst.msk [vmem:[#allocation3 + $0xb0] sm:$0xff] %vm1583_vm10, %v1538_v42 }
 0x312   : > { %1769 = vst.msk [vmem:[#allocation3 + $0x10] sm:$0x3] %vm1768_vm11, %v1680_v49 }
 0x315   : > { %1869 = vrot.lane.b32.xlu0 %v7002_v56, %s6534_s26  ;;  %1871 = vrot.lane.b32.xlu1 %v7004_v57, %s6534_s26 }
 0x316   : > { %1873 = vrot.lane.b32.xlu2 %v1805_v25, %s6534_s26  ;;  %v1996_v25 = vld [vmem:[#allocation2 + $0xb8] sm:$0x3] }
 0x317   : > { %v1542_v50 = vpop.permute.xlu0 %1541  ;;  %v1544_v24 = vpop.permute.xlu1 %1543 }
 0x318   : > { %1609 = vst.msk [vmem:[#allocation3 + $0xc0] sm:$0xff] %vm1583_vm10, %v1542_v50  ;;  %v1686_v56 = vpop.permute.xlu2 %1685  ;;  %v1993_v50 = vld [vmem:[#allocation2 + $0xa0] sm:$0x3] }
 0x319   : > { %1610 = vst.msk [vmem:[#allocation3 + $0xc8] sm:$0xff] %vm1583_vm10, %v1544_v24 }
 0x31a   : > { %1772 = vst.msk [vmem:[#allocation3 + $0x28] sm:$0x3] %vm1768_vm11, %v1686_v56 }
 0x31d   : > { %1875 = vrot.lane.b32.xlu0 %v7021_v63, %s6534_s26  ;;  %1877 = vrot.lane.b32.xlu1 %v7023_v0, %s6534_s26 }
 0x31e   : > { %1879 = vrot.lane.b32.xlu2 %v1808_v59, %s6534_s26  ;;  %v2002_v59 = vld [vmem:[#allocation2 + $0xe8] sm:$0x3] }
 0x31f   : > { %v1548_v57 = vpop.permute.xlu0 %1547  ;;  %v1550_v54 = vpop.permute.xlu1 %1549 }
 0x320   : > { %1612 = vst.msk [vmem:[#allocation3 + $0xd8] sm:$0xff] %vm1583_vm10, %v1548_v57  ;;  %v1692_v63 = vpop.permute.xlu2 %1691  ;;  %v1999_v57 = vld [vmem:[#allocation2 + $0xd0] sm:$0x3] }
 0x321   : > { %1613 = vst.msk [vmem:[#allocation3 + $0xe0] sm:$0xff] %vm1583_vm10, %v1550_v54 }
 0x322   : > { %1775 = vst.msk [vmem:[#allocation3 + $0x40] sm:$0x3] %vm1768_vm11, %v1692_v63 }
 0x325   : > { %1881 = vrot.lane.b32.xlu0 %v7038_v8, %s6534_s26  ;;  %1883 = vrot.lane.b32.xlu1 %v7040_v9, %s6534_s26 }
 0x326   : > { %1885 = vrot.lane.b32.xlu2 %v1811_v28, %s6534_s26  ;;  %v2007_v28 = vld [vmem:[#allocation2 + $0x110] sm:$0xff] }
 0x327   : > { %v1676_v0 = vpop.permute.xlu0 %1675  ;;  %v1678_v27 = vpop.permute.xlu1 %1677 }
 0x328   : > { %1766 = vst.msk [vmem:[#allocation3] sm:$0xff] %vm1765_vm12, %v1676_v0  ;;  %v1698_v8 = vpop.permute.xlu2 %1697  ;;  %v2005_v0 = vld [vmem:[#allocation2 + $0x100] sm:$0x3] }
 0x329   : > { %1767 = vst.msk [vmem:[#allocation3 + $0x8] sm:$0xff] %vm1765_vm12, %v1678_v27  ;;  %v2006_v27 = vld [vmem:[#allocation2 + $0x108] sm:$0xff] }
 0x32a   : > { %1778 = vst.msk [vmem:[#allocation3 + $0x58] sm:$0x3] %vm1768_vm11, %v1698_v8 }
 0x32d   : > { %1887 = vrot.lane.b32.xlu0 %v7059_v29, %s6534_s26  ;;  %1889 = vrot.lane.b32.xlu1 %v7061_v32, %s6534_s26 }
 0x32e   : > { %1891 = vrot.lane.b32.xlu2 %v1814_v11, %s6534_s26  ;;  %v2162_v11 = vld [vmem:[#allocation2 + $0x39] sm:$0xff] }
 0x32f   : > { %v1682_v9 = vpop.permute.xlu0 %1681  ;;  %v1684_v13 = vpop.permute.xlu1 %1683 }
 0x330   : > { %1770 = vst.msk [vmem:[#allocation3 + $0x18] sm:$0xff] %vm1765_vm12, %v1682_v9  ;;  %v1704_v29 = vpop.permute.xlu2 %1703  ;;  %v2008_v9 = vld [vmem:[#allocation2 + $0x118] sm:$0x3] }
 0x331   : > { %1771 = vst.msk [vmem:[#allocation3 + $0x20] sm:$0xff] %vm1765_vm12, %v1684_v13  ;;  %v2161_v13 = vld [vmem:[#allocation2 + $0x31] sm:$0xff] }
 0x332   : > { %1781 = vst.msk [vmem:[#allocation3 + $0x70] sm:$0x3] %vm1768_vm11, %v1704_v29 }
 0x335   : > { %1893 = vrot.lane.b32.xlu0 %v7080_v46, %s6534_s26  ;;  %1895 = vrot.lane.b32.xlu1 %v7082_v47, %s6534_s26 }
 0x336   : > { %1897 = vrot.lane.b32.xlu2 %v1817_v31, %s6534_s26  ;;  %v2163_v31 = vld [vmem:[#allocation2 + $0x41] sm:$0x3] }
 0x337   : > { %v1688_v32 = vpop.permute.xlu0 %1687  ;;  %v1690_v30 = vpop.permute.xlu1 %1689 }
 0x338   : > { %1773 = vst.msk [vmem:[#allocation3 + $0x30] sm:$0xff] %vm1765_vm12, %v1688_v32  ;;  %v1710_v46 = vpop.permute.xlu2 %1709 }
 0x339   : > { %1774 = vst.msk [vmem:[#allocation3 + $0x38] sm:$0xff] %vm1765_vm12, %v1690_v30 }
 0x33a   : > { %1784 = vst.msk [vmem:[#allocation3 + $0x88] sm:$0x3] %vm1768_vm11, %v1710_v46  ;;  %v2164_v46 = vld [vmem:[#allocation2 + $0x49] sm:$0xff] }
 0x33d   : > { %1899 = vrot.lane.b32.xlu0 %v7101_v3, %s6534_s26  ;;  %1901 = vrot.lane.b32.xlu1 %v7103_v4, %s6534_s26 }
 0x33e   : > { %1903 = vrot.lane.b32.xlu2 %v1820_v10, %s6534_s26 }
 0x33f   : > { %v1694_v47 = vpop.permute.xlu0 %1693  ;;  %v1696_v6 = vpop.permute.xlu1 %1695 }
 0x340   : > { %1776 = vst.msk [vmem:[#allocation3 + $0x48] sm:$0xff] %vm1765_vm12, %v1694_v47  ;;  %v1716_v3 = vpop.permute.xlu2 %1715  ;;  %v2165_v47 = vld [vmem:[#allocation2 + $0x51] sm:$0xff] }
 0x341   : > { %1777 = vst.msk [vmem:[#allocation3 + $0x50] sm:$0xff] %vm1765_vm12, %v1696_v6 }
 0x342   : > { %1787 = vst.msk [vmem:[#allocation3 + $0xa0] sm:$0x3] %vm1768_vm11, %v1716_v3 }
 0x345   : > { %1905 = vrot.lane.b32.xlu0 %v7122_v38, %s6534_s26  ;;  %1907 = vrot.lane.b32.xlu1 %v7124_v39, %s6534_s26 }
 0x346   : > { %1909 = vrot.lane.b32.xlu2 %v1823_v34, %s6534_s26  ;;  %v2168_v34 = vld [vmem:[#allocation2 + $0x69] sm:$0xff] }
 0x347   : > { %v1700_v4 = vpop.permute.xlu0 %1699  ;;  %v1702_v33 = vpop.permute.xlu1 %1701 }
 0x348   : > { %1779 = vst.msk [vmem:[#allocation3 + $0x60] sm:$0xff] %vm1765_vm12, %v1700_v4  ;;  %v1722_v38 = vpop.permute.xlu2 %1721  ;;  %v2166_v4 = vld [vmem:[#allocation2 + $0x59] sm:$0x3] }
 0x349   : > { %1780 = vst.msk [vmem:[#allocation3 + $0x68] sm:$0xff] %vm1765_vm12, %v1702_v33  ;;  %v2167_v33 = vld [vmem:[#allocation2 + $0x61] sm:$0xff] }
 0x34a   : > { %1790 = vst.msk [vmem:[#allocation3 + $0xb8] sm:$0x3] %vm1768_vm11, %v1722_v38 }
 0x34d   : > { %1911 = vrot.lane.b32.xlu0 %v7389_v15, %s6534_s26  ;;  %1913 = vrot.lane.b32.xlu1 %v7391_v16, %s6534_s26 }
 0x34e   : > { %1915 = vrot.lane.b32.xlu2 %v1826_v37, %s6534_s26  ;;  %v2169_v37 = vld [vmem:[#allocation2 + $0x71] sm:$0x3] }
 0x34f   : > { %v1706_v39 = vpop.permute.xlu0 %1705  ;;  %v1708_v36 = vpop.permute.xlu1 %1707 }
 0x350   : > { %1782 = vst.msk [vmem:[#allocation3 + $0x78] sm:$0xff] %vm1765_vm12, %v1706_v39  ;;  %v1728_v18 = vpop.permute.xlu2 %1727 }
 0x351   : > { %1783 = vst.msk [vmem:[#allocation3 + $0x80] sm:$0xff] %vm1765_vm12, %v1708_v36 }
 0x352   : > { %1793 = vst.msk [vmem:[#allocation3 + $0xd0] sm:$0x3] %vm1768_vm11, %v1728_v18  ;;  %v2170_v18 = vld [vmem:[#allocation2 + $0x79] sm:$0xff] }
 0x355   : > { %2039 = vrot.lane.b32.xlu0 %v6992_v53, %s6535_s29  ;;  %2041 = vrot.lane.b32.xlu1 %v6997_v55, %s6535_s29 }
 0x356   : > { %2043 = vrot.lane.b32.xlu2 %v1981_v40, %s6535_s29 }
 0x357   : > { %v1712_v19 = vpop.permute.xlu0 %1711  ;;  %v1714_v52 = vpop.permute.xlu1 %1713 }
 0x358   : > { %1785 = vst.msk [vmem:[#allocation3 + $0x90] sm:$0xff] %vm1765_vm12, %v1712_v19  ;;  %v1734_v53 = vpop.permute.xlu2 %1733  ;;  %v2171_v19 = vld [vmem:[#allocation2 + $0x81] sm:$0xff] }
 0x359   : > { %1786 = vst.msk [vmem:[#allocation3 + $0x98] sm:$0xff] %vm1765_vm12, %v1714_v52 }
 0x35a   : > { %1796 = vst.msk [vmem:[#allocation3 + $0xe8] sm:$0x3] %vm1768_vm11, %v1734_v53 }
 0x35d   : > { %2045 = vrot.lane.b32.xlu0 %v7011_v60, %s6535_s29  ;;  %2047 = vrot.lane.b32.xlu1 %v7016_v62, %s6535_s29 }
 0x35e   : > { %2049 = vrot.lane.b32.xlu2 %v1984_v22, %s6535_s29  ;;  %v2174_v22 = vld [vmem:[#allocation2 + $0x99] sm:$0xff] }
 0x35f   : > { %v1718_v55 = vpop.permute.xlu0 %1717  ;;  %v1720_v21 = vpop.permute.xlu1 %1719 }
 0x360   : > { %1788 = vst.msk [vmem:[#allocation3 + $0xa8] sm:$0xff] %vm1765_vm12, %v1718_v55  ;;  %v1862_v60 = vpop.permute.xlu2 %1861  ;;  %v2172_v55 = vld [vmem:[#allocation2 + $0x89] sm:$0x3] }
 0x361   : > { %1789 = vst.msk [vmem:[#allocation3 + $0xb0] sm:$0xff] %vm1765_vm12, %v1720_v21  ;;  %v2173_v21 = vld [vmem:[#allocation2 + $0x91] sm:$0xff] }
 0x362   : > { %1951 = vst.msk [vmem:[#allocation3 + $0x10] sm:$0x3] %vm1950_vm13, %v1862_v60 }
 0x365   : > { %2051 = vrot.lane.b32.xlu0 %v7031_v5, %s6535_s29  ;;  %2053 = vrot.lane.b32.xlu1 %v7034_v7, %s6535_s29 }
 0x366   : > { %2055 = vrot.lane.b32.xlu2 %v1987_v45, %s6535_s29  ;;  %v2175_v45 = vld [vmem:[#allocation2 + $0xa1] sm:$0x3] }
 0x367   : > { %v1724_v62 = vpop.permute.xlu0 %1723  ;;  %v1726_v44 = vpop.permute.xlu1 %1725 }
 0x368   : > { %1791 = vst.msk [vmem:[#allocation3 + $0xc0] sm:$0xff] %vm1765_vm12, %v1724_v62  ;;  %v1868_v5 = vpop.permute.xlu2 %1867 }
 0x369   : > { %1792 = vst.msk [vmem:[#allocation3 + $0xc8] sm:$0xff] %vm1765_vm12, %v1726_v44 }
 0x36a   : > { %1954 = vst.msk [vmem:[#allocation3 + $0x28] sm:$0x3] %vm1950_vm13, %v1868_v5  ;;  %v2176_v5 = vld [vmem:[#allocation2 + $0xa9] sm:$0xff] }
 0x36d   : > { %2057 = vrot.lane.b32.xlu0 %v7052_v20, %s6535_s29  ;;  %2059 = vrot.lane.b32.xlu1 %v7055_v26, %s6535_s29 }
 0x36e   : > { %2061 = vrot.lane.b32.xlu2 %v1990_v51, %s6535_s29 }
 0x36f   : > { %v1730_v7 = vpop.permute.xlu0 %1729  ;;  %v1732_v42 = vpop.permute.xlu1 %1731 }
 0x370   : > { %1794 = vst.msk [vmem:[#allocation3 + $0xd8] sm:$0xff] %vm1765_vm12, %v1730_v7  ;;  %v1874_v20 = vpop.permute.xlu2 %1873  ;;  %v2177_v7 = vld [vmem:[#allocation2 + $0xb1] sm:$0xff] }
 0x371   : > { %1795 = vst.msk [vmem:[#allocation3 + $0xe0] sm:$0xff] %vm1765_vm12, %v1732_v42 }
 0x372   : > { %1957 = vst.msk [vmem:[#allocation3 + $0x40] sm:$0x3] %vm1950_vm13, %v1874_v20 }
 0x375   : > { %2063 = vrot.lane.b32.xlu0 %v7073_v41, %s6535_s29  ;;  %2065 = vrot.lane.b32.xlu1 %v7076_v43, %s6535_s29 }
 0x376   : > { %2067 = vrot.lane.b32.xlu2 %v1993_v50, %s6535_s29  ;;  %v2180_v50 = vld [vmem:[#allocation2 + $0xc9] sm:$0xff] }
 0x377   : > { %v1858_v26 = vpop.permute.xlu0 %1857  ;;  %v1860_v49 = vpop.permute.xlu1 %1859 }
 0x378   : > { %1948 = vst.msk [vmem:[#allocation3] sm:$0xff] %vm1947_vm14, %v1858_v26  ;;  %v1880_v41 = vpop.permute.xlu2 %1879  ;;  %v2178_v26 = vld [vmem:[#allocation2 + $0xb9] sm:$0x3] }
 0x379   : > { %1949 = vst.msk [vmem:[#allocation3 + $0x8] sm:$0xff] %vm1947_vm14, %v1860_v49  ;;  %v2179_v49 = vld [vmem:[#allocation2 + $0xc1] sm:$0xff] }
 0x37a   : > { %1960 = vst.msk [vmem:[#allocation3 + $0x58] sm:$0x3] %vm1950_vm13, %v1880_v41 }
 0x37d   : > { %2069 = vrot.lane.b32.xlu0 %v7094_v61, %s6535_s29  ;;  %2071 = vrot.lane.b32.xlu1 %v7097_v2, %s6535_s29 }
 0x37e   : > { %2073 = vrot.lane.b32.xlu2 %v1996_v25, %s6535_s29  ;;  %v2181_v25 = vld [vmem:[#allocation2 + $0xd1] sm:$0x3] }
 0x37f   : > { %v1864_v43 = vpop.permute.xlu0 %1863  ;;  %v1866_v24 = vpop.permute.xlu1 %1865 }
 0x380   : > { %1952 = vst.msk [vmem:[#allocation3 + $0x18] sm:$0xff] %vm1947_vm14, %v1864_v43  ;;  %v1886_v61 = vpop.permute.xlu2 %1885 }
 0x381   : > { %1953 = vst.msk [vmem:[#allocation3 + $0x20] sm:$0xff] %vm1947_vm14, %v1866_v24 }
 0x382   : > { %1963 = vst.msk [vmem:[#allocation3 + $0x70] sm:$0x3] %vm1950_vm13, %v1886_v61  ;;  %v2182_v61 = vld [vmem:[#allocation2 + $0xd9] sm:$0xff] }
 0x385   : > { %2075 = vrot.lane.b32.xlu0 %v7115_v17, %s6535_s29  ;;  %2077 = vrot.lane.b32.xlu1 %v7118_v35, %s6535_s29 }
 0x386   : > { %2079 = vrot.lane.b32.xlu2 %v1999_v57, %s6535_s29 }
 0x387   : > { %v1870_v2 = vpop.permute.xlu0 %1869  ;;  %v1872_v56 = vpop.permute.xlu1 %1871 }
 0x388   : > { %1955 = vst.msk [vmem:[#allocation3 + $0x30] sm:$0xff] %vm1947_vm14, %v1870_v2  ;;  %v1892_v17 = vpop.permute.xlu2 %1891  ;;  %v2183_v2 = vld [vmem:[#allocation2 + $0xe1] sm:$0xff] }
 0x389   : > { %1956 = vst.msk [vmem:[#allocation3 + $0x38] sm:$0xff] %vm1947_vm14, %v1872_v56 }
 0x38a   : > { %1966 = vst.msk [vmem:[#allocation3 + $0x88] sm:$0x3] %vm1950_vm13, %v1892_v17 }
 0x38d   : > { %2081 = vrot.lane.b32.xlu0 %v7136_v58, %s6535_s29  ;;  %2083 = vrot.lane.b32.xlu1 %v7139_v1, %s6535_s29 }
 0x38e   : > { %2085 = vrot.lane.b32.xlu2 %v2002_v59, %s6535_s29 }
 0x38f   : > { %v1876_v35 = vpop.permute.xlu0 %1875  ;;  %v1878_v54 = vpop.permute.xlu1 %1877 }
 0x390   : > { %1958 = vst.msk [vmem:[#allocation3 + $0x48] sm:$0xff] %vm1947_vm14, %v1876_v35  ;;  %v1898_v58 = vpop.permute.xlu2 %1897  ;;  %v2184_v35 = vld [vmem:[#allocation2 + $0xe9] sm:$0x3] }
 0x391   : > { %1959 = vst.msk [vmem:[#allocation3 + $0x50] sm:$0xff] %vm1947_vm14, %v1878_v54 }
 0x392   : > { %1969 = vst.msk [vmem:[#allocation3 + $0xa0] sm:$0x3] %vm1950_vm13, %v1898_v58 }
 0x395   : > { %2087 = vrot.lane.b32.xlu0 %v7221_v12, %s6535_s29  ;;  %2089 = vrot.lane.b32.xlu1 %v7223_v14, %s6535_s29 }
 0x396   : > { %2091 = vrot.lane.b32.xlu2 %v2005_v0, %s6535_s29  ;;  %v2189_v0 = vld [vmem:[#allocation2 + $0x111] sm:$0xff] }
 0x397   : > { %v1882_v1 = vpop.permute.xlu0 %1881  ;;  %v1884_v63 = vpop.permute.xlu1 %1883 }
 0x398   : > { %1961 = vst.msk [vmem:[#allocation3 + $0x60] sm:$0xff] %vm1947_vm14, %v1882_v1  ;;  %v1904_v12 = vpop.permute.xlu2 %1903  ;;  %v2187_v1 = vld [vmem:[#allocation2 + $0x101] sm:$0x3] }
 0x399   : > { %1962 = vst.msk [vmem:[#allocation3 + $0x68] sm:$0xff] %vm1947_vm14, %v1884_v63  ;;  %v2188_v63 = vld [vmem:[#allocation2 + $0x109] sm:$0xff] }
 0x39a   : > { %1972 = vst.msk [vmem:[#allocation3 + $0xb8] sm:$0x3] %vm1950_vm13, %v1904_v12  ;;  %v2343_v12 = vld [vmem:[#allocation2 + $0x32] sm:$0xff] }
 0x39d   : > { %2093 = vrot.lane.b32.xlu0 %v2006_v27, %s6535_s29  ;;  %2095 = vrot.lane.b32.xlu1 %v2007_v28, %s6535_s29  ;;  %v2190_v28 = vld [vmem:[#allocation2 + $0x119] sm:$0x3] }
 0x39e   : > { %2097 = vrot.lane.b32.xlu2 %v2008_v9, %s6535_s29 }
 0x39f   : > { %v1888_v14 = vpop.permute.xlu0 %1887  ;;  %v1890_v8 = vpop.permute.xlu1 %1889 }
 0x3a0   : > { %1964 = vst.msk [vmem:[#allocation3 + $0x78] sm:$0xff] %vm1947_vm14, %v1888_v14  ;;  %v1910_v29 = vpop.permute.xlu2 %1909  ;;  %v2344_v14 = vld [vmem:[#allocation2 + $0x3a] sm:$0xff] }
 0x3a1   : > { %1965 = vst.msk [vmem:[#allocation3 + $0x80] sm:$0xff] %vm1947_vm14, %v1890_v8 }
 0x3a2   : > { %1975 = vst.msk [vmem:[#allocation3 + $0xd0] sm:$0x3] %vm1950_vm13, %v1910_v29  ;;  %v2346_v29 = vld [vmem:[#allocation2 + $0x4a] sm:$0xff] }
 0x3a5   : > { %2221 = vrot.lane.b32.xlu0 %v2161_v13, %s6536_s30  ;;  %2223 = vrot.lane.b32.xlu1 %v2162_v11, %s6536_s30  ;;  %v2345_v11 = vld [vmem:[#allocation2 + $0x42] sm:$0x3] }
 0x3a6   : > { %2225 = vrot.lane.b32.xlu2 %v2163_v31, %s6536_s30 }
 0x3a7   : > { %v1894_v32 = vpop.permute.xlu0 %1893  ;;  %v1896_v30 = vpop.permute.xlu1 %1895 }
 0x3a8   : > { %1967 = vst.msk [vmem:[#allocation3 + $0x90] sm:$0xff] %vm1947_vm14, %v1894_v32  ;;  %v1916_v6 = vpop.permute.xlu2 %1915  ;;  %v2347_v32 = vld [vmem:[#allocation2 + $0x52] sm:$0xff] }
 0x3a9   : > { %1968 = vst.msk [vmem:[#allocation3 + $0x98] sm:$0xff] %vm1947_vm14, %v1896_v30 }
 0x3aa   : > { %1978 = vst.msk [vmem:[#allocation3 + $0xe8] sm:$0x3] %vm1950_vm13, %v1916_v6  ;;  %v2349_v6 = vld [vmem:[#allocation2 + $0x62] sm:$0xff]  ;;  %vm3244_vm13 = vcmask 25600  }
 0x3ad   : > { %2227 = vrot.lane.b32.xlu0 %v2164_v46, %s6536_s30  ;;  %2229 = vrot.lane.b32.xlu1 %v2165_v47, %s6536_s30  ;;  %v2348_v47 = vld [vmem:[#allocation2 + $0x5a] sm:$0x3] }
 0x3ae   : > { %2231 = vrot.lane.b32.xlu2 %v2166_v4, %s6536_s30 }
 0x3af   : > { %v1900_v10 = vpop.permute.xlu0 %1899  ;;  %v1902_v3 = vpop.permute.xlu1 %1901 }
 0x3b0   : > { %1970 = vst.msk [vmem:[#allocation3 + $0xa8] sm:$0xff] %vm1947_vm14, %v1900_v10  ;;  %v2044_v38 = vpop.permute.xlu2 %2043  ;;  %v2350_v10 = vld [vmem:[#allocation2 + $0x6a] sm:$0xff] }
 0x3b1   : > { %1971 = vst.msk [vmem:[#allocation3 + $0xb0] sm:$0xff] %vm1947_vm14, %v1902_v3 }
 0x3b2   : > { %2133 = vst.msk [vmem:[#allocation3 + $0x10] sm:$0x3] %vm2132_vm15, %v2044_v38  ;;  %v2353_v38 = vld [vmem:[#allocation2 + $0x82] sm:$0xff] }
 0x3b5   : > { %2233 = vrot.lane.b32.xlu0 %v2167_v33, %s6536_s30  ;;  %2235 = vrot.lane.b32.xlu1 %v2168_v34, %s6536_s30  ;;  %v2352_v34 = vld [vmem:[#allocation2 + $0x7a] sm:$0xff] }
 0x3b6   : > { %2237 = vrot.lane.b32.xlu2 %v2169_v37, %s6536_s30 }
 0x3b7   : > { %v1906_v39 = vpop.permute.xlu0 %1905  ;;  %v1908_v36 = vpop.permute.xlu1 %1907 }
 0x3b8   : > { %1973 = vst.msk [vmem:[#allocation3 + $0xc0] sm:$0xff] %vm1947_vm14, %v1906_v39  ;;  %v2050_v52 = vpop.permute.xlu2 %2049 }
 0x3b9   : > { %1974 = vst.msk [vmem:[#allocation3 + $0xc8] sm:$0xff] %vm1947_vm14, %v1908_v36 }
 0x3ba   : > { %2136 = vst.msk [vmem:[#allocation3 + $0x28] sm:$0x3] %vm2132_vm15, %v2050_v52 }
 0x3bd   : > { %2239 = vrot.lane.b32.xlu0 %v2170_v18, %s6536_s30  ;;  %2241 = vrot.lane.b32.xlu1 %v2171_v19, %s6536_s30  ;;  %v2351_v18 = vld [vmem:[#allocation2 + $0x72] sm:$0x3] }
 0x3be   : > { %2243 = vrot.lane.b32.xlu2 %v2172_v55, %s6536_s30  ;;  %v2355_v19 = vld [vmem:[#allocation2 + $0x92] sm:$0xff]  ;;  %v2356_v55 = vld [vmem:[#allocation2 + $0x9a] sm:$0xff] }
 0x3bf   : > { %v1912_v40 = vpop.permute.xlu0 %1911  ;;  %v1914_v53 = vpop.permute.xlu1 %1913 }
 0x3c0   : > { %1976 = vst.msk [vmem:[#allocation3 + $0xd8] sm:$0xff] %vm1947_vm14, %v1912_v40  ;;  %v2056_v60 = vpop.permute.xlu2 %2055 }
 0x3c1   : > { %1977 = vst.msk [vmem:[#allocation3 + $0xe0] sm:$0xff] %vm1947_vm14, %v1914_v53 }
 0x3c2   : > { %2139 = vst.msk [vmem:[#allocation3 + $0x40] sm:$0x3] %vm2132_vm15, %v2056_v60 }
 0x3c5   : > { %2245 = vrot.lane.b32.xlu0 %v2173_v21, %s6536_s30  ;;  %2247 = vrot.lane.b32.xlu1 %v2174_v22, %s6536_s30  ;;  %v2358_v21 = vld [vmem:[#allocation2 + $0xaa] sm:$0xff] }
 0x3c6   : > { %2249 = vrot.lane.b32.xlu2 %v2175_v45, %s6536_s30  ;;  %v2361_v45 = vld [vmem:[#allocation2 + $0xc2] sm:$0xff] }
 0x3c7   : > { %v2040_v62 = vpop.permute.xlu0 %2039  ;;  %v2042_v44 = vpop.permute.xlu1 %2041 }
 0x3c8   : > { %2130 = vst.msk [vmem:[#allocation3] sm:$0xff] %vm2129_vm0, %v2040_v62  ;;  %v2062_v42 = vpop.permute.xlu2 %2061 }
 0x3c9   : > { %2131 = vst.msk [vmem:[#allocation3 + $0x8] sm:$0xff] %vm2129_vm0, %v2042_v44  ;;  %v2359_v44 = vld [vmem:[#allocation2 + $0xb2] sm:$0xff] }
 0x3ca   : > { %2142 = vst.msk [vmem:[#allocation3 + $0x58] sm:$0x3] %vm2132_vm15, %v2062_v42 }
 0x3cd   : > { %2251 = vrot.lane.b32.xlu0 %v2176_v5, %s6536_s30  ;;  %2253 = vrot.lane.b32.xlu1 %v2177_v7, %s6536_s30 }
 0x3ce   : > { %2255 = vrot.lane.b32.xlu2 %v2178_v26, %s6536_s30 }
 0x3cf   : > { %v2046_v51 = vpop.permute.xlu0 %2045  ;;  %v2048_v20 = vpop.permute.xlu1 %2047 }
 0x3d0   : > { %2134 = vst.msk [vmem:[#allocation3 + $0x18] sm:$0xff] %vm2129_vm0, %v2046_v51  ;;  %v2068_v41 = vpop.permute.xlu2 %2067  ;;  %v2354_v51 = vld [vmem:[#allocation2 + $0x8a] sm:$0x3] }
 0x3d1   : > { %2135 = vst.msk [vmem:[#allocation3 + $0x20] sm:$0xff] %vm2129_vm0, %v2048_v20  ;;  %v2362_v20 = vld [vmem:[#allocation2 + $0xca] sm:$0xff] }
 0x3d2   : > { %2145 = vst.msk [vmem:[#allocation3 + $0x70] sm:$0x3] %vm2132_vm15, %v2068_v41 }
 0x3d5   : > { %2257 = vrot.lane.b32.xlu0 %v2179_v49, %s6536_s30  ;;  %2259 = vrot.lane.b32.xlu1 %v2180_v50, %s6536_s30 }
 0x3d6   : > { %2261 = vrot.lane.b32.xlu2 %v2181_v25, %s6536_s30  ;;  %v2357_v25 = vld [vmem:[#allocation2 + $0xa2] sm:$0x3] }
 0x3d7   : > { %v2052_v43 = vpop.permute.xlu0 %2051  ;;  %v2054_v24 = vpop.permute.xlu1 %2053 }
 0x3d8   : > { %2137 = vst.msk [vmem:[#allocation3 + $0x30] sm:$0xff] %vm2129_vm0, %v2052_v43  ;;  %v2074_v56 = vpop.permute.xlu2 %2073 }
 0x3d9   : > { %2138 = vst.msk [vmem:[#allocation3 + $0x38] sm:$0xff] %vm2129_vm0, %v2054_v24 }
 0x3da   : > { %2148 = vst.msk [vmem:[#allocation3 + $0x88] sm:$0x3] %vm2132_vm15, %v2074_v56 }
 0x3dd   : > { %2263 = vrot.lane.b32.xlu0 %v2182_v61, %s6536_s30  ;;  %2265 = vrot.lane.b32.xlu1 %v2183_v2, %s6536_s30  ;;  %v2364_v61 = vld [vmem:[#allocation2 + $0xda] sm:$0xff] }
 0x3de   : > { %2267 = vrot.lane.b32.xlu2 %v2184_v35, %s6536_s30  ;;  %v2365_v35 = vld [vmem:[#allocation2 + $0xe2] sm:$0xff] }
 0x3df   : > { %v2058_v57 = vpop.permute.xlu0 %2057  ;;  %v2060_v17 = vpop.permute.xlu1 %2059 }
 0x3e0   : > { %2140 = vst.msk [vmem:[#allocation3 + $0x48] sm:$0xff] %vm2129_vm0, %v2058_v57  ;;  %v2080_v54 = vpop.permute.xlu2 %2079 }
 0x3e1   : > { %2141 = vst.msk [vmem:[#allocation3 + $0x50] sm:$0xff] %vm2129_vm0, %v2060_v17  ;;  %v2360_v17 = vld [vmem:[#allocation2 + $0xba] sm:$0x3] }
 0x3e2   : > { %2151 = vst.msk [vmem:[#allocation3 + $0xa0] sm:$0x3] %vm2132_vm15, %v2080_v54 }
 0x3e5   : > { %2269 = vrot.lane.b32.xlu0 %v7305_v23, %s6536_s30  ;;  %2271 = vrot.lane.b32.xlu1 %v7307_v48, %s6536_s30 }
 0x3e6   : > { %2273 = vrot.lane.b32.xlu2 %v2187_v1, %s6536_s30  ;;  %v2653_v1 = vld [vmem:[%s10404_s6 + $0x40] sm:$0xff] }
 0x3e7   : > { %v2064_v59 = vpop.permute.xlu0 %2063  ;;  %v2066_v58 = vpop.permute.xlu1 %2065  ;;  %2832 = vmatpush.msra.mxu0 %v2653_v1  ;;  %6411 = vmatpush.msra.mxu3 %v2653_v1 }
 0x3e8   : > { %2143 = vst.msk [vmem:[#allocation3 + $0x60] sm:$0xff] %vm2129_vm0, %v2064_v59  ;;  %v2086_v23 = vpop.permute.xlu2 %2085 }
 0x3e9   : > { %2144 = vst.msk [vmem:[#allocation3 + $0x68] sm:$0xff] %vm2129_vm0, %v2066_v58 }
 0x3ea   : > { %2154 = vst.msk [vmem:[#allocation3 + $0xb8] sm:$0x3] %vm2132_vm15, %v2086_v23 }
 0x3ed   : > { %2275 = vrot.lane.b32.xlu0 %v2188_v63, %s6536_s30  ;;  %2277 = vrot.lane.b32.xlu1 %v2189_v0, %s6536_s30  ;;  %v2651_v63 = vld [vmem:[%s10404_s6 + $0x30] sm:$0xff] }
 0x3ee   : > { %2279 = vrot.lane.b32.xlu2 %v2190_v28, %s6536_s30  ;;  %v2649_v28 = vld [vmem:[%s10404_s6 + $0x20] sm:$0xff] }
 0x3ef   : > { %v2070_v48 = vpop.permute.xlu0 %2069  ;;  %v2072_v27 = vpop.permute.xlu1 %2071 }
 0x3f0   : > { %2146 = vst.msk [vmem:[#allocation3 + $0x78] sm:$0xff] %vm2129_vm0, %v2070_v48  ;;  %v2092_v8 = vpop.permute.xlu2 %2091  ;;  %v2370_v48 = vld [vmem:[#allocation2 + $0x10a] sm:$0xff] }
 0x3f1   : > { %2147 = vst.msk [vmem:[#allocation3 + $0x80] sm:$0xff] %vm2129_vm0, %v2072_v27 }
 0x3f2   : > { %2157 = vst.msk [vmem:[#allocation3 + $0xd0] sm:$0x3] %vm2132_vm15, %v2092_v8  ;;  %v2647_v8 = vld [vmem:[%s10404_s6 + $0x10] sm:$0xff] }
 0x3f5   : > { %2403 = vrot.lane.b32.xlu0 %v2343_v12, %s6537_s25  ;;  %2405 = vrot.lane.b32.xlu1 %v2344_v14, %s6537_s25  ;;  %v2363_v12 = vld [vmem:[#allocation2 + $0xd2] sm:$0x3] }
 0x3f6   : > { %2407 = vrot.lane.b32.xlu2 %v2345_v11, %s6537_s25  ;;  %v2648_v14 = vld [vmem:[%s10404_s6 + $0x18] sm:$0xff]  ;;  %v2646_v11 = vld [vmem:[%s10404_s6 + $0x8] sm:$0xff] }
 0x3f7   : > { %v2076_v9 = vpop.permute.xlu0 %2075  ;;  %v2078_v13 = vpop.permute.xlu1 %2077 }
 0x3f8   : > { %2149 = vst.msk [vmem:[#allocation3 + $0x90] sm:$0xff] %vm2129_vm0, %v2076_v9  ;;  %v2098_v30 = vpop.permute.xlu2 %2097 }
 0x3f9   : > { %2150 = vst.msk [vmem:[#allocation3 + $0x98] sm:$0xff] %vm2129_vm0, %v2078_v13 }
 0x3fa   : > { %2160 = vst.msk [vmem:[#allocation3 + $0xe8] sm:$0x3] %vm2132_vm15, %v2098_v30  ;;  %v2645_v30 = vld [vmem:[%s10404_s6] sm:$0xff] }
 0x3fd   : > { %2409 = vrot.lane.b32.xlu0 %v2346_v29, %s6537_s25  ;;  %2411 = vrot.lane.b32.xlu1 %v2347_v32, %s6537_s25  ;;  %v2371_v29 = vld [vmem:[#allocation2 + $0x112] sm:$0xff] }
 0x3fe   : > { %2413 = vrot.lane.b32.xlu2 %v2348_v47, %s6537_s25  ;;  %v2366_v47 = vld [vmem:[#allocation2 + $0xea] sm:$0x3] }
 0x3ff   : > { %v2082_v31 = vpop.permute.xlu0 %2081  ;;  %v2084_v46 = vpop.permute.xlu1 %2083 }
 0x400   : > { %2152 = vst.msk [vmem:[#allocation3 + $0xa8] sm:$0xff] %vm2129_vm0, %v2082_v31  ;;  %v2226_v3 = vpop.permute.xlu2 %2225 }
 0x401   : > { %2153 = vst.msk [vmem:[#allocation3 + $0xb0] sm:$0xff] %vm2129_vm0, %v2084_v46 }
 0x402   : > { %2315 = vst.msk [vmem:[#allocation3 + $0x10] sm:$0x3] %vm2314_vm2, %v2226_v3 }
 0x405   : > { %2415 = vrot.lane.b32.xlu0 %v2349_v6, %s6537_s25  ;;  %2417 = vrot.lane.b32.xlu1 %v2350_v10, %s6537_s25 }
 0x406   : > { %2419 = vrot.lane.b32.xlu2 %v2351_v18, %s6537_s25 }
 0x407   : > { %v2088_v4 = vpop.permute.xlu0 %2087  ;;  %v2090_v33 = vpop.permute.xlu1 %2089 }
 0x408   : > { %2155 = vst.msk [vmem:[#allocation3 + $0xc0] sm:$0xff] %vm2129_vm0, %v2088_v4  ;;  %v2232_v39 = vpop.permute.xlu2 %2231 }
 0x409   : > { %2156 = vst.msk [vmem:[#allocation3 + $0xc8] sm:$0xff] %vm2129_vm0, %v2090_v33 }
 0x40a   : > { %2318 = vst.msk [vmem:[#allocation3 + $0x28] sm:$0x3] %vm2314_vm2, %v2232_v39 }
 0x40d   : > { %2421 = vrot.lane.b32.xlu0 %v2352_v34, %s6537_s25  ;;  %2423 = vrot.lane.b32.xlu1 %v2353_v38, %s6537_s25  ;;  %v2369_v34 = vld [vmem:[#allocation2 + $0x102] sm:$0x3] }
 0x40e   : > { %2425 = vrot.lane.b32.xlu2 %v2354_v51, %s6537_s25 }
 0x40f   : > { %v2094_v36 = vpop.permute.xlu0 %2093  ;;  %v2096_v37 = vpop.permute.xlu1 %2095 }
 0x410   : > { %2158 = vst.msk [vmem:[#allocation3 + $0xd8] sm:$0xff] %vm2129_vm0, %v2094_v36  ;;  %v2238_v52 = vpop.permute.xlu2 %2237 }
 0x411   : > { %2159 = vst.msk [vmem:[#allocation3 + $0xe0] sm:$0xff] %vm2129_vm0, %v2096_v37 }
 0x412   : > { %2321 = vst.msk [vmem:[#allocation3 + $0x40] sm:$0x3] %vm2314_vm2, %v2238_v52 }
 0x415   : > { %2427 = vrot.lane.b32.xlu0 %v2355_v19, %s6537_s25  ;;  %2429 = vrot.lane.b32.xlu1 %v2356_v55, %s6537_s25  ;;  %v2372_v55 = vld [vmem:[#allocation2 + $0x11a] sm:$0x3] }
 0x416   : > { %2431 = vrot.lane.b32.xlu2 %v2357_v25, %s6537_s25 }
 0x417   : > { %v2222_v40 = vpop.permute.xlu0 %2221  ;;  %v2224_v53 = vpop.permute.xlu1 %2223 }
 0x418   : > { %2312 = vst.msk [vmem:[#allocation3] sm:$0xff] %vm2311_vm4, %v2222_v40  ;;  %v2244_v22 = vpop.permute.xlu2 %2243 }
 0x419   : > { %2313 = vst.msk [vmem:[#allocation3 + $0x8] sm:$0xff] %vm2311_vm4, %v2224_v53 }
 0x41a   : > { %2324 = vst.msk [vmem:[#allocation3 + $0x58] sm:$0x3] %vm2314_vm2, %v2244_v22 }
 0x41d   : > { %2433 = vrot.lane.b32.xlu0 %v2358_v21, %s6537_s25  ;;  %2435 = vrot.lane.b32.xlu1 %v2359_v44, %s6537_s25 }
 0x41e   : > { %2437 = vrot.lane.b32.xlu2 %v2360_v17, %s6537_s25 }
 0x41f   : > { %v2228_v60 = vpop.permute.xlu0 %2227  ;;  %v2230_v62 = vpop.permute.xlu1 %2229 }
 0x420   : > { %2316 = vst.msk [vmem:[#allocation3 + $0x18] sm:$0xff] %vm2311_vm4, %v2228_v60  ;;  %v2250_v5 = vpop.permute.xlu2 %2249 }
 0x421   : > { %2317 = vst.msk [vmem:[#allocation3 + $0x20] sm:$0xff] %vm2311_vm4, %v2230_v62 }
 0x422   : > { %2327 = vst.msk [vmem:[#allocation3 + $0x70] sm:$0x3] %vm2314_vm2, %v2250_v5 }
 0x425   : > { %2439 = vrot.lane.b32.xlu0 %v2361_v45, %s6537_s25  ;;  %2441 = vrot.lane.b32.xlu1 %v2362_v20, %s6537_s25 }
 0x426   : > { %2443 = vrot.lane.b32.xlu2 %v2363_v12, %s6537_s25 }
 0x427   : > { %v2234_v7 = vpop.permute.xlu0 %2233  ;;  %v2236_v42 = vpop.permute.xlu1 %2235 }
 0x428   : > { %2319 = vst.msk [vmem:[#allocation3 + $0x30] sm:$0xff] %vm2311_vm4, %v2234_v7  ;;  %v2256_v26 = vpop.permute.xlu2 %2255 }
 0x429   : > { %2320 = vst.msk [vmem:[#allocation3 + $0x38] sm:$0xff] %vm2311_vm4, %v2236_v42 }
 0x42a   : > { %2330 = vst.msk [vmem:[#allocation3 + $0x88] sm:$0x3] %vm2314_vm2, %v2256_v26 }
 0x42d   : > { %2445 = vrot.lane.b32.xlu0 %v2364_v61, %s6537_s25  ;;  %2447 = vrot.lane.b32.xlu1 %v2365_v35, %s6537_s25 }
 0x42e   : > { %2449 = vrot.lane.b32.xlu2 %v2366_v47, %s6537_s25 }
 0x42f   : > { %v2240_v49 = vpop.permute.xlu0 %2239  ;;  %v2242_v50 = vpop.permute.xlu1 %2241 }
 0x430   : > { %2322 = vst.msk [vmem:[#allocation3 + $0x48] sm:$0xff] %vm2311_vm4, %v2240_v49  ;;  %v2262_v41 = vpop.permute.xlu2 %2261 }
 0x431   : > { %2323 = vst.msk [vmem:[#allocation3 + $0x50] sm:$0xff] %vm2311_vm4, %v2242_v50 }
 0x432   : > { %2333 = vst.msk [vmem:[#allocation3 + $0xa0] sm:$0x3] %vm2314_vm2, %v2262_v41 }
 0x435   : > { %2451 = vrot.lane.b32.xlu0 %v7389_v15, %s6537_s25  ;;  %2453 = vrot.lane.b32.xlu1 %v7391_v16, %s6537_s25  ;;  %v2652_v15 = vld [vmem:[%s10404_s6 + $0x38] sm:$0xff]  ;;  %v2650_v16 = vld [vmem:[%s10404_s6 + $0x28] sm:$0xff] }
 0x436   : > { %2833 = vmatpush.msra.mxu0 %v2652_v15  ;;  %6412 = vmatpush.msra.mxu3 %v2652_v15 }
 0x437   : > { %v2246_v43 = vpop.permute.xlu0 %2245  ;;  %v2248_v24 = vpop.permute.xlu1 %2247  ;;  %2455 = vrot.lane.b32.xlu2 %v2369_v34, %s6537_s25 }
 0x438   : > { %2325 = vst.msk [vmem:[#allocation3 + $0x60] sm:$0xff] %vm2311_vm4, %v2246_v43  ;;  %v2268_v2 = vpop.permute.xlu2 %2267  ;;  %2834 = vmatpush.msra.mxu0 %v2651_v63  ;;  %6413 = vmatpush.msra.mxu3 %v2651_v63 }
 0x439   : > { %2326 = vst.msk [vmem:[#allocation3 + $0x68] sm:$0xff] %vm2311_vm4, %v2248_v24 }
 0x43a   : > { %2336 = vst.msk [vmem:[#allocation3 + $0xb8] sm:$0x3] %vm2314_vm2, %v2268_v2  ;;  %2835 = vmatpush.msra.mxu0 %v2650_v16  ;;  %6414 = vmatpush.msra.mxu3 %v2650_v16 }
 0x43c   : > { %2836 = vmatpush.msra.mxu0 %v2649_v28  ;;  %6415 = vmatpush.msra.mxu3 %v2649_v28 }
 0x43d   : > { %2457 = vrot.lane.b32.xlu0 %v2370_v48, %s6537_s25  ;;  %2459 = vrot.lane.b32.xlu1 %v2371_v29, %s6537_s25 }
 0x43e   : > { %2837 = vmatpush.msra.mxu0 %v2648_v14  ;;  %6416 = vmatpush.msra.mxu3 %v2648_v14 }
 0x43f   : > { %v2252_v56 = vpop.permute.xlu0 %2251  ;;  %v2254_v57 = vpop.permute.xlu1 %2253  ;;  %2461 = vrot.lane.b32.xlu2 %v2372_v55, %s6537_s25 }
 0x440   : > { %2328 = vst.msk [vmem:[#allocation3 + $0x78] sm:$0xff] %vm2311_vm4, %v2252_v56  ;;  %v2274_v54 = vpop.permute.xlu2 %2273  ;;  %2838 = vmatpush.msra.mxu0 %v2647_v8  ;;  %6417 = vmatpush.msra.mxu3 %v2647_v8 }
 0x441   : > { %2329 = vst.msk [vmem:[#allocation3 + $0x80] sm:$0xff] %vm2311_vm4, %v2254_v57 }
 0x442   : > { %2339 = vst.msk [vmem:[#allocation3 + $0xd0] sm:$0x3] %vm2314_vm2, %v2274_v54  ;;  %2839 = vmatpush.msra.mxu0 %v2646_v11  ;;  %6418 = vmatpush.msra.mxu3 %v2646_v11 }
 0x444   : > { %2840 = vmatpush.msra.mxu0 %v2645_v30  ;;  %6419 = vmatpush.msra.mxu3 %v2645_v30 }
 0x447   : > { %v2258_v59 = vpop.permute.xlu0 %2257  ;;  %v2260_v58 = vpop.permute.xlu1 %2259 }
 0x448   : > { %2331 = vst.msk [vmem:[#allocation3 + $0x90] sm:$0xff] %vm2311_vm4, %v2258_v59  ;;  %v2280_v27 = vpop.permute.xlu2 %2279 }
 0x449   : > { %2332 = vst.msk [vmem:[#allocation3 + $0x98] sm:$0xff] %vm2311_vm4, %v2260_v58 }
 0x44a   : > { %2342 = vst.msk [vmem:[#allocation3 + $0xe8] sm:$0x3] %vm2314_vm2, %v2280_v27  ;;  %vm3481_vm2 = vcmask 97344  }
 0x44f   : > { %v2264_v0 = vpop.permute.xlu0 %2263  ;;  %v2266_v23 = vpop.permute.xlu1 %2265 }
 0x450   : > { %2334 = vst.msk [vmem:[#allocation3 + $0xa8] sm:$0xff] %vm2311_vm4, %v2264_v0  ;;  %v2408_v32 = vpop.permute.xlu2 %2407 }
 0x451   : > { %2335 = vst.msk [vmem:[#allocation3 + $0xb0] sm:$0xff] %vm2311_vm4, %v2266_v23 }
 0x452   : > { %2497 = vst.msk [vmem:[#allocation3 + $0x10] sm:$0x3] %vm2496_vm5, %v2408_v32 }
 0x457   : > { %v2270_v9 = vpop.permute.xlu0 %2269  ;;  %v2272_v13 = vpop.permute.xlu1 %2271 }
 0x458   : > { %2337 = vst.msk [vmem:[#allocation3 + $0xc0] sm:$0xff] %vm2311_vm4, %v2270_v9  ;;  %v2414_v6 = vpop.permute.xlu2 %2413 }
 0x459   : > { %2338 = vst.msk [vmem:[#allocation3 + $0xc8] sm:$0xff] %vm2311_vm4, %v2272_v13  ;;  %v2527_v22 = vld [vmem:[#allocation3 + $0x10] sm:$0x3] }
 0x45a   : > { %2500 = vst.msk [vmem:[#allocation3 + $0x28] sm:$0x3] %vm2496_vm5, %v2414_v6 }
 0x45f   : > { %v2276_v31 = vpop.permute.xlu0 %2275  ;;  %v2278_v46 = vpop.permute.xlu1 %2277 }
 0x460   : > { %2340 = vst.msk [vmem:[#allocation3 + $0xd8] sm:$0xff] %vm2311_vm4, %v2276_v31  ;;  %v2420_v60 = vpop.permute.xlu2 %2419 }
 0x461   : > { %2341 = vst.msk [vmem:[#allocation3 + $0xe0] sm:$0xff] %vm2311_vm4, %v2278_v46  ;;  %v2530_v17 = vld [vmem:[#allocation3 + $0x28] sm:$0x3]  ;;  %vm3676_vm4 = vcmask 162944  }
 0x462   : > { %2503 = vst.msk [vmem:[#allocation3 + $0x40] sm:$0x3] %vm2496_vm5, %v2420_v60 }
 0x467   : > { %v2404_v10 = vpop.permute.xlu0 %2403  ;;  %v2406_v3 = vpop.permute.xlu1 %2405 }
 0x468   : > { %2494 = vst.msk [vmem:[#allocation3] sm:$0xff] %vm2493_vm6, %v2404_v10  ;;  %v2426_v43 = vpop.permute.xlu2 %2425 }
 0x469   : > { %2495 = vst.msk [vmem:[#allocation3 + $0x8] sm:$0xff] %vm2493_vm6, %v2406_v3  ;;  %v2533_v0 = vld [vmem:[#allocation3 + $0x40] sm:$0x3] }
 0x46a   : > { %2506 = vst.msk [vmem:[#allocation3 + $0x58] sm:$0x3] %vm2496_vm5, %v2426_v43 }
 0x46f   : > { %v2525_v4 = vld [vmem:[#allocation3] sm:$0xff]  ;;  %v2410_v33 = vpop.permute.xlu0 %2409  ;;  %v2412_v18 = vpop.permute.xlu1 %2411 }
 0x470   : > { %v2585_v38 = vrot.slane %v2525_v4, 2  ;;  %v2586_v39 = vrot.slane %v2525_v4, 4  ;;  %v2587_v36 = vrot.slane %v2525_v4, 6  ;;  %2658 = vst [vmem:[#allocation1] ss:$4 sm:$0xff] %v2525_v4  ;;  %v2526_v37 = vld [vmem:[#allocation3 + $0x8] sm:$0xff]  ;;  %v2432_v8 = vpop.permute.xlu2 %2431 }
 0x471   : > { %v2588_v19 = vrot.slane %v2526_v37, 2  ;;  %2666 = vst [vmem:[#allocation1 + $0x20] ss:$4 sm:$0xff] %v2526_v37  ;;  %v2589_v52 = vrot.slane %v2526_v37, 4  ;;  %v2590_v40 = vrot.slane %v2526_v37, 6 }
 0x472   : > { %2660 = vst [vmem:[#allocation1 + $0x1] ss:$4 sm:$0xff] %v2585_v38  ;;  %v2536_v31 = vld [vmem:[#allocation3 + $0x58] sm:$0x3] }
 0x473   : > { %2662 = vst [vmem:[#allocation1 + $0x2] ss:$4 sm:$0xff] %v2586_v39 }
 0x474   : > { %2664 = vst [vmem:[#allocation1 + $0x3] ss:$4 sm:$0xff] %v2587_v36 }
 0x475   : > { %2668 = vst [vmem:[#allocation1 + $0x21] ss:$4 sm:$0xff] %v2588_v19 }
 0x476   : > { %2670 = vst [vmem:[#allocation1 + $0x22] ss:$4 sm:$0xff] %v2589_v52 }
 0x477   : > { %2672 = vst [vmem:[#allocation1 + $0x23] ss:$4 sm:$0xff] %v2590_v40  ;;  %v2416_v53 = vpop.permute.xlu0 %2415  ;;  %v2418_v21 = vpop.permute.xlu1 %2417 }
 0x478   : > { %2498 = vst.msk [vmem:[#allocation3 + $0x18] sm:$0xff] %vm2493_vm6, %v2410_v33  ;;  %v2438_v33 = vpop.permute.xlu2 %2437 }
 0x479   : > { %2499 = vst.msk [vmem:[#allocation3 + $0x20] sm:$0xff] %vm2493_vm6, %v2412_v18 }
 0x47a   : > { %2501 = vst.msk [vmem:[#allocation3 + $0x30] sm:$0xff] %vm2493_vm6, %v2416_v53 }
 0x47b   : > { %v2673_v62 = vld.sshfl [vmem:[#allocation1] sm:$0xff pattern:$0x73625140]  ;;  %2502 = vst.msk [vmem:[#allocation3 + $0x38] sm:$0xff] %vm2493_vm6, %v2418_v21 }
 0x47c   : > { %2675 = vst [vmem:[#allocation1] ss:$4 sm:$0xff] %v2527_v22  ;;  %6340 = vmatmul.msk.f32.vlgmr.msra.gmra.mxu0 %vm2778_vm7, %v2673_v62 }
 0x47d   : > { %2509 = vst.msk [vmem:[#allocation3 + $0x70] sm:$0x3] %vm2496_vm5, %v2432_v8 }
 0x47e   : > { %v2674_v44 = vld.sshfl [vmem:[#allocation1 + $0x20] sm:$0xff pattern:$0x73625140]  ;;  %2512 = vst.msk [vmem:[#allocation3 + $0x88] sm:$0x3] %vm2496_vm5, %v2438_v33 }
 0x47f   : > { %v2528_v45 = vld [vmem:[#allocation3 + $0x18] sm:$0xff]  ;;  %v2422_v49 = vpop.permute.xlu0 %2421  ;;  %v2424_v50 = vpop.permute.xlu1 %2423 }
 0x480   : > { %v2591_v5 = vrot.slane %v2528_v45, 2  ;;  %v2592_v7 = vrot.slane %v2528_v45, 4  ;;  %v2593_v42 = vrot.slane %v2528_v45, 6  ;;  %2676 = vst [vmem:[#allocation1 + $0x1] ss:$4 sm:$0xff] %v2528_v45  ;;  %v2529_v51 = vld [vmem:[#allocation3 + $0x20] sm:$0xff]  ;;  %v2444_v55 = vpop.permute.xlu2 %2443 }
 0x481   : > { %v2595_v20 = vrot.slane %v2529_v51, 4  ;;  %2680 = vst [vmem:[#allocation1 + $0x21] ss:$4 sm:$0xff] %v2529_v51  ;;  %v2594_v26 = vrot.slane %v2529_v51, 2  ;;  %v2531_v41 = vld [vmem:[#allocation3 + $0x30] sm:$0xff]  ;;  %v2596_v24 = vrot.slane %v2529_v51, 6 }
 0x482   : > { %2678 = vst [vmem:[#allocation1 + $0x3] ss:$4 sm:$0xff] %v2592_v7  ;;  %v2597_v25 = vrot.slane %v2531_v41, 2  ;;  %v2598_v2 = vrot.slane %v2531_v41, 4  ;;  %v2599_v56 = vrot.slane %v2531_v41, 6  ;;  %v2532_v57 = vld [vmem:[#allocation3 + $0x38] sm:$0xff] }
 0x483   : > { %2679 = vst [vmem:[#allocation1 + $0x20] ss:$4 sm:$0xff] %v2593_v42  ;;  %v2600_v54 = vrot.slane %v2532_v57, 2  ;;  %v2601_v1 = vrot.slane %v2532_v57, 4  ;;  %v2602_v15 = vrot.slane %v2532_v57, 6 }
 0x484   : > { %2677 = vst [vmem:[#allocation1 + $0x2] ss:$4 sm:$0xff] %v2591_v5  ;;  %6341 = vmatmul.msk.f32.gmra.mxu0 %vm2778_vm7, %v2674_v44  ;;  %v2539_v53 = vld [vmem:[#allocation3 + $0x70] sm:$0x3] }
 0x485   : > { %2682 = vst [vmem:[#allocation1 + $0x23] ss:$4 sm:$0xff] %v2595_v20 }
 0x486   : > { %2681 = vst [vmem:[#allocation1 + $0x22] ss:$4 sm:$0xff] %v2594_v26  ;;  %v2542_v26 = vld [vmem:[#allocation3 + $0x88] sm:$0x3] }
 0x487   : > { %2504 = vst.msk [vmem:[#allocation3 + $0x48] sm:$0xff] %vm2493_vm6, %v2422_v49  ;;  %v2428_v59 = vpop.permute.xlu0 %2427  ;;  %v2430_v58 = vpop.permute.xlu1 %2429 }
 0x488   : > { %2505 = vst.msk [vmem:[#allocation3 + $0x50] sm:$0xff] %vm2493_vm6, %v2424_v50 }
 0x489   : > { %2507 = vst.msk [vmem:[#allocation3 + $0x60] sm:$0xff] %vm2493_vm6, %v2428_v59 }
 0x48a   : > { %2508 = vst.msk [vmem:[#allocation3 + $0x68] sm:$0xff] %vm2493_vm6, %v2430_v58 }
 0x48b   : > { %v2683_v61 = vld.sshfl [vmem:[#allocation1] sm:$0xff pattern:$0x73625140]  ;;  %2515 = vst.msk [vmem:[#allocation3 + $0xa0] sm:$0x3] %vm2496_vm5, %v2444_v55 }
 0x48c   : > { %2685 = vst [vmem:[#allocation1] ss:$4 sm:$0xff] %v2596_v24  ;;  %6342 = vmatmul.msk.f32.gmra.mxu0 %vm2778_vm7, %v2683_v61  ;;  %v2450_v24 = vpop.permute.xlu2 %2449 }
 0x48d   : > { %2687 = vst [vmem:[#allocation1 + $0x2] ss:$4 sm:$0xff] %v2531_v41  ;;  %v2684_v35 = vld.sshfl [vmem:[#allocation1 + $0x20] sm:$0xff pattern:$0x73625140] }
 0x48e   : > { %2688 = vst [vmem:[#allocation1 + $0x3] ss:$4 sm:$0xff] %v2597_v25  ;;  %v2534_v23 = vld [vmem:[#allocation3 + $0x48] sm:$0xff] }
 0x48f   : > { %2689 = vst [vmem:[#allocation1 + $0x20] ss:$4 sm:$0xff] %v2598_v2  ;;  %v2603_v16 = vrot.slane %v2534_v23, 2  ;;  %v2604_v48 = vrot.slane %v2534_v23, 4  ;;  %v2605_v27 = vrot.slane %v2534_v23, 6  ;;  %v2535_v12 = vld [vmem:[#allocation3 + $0x50] sm:$0xff]  ;;  %v2434_v14 = vpop.permute.xlu0 %2433  ;;  %v2436_v13 = vpop.permute.xlu1 %2435 }
 0x490   : > { %2690 = vst [vmem:[#allocation1 + $0x21] ss:$4 sm:$0xff] %v2599_v56  ;;  %v2606_v9 = vrot.slane %v2535_v12, 2  ;;  %v2607_v11 = vrot.slane %v2535_v12, 4  ;;  %v2608_v29 = vrot.slane %v2535_v12, 6  ;;  %v2537_v32 = vld [vmem:[#allocation3 + $0x60] sm:$0xff] }
 0x491   : > { %2686 = vst [vmem:[#allocation1 + $0x1] ss:$4 sm:$0xff] %v2530_v17  ;;  %v2609_v46 = vrot.slane %v2537_v32, 2  ;;  %v2610_v47 = vrot.slane %v2537_v32, 4  ;;  %v2611_v10 = vrot.slane %v2537_v32, 6  ;;  %v2538_v3 = vld [vmem:[#allocation3 + $0x68] sm:$0xff] }
 0x492   : > { %2691 = vst [vmem:[#allocation1 + $0x22] ss:$4 sm:$0xff] %v2532_v57  ;;  %v2612_v38 = vrot.slane %v2538_v3, 2  ;;  %v2613_v39 = vrot.slane %v2538_v3, 4  ;;  %v2614_v18 = vrot.slane %v2538_v3, 6 }
 0x493   : > { %2692 = vst [vmem:[#allocation1 + $0x23] ss:$4 sm:$0xff] %v2600_v54  ;;  %v2545_v57 = vld [vmem:[#allocation3 + $0xa0] sm:$0x3] }
 0x494   : > { %6343 = vmatmul.msk.f32.gmra.mxu0 %vm2778_vm7, %v2684_v35  ;;  %2510 = vst.msk [vmem:[#allocation3 + $0x78] sm:$0xff] %vm2493_vm6, %v2434_v14 }
 0x495   : > { %2511 = vst.msk [vmem:[#allocation3 + $0x80] sm:$0xff] %vm2493_vm6, %v2436_v13 }
 0x496   : > { %2518 = vst.msk [vmem:[#allocation3 + $0xb8] sm:$0x3] %vm2496_vm5, %v2450_v24 }
 0x497   : > { %v2440_v4 = vpop.permute.xlu0 %2439  ;;  %v2442_v34 = vpop.permute.xlu1 %2441 }
 0x498   : > { %v2693_v63 = vld.sshfl [vmem:[#allocation1] sm:$0xff pattern:$0x73625140]  ;;  %2513 = vst.msk [vmem:[#allocation3 + $0x90] sm:$0xff] %vm2493_vm6, %v2440_v4 }
 0x499   : > { %2695 = vst [vmem:[#allocation1] ss:$4 sm:$0xff] %v2601_v1  ;;  %v2456_v1 = vpop.permute.xlu2 %2455 }
 0x49a   : > { %2696 = vst [vmem:[#allocation1 + $0x1] ss:$4 sm:$0xff] %v2602_v15  ;;  %v2694_v28 = vld.sshfl [vmem:[#allocation1 + $0x20] sm:$0xff pattern:$0x73625140] }
 0x49b   : > { %2697 = vst [vmem:[#allocation1 + $0x2] ss:$4 sm:$0xff] %v2533_v0  ;;  %v2540_v36 = vld [vmem:[#allocation3 + $0x78] sm:$0xff] }
 0x49c   : > { %2698 = vst [vmem:[#allocation1 + $0x3] ss:$4 sm:$0xff] %v2534_v23  ;;  %6344 = vmatmul.msk.f32.gmra.mxu0 %vm2778_vm7, %v2693_v63  ;;  %v2615_v19 = vrot.slane %v2540_v36, 2  ;;  %v2616_v52 = vrot.slane %v2540_v36, 4  ;;  %v2541_v21 = vld [vmem:[#allocation3 + $0x80] sm:$0xff]  ;;  %v2617_v60 = vrot.slane %v2540_v36, 6 }
 0x49d   : > { %2699 = vst [vmem:[#allocation1 + $0x20] ss:$4 sm:$0xff] %v2603_v16  ;;  %v2618_v44 = vrot.slane %v2541_v21, 2  ;;  %v2619_v5 = vrot.slane %v2541_v21, 4  ;;  %v2620_v42 = vrot.slane %v2541_v21, 6 }
 0x49e   : > { %2700 = vst [vmem:[#allocation1 + $0x21] ss:$4 sm:$0xff] %v2604_v48 }
 0x49f   : > { %2701 = vst [vmem:[#allocation1 + $0x22] ss:$4 sm:$0xff] %v2605_v27  ;;  %v2446_v22 = vpop.permute.xlu0 %2445  ;;  %v2448_v62 = vpop.permute.xlu1 %2447  ;;  %v2543_v7 = vld [vmem:[#allocation3 + $0x90] sm:$0xff] }
 0x4a0   : > { %2702 = vst [vmem:[#allocation1 + $0x23] ss:$4 sm:$0xff] %v2535_v12  ;;  %v2621_v51 = vrot.slane %v2543_v7, 2  ;;  %v2622_v50 = vrot.slane %v2543_v7, 4  ;;  %v2623_v43 = vrot.slane %v2543_v7, 6 }
 0x4a1   : > { %2514 = vst.msk [vmem:[#allocation3 + $0x98] sm:$0xff] %vm2493_vm6, %v2442_v34  ;;  %v2548_v12 = vld [vmem:[#allocation3 + $0xb8] sm:$0x3] }
 0x4a2   : > { %2516 = vst.msk [vmem:[#allocation3 + $0xa8] sm:$0xff] %vm2493_vm6, %v2446_v22 }
 0x4a3   : > { %v2703_v30 = vld.sshfl [vmem:[#allocation1] sm:$0xff pattern:$0x73625140]  ;;  %2517 = vst.msk [vmem:[#allocation3 + $0xb0] sm:$0xff] %vm2493_vm6, %v2448_v62  ;;  %v3024_v62 = vlaneseq }
 0x4a4   : > { %2705 = vst [vmem:[#allocation1] ss:$4 sm:$0xff] %v2606_v9  ;;  %6345 = vmatmul.msk.f32.gmra.mxu0 %vm2778_vm7, %v2694_v28  ;;  %v2462_v9 = vpop.permute.xlu2 %2461 }
 0x4a5   : > { %2706 = vst [vmem:[#allocation1 + $0x1] ss:$4 sm:$0xff] %v2607_v11 }
 0x4a6   : > { %2707 = vst [vmem:[#allocation1 + $0x2] ss:$4 sm:$0xff] %v2608_v29 }
 0x4a7   : > { %v2704_v6 = vld.sshfl [vmem:[#allocation1 + $0x20] sm:$0xff pattern:$0x73625140]  ;;  %2708 = vst [vmem:[#allocation1 + $0x3] ss:$4 sm:$0xff] %v2536_v31  ;;  %v2452_v49 = vpop.permute.xlu0 %2451  ;;  %v2454_v54 = vpop.permute.xlu1 %2453 }
 0x4a8   : > { %2709 = vst [vmem:[#allocation1 + $0x20] ss:$4 sm:$0xff] %v2537_v32  ;;  %v2544_v41 = vld [vmem:[#allocation3 + $0x98] sm:$0xff] }
 0x4a9   : > { %2710 = vst [vmem:[#allocation1 + $0x21] ss:$4 sm:$0xff] %v2609_v46  ;;  %v2624_v61 = vrot.slane %v2544_v41, 2  ;;  %v2625_v2 = vrot.slane %v2544_v41, 4  ;;  %v2626_v56 = vrot.slane %v2544_v41, 6  ;;  %v2546_v35 = vld [vmem:[#allocation3 + $0xa8] sm:$0xff] }
 0x4aa   : > { %2711 = vst [vmem:[#allocation1 + $0x22] ss:$4 sm:$0xff] %v2610_v47  ;;  %v2627_v58 = vrot.slane %v2546_v35, 2  ;;  %v2628_v15 = vrot.slane %v2546_v35, 4  ;;  %v2629_v63 = vrot.slane %v2546_v35, 6  ;;  %v2547_v23 = vld [vmem:[#allocation3 + $0xb0] sm:$0xff] }
 0x4ab   : > { %2712 = vst [vmem:[#allocation1 + $0x23] ss:$4 sm:$0xff] %v2611_v10  ;;  %v2630_v16 = vrot.slane %v2547_v23, 2  ;;  %v2631_v48 = vrot.slane %v2547_v23, 4  ;;  %v2632_v27 = vrot.slane %v2547_v23, 6 }
 0x4ac   : > { %6346 = vmatmul.msk.f32.gmra.mxu0 %vm2778_vm7, %v2703_v30  ;;  %2519 = vst.msk [vmem:[#allocation3 + $0xc0] sm:$0xff] %vm2493_vm6, %v2452_v49 }
 0x4ad   : > { %2520 = vst.msk [vmem:[#allocation3 + $0xc8] sm:$0xff] %vm2493_vm6, %v2454_v54 }
 0x4ae   : > { %v2713_v37 = vld.sshfl [vmem:[#allocation1] sm:$0xff pattern:$0x73625140]  ;;  %2521 = vst.msk [vmem:[#allocation3 + $0xd0] sm:$0x3] %vm2496_vm5, %v2456_v1 }
 0x4af   : > { %2715 = vst [vmem:[#allocation1] ss:$4 sm:$0xff] %v2538_v3  ;;  %v2458_v59 = vpop.permute.xlu0 %2457  ;;  %v2460_v8 = vpop.permute.xlu1 %2459 }
 0x4b0   : > { %2716 = vst [vmem:[#allocation1 + $0x1] ss:$4 sm:$0xff] %v2612_v38 }
 0x4b1   : > { %2717 = vst [vmem:[#allocation1 + $0x2] ss:$4 sm:$0xff] %v2613_v39 }
 0x4b2   : > { %v2714_v40 = vld.sshfl [vmem:[#allocation1 + $0x20] sm:$0xff pattern:$0x73625140]  ;;  %2718 = vst [vmem:[#allocation1 + $0x3] ss:$4 sm:$0xff] %v2614_v18 }
 0x4b3   : > { %2720 = vst [vmem:[#allocation1 + $0x21] ss:$4 sm:$0xff] %v2540_v36  ;;  %v2549_v14 = vld [vmem:[#allocation3 + $0xc0] sm:$0xff] }
 0x4b4   : > { %2721 = vst [vmem:[#allocation1 + $0x22] ss:$4 sm:$0xff] %v2615_v19  ;;  %6347 = vmatmul.msk.f32.gmra.mxu0 %vm2778_vm7, %v2704_v6  ;;  %v2633_v13 = vrot.slane %v2549_v14, 2  ;;  %v2634_v11 = vrot.slane %v2549_v14, 4  ;;  %v2550_v29 = vld [vmem:[#allocation3 + $0xc8] sm:$0xff]  ;;  %v2635_v30 = vrot.slane %v2549_v14, 6 }
 0x4b5   : > { %2722 = vst [vmem:[#allocation1 + $0x23] ss:$4 sm:$0xff] %v2616_v52  ;;  %v2636_v31 = vrot.slane %v2550_v29, 2  ;;  %v2637_v46 = vrot.slane %v2550_v29, 4  ;;  %v2638_v6 = vrot.slane %v2550_v29, 6 }
 0x4b6   : > { %2719 = vst [vmem:[#allocation1 + $0x20] ss:$4 sm:$0xff] %v2539_v53  ;;  %v2551_v38 = vld [vmem:[#allocation3 + $0xd0] sm:$0x3]  ;;  %v7692_v53 = vld [vmem:[%s10405_s7] ss:$0 sm:$0xff] }
 0x4b7   : > { %2522 = vst.msk [vmem:[#allocation3 + $0xd8] sm:$0xff] %vm2493_vm6, %v2458_v59 }
 0x4b8   : > { %2523 = vst.msk [vmem:[#allocation3 + $0xe0] sm:$0xff] %vm2493_vm6, %v2460_v8  ;;  %vm3871_vm6 = vcmask 228544  }
 0x4b9   : > { %v2723_v45 = vld.sshfl [vmem:[#allocation1] sm:$0xff pattern:$0x73625140]  ;;  %2524 = vst.msk [vmem:[#allocation3 + $0xe8] sm:$0x3] %vm2496_vm5, %v2462_v9  ;;  %vm3773_vm5 = vcmask 195744  }
 0x4ba   : > { %2725 = vst [vmem:[#allocation1] ss:$4 sm:$0xff] %v2617_v60 }
 0x4bb   : > { %2726 = vst [vmem:[#allocation1 + $0x1] ss:$4 sm:$0xff] %v2541_v21 }
 0x4bc   : > { %2727 = vst [vmem:[#allocation1 + $0x2] ss:$4 sm:$0xff] %v2618_v44  ;;  %6348 = vmatmul.msk.f32.gmra.mxu0 %vm2778_vm7, %v2713_v37 }
 0x4bd   : > { %v2724_v20 = vld.sshfl [vmem:[#allocation1 + $0x20] sm:$0xff pattern:$0x73625140]  ;;  %2728 = vst [vmem:[#allocation1 + $0x3] ss:$4 sm:$0xff] %v2619_v5 }
 0x4be   : > { %2729 = vst [vmem:[#allocation1 + $0x20] ss:$4 sm:$0xff] %v2620_v42  ;;  %v2552_v10 = vld [vmem:[#allocation3 + $0xd8] sm:$0xff] }
 0x4bf   : > { %2731 = vst [vmem:[#allocation1 + $0x22] ss:$4 sm:$0xff] %v2543_v7  ;;  %v2639_v3 = vrot.slane %v2552_v10, 2  ;;  %v2640_v4 = vrot.slane %v2552_v10, 4  ;;  %v2641_v34 = vrot.slane %v2552_v10, 6  ;;  %v2553_v39 = vld [vmem:[#allocation3 + $0xe0] sm:$0xff] }
 0x4c0   : > { %2732 = vst [vmem:[#allocation1 + $0x23] ss:$4 sm:$0xff] %v2621_v51  ;;  %v2642_v36 = vrot.slane %v2553_v39, 2  ;;  %v2643_v18 = vrot.slane %v2553_v39, 4  ;;  %v2644_v19 = vrot.slane %v2553_v39, 6  ;;  %v7698_v7 = vshrl.u32 %v3024_v62, 7 }
 0x4c1   : > { %2730 = vst [vmem:[#allocation1 + $0x21] ss:$4 sm:$0xff] %v2542_v26  ;;  %v2554_v52 = vld [vmem:[#allocation3 + $0xe8] sm:$0x3]  ;;  %v3038_v51 = vstv %s3037_s28 }
 0x4c2   : > { %vm3028_vm8 = vcmp.ge.s32.totalorder %v7698_v7, 1  ;;  %vm7703_vm9 = vcmp.eq.s32.totalorder %v3038_v51, 1 }
 0x4c3   : > { %vm3040_vm10 = vmand %vm3028_vm8, %vm7703_vm9 }
 0x4c4   : > { %v2733_v25 = vld.sshfl [vmem:[#allocation1] sm:$0xff pattern:$0x73625140]  ;;  %6349 = vmatmul.msk.f32.gmra.mxu0 %vm2778_vm7, %v2714_v40 }
 0x4c5   : > { %2735 = vst [vmem:[#allocation1] ss:$4 sm:$0xff] %v2622_v50 }
 0x4c6   : > { %2736 = vst [vmem:[#allocation1 + $0x1] ss:$4 sm:$0xff] %v2623_v43 }
 0x4c7   : > { %2737 = vst [vmem:[#allocation1 + $0x2] ss:$4 sm:$0xff] %v2544_v41 }
 0x4c8   : > { %v2734_v17 = vld.sshfl [vmem:[#allocation1 + $0x20] sm:$0xff pattern:$0x73625140]  ;;  %2738 = vst [vmem:[#allocation1 + $0x3] ss:$4 sm:$0xff] %v2624_v61 }
 0x4c9   : > { %2739 = vst [vmem:[#allocation1 + $0x20] ss:$4 sm:$0xff] %v2625_v2  ;;  %6353 = vmatmul.msk.f32.vlgmr.msra.gmra.mxu3 %vm2778_vm7, %v2734_v17  ;;  %v7715_v17 = vadd.s32 16, %v7698_v7 }
 0x4ca   : > { %2740 = vst [vmem:[#allocation1 + $0x21] ss:$4 sm:$0xff] %v2626_v56 }
 0x4cb   : > { %2741 = vst [vmem:[#allocation1 + $0x22] ss:$4 sm:$0xff] %v2545_v57  ;;  %vm3033_vm11 = vcmp.le.s32.totalorder %v7715_v17, 16 }
 0x4cc   : > { %6350 = vmatmul.msk.f32.gmra.mxu0 %vm2778_vm7, %v2723_v45  ;;  %2742 = vst [vmem:[#allocation1 + $0x23] ss:$4 sm:$0xff] %v2546_v35  ;;  %vm3042_vm12 = vmand %vm3033_vm11, %vm7703_vm9 }
 0x4cf   : > { %v2743_v0 = vld.sshfl [vmem:[#allocation1] sm:$0xff pattern:$0x73625140] }
 0x4d0   : > { %2745 = vst [vmem:[#allocation1] ss:$4 sm:$0xff] %v2627_v58 }
 0x4d1   : > { %2746 = vst [vmem:[#allocation1 + $0x1] ss:$4 sm:$0xff] %v2628_v15  ;;  %6354 = vmatmul.msk.f32.gmra.mxu3 %vm2778_vm7, %v2743_v0 }
 0x4d2   : > { %2747 = vst [vmem:[#allocation1 + $0x2] ss:$4 sm:$0xff] %v2629_v63 }
 0x4d3   : > { %v2744_v28 = vld.sshfl [vmem:[#allocation1 + $0x20] sm:$0xff pattern:$0x73625140]  ;;  %2748 = vst [vmem:[#allocation1 + $0x3] ss:$4 sm:$0xff] %v2547_v23 }
 0x4d4   : > { %6351 = vmatmul.msk.f32.gmra.mxu0 %vm2778_vm7, %v2724_v20  ;;  %2749 = vst [vmem:[#allocation1 + $0x20] ss:$4 sm:$0xff] %v2630_v16 }
 0x4d5   : > { %2750 = vst [vmem:[#allocation1 + $0x21] ss:$4 sm:$0xff] %v2631_v48 }
 0x4d6   : > { %2751 = vst [vmem:[#allocation1 + $0x22] ss:$4 sm:$0xff] %v2632_v27 }
 0x4d7   : > { %2752 = vst [vmem:[#allocation1 + $0x23] ss:$4 sm:$0xff] %v2548_v12 }
 0x4d9   : > { %6355 = vmatmul.msk.f32.gmra.mxu3 %vm2778_vm7, %v2744_v28 }
 0x4da   : > { %v2753_v32 = vld.sshfl [vmem:[#allocation1] sm:$0xff pattern:$0x73625140] }
 0x4db   : > { %2755 = vst [vmem:[#allocation1] ss:$4 sm:$0xff] %v2549_v14 }
 0x4dc   : > { %2756 = vst [vmem:[#allocation1 + $0x1] ss:$4 sm:$0xff] %v2633_v13  ;;  %6352 = vmatmul.msk.f32.gmra.mxu0 %vm2778_vm7, %v2733_v25 }
 0x4dd   : > { %2757 = vst [vmem:[#allocation1 + $0x2] ss:$4 sm:$0xff] %v2634_v11 }
 0x4de   : > { %2758 = vst [vmem:[#allocation1 + $0x3] ss:$4 sm:$0xff] %v2635_v30  ;;  %v2754_v47 = vld.sshfl [vmem:[#allocation1 + $0x20] sm:$0xff pattern:$0x73625140] }
 0x4df   : > { %2759 = vst [vmem:[#allocation1 + $0x20] ss:$4 sm:$0xff] %v2550_v29 }
 0x4e0   : > { %2760 = vst [vmem:[#allocation1 + $0x21] ss:$4 sm:$0xff] %v2636_v31 }
 0x4e1   : > { %2761 = vst [vmem:[#allocation1 + $0x22] ss:$4 sm:$0xff] %v2637_v46  ;;  %6356 = vmatmul.msk.f32.gmra.mxu3 %vm2778_vm7, %v2753_v32 }
 0x4e2   : > { %2762 = vst [vmem:[#allocation1 + $0x23] ss:$4 sm:$0xff] %v2638_v6 }
 0x4e5   : > { %v2763_v33 = vld.sshfl [vmem:[#allocation1] sm:$0xff pattern:$0x73625140] }
 0x4e6   : > { %2766 = vst [vmem:[#allocation1 + $0x1] ss:$4 sm:$0xff] %v2552_v10 }
 0x4e7   : > { %2767 = vst [vmem:[#allocation1 + $0x2] ss:$4 sm:$0xff] %v2639_v3 }
 0x4e8   : > { %2768 = vst [vmem:[#allocation1 + $0x3] ss:$4 sm:$0xff] %v2640_v4 }
 0x4e9   : > { %v2764_v37 = vld.sshfl [vmem:[#allocation1 + $0x20] sm:$0xff pattern:$0x73625140]  ;;  %2765 = vst [vmem:[#allocation1] ss:$4 sm:$0xff] %v2551_v38  ;;  %6357 = vmatmul.msk.f32.gmra.mxu3 %vm2778_vm7, %v2754_v47 }
 0x4ea   : > { %2769 = vst [vmem:[#allocation1 + $0x20] ss:$4 sm:$0xff] %v2641_v34 }
 0x4eb   : > { %2770 = vst [vmem:[#allocation1 + $0x21] ss:$4 sm:$0xff] %v2553_v39 }
 0x4ec   : > { %2771 = vst [vmem:[#allocation1 + $0x22] ss:$4 sm:$0xff] %v2642_v36 }
 0x4ed   : > { %2772 = vst [vmem:[#allocation1 + $0x23] ss:$4 sm:$0xff] %v2643_v18 }
 0x4f0   : > { %v2773_v40 = vld.sshfl [vmem:[#allocation1] sm:$0xff pattern:$0x73625140] }
 0x4f1   : > { %2775 = vst [vmem:[#allocation1] ss:$4 sm:$0xff] %v2644_v19  ;;  %6358 = vmatmul.msk.f32.gmra.mxu3 %vm2778_vm7, %v2763_v33 }
 0x4f2   : > { %2776 = vst [vmem:[#allocation1 + $0x1] ss:$4 sm:$0xff] %v2554_v52 }
 0x4f4   : > { %v2774_v26 = vld.sshfl [vmem:[#allocation1 + $0x20] sm:$0xff pattern:$0x73625140] }
 0x4f9   : > { %v2842_v55 = vpop.f32.mrf.mxu0  ;;  %6359 = vmatmul.msk.f32.gmra.mxu3 %vm2778_vm7, %v2764_v37  ;;  %v2777_v22 = vld.sshfl [vmem:[#allocation1] sm:$0xff pattern:$0x73625140] }
 0x4fa   : > { %v2843_v21 = vadd.f32 %v7692_v53, %v2842_v55 }
 0x4fc   : > { %v2911_v60 = vmax.f32 %v2843_v21, 0.0 }
 0x4fe   : > { %v2957_v44 = vrot.slane %v2911_v60, 2  ;;  %v2958_v45 = vrot.slane %v2911_v60, 4  ;;  %v2959_v5 = vrot.slane %v2911_v60, 6  ;;  %3055 = vst [vmem:[#allocation1] ss:$4 sm:$0xff] %v2911_v60 }
 0x500   : > { %3057 = vst [vmem:[#allocation1 + $0x1] ss:$4 sm:$0xff] %v2957_v44 }
 0x501   : > { %3059 = vst [vmem:[#allocation1 + $0x2] ss:$4 sm:$0xff] %v2958_v45  ;;  %v2845_v42 = vpop.f32.mrf.mxu0  ;;  %6360 = vmatmul.msk.f32.gmra.mxu3 %vm2778_vm7, %v2773_v40 }
 0x502   : > { %3061 = vst [vmem:[#allocation1 + $0x3] ss:$4 sm:$0xff] %v2959_v5  ;;  %v2846_v20 = vadd.f32 %v7692_v53, %v2845_v42 }
 0x504   : > { %v2912_v49 = vmax.f32 %v2846_v20, 0.0 }
 0x506   : > { %v2960_v41 = vrot.slane %v2912_v49, 2  ;;  %v2961_v43 = vrot.slane %v2912_v49, 4  ;;  %v2962_v24 = vrot.slane %v2912_v49, 6  ;;  %3063 = vst [vmem:[#allocation1 + $0x20] ss:$4 sm:$0xff] %v2912_v49 }
 0x508   : > { %3065 = vst [vmem:[#allocation1 + $0x21] ss:$4 sm:$0xff] %v2960_v41 }
 0x509   : > { %v3070_v25 = vld.sshfl [vmem:[#allocation1] sm:$0xff pattern:$0x73625140]  ;;  %3067 = vst [vmem:[#allocation1 + $0x22] ss:$4 sm:$0xff] %v2961_v43  ;;  %v2848_v61 = vpop.f32.mrf.mxu0  ;;  %6361 = vmatmul.msk.f32.gmra.mxu3 %vm2778_vm7, %v2774_v26 }
 0x50a   : > { %3069 = vst [vmem:[#allocation1 + $0x23] ss:$4 sm:$0xff] %v2962_v24  ;;  %v2849_v2 = vadd.f32 %v7692_v53, %v2848_v61  ;;  %v3212_v56 = vsel %vm3040_vm10, %v3070_v25, 0.0  ;;  %vm4107_vm10 = vcmask 293888  }
 0x50b   : > { %3242 = vst.msk [vmem:[#allocation4] sm:$0xff] %vm820_vm1, %v3212_v56 }
 0x50c   : > { %v2913_v57 = vmax.f32 %v2849_v2, 0.0 }
 0x50e   : > { %v2963_v35 = vrot.slane %v2913_v57, 2  ;;  %3072 = vst [vmem:[#allocation1] ss:$4 sm:$0xff] %v2913_v57  ;;  %v2964_v54 = vrot.slane %v2913_v57, 4  ;;  %v2965_v59 = vrot.slane %v2913_v57, 6 }
 0x511   : > { %v3071_v58 = vld.sshfl [vmem:[#allocation1 + $0x20] sm:$0xff pattern:$0x73625140]  ;;  %v2851_v1 = vpop.f32.mrf.mxu0  ;;  %6362 = vmatmul.msk.f32.gmra.mxu3 %vm2778_vm7, %v2777_v22  ;;  %vm3968_vm7 = vcmask 261344  }
 0x512   : > { %3074 = vst [vmem:[#allocation1 + $0x20] ss:$4 sm:$0xff] %v2963_v35  ;;  %v2852_v15 = vadd.f32 %v7692_v53, %v2851_v1  ;;  %v3213_v63 = vsel %vm7703_vm9, %v3071_v58, 0.0  ;;  %v3273_v12 = vld [vmem:[#allocation4] sm:$0xff]  ;;  %vm4065_vm9 = vcmask 294144  }
 0x513   : > { %3075 = vst [vmem:[#allocation1 + $0x21] ss:$4 sm:$0xff] %v2964_v54 }
 0x514   : > { %3076 = vst [vmem:[#allocation1 + $0x22] ss:$4 sm:$0xff] %v2965_v59  ;;  %v2914_v0 = vmax.f32 %v2852_v15, 0.0 }
 0x515   : > { %v3073_v23 = vld.sshfl [vmem:[#allocation1] sm:$0xff pattern:$0x73625140]  ;;  %3243 = vst.msk [vmem:[#allocation4 + $0x8] sm:$0xff] %vm820_vm1, %v3213_v63 }
 0x516   : > { %v2966_v16 = vrot.slane %v2914_v0, 2  ;;  %v2967_v48 = vrot.slane %v2914_v0, 4  ;;  %v2968_v27 = vrot.slane %v2914_v0, 6  ;;  %3077 = vst [vmem:[#allocation1 + $0x23] ss:$4 sm:$0xff] %v2914_v0  ;;  %v3214_v28 = vsel %vm3042_vm12, %v3073_v23, 0.0 }
 0x517   : > { %3245 = vst.msk [vmem:[#allocation4 + $0x10] sm:$0x3] %vm3244_vm13, %v3214_v28 }
 0x518   : > { %3079 = vst [vmem:[#allocation1] ss:$4 sm:$0xff] %v2966_v16 }
 0x519   : > { %3080 = vst [vmem:[#allocation1 + $0x1] ss:$4 sm:$0xff] %v2967_v48  ;;  %v2854_v14 = vpop.f32.mrf.mxu0 }
 0x51a   : > { %3081 = vst [vmem:[#allocation1 + $0x2] ss:$4 sm:$0xff] %v2968_v27  ;;  %v2855_v8 = vadd.f32 %v7692_v53, %v2854_v14 }
 0x51b   : > { %3289 = vst.msk [vmem:[#allocation5] sm:$0xff] %vm820_vm1, %v3273_v12 }
 0x51c   : > { %v2915_v9 = vmax.f32 %v2855_v8, 0.0  ;;  %v3305_v13 = vld [vmem:[#allocation4 + $0x1] sm:$0xff] }
 0x51d   : > { %v3274_v11 = vld [vmem:[#allocation4 + $0x8] sm:$0xff]  ;;  %3337 = vrot.lane.b32.xlu0 %v3305_v13, %s6526_s23 }
 0x51e   : > { %v3078_v29 = vld.sshfl [vmem:[#allocation1 + $0x20] sm:$0xff pattern:$0x73625140]  ;;  %3290 = vst.msk [vmem:[#allocation5 + $0x8] sm:$0xff] %vm820_vm1, %v3274_v11  ;;  %v2969_v32 = vrot.slane %v2915_v9, 2  ;;  %v2970_v6 = vrot.slane %v2915_v9, 4 }
 0x51f   : > { %3082 = vst [vmem:[#allocation1 + $0x3] ss:$4 sm:$0xff] %v2915_v9  ;;  %v3306_v30 = vld [vmem:[#allocation4 + $0x9] sm:$0xff]  ;;  %v3215_v31 = vsel %vm3028_vm8, %v3078_v29, 0.0  ;;  %v2971_v3 = vrot.slane %v2915_v9, 6 }
 0x520   : > { %3339 = vrot.lane.b32.xlu1 %v3306_v30, %s6526_s23  ;;  %3083 = vst [vmem:[#allocation1 + $0x20] ss:$4 sm:$0xff] %v2969_v32 }
 0x521   : > { %v2857_v46 = vpop.f32.mrf.mxu0  ;;  %3246 = vst.msk [vmem:[#allocation4 + $0x18] sm:$0xff] %vm820_vm1, %v3215_v31 }
 0x522   : > { %v2858_v47 = vadd.f32 %v7692_v53, %v2857_v46 }
 0x524   : > { %v2916_v10 = vmax.f32 %v2858_v47, 0.0 }
 0x526   : > { %v3084_v4 = vld.sshfl [vmem:[#allocation1] sm:$0xff pattern:$0x73625140]  ;;  %v2972_v33 = vrot.slane %v2916_v10, 2  ;;  %v2973_v38 = vrot.slane %v2916_v10, 4  ;;  %v2974_v39 = vrot.slane %v2916_v10, 6 }
 0x527   : > { %3086 = vst [vmem:[#allocation1] ss:$4 sm:$0xff] %v2970_v6  ;;  %v3085_v34 = vld.sshfl [vmem:[#allocation1 + $0x20] sm:$0xff pattern:$0x73625140] }
 0x528   : > { %3087 = vst [vmem:[#allocation1 + $0x1] ss:$4 sm:$0xff] %v2971_v3  ;;  %v3217_v18 = vsel %vm3033_vm11, %v3085_v34, 0.0  ;;  %v7741_v52 = vld [vmem:[#allocation4 + $0x18] sm:$0xff] }
 0x529   : > { %3247 = vst.msk [vmem:[#allocation4 + $0x20] sm:$0xff] %vm820_vm1, %v3084_v4  ;;  %v2860_v36 = vpop.f32.mrf.mxu0 }
 0x52a   : > { %3088 = vst [vmem:[#allocation1 + $0x2] ss:$4 sm:$0xff] %v2916_v10  ;;  %v2861_v37 = vadd.f32 %v7692_v53, %v2860_v36 }
 0x52b   : > { %3089 = vst [vmem:[#allocation1 + $0x3] ss:$4 sm:$0xff] %v2972_v33 }
 0x52c   : > { %3090 = vst [vmem:[#allocation1 + $0x20] ss:$4 sm:$0xff] %v2973_v38  ;;  %v2917_v19 = vmax.f32 %v2861_v37, 0.0 }
 0x52d   : > { %3091 = vst [vmem:[#allocation1 + $0x21] ss:$4 sm:$0xff] %v2974_v39 }
 0x52e   : > { %3248 = vst.msk [vmem:[#allocation4 + $0x28] sm:$0x3] %vm3244_vm13, %v3217_v18  ;;  %v2975_v40 = vrot.slane %v2917_v19, 2  ;;  %v2976_v55 = vrot.slane %v2917_v19, 4  ;;  %v2977_v51 = vrot.slane %v2917_v19, 6 }
 0x52f   : > { %3092 = vst [vmem:[#allocation1 + $0x22] ss:$4 sm:$0xff] %v2917_v19 }
 0x530   : > { %v7744_v21 = vld [vmem:[#allocation4 + $0x19] sm:$0xff]  ;;  %3291 = vst.msk [vmem:[#allocation5 + $0x10] sm:$0xff] %vm820_vm1, %v7741_v52 }
 0x531   : > { %v7748_v22 = vld [vmem:[#allocation4 + $0x20] sm:$0xff]  ;;  %3093 = vst [vmem:[#allocation1 + $0x23] ss:$4 sm:$0xff] %v2975_v40  ;;  %3341 = vrot.lane.b32.xlu2 %v7744_v21, %s6526_s23  ;;  %v2863_v62 = vpop.f32.mrf.mxu0 }
 0x532   : > { %v3094_v60 = vld.sshfl [vmem:[#allocation1] sm:$0xff pattern:$0x73625140]  ;;  %3292 = vst.msk [vmem:[#allocation5 + $0x18] sm:$0xff] %vm820_vm1, %v7748_v22  ;;  %v2864_v44 = vadd.f32 %v7692_v53, %v2863_v62 }
 0x533   : > { %3096 = vst [vmem:[#allocation1] ss:$4 sm:$0xff] %v2976_v55  ;;  %v3218_v45 = vsel %vm3028_vm8, %v3094_v60, 0.0 }
 0x534   : > { %3249 = vst.msk [vmem:[#allocation4 + $0x30] sm:$0xff] %vm820_vm1, %v3218_v45  ;;  %v2918_v5 = vmax.f32 %v2864_v44, 0.0 }
 0x535   : > { %v7758_v42 = vld [vmem:[#allocation4 + $0x21] sm:$0xff] }
 0x536   : > { %3343 = vrot.lane.b32.xlu0 %v7758_v42, %s6526_s23  ;;  %v2978_v26 = vrot.slane %v2918_v5, 2  ;;  %v2979_v49 = vrot.slane %v2918_v5, 4  ;;  %v2980_v41 = vrot.slane %v2918_v5, 6 }
 0x538   : > { %v3095_v20 = vld.sshfl [vmem:[#allocation1 + $0x20] sm:$0xff pattern:$0x73625140] }
 0x539   : > { %3098 = vst [vmem:[#allocation1 + $0x20] ss:$4 sm:$0xff] %v2977_v51  ;;  %v2866_v43 = vpop.f32.mrf.mxu0 }
 0x53a   : > { %v3097_v50 = vld.sshfl [vmem:[#allocation1] sm:$0xff pattern:$0x73625140]  ;;  %3250 = vst.msk [vmem:[#allocation4 + $0x38] sm:$0xff] %vm820_vm1, %v3095_v20  ;;  %v2867_v24 = vadd.f32 %v7692_v53, %v2866_v43 }
 0x53b   : > { %3099 = vst [vmem:[#allocation1 + $0x21] ss:$4 sm:$0xff] %v2918_v5  ;;  %v3220_v61 = vsel %vm3033_vm11, %v3097_v50, 0.0  ;;  %v7771_v59 = vld [vmem:[#allocation4 + $0x30] sm:$0xff] }
 0x53c   : > { %3100 = vst [vmem:[#allocation1 + $0x22] ss:$4 sm:$0xff] %v2978_v26  ;;  %v2919_v25 = vmax.f32 %v2867_v24, 0.0 }
 0x53d   : > { %3101 = vst [vmem:[#allocation1 + $0x23] ss:$4 sm:$0xff] %v2979_v49 }
 0x53e   : > { %3103 = vst [vmem:[#allocation1] ss:$4 sm:$0xff] %v2980_v41  ;;  %v2981_v2 = vrot.slane %v2919_v25, 2  ;;  %v2982_v56 = vrot.slane %v2919_v25, 4  ;;  %v2983_v57 = vrot.slane %v2919_v25, 6 }
 0x53f   : > { %3104 = vst [vmem:[#allocation1 + $0x1] ss:$4 sm:$0xff] %v2919_v25 }
 0x540   : > { %3251 = vst.msk [vmem:[#allocation4 + $0x40] sm:$0x3] %vm3244_vm13, %v3220_v61 }
 0x541   : > { %3105 = vst [vmem:[#allocation1 + $0x2] ss:$4 sm:$0xff] %v2981_v2  ;;  %v7767_v35 = vld [vmem:[#allocation4 + $0x31] sm:$0xff]  ;;  %v2869_v58 = vpop.f32.mrf.mxu0 }
 0x542   : > { %v7769_v54 = vld [vmem:[#allocation4 + $0x38] sm:$0xff]  ;;  %3106 = vst [vmem:[#allocation1 + $0x3] ss:$4 sm:$0xff] %v2982_v56  ;;  %3345 = vrot.lane.b32.xlu1 %v7767_v35, %s6526_s23  ;;  %v2870_v1 = vadd.f32 %v7692_v53, %v2869_v58 }
 0x543   : > { %3294 = vst.msk [vmem:[#allocation5 + $0x28] sm:$0xff] %vm820_vm1, %v7769_v54 }
 0x544   : > { %v3102_v15 = vld.sshfl [vmem:[#allocation1 + $0x20] sm:$0xff pattern:$0x73625140]  ;;  %3293 = vst.msk [vmem:[#allocation5 + $0x20] sm:$0xff] %vm820_vm1, %v7771_v59  ;;  %v2920_v63 = vmax.f32 %v2870_v1, 0.0 }
 0x545   : > { %3107 = vst [vmem:[#allocation1 + $0x20] ss:$4 sm:$0xff] %v2983_v57  ;;  %v3221_v0 = vsel %vm3028_vm8, %v3102_v15, 0.0 }
 0x546   : > { %3252 = vst.msk [vmem:[#allocation4 + $0x48] sm:$0xff] %vm820_vm1, %v3221_v0  ;;  %v2984_v16 = vrot.slane %v2920_v63, 2  ;;  %v2985_v27 = vrot.slane %v2920_v63, 4  ;;  %v2986_v28 = vrot.slane %v2920_v63, 6 }
 0x547   : > { %v7783_v23 = vld [vmem:[#allocation4 + $0x39] sm:$0xff] }
 0x548   : > { %3347 = vrot.lane.b32.xlu2 %v7783_v23, %s6526_s23 }
 0x549   : > { %v3108_v48 = vld.sshfl [vmem:[#allocation1] sm:$0xff pattern:$0x73625140]  ;;  %v2872_v12 = vpop.f32.mrf.mxu0 }
 0x54a   : > { %3253 = vst.msk [vmem:[#allocation4 + $0x50] sm:$0xff] %vm820_vm1, %v3108_v48  ;;  %v2873_v14 = vadd.f32 %v7692_v53, %v2872_v12 }
 0x54b   : > { %3110 = vst [vmem:[#allocation1] ss:$4 sm:$0xff] %v2920_v63 }
 0x54c   : > { %v3109_v8 = vld.sshfl [vmem:[#allocation1 + $0x20] sm:$0xff pattern:$0x73625140]  ;;  %3111 = vst [vmem:[#allocation1 + $0x1] ss:$4 sm:$0xff] %v2984_v16  ;;  %v2921_v9 = vmax.f32 %v2873_v14, 0.0  ;;  %v2881_v13 = vpop.f32.mrf.mxu3 }
 0x54d   : > { %3112 = vst [vmem:[#allocation1 + $0x2] ss:$4 sm:$0xff] %v2985_v27  ;;  %v3223_v11 = vsel %vm3033_vm11, %v3109_v8, 0.0  ;;  %v7794_v46 = vld [vmem:[#allocation4 + $0x48] sm:$0xff]  ;;  %v2882_v37 = vadd.f32 %v7692_v53, %v2881_v13 }
 0x54e   : > { %3113 = vst [vmem:[#allocation1 + $0x3] ss:$4 sm:$0xff] %v2986_v28  ;;  %v2987_v29 = vrot.slane %v2921_v9, 2  ;;  %v2988_v32 = vrot.slane %v2921_v9, 4  ;;  %v2989_v30 = vrot.slane %v2921_v9, 6 }
 0x54f   : > { %3114 = vst [vmem:[#allocation1 + $0x20] ss:$4 sm:$0xff] %v2921_v9  ;;  %v2924_v60 = vmax.f32 %v2882_v37, 0.0 }
 0x550   : > { %3254 = vst.msk [vmem:[#allocation4 + $0x58] sm:$0x3] %vm3244_vm13, %v3223_v11 }
 0x551   : > { %3115 = vst [vmem:[#allocation1 + $0x21] ss:$4 sm:$0xff] %v2987_v29  ;;  %v7792_v31 = vld [vmem:[#allocation4 + $0x49] sm:$0xff]  ;;  %v2875_v47 = vpop.f32.mrf.mxu0  ;;  %v2996_v25 = vrot.slane %v2924_v60, 2  ;;  %v2997_v56 = vrot.slane %v2924_v60, 4  ;;  %v2998_v1 = vrot.slane %v2924_v60, 6 }
 0x552   : > { %3116 = vst [vmem:[#allocation1 + $0x22] ss:$4 sm:$0xff] %v2988_v32  ;;  %3349 = vrot.lane.b32.xlu0 %v7792_v31, %s6526_s23  ;;  %v7798_v6 = vld [vmem:[#allocation4 + $0x50] sm:$0xff]  ;;  %v2876_v10 = vadd.f32 %v7692_v53, %v2875_v47 }
 0x553   : > { %3117 = vst [vmem:[#allocation1 + $0x23] ss:$4 sm:$0xff] %v2989_v30 }
 0x554   : > { %3295 = vst.msk [vmem:[#allocation5 + $0x30] sm:$0xff] %vm820_vm1, %v7794_v46  ;;  %v2922_v4 = vmax.f32 %v2876_v10, 0.0  ;;  %v2884_v33 = vpop.f32.mrf.mxu3 }
 0x555   : > { %v3118_v3 = vld.sshfl [vmem:[#allocation1] sm:$0xff pattern:$0x73625140]  ;;  %3296 = vst.msk [vmem:[#allocation5 + $0x38] sm:$0xff] %vm820_vm1, %v7798_v6  ;;  %v2885_v43 = vadd.f32 %v7692_v53, %v2884_v33 }
 0x556   : > { %v3224_v34 = vsel %vm3028_vm8, %v3118_v3, 0.0  ;;  %3120 = vst [vmem:[#allocation1] ss:$4 sm:$0xff] %v2922_v4  ;;  %v2990_v39 = vrot.slane %v2922_v4, 2  ;;  %v2991_v36 = vrot.slane %v2922_v4, 4  ;;  %v2992_v19 = vrot.slane %v2922_v4, 6 }
 0x557   : > { %v7807_v38 = vld [vmem:[#allocation4 + $0x51] sm:$0xff]  ;;  %3255 = vst.msk [vmem:[#allocation4 + $0x60] sm:$0xff] %vm820_vm1, %v3224_v34  ;;  %v2925_v57 = vmax.f32 %v2885_v43, 0.0 }
 0x558   : > { %3351 = vrot.lane.b32.xlu1 %v7807_v38, %s6526_s23 }
 0x559   : > { %v2878_v40 = vpop.f32.mrf.mxu0  ;;  %v2999_v0 = vrot.slane %v2925_v57, 2  ;;  %v3000_v27 = vrot.slane %v2925_v57, 4  ;;  %v3001_v12 = vrot.slane %v2925_v57, 6 }
 0x55a   : > { %v3119_v18 = vld.sshfl [vmem:[#allocation1 + $0x20] sm:$0xff pattern:$0x73625140]  ;;  %v2879_v55 = vadd.f32 %v7692_v53, %v2878_v40 }
 0x55b   : > { %3256 = vst.msk [vmem:[#allocation4 + $0x68] sm:$0xff] %vm820_vm1, %v3119_v18 }
 0x55c   : > { %3122 = vst [vmem:[#allocation1 + $0x20] ss:$4 sm:$0xff] %v2990_v39  ;;  %v2923_v62 = vmax.f32 %v2879_v55, 0.0  ;;  %v2887_v44 = vpop.f32.mrf.mxu3 }
 0x55d   : > { %3123 = vst [vmem:[#allocation1 + $0x21] ss:$4 sm:$0xff] %v2991_v36  ;;  %v3121_v45 = vld.sshfl [vmem:[#allocation1] sm:$0xff pattern:$0x73625140]  ;;  %v2888_v58 = vadd.f32 %v7692_v53, %v2887_v44 }
 0x55e   : > { %3124 = vst [vmem:[#allocation1 + $0x22] ss:$4 sm:$0xff] %v2992_v19  ;;  %v2993_v5 = vrot.slane %v2923_v62, 2  ;;  %v2994_v51 = vrot.slane %v2923_v62, 4  ;;  %v2995_v20 = vrot.slane %v2923_v62, 6  ;;  %v3226_v26 = vsel %vm3033_vm11, %v3121_v45, 0.0 }
 0x55f   : > { %3130 = vst [vmem:[#allocation1 + $0x3] ss:$4 sm:$0xff] %v2924_v60  ;;  %v7819_v50 = vld [vmem:[#allocation4 + $0x60] sm:$0xff]  ;;  %v2926_v16 = vmax.f32 %v2888_v58, 0.0 }
 0x560   : > { %3125 = vst [vmem:[#allocation1 + $0x23] ss:$4 sm:$0xff] %v2923_v62 }
 0x561   : > { %3127 = vst [vmem:[#allocation1] ss:$4 sm:$0xff] %v2993_v5  ;;  %v3002_v14 = vrot.slane %v2926_v16, 2  ;;  %v3003_v32 = vrot.slane %v2926_v16, 4  ;;  %v3004_v33 = vrot.slane %v2926_v16, 6 }
 0x562   : > { %3128 = vst [vmem:[#allocation1 + $0x1] ss:$4 sm:$0xff] %v2994_v51  ;;  %v7817_v49 = vld [vmem:[#allocation4 + $0x61] sm:$0xff] }
 0x563   : > { %3129 = vst [vmem:[#allocation1 + $0x2] ss:$4 sm:$0xff] %v2995_v20  ;;  %3353 = vrot.lane.b32.xlu2 %v7817_v49, %s6526_s23  ;;  %v7823_v41 = vld [vmem:[#allocation4 + $0x68] sm:$0xff] }
 0x564   : > { %3257 = vst.msk [vmem:[#allocation4 + $0x70] sm:$0x3] %vm3244_vm13, %v3226_v26  ;;  %v2890_v24 = vpop.f32.mrf.mxu3 }
 0x565   : > { %3297 = vst.msk [vmem:[#allocation5 + $0x40] sm:$0xff] %vm820_vm1, %v7819_v50  ;;  %v2891_v13 = vadd.f32 %v7692_v53, %v2890_v24 }
 0x566   : > { %3298 = vst.msk [vmem:[#allocation5 + $0x48] sm:$0xff] %vm820_vm1, %v7823_v41 }
 0x567   : > { %v3126_v61 = vld.sshfl [vmem:[#allocation1 + $0x20] sm:$0xff pattern:$0x73625140]  ;;  %v2927_v4 = vmax.f32 %v2891_v13, 0.0 }
 0x568   : > { %3131 = vst [vmem:[#allocation1 + $0x20] ss:$4 sm:$0xff] %v2996_v25  ;;  %v3227_v2 = vsel %vm3028_vm8, %v3126_v61, 0.0 }
 0x569   : > { %3258 = vst.msk [vmem:[#allocation4 + $0x78] sm:$0xff] %vm820_vm1, %v3227_v2  ;;  %v3005_v37 = vrot.slane %v2927_v4, 2  ;;  %v3006_v18 = vrot.slane %v2927_v4, 4  ;;  %v3007_v19 = vrot.slane %v2927_v4, 6 }
 0x56a   : > { %v3132_v15 = vld.sshfl [vmem:[#allocation1] sm:$0xff pattern:$0x73625140] }
 0x56b   : > { %3134 = vst [vmem:[#allocation1] ss:$4 sm:$0xff] %v2997_v56  ;;  %v7835_v63 = vld [vmem:[#allocation4 + $0x69] sm:$0xff] }
 0x56c   : > { %3135 = vst [vmem:[#allocation1 + $0x1] ss:$4 sm:$0xff] %v2998_v1  ;;  %3355 = vrot.lane.b32.xlu0 %v7835_v63, %s6526_s23  ;;  %v2893_v48 = vpop.f32.mrf.mxu3 }
 0x56d   : > { %3259 = vst.msk [vmem:[#allocation4 + $0x80] sm:$0xff] %vm820_vm1, %v3132_v15  ;;  %v2894_v10 = vadd.f32 %v7692_v53, %v2893_v48 }
 0x56e   : > { %3136 = vst [vmem:[#allocation1 + $0x2] ss:$4 sm:$0xff] %v2925_v57 }
 0x56f   : > { %v3133_v28 = vld.sshfl [vmem:[#allocation1 + $0x20] sm:$0xff pattern:$0x73625140]  ;;  %3137 = vst [vmem:[#allocation1 + $0x3] ss:$4 sm:$0xff] %v2999_v0  ;;  %v2928_v39 = vmax.f32 %v2894_v10, 0.0 }
 0x570   : > { %3138 = vst [vmem:[#allocation1 + $0x20] ss:$4 sm:$0xff] %v3000_v27  ;;  %v3229_v8 = vsel %vm3033_vm11, %v3133_v28, 0.0  ;;  %v7842_v9 = vld [vmem:[#allocation4 + $0x78] sm:$0xff] }
 0x571   : > { %3139 = vst [vmem:[#allocation1 + $0x21] ss:$4 sm:$0xff] %v3001_v12  ;;  %v3008_v60 = vrot.slane %v2928_v39, 2  ;;  %v3009_v62 = vrot.slane %v2928_v39, 4  ;;  %v3010_v51 = vrot.slane %v2928_v39, 6 }
 0x572   : > { %3140 = vst [vmem:[#allocation1 + $0x22] ss:$4 sm:$0xff] %v2926_v16 }
 0x573   : > { %3141 = vst [vmem:[#allocation1 + $0x23] ss:$4 sm:$0xff] %v3002_v14 }
 0x574   : > { %v7845_v11 = vld [vmem:[#allocation4 + $0x79] sm:$0xff]  ;;  %3260 = vst.msk [vmem:[#allocation4 + $0x88] sm:$0x3] %vm3244_vm13, %v3229_v8  ;;  %v2896_v30 = vpop.f32.mrf.mxu3 }
 0x575   : > { %v7848_v29 = vld [vmem:[#allocation4 + $0x80] sm:$0xff]  ;;  %3357 = vrot.lane.b32.xlu1 %v7845_v11, %s6526_s23  ;;  %3299 = vst.msk [vmem:[#allocation5 + $0x50] sm:$0xff] %vm820_vm1, %v7842_v9  ;;  %v2897_v44 = vadd.f32 %v7692_v53, %v2896_v30 }
 0x576   : > { %3300 = vst.msk [vmem:[#allocation5 + $0x58] sm:$0xff] %vm820_vm1, %v7848_v29  ;;  %v3142_v47 = vld.sshfl [vmem:[#allocation1] sm:$0xff pattern:$0x73625140] }
 0x577   : > { %3144 = vst [vmem:[#allocation1] ss:$4 sm:$0xff] %v3003_v32  ;;  %v3230_v3 = vsel %vm3028_vm8, %v3142_v47, 0.0  ;;  %v2929_v43 = vmax.f32 %v2897_v44, 0.0  ;;  %v3401_v30 = vld [vmem:[#allocation4 + $0x2] sm:$0xff] }
 0x578   : > { %3261 = vst.msk [vmem:[#allocation4 + $0x90] sm:$0xff] %vm820_vm1, %v3230_v3  ;;  %v7912_v44 = vld [vmem:[#allocation4 + $0x22] sm:$0xff] }
 0x579   : > { %v3011_v56 = vrot.slane %v2929_v43, 2  ;;  %v3012_v1 = vrot.slane %v2929_v43, 4  ;;  %v3013_v15 = vrot.slane %v2929_v43, 6 }
 0x57a   : > { %v3143_v34 = vld.sshfl [vmem:[#allocation1 + $0x20] sm:$0xff pattern:$0x73625140] }
 0x57b   : > { %3146 = vst [vmem:[#allocation1 + $0x20] ss:$4 sm:$0xff] %v3004_v33  ;;  %v7860_v36 = vld [vmem:[#allocation4 + $0x81] sm:$0xff] }
 0x57c   : > { %3262 = vst.msk [vmem:[#allocation4 + $0x98] sm:$0xff] %vm820_vm1, %v3143_v34  ;;  %3359 = vrot.lane.b32.xlu2 %v7860_v36, %s6526_s23  ;;  %v2899_v40 = vpop.f32.mrf.mxu3 }
 0x57d   : > { %3147 = vst [vmem:[#allocation1 + $0x21] ss:$4 sm:$0xff] %v2927_v4  ;;  %v2900_v24 = vadd.f32 %v7692_v53, %v2899_v40  ;;  %v3402_v40 = vld [vmem:[#allocation4 + $0xa] sm:$0xff] }
 0x57e   : > { %v3145_v55 = vld.sshfl [vmem:[#allocation1] sm:$0xff pattern:$0x73625140]  ;;  %3148 = vst [vmem:[#allocation1 + $0x22] ss:$4 sm:$0xff] %v3005_v37 }
 0x57f   : > { %3149 = vst [vmem:[#allocation1 + $0x23] ss:$4 sm:$0xff] %v3006_v18  ;;  %v3232_v45 = vsel %vm3033_vm11, %v3145_v55, 0.0  ;;  %v7868_v5 = vld [vmem:[#allocation4 + $0x90] sm:$0xff]  ;;  %v2930_v57 = vmax.f32 %v2900_v24, 0.0 }
 0x580   : > { %3151 = vst [vmem:[#allocation1] ss:$4 sm:$0xff] %v3007_v19 }
 0x581   : > { %3152 = vst [vmem:[#allocation1 + $0x1] ss:$4 sm:$0xff] %v2928_v39  ;;  %v3014_v16 = vrot.slane %v2930_v57, 2  ;;  %v3015_v48 = vrot.slane %v2930_v57, 4  ;;  %v3016_v12 = vrot.slane %v2930_v57, 6 }
 0x582   : > { %3153 = vst [vmem:[#allocation1 + $0x2] ss:$4 sm:$0xff] %v3008_v60 }
 0x583   : > { %3154 = vst [vmem:[#allocation1 + $0x3] ss:$4 sm:$0xff] %v3009_v62  ;;  %v7870_v20 = vld [vmem:[#allocation4 + $0x91] sm:$0xff] }
 0x584   : > { %v7872_v26 = vld [vmem:[#allocation4 + $0x98] sm:$0xff]  ;;  %3361 = vrot.lane.b32.xlu0 %v7870_v20, %s6526_s23  ;;  %3263 = vst.msk [vmem:[#allocation4 + $0xa0] sm:$0x3] %vm3244_vm13, %v3232_v45  ;;  %v2902_v25 = vpop.f32.mrf.mxu3 }
 0x585   : > { %3301 = vst.msk [vmem:[#allocation5 + $0x60] sm:$0xff] %vm820_vm1, %v7868_v5  ;;  %v2903_v14 = vadd.f32 %v7692_v53, %v2902_v25 }
 0x586   : > { %v3150_v61 = vld.sshfl [vmem:[#allocation1 + $0x20] sm:$0xff pattern:$0x73625140]  ;;  %3302 = vst.msk [vmem:[#allocation5 + $0x68] sm:$0xff] %vm820_vm1, %v7872_v26 }
 0x587   : > { %3155 = vst [vmem:[#allocation1 + $0x20] ss:$4 sm:$0xff] %v3010_v51  ;;  %v3233_v2 = vsel %vm3028_vm8, %v3150_v61, 0.0  ;;  %v2931_v10 = vmax.f32 %v2903_v14, 0.0 }
 0x588   : > { %3264 = vst.msk [vmem:[#allocation4 + $0xa8] sm:$0xff] %vm820_vm1, %v3233_v2 }
 0x589   : > { %v3017_v37 = vrot.slane %v2931_v10, 2  ;;  %v3018_v19 = vrot.slane %v2931_v10, 4  ;;  %v3019_v60 = vrot.slane %v2931_v10, 6 }
 0x58a   : > { %v3156_v58 = vld.sshfl [vmem:[#allocation1] sm:$0xff pattern:$0x73625140] }
 0x58b   : > { %3265 = vst.msk [vmem:[#allocation4 + $0xb0] sm:$0xff] %vm820_vm1, %v3156_v58  ;;  %v7886_v0 = vld [vmem:[#allocation4 + $0x99] sm:$0xff]  ;;  %v3342_v8 = vpop.permute.xlu2 %3341  ;;  %v3047_v58 = vstv %s3046_s14 }
 0x58c   : > { %3158 = vst [vmem:[#allocation1] ss:$4 sm:$0xff] %v2929_v43  ;;  %3363 = vrot.lane.b32.xlu1 %v7886_v0, %s6526_s23  ;;  %v2905_v27 = vpop.f32.mrf.mxu3  ;;  %vm7933_vm14 = vcmp.eq.s32.totalorder %v3047_v58, 1 }
 0x58d   : > { %3159 = vst [vmem:[#allocation1 + $0x1] ss:$4 sm:$0xff] %v3011_v56  ;;  %v2906_v33 = vadd.f32 %v7692_v53, %v2905_v27  ;;  %vm3052_vm15 = vmand %vm3028_vm8, %vm7933_vm14  ;;  %v7944_v27 = vld [vmem:[#allocation4 + $0x1a] sm:$0xff] }
 0x58e   : > { %3160 = vst [vmem:[#allocation1 + $0x2] ss:$4 sm:$0xff] %v3012_v1  ;;  %v3157_v28 = vld.sshfl [vmem:[#allocation1 + $0x20] sm:$0xff pattern:$0x73625140]  ;;  %vm3054_vm0 = vmand %vm3033_vm11, %vm7933_vm14 }
 0x58f   : > { %3161 = vst [vmem:[#allocation1 + $0x3] ss:$4 sm:$0xff] %v3013_v15  ;;  %v3338_v32 = vpop.permute.xlu0 %3337  ;;  %v3235_v47 = vsel %vm3033_vm11, %v3157_v28, 0.0  ;;  %v7902_v34 = vld [vmem:[#allocation4 + $0xa8] sm:$0xff]  ;;  %v2932_v62 = vmax.f32 %v2906_v33, 0.0  ;;  %v7977_v33 = vld [vmem:[#allocation4 + $0x92] sm:$0xff] }
 0x590   : > { %3162 = vst [vmem:[#allocation1 + $0x20] ss:$4 sm:$0xff] %v2930_v57  ;;  %v7929_v1 = vld [vmem:[#allocation4 + $0x4a] sm:$0xff] }
 0x591   : > { %3163 = vst [vmem:[#allocation1 + $0x21] ss:$4 sm:$0xff] %v3014_v16  ;;  %v3020_v51 = vrot.slane %v2932_v62, 2  ;;  %v3021_v24 = vrot.slane %v2932_v62, 4  ;;  %v3022_v61 = vrot.slane %v2932_v62, 6 }
 0x592   : > { %3164 = vst [vmem:[#allocation1 + $0x22] ss:$4 sm:$0xff] %v3015_v48  ;;  %v7891_v13 = vld [vmem:[#allocation4 + $0xa9] sm:$0xff]  ;;  %v3340_v3 = vpop.permute.xlu1 %3339 }
 0x593   : > { %3165 = vst [vmem:[#allocation1 + $0x23] ss:$4 sm:$0xff] %v3016_v12  ;;  %3365 = vrot.lane.b32.xlu2 %v7891_v13, %s6526_s23  ;;  %v7925_v57 = vld [vmem:[#allocation4 + $0xb0] sm:$0xff] }
 0x594   : > { %3387 = vst.msk [vmem:[#allocation5 + $0x10] sm:$0xff] %vm917_vm3, %v3342_v8  ;;  %3433 = vrot.lane.b32.xlu1 %v3401_v30, %s6530_s11  ;;  %v2908_v18 = vpop.f32.mrf.mxu3  ;;  %v7953_v8 = vld [vmem:[#allocation4 + $0x52] sm:$0xff] }
 0x595   : > { %3385 = vst.msk [vmem:[#allocation5] sm:$0xff] %vm917_vm3, %v3338_v32  ;;  %v2909_v45 = vadd.f32 %v7692_v53, %v2908_v18  ;;  %v7923_v53 = vld [vmem:[#allocation4 + $0x32] sm:$0xff]  ;;  %v7957_v32 = vld [vmem:[#allocation4 + $0x6a] sm:$0xff] }
 0x596   : > { %v3166_v4 = vld.sshfl [vmem:[#allocation1] sm:$0xff pattern:$0x73625140]  ;;  %3266 = vst.msk [vmem:[#allocation4 + $0xb8] sm:$0x3] %vm3244_vm13, %v3235_v47  ;;  %v7968_v47 = vld [vmem:[#allocation4 + $0x3a] sm:$0xff] }
 0x597   : > { %3168 = vst [vmem:[#allocation1] ss:$4 sm:$0xff] %v2931_v10  ;;  %v3236_v39 = vsel %vm3028_vm8, %v3166_v4, 0.0  ;;  %v2933_v2 = vmax.f32 %v2909_v45, 0.0  ;;  %v7973_v4 = vld [vmem:[#allocation4 + $0x7a] sm:$0xff]  ;;  %vm4156_vm8 = vcmask 1043456  }
 0x598   : > { %3386 = vst.msk [vmem:[#allocation5 + $0x8] sm:$0xff] %vm917_vm3, %v3340_v3 }
 0x599   : > { %3267 = vst.msk [vmem:[#allocation4 + $0xc0] sm:$0xff] %vm820_vm1, %v3236_v39  ;;  %v3023_v15 = vrot.slane %v2933_v2, 2  ;;  %v7981_v39 = vld [vmem:[#allocation4 + $0x62] sm:$0xff] }
 0x59a   : > { %v3167_v55 = vld.sshfl [vmem:[#allocation1 + $0x20] sm:$0xff pattern:$0x73625140]  ;;  %3303 = vst.msk [vmem:[#allocation5 + $0x70] sm:$0xff] %vm820_vm1, %v7902_v34 }
 0x59b   : > { %3268 = vst.msk [vmem:[#allocation4 + $0xc8] sm:$0xff] %vm820_vm1, %v3167_v55  ;;  %3435 = vrot.lane.b32.xlu2 %v3402_v40, %s6530_s11 }
 0x59c   : > { %3170 = vst [vmem:[#allocation1 + $0x20] ss:$4 sm:$0xff] %v3017_v37  ;;  %3439 = vrot.lane.b32.xlu1 %v7912_v44, %s6530_s11  ;;  %v7986_v37 = vld [vmem:[#allocation4 + $0x9a] sm:$0xff] }
 0x59d   : > { %3171 = vst [vmem:[#allocation1 + $0x21] ss:$4 sm:$0xff] %v3018_v19  ;;  %v7917_v43 = vld [vmem:[#allocation4 + $0xb1] sm:$0xff]  ;;  %v7994_v19 = vld [vmem:[#allocation4 + $0x82] sm:$0xff] }
 0x59e   : > { %v3169_v25 = vld.sshfl [vmem:[#allocation1] sm:$0xff pattern:$0x73625140]  ;;  %3172 = vst [vmem:[#allocation1 + $0x22] ss:$4 sm:$0xff] %v3019_v60  ;;  %3367 = vrot.lane.b32.xlu0 %v7917_v43, %s6526_s23  ;;  %v7990_v18 = vld [vmem:[#allocation4 + $0xb2] sm:$0xff] }
 0x59f   : > { %3173 = vst [vmem:[#allocation1 + $0x23] ss:$4 sm:$0xff] %v2932_v62  ;;  %v3238_v16 = vsel %vm3033_vm11, %v3169_v25, 0.0  ;;  %v8003_v60 = vld [vmem:[#allocation4 + $0xaa] sm:$0xff]  ;;  %s6539_s23 = smov 20   ;;  %vm6018_vm11 = vcmask 15360  }
 0x5a0   : > { %3175 = vst [vmem:[#allocation1] ss:$4 sm:$0xff] %v3020_v51  ;;  %v8031_v45 = vld [vmem:[#allocation4 + $0xc0] sm:$0xff] }
 0x5a1   : > { %3176 = vst [vmem:[#allocation1 + $0x1] ss:$4 sm:$0xff] %v3021_v24 }
 0x5a2   : > { %3177 = vst [vmem:[#allocation1 + $0x2] ss:$4 sm:$0xff] %v3022_v61  ;;  %v3348_v56 = vpop.permute.xlu2 %3347  ;;  %v8038_v24 = vld [vmem:[#allocation4 + $0xc8] sm:$0xff] }
 0x5a3   : > { %3441 = vrot.lane.b32.xlu2 %v7923_v53, %s6530_s11  ;;  %3178 = vst [vmem:[#allocation1 + $0x3] ss:$4 sm:$0xff] %v2933_v2  ;;  %v8080_v48 = vld [vmem:[#allocation4 + $0xc1] sm:$0xff] }
 0x5a4   : > { %3445 = vrot.lane.b32.xlu1 %v7929_v1, %s6530_s11  ;;  %3390 = vst.msk [vmem:[#allocation5 + $0x28] sm:$0xff] %vm917_vm3, %v3348_v56 }
 0x5a5   : > { %3304 = vst.msk [vmem:[#allocation5 + $0x78] sm:$0xff] %vm820_vm1, %v7925_v57 }
 0x5a6   : > { %v3174_v28 = vld.sshfl [vmem:[#allocation1 + $0x20] sm:$0xff pattern:$0x73625140]  ;;  %3437 = vrot.lane.b32.xlu0 %v7944_v27, %s6530_s11  ;;  %3269 = vst.msk [vmem:[#allocation4 + $0xd0] sm:$0x3] %vm3244_vm13, %v3238_v16 }
 0x5a7   : > { %3179 = vst [vmem:[#allocation1 + $0x20] ss:$4 sm:$0xff] %v3023_v15  ;;  %v3239_v12 = vsel %vm3052_vm15, %v3174_v28, 0.0 }
 0x5a8   : > { %v3344_v14 = vpop.permute.xlu0 %3343  ;;  %3270 = vst.msk [vmem:[#allocation4 + $0xd8] sm:$0xff] %vm820_vm1, %v3239_v12 }
 0x5a9   : > { %3388 = vst.msk [vmem:[#allocation5 + $0x18] sm:$0xff] %vm917_vm3, %v3344_v14 }
 0x5aa   : > { %v3180_v7 = vld.sshfl [vmem:[#allocation1] sm:$0xff pattern:$0x73625140] }
 0x5ab   : > { %3447 = vrot.lane.b32.xlu2 %v7953_v8, %s6530_s11  ;;  %v3240_v30 = vsel %vm7933_vm14, %v3180_v7, 0.0 }
 0x5ac   : > { %3451 = vrot.lane.b32.xlu1 %v7957_v32, %s6530_s11  ;;  %3271 = vst.msk [vmem:[#allocation4 + $0xe0] sm:$0xff] %vm820_vm1, %v3240_v30 }
 0x5ae   : > { %v3181_v10 = vld.sshfl [vmem:[#allocation1 + $0x20] sm:$0xff pattern:$0x73625140]  ;;  %3443 = vrot.lane.b32.xlu0 %v7968_v47, %s6530_s11 }
 0x5af   : > { %v3241_v3 = vsel %vm3054_vm0, %v3181_v10, 0.0 }
 0x5b0   : > { %3272 = vst.msk [vmem:[#allocation4 + $0xe8] sm:$0x3] %vm3244_vm13, %v3241_v3 }
 0x5b3   : > { %3453 = vrot.lane.b32.xlu2 %v7973_v4, %s6530_s11 }
 0x5b4   : > { %3457 = vrot.lane.b32.xlu1 %v7977_v33, %s6530_s11  ;;  %v3346_v17 = vpop.permute.xlu1 %3345 }
 0x5b5   : > { %3389 = vst.msk [vmem:[#allocation5 + $0x20] sm:$0xff] %vm917_vm3, %v3346_v17 }
 0x5b6   : > { %3449 = vrot.lane.b32.xlu0 %v7981_v39, %s6530_s11 }
 0x5bb   : > { %3459 = vrot.lane.b32.xlu2 %v7986_v37, %s6530_s11 }
 0x5bc   : > { %3463 = vrot.lane.b32.xlu1 %v7990_v18, %s6530_s11 }
 0x5bd   : > { %v3354_v40 = vpop.permute.xlu2 %3353 }
 0x5be   : > { %3455 = vrot.lane.b32.xlu0 %v7994_v19, %s6530_s11  ;;  %3393 = vst.msk [vmem:[#allocation5 + $0x40] sm:$0xff] %vm917_vm3, %v3354_v40 }
 0x5c3   : > { %3531 = vrot.lane.b32.xlu2 %v7741_v52, %s6538_s21 }
 0x5c4   : > { %3535 = vrot.lane.b32.xlu1 %v7771_v59, %s6538_s21  ;;  %v3350_v55 = vpop.permute.xlu0 %3349 }
 0x5c5   : > { %3391 = vst.msk [vmem:[#allocation5 + $0x30] sm:$0xff] %vm917_vm3, %v3350_v55 }
 0x5c6   : > { %3461 = vrot.lane.b32.xlu0 %v8003_v60, %s6530_s11  ;;  %s6540_s11 = smov 28  }
 0x5ca   : > { %v3352_v62 = vpop.permute.xlu1 %3351 }
 0x5cb   : > { %3537 = vrot.lane.b32.xlu2 %v7769_v54, %s6538_s21  ;;  %3392 = vst.msk [vmem:[#allocation5 + $0x38] sm:$0xff] %vm917_vm3, %v3352_v62 }
 0x5cc   : > { %3541 = vrot.lane.b32.xlu1 %v7798_v6, %s6538_s21 }
 0x5ce   : > { %3533 = vrot.lane.b32.xlu0 %v7748_v22, %s6538_s21 }
 0x5d3   : > { %3543 = vrot.lane.b32.xlu2 %v7819_v50, %s6538_s21 }
 0x5d4   : > { %3547 = vrot.lane.b32.xlu1 %v7842_v9, %s6538_s21 }
 0x5d6   : > { %3539 = vrot.lane.b32.xlu0 %v7794_v46, %s6538_s21  ;;  %v3360_v52 = vpop.permute.xlu2 %3359 }
 0x5d7   : > { %3396 = vst.msk [vmem:[#allocation5 + $0x58] sm:$0xff] %vm917_vm3, %v3360_v52 }
 0x5db   : > { %3549 = vrot.lane.b32.xlu2 %v7848_v29, %s6538_s21 }
 0x5dc   : > { %3553 = vrot.lane.b32.xlu1 %v7872_v26, %s6538_s21 }
 0x5de   : > { %3545 = vrot.lane.b32.xlu0 %v7823_v41, %s6538_s21  ;;  %v3356_v22 = vpop.permute.xlu0 %3355 }
 0x5df   : > { %3394 = vst.msk [vmem:[#allocation5 + $0x48] sm:$0xff] %vm917_vm3, %v3356_v22 }
 0x5e3   : > { %3555 = vrot.lane.b32.xlu2 %v7902_v34, %s6538_s21 }
 0x5e4   : > { %3559 = vrot.lane.b32.xlu1 %v8031_v45, %s6538_s21 }
 0x5e6   : > { %3551 = vrot.lane.b32.xlu0 %v7868_v5, %s6538_s21 }
 0x5e7   : > { %v3358_v51 = vpop.permute.xlu1 %3357 }
 0x5e8   : > { %3395 = vst.msk [vmem:[#allocation5 + $0x50] sm:$0xff] %vm917_vm3, %v3358_v51 }
 0x5eb   : > { %3561 = vrot.lane.b32.xlu2 %v8038_v24, %s6538_s21 }
 0x5ec   : > { %3630 = vrot.lane.b32.xlu1 %v7758_v42, %s6531_s20 }
 0x5ed   : > { %v3366_v25 = vpop.permute.xlu2 %3365 }
 0x5ee   : > { %3557 = vrot.lane.b32.xlu0 %v7925_v57, %s6538_s21  ;;  %3399 = vst.msk [vmem:[#allocation5 + $0x70] sm:$0xff] %vm917_vm3, %v3366_v25  ;;  %v8131_v25 = vld [vmem:[#allocation4 + $0xca] sm:$0xff]  ;;  %s10563_s21 = sld [smem:[#allocation87_spill]] }
 0x5f3   : > { %3632 = vrot.lane.b32.xlu2 %v7767_v35, %s6531_s20 }
 0x5f4   : > { %3636 = vrot.lane.b32.xlu1 %v7792_v31, %s6531_s20 }
 0x5f5   : > { %v3436_v61 = vpop.permute.xlu2 %3435 }
 0x5f6   : > { %3628 = vrot.lane.b32.xlu0 %v7744_v21, %s6531_s20  ;;  %3483 = vst.msk [vmem:[#allocation5 + $0x8] sm:$0xff] %vm3481_vm2, %v3436_v61  ;;  %v3362_v42 = vpop.permute.xlu0 %3361 }
 0x5f7   : > { %3397 = vst.msk [vmem:[#allocation5 + $0x60] sm:$0xff] %vm917_vm3, %v3362_v42 }
 0x5fb   : > { %3638 = vrot.lane.b32.xlu2 %v7807_v38, %s6531_s20 }
 0x5fc   : > { %3642 = vrot.lane.b32.xlu1 %v7835_v63, %s6531_s20 }
 0x5fd   : > { %v3442_v35 = vpop.permute.xlu2 %3441 }
 0x5fe   : > { %3634 = vrot.lane.b32.xlu0 %v7783_v23, %s6531_s20  ;;  %3486 = vst.msk [vmem:[#allocation5 + $0x20] sm:$0xff] %vm3481_vm2, %v3442_v35  ;;  %v3364_v2 = vpop.permute.xlu1 %3363 }
 0x5ff   : > { %3398 = vst.msk [vmem:[#allocation5 + $0x68] sm:$0xff] %vm917_vm3, %v3364_v2  ;;  %v8144_v2 = vld [vmem:[#allocation4 + $0xc2] sm:$0xff] }
 0x603   : > { %3644 = vrot.lane.b32.xlu2 %v7845_v11, %s6531_s20 }
 0x604   : > { %3648 = vrot.lane.b32.xlu1 %v7870_v20, %s6531_s20 }
 0x605   : > { %v3448_v21 = vpop.permute.xlu2 %3447 }
 0x606   : > { %3640 = vrot.lane.b32.xlu0 %v7817_v49, %s6531_s20  ;;  %3489 = vst.msk [vmem:[#allocation5 + $0x38] sm:$0xff] %vm3481_vm2, %v3448_v21  ;;  %v3434_v56 = vpop.permute.xlu1 %3433 }
 0x607   : > { %3482 = vst.msk [vmem:[#allocation5] sm:$0xff] %vm3481_vm2, %v3434_v56 }
 0x60b   : > { %3650 = vrot.lane.b32.xlu2 %v7886_v0, %s6531_s20 }
 0x60c   : > { %3654 = vrot.lane.b32.xlu1 %v7917_v43, %s6531_s20 }
 0x60d   : > { %v3454_v58 = vpop.permute.xlu2 %3453 }
 0x60e   : > { %3646 = vrot.lane.b32.xlu0 %v7860_v36, %s6531_s20  ;;  %3492 = vst.msk [vmem:[#allocation5 + $0x50] sm:$0xff] %vm3481_vm2, %v3454_v58  ;;  %v3440_v15 = vpop.permute.xlu1 %3439 }
 0x60f   : > { %3485 = vst.msk [vmem:[#allocation5 + $0x18] sm:$0xff] %vm3481_vm2, %v3440_v15 }
 0x610   : > { %v3368_v16 = vpop.permute.xlu0 %3367 }
 0x611   : > { %3400 = vst.msk [vmem:[#allocation5 + $0x78] sm:$0xff] %vm917_vm3, %v3368_v16  ;;  %vm3579_vm3 = vcmask 130144   ;;  %v3805_v16 = vld [vmem:[#allocation4 + $0xd8] sm:$0xff] }
 0x613   : > { %3656 = vrot.lane.b32.xlu2 %v8080_v48, %s6531_s20 }
 0x614   : > { %3725 = vrot.lane.b32.xlu1 %v7944_v27, %s6539_s23  ;;  %v8095_v27 = vld [vmem:[#allocation4 + $0xc9] sm:$0xff] }
 0x615   : > { %v3460_v28 = vpop.permute.xlu2 %3459 }
 0x616   : > { %3652 = vrot.lane.b32.xlu0 %v7891_v13, %s6531_s20  ;;  %3495 = vst.msk [vmem:[#allocation5 + $0x68] sm:$0xff] %vm3481_vm2, %v3460_v28  ;;  %v3446_v12 = vpop.permute.xlu1 %3445  ;;  %v3806_v28 = vld [vmem:[#allocation4 + $0xe0] sm:$0xff] }
 0x617   : > { %3488 = vst.msk [vmem:[#allocation5 + $0x30] sm:$0xff] %vm3481_vm2, %v3446_v12 }
 0x618   : > { %v3438_v14 = vpop.permute.xlu0 %3437 }
 0x619   : > { %3484 = vst.msk [vmem:[#allocation5 + $0x10] sm:$0xff] %vm3481_vm2, %v3438_v14 }
 0x61b   : > { %3727 = vrot.lane.b32.xlu2 %v7912_v44, %s6539_s23 }
 0x61c   : > { %3731 = vrot.lane.b32.xlu1 %v7968_v47, %s6539_s23 }
 0x61d   : > { %v3532_v7 = vpop.permute.xlu2 %3531 }
 0x61e   : > { %3658 = vrot.lane.b32.xlu0 %v8095_v27, %s6531_s20  ;;  %3580 = vst.msk [vmem:[#allocation5] sm:$0xff] %vm3579_vm3, %v3532_v7  ;;  %v3452_v30 = vpop.permute.xlu1 %3451 }
 0x61f   : > { %3491 = vst.msk [vmem:[#allocation5 + $0x48] sm:$0xff] %vm3481_vm2, %v3452_v30 }
 0x620   : > { %v3444_v10 = vpop.permute.xlu0 %3443 }
 0x621   : > { %3487 = vst.msk [vmem:[#allocation5 + $0x28] sm:$0xff] %vm3481_vm2, %v3444_v10  ;;  %v3902_v10 = vld [vmem:[#allocation4 + $0xd9] sm:$0xff] }
 0x623   : > { %3733 = vrot.lane.b32.xlu2 %v7929_v1, %s6539_s23 }
 0x624   : > { %3737 = vrot.lane.b32.xlu1 %v7981_v39, %s6539_s23 }
 0x625   : > { %v3538_v44 = vpop.permute.xlu2 %3537 }
 0x626   : > { %3729 = vrot.lane.b32.xlu0 %v7923_v53, %s6539_s23  ;;  %3583 = vst.msk [vmem:[#allocation5 + $0x18] sm:$0xff] %vm3579_vm3, %v3538_v44  ;;  %v3458_v3 = vpop.permute.xlu1 %3457 }
 0x627   : > { %3494 = vst.msk [vmem:[#allocation5 + $0x60] sm:$0xff] %vm3481_vm2, %v3458_v3 }
 0x628   : > { %v3450_v17 = vpop.permute.xlu0 %3449 }
 0x629   : > { %3490 = vst.msk [vmem:[#allocation5 + $0x40] sm:$0xff] %vm3481_vm2, %v3450_v17 }
 0x62b   : > { %3739 = vrot.lane.b32.xlu2 %v7957_v32, %s6539_s23 }
 0x62c   : > { %3743 = vrot.lane.b32.xlu1 %v7994_v19, %s6539_s23 }
 0x62d   : > { %v3544_v40 = vpop.permute.xlu2 %3543 }
 0x62e   : > { %3735 = vrot.lane.b32.xlu0 %v7953_v8, %s6539_s23  ;;  %3586 = vst.msk [vmem:[#allocation5 + $0x30] sm:$0xff] %vm3579_vm3, %v3544_v40  ;;  %v3464_v55 = vpop.permute.xlu1 %3463  ;;  %v4000_v40 = vld [vmem:[#allocation4 + $0xe2] sm:$0xff] }
 0x62f   : > { %3497 = vst.msk [vmem:[#allocation5 + $0x78] sm:$0xff] %vm3481_vm2, %v3464_v55 }
 0x630   : > { %v3456_v62 = vpop.permute.xlu0 %3455 }
 0x631   : > { %3493 = vst.msk [vmem:[#allocation5 + $0x58] sm:$0xff] %vm3481_vm2, %v3456_v62  ;;  %v3999_v62 = vld [vmem:[#allocation4 + $0xda] sm:$0xff] }
 0x633   : > { %3745 = vrot.lane.b32.xlu2 %v7977_v33, %s6539_s23 }
 0x634   : > { %3749 = vrot.lane.b32.xlu1 %v8003_v60, %s6539_s23 }
 0x635   : > { %v3550_v52 = vpop.permute.xlu2 %3549 }
 0x636   : > { %3741 = vrot.lane.b32.xlu0 %v7973_v4, %s6539_s23  ;;  %3589 = vst.msk [vmem:[#allocation5 + $0x48] sm:$0xff] %vm3579_vm3, %v3550_v52  ;;  %v3536_v22 = vpop.permute.xlu1 %3535 }
 0x637   : > { %3582 = vst.msk [vmem:[#allocation5 + $0x10] sm:$0xff] %vm3579_vm3, %v3536_v22 }
 0x638   : > { %v3462_v51 = vpop.permute.xlu0 %3461 }
 0x639   : > { %3496 = vst.msk [vmem:[#allocation5 + $0x70] sm:$0xff] %vm3481_vm2, %v3462_v51 }
 0x63b   : > { %3751 = vrot.lane.b32.xlu2 %v7990_v18, %s6539_s23 }
 0x63c   : > { %3755 = vrot.lane.b32.xlu1 %v8131_v25, %s6539_s23 }
 0x63d   : > { %v3556_v61 = vpop.permute.xlu2 %3555 }
 0x63e   : > { %3747 = vrot.lane.b32.xlu0 %v7986_v37, %s6539_s23  ;;  %3592 = vst.msk [vmem:[#allocation5 + $0x60] sm:$0xff] %vm3579_vm3, %v3556_v61  ;;  %v3542_v42 = vpop.permute.xlu1 %3541 }
 0x63f   : > { %3585 = vst.msk [vmem:[#allocation5 + $0x28] sm:$0xff] %vm3579_vm3, %v3542_v42 }
 0x640   : > { %v3534_v35 = vpop.permute.xlu0 %3533 }
 0x641   : > { %3581 = vst.msk [vmem:[#allocation5 + $0x8] sm:$0xff] %vm3579_vm3, %v3534_v35 }
 0x643   : > { %3823 = vrot.lane.b32.xlu2 %v7771_v59, %s6532_s16 }
 0x644   : > { %3827 = vrot.lane.b32.xlu1 %v7794_v46, %s6532_s16 }
 0x645   : > { %v3562_v21 = vpop.permute.xlu2 %3561 }
 0x646   : > { %3753 = vrot.lane.b32.xlu0 %v8144_v2, %s6539_s23  ;;  %3595 = vst.msk [vmem:[#allocation5 + $0x78] sm:$0xff] %vm3579_vm3, %v3562_v21  ;;  %v3548_v56 = vpop.permute.xlu1 %3547  ;;  %s6541_s23 = smov 126  }
 0x647   : > { %3588 = vst.msk [vmem:[#allocation5 + $0x40] sm:$0xff] %vm3579_vm3, %v3548_v56 }
 0x648   : > { %v3540_v58 = vpop.permute.xlu0 %3539 }
 0x649   : > { %3584 = vst.msk [vmem:[#allocation5 + $0x20] sm:$0xff] %vm3579_vm3, %v3540_v58 }
 0x64b   : > { %3829 = vrot.lane.b32.xlu2 %v7798_v6, %s6532_s16 }
 0x64c   : > { %3833 = vrot.lane.b32.xlu1 %v7823_v41, %s6532_s16 }
 0x64d   : > { %v3633_v59 = vpop.permute.xlu2 %3632 }
 0x64e   : > { %3825 = vrot.lane.b32.xlu0 %v7769_v54, %s6532_s16  ;;  %3679 = vst.msk [vmem:[#allocation5 + $0x10] sm:$0xff] %vm3676_vm4, %v3633_v59  ;;  %v3554_v46 = vpop.permute.xlu1 %3553 }
 0x64f   : > { %3591 = vst.msk [vmem:[#allocation5 + $0x58] sm:$0xff] %vm3579_vm3, %v3554_v46 }
 0x650   : > { %v3546_v15 = vpop.permute.xlu0 %3545 }
 0x651   : > { %3587 = vst.msk [vmem:[#allocation5 + $0x38] sm:$0xff] %vm3579_vm3, %v3546_v15 }
 0x653   : > { %3835 = vrot.lane.b32.xlu2 %v7842_v9, %s6532_s16 }
 0x654   : > { %3839 = vrot.lane.b32.xlu1 %v7868_v5, %s6532_s16 }
 0x655   : > { %v3639_v6 = vpop.permute.xlu2 %3638 }
 0x656   : > { %3831 = vrot.lane.b32.xlu0 %v7819_v50, %s6532_s16  ;;  %3682 = vst.msk [vmem:[#allocation5 + $0x28] sm:$0xff] %vm3676_vm4, %v3639_v6  ;;  %v3560_v54 = vpop.permute.xlu1 %3559  ;;  %v4102_v6 = vld [vmem:[%s10406_s8 + $0x20] sm:$0xf] }
 0x657   : > { %3594 = vst.msk [vmem:[#allocation5 + $0x70] sm:$0xff] %vm3579_vm3, %v3560_v54  ;;  %v4101_v54 = vld [vmem:[%s10406_s8 + $0x18] sm:$0xff]  ;;  %6363 = vmatpush.msk.msra.mxu1 %vm4156_vm8, %v4102_v6  ;;  %6420 = vmatpush.msk.msrb.mxu3 %vm4156_vm8, %v4102_v6 }
 0x658   : > { %v3552_v41 = vpop.permute.xlu0 %3551 }
 0x659   : > { %3590 = vst.msk [vmem:[#allocation5 + $0x50] sm:$0xff] %vm3579_vm3, %v3552_v41  ;;  %v4100_v41 = vld [vmem:[%s10406_s8 + $0x10] sm:$0xff]  ;;  %4172 = vmatpush.msra.mxu1 %v4101_v54  ;;  %6421 = vmatpush.msrb.mxu3 %v4101_v54 }
 0x65b   : > { %3841 = vrot.lane.b32.xlu2 %v7872_v26, %s6532_s16  ;;  %4173 = vmatpush.msra.mxu1 %v4100_v41 }
 0x65c   : > { %3845 = vrot.lane.b32.xlu1 %v7925_v57, %s6532_s16  ;;  %6422 = vmatpush.msrb.mxu3 %v4100_v41 }
 0x65d   : > { %v3645_v9 = vpop.permute.xlu2 %3644 }
 0x65e   : > { %3837 = vrot.lane.b32.xlu0 %v7848_v29, %s6532_s16  ;;  %3685 = vst.msk [vmem:[#allocation5 + $0x40] sm:$0xff] %vm3676_vm4, %v3645_v9  ;;  %v3631_v50 = vpop.permute.xlu1 %3630 }
 0x65f   : > { %3678 = vst.msk [vmem:[#allocation5 + $0x8] sm:$0xff] %vm3676_vm4, %v3631_v50  ;;  %v4099_v50 = vld [vmem:[%s10406_s8 + $0x8] sm:$0xff] }
 0x660   : > { %v3558_v5 = vpop.permute.xlu0 %3557  ;;  %4174 = vmatpush.msra.mxu1 %v4099_v50  ;;  %6423 = vmatpush.msrb.mxu3 %v4099_v50 }
 0x661   : > { %3593 = vst.msk [vmem:[#allocation5 + $0x68] sm:$0xff] %vm3579_vm3, %v3558_v5 }
 0x663   : > { %3847 = vrot.lane.b32.xlu2 %v8031_v45, %s6532_s16 }
 0x664   : > { %3851 = vrot.lane.b32.xlu1 %v3805_v16, %s6532_s16 }
 0x665   : > { %v3651_v26 = vpop.permute.xlu2 %3650 }
 0x666   : > { %3843 = vrot.lane.b32.xlu0 %v7902_v34, %s6532_s16  ;;  %3688 = vst.msk [vmem:[#allocation5 + $0x58] sm:$0xff] %vm3676_vm4, %v3651_v26  ;;  %v3637_v29 = vpop.permute.xlu1 %3636  ;;  %v4098_v26 = vld [vmem:[%s10406_s8] sm:$0xff] }
 0x667   : > { %3681 = vst.msk [vmem:[#allocation5 + $0x20] sm:$0xff] %vm3676_vm4, %v3637_v29  ;;  %4175 = vmatpush.msra.mxu1 %v4098_v26  ;;  %6424 = vmatpush.msrb.mxu3 %v4098_v26 }
 0x668   : > { %v3629_v57 = vpop.permute.xlu0 %3628 }
 0x669   : > { %3677 = vst.msk [vmem:[#allocation5] sm:$0xff] %vm3676_vm4, %v3629_v57 }
 0x66b   : > { %3853 = vrot.lane.b32.xlu2 %v3806_v28, %s6532_s16 }
 0x66c   : > { %3922 = vrot.lane.b32.xlu1 %v7783_v23, %s6540_s11  ;;  %v3888_v23 = vld [vmem:[#allocation4 + $0x31] sm:$0xff] }
 0x66d   : > { %v3657_v45 = vpop.permute.xlu2 %3656 }
 0x66e   : > { %3849 = vrot.lane.b32.xlu0 %v8038_v24, %s6532_s16  ;;  %3691 = vst.msk [vmem:[#allocation5 + $0x70] sm:$0xff] %vm3676_vm4, %v3657_v45  ;;  %v3643_v34 = vpop.permute.xlu1 %3642 }
 0x66f   : > { %3684 = vst.msk [vmem:[#allocation5 + $0x38] sm:$0xff] %vm3676_vm4, %v3643_v34 }
 0x670   : > { %v3635_v12 = vpop.permute.xlu0 %3634 }
 0x671   : > { %3680 = vst.msk [vmem:[#allocation5 + $0x18] sm:$0xff] %vm3676_vm4, %v3635_v12 }
 0x673   : > { %3924 = vrot.lane.b32.xlu2 %v7792_v31, %s6540_s11 }
 0x674   : > { %3928 = vrot.lane.b32.xlu1 %v7817_v49, %s6540_s11 }
 0x675   : > { %v3728_v14 = vpop.permute.xlu2 %3727 }
 0x676   : > { %3920 = vrot.lane.b32.xlu0 %v3888_v23, %s6540_s11  ;;  %3775 = vst.msk [vmem:[#allocation5 + $0x8] sm:$0xff] %vm3773_vm5, %v3728_v14  ;;  %v3649_v24 = vpop.permute.xlu1 %3648 }
 0x677   : > { %3687 = vst.msk [vmem:[#allocation5 + $0x50] sm:$0xff] %vm3676_vm4, %v3649_v24 }
 0x678   : > { %v3641_v7 = vpop.permute.xlu0 %3640 }
 0x679   : > { %3683 = vst.msk [vmem:[#allocation5 + $0x30] sm:$0xff] %vm3676_vm4, %v3641_v7 }
 0x67b   : > { %3930 = vrot.lane.b32.xlu2 %v7835_v63, %s6540_s11 }
 0x67c   : > { %3934 = vrot.lane.b32.xlu1 %v7860_v36, %s6540_s11 }
 0x67d   : > { %v3734_v31 = vpop.permute.xlu2 %3733 }
 0x67e   : > { %3926 = vrot.lane.b32.xlu0 %v7807_v38, %s6540_s11  ;;  %3778 = vst.msk [vmem:[#allocation5 + $0x20] sm:$0xff] %vm3773_vm5, %v3734_v31  ;;  %v3655_v49 = vpop.permute.xlu1 %3654 }
 0x67f   : > { %3690 = vst.msk [vmem:[#allocation5 + $0x68] sm:$0xff] %vm3676_vm4, %v3655_v49 }
 0x680   : > { %v3647_v30 = vpop.permute.xlu0 %3646 }
 0x681   : > { %3686 = vst.msk [vmem:[#allocation5 + $0x48] sm:$0xff] %vm3676_vm4, %v3647_v30 }
 0x683   : > { %3936 = vrot.lane.b32.xlu2 %v7870_v20, %s6540_s11 }
 0x684   : > { %3940 = vrot.lane.b32.xlu1 %v7891_v13, %s6540_s11 }
 0x685   : > { %v3740_v63 = vpop.permute.xlu2 %3739 }
 0x686   : > { %3932 = vrot.lane.b32.xlu0 %v7845_v11, %s6540_s11  ;;  %3781 = vst.msk [vmem:[#allocation5 + $0x38] sm:$0xff] %vm3773_vm5, %v3740_v63  ;;  %v3726_v38 = vpop.permute.xlu1 %3725 }
 0x687   : > { %3774 = vst.msk [vmem:[#allocation5] sm:$0xff] %vm3773_vm5, %v3726_v38 }
 0x688   : > { %v3653_v36 = vpop.permute.xlu0 %3652 }
 0x689   : > { %3689 = vst.msk [vmem:[#allocation5 + $0x60] sm:$0xff] %vm3676_vm4, %v3653_v36 }
 0x68b   : > { %3942 = vrot.lane.b32.xlu2 %v7917_v43, %s6540_s11 }
 0x68c   : > { %3946 = vrot.lane.b32.xlu1 %v8095_v27, %s6540_s11 }
 0x68d   : > { %v3746_v20 = vpop.permute.xlu2 %3745 }
 0x68e   : > { %3938 = vrot.lane.b32.xlu0 %v7886_v0, %s6540_s11  ;;  %3784 = vst.msk [vmem:[#allocation5 + $0x50] sm:$0xff] %vm3773_vm5, %v3746_v20  ;;  %v3732_v11 = vpop.permute.xlu1 %3731 }
 0x68f   : > { %3777 = vst.msk [vmem:[#allocation5 + $0x18] sm:$0xff] %vm3773_vm5, %v3732_v11 }
 0x690   : > { %v3659_v13 = vpop.permute.xlu0 %3658 }
 0x691   : > { %3692 = vst.msk [vmem:[#allocation5 + $0x78] sm:$0xff] %vm3676_vm4, %v3659_v13 }
 0x693   : > { %3948 = vrot.lane.b32.xlu2 %v3902_v10, %s6540_s11 }
 0x694   : > { %4017 = vrot.lane.b32.xlu1 %v7923_v53, %s6533_s18  ;;  %v3903_v53 = vld [vmem:[#allocation4 + $0xe1] sm:$0xff] }
 0x695   : > { %v3752_v43 = vpop.permute.xlu2 %3751 }
 0x696   : > { %3944 = vrot.lane.b32.xlu0 %v8080_v48, %s6540_s11  ;;  %3787 = vst.msk [vmem:[#allocation5 + $0x68] sm:$0xff] %vm3773_vm5, %v3752_v43  ;;  %v3738_v0 = vpop.permute.xlu1 %3737 }
 0x697   : > { %3780 = vst.msk [vmem:[#allocation5 + $0x30] sm:$0xff] %vm3773_vm5, %v3738_v0 }
 0x698   : > { %v3730_v27 = vpop.permute.xlu0 %3729 }
 0x699   : > { %3776 = vst.msk [vmem:[#allocation5 + $0x10] sm:$0xff] %vm3773_vm5, %v3730_v27 }
 0x69b   : > { %4019 = vrot.lane.b32.xlu2 %v7968_v47, %s6533_s18 }
 0x69c   : > { %4023 = vrot.lane.b32.xlu1 %v7953_v8, %s6533_s18 }
 0x69d   : > { %v3824_v44 = vpop.permute.xlu2 %3823 }
 0x69e   : > { %3950 = vrot.lane.b32.xlu0 %v3903_v53, %s6540_s11  ;;  %3872 = vst.msk [vmem:[#allocation5] sm:$0xff] %vm3871_vm6, %v3824_v44  ;;  %v3744_v48 = vpop.permute.xlu1 %3743  ;;  %s6542_s11 = smov 124  }
 0x69f   : > { %3783 = vst.msk [vmem:[#allocation5 + $0x48] sm:$0xff] %vm3773_vm5, %v3744_v48 }
 0x6a0   : > { %v3736_v3 = vpop.permute.xlu0 %3735 }
 0x6a1   : > { %3779 = vst.msk [vmem:[#allocation5 + $0x28] sm:$0xff] %vm3773_vm5, %v3736_v3 }
 0x6a3   : > { %4025 = vrot.lane.b32.xlu2 %v7981_v39, %s6533_s18 }
 0x6a4   : > { %4029 = vrot.lane.b32.xlu1 %v7973_v4, %s6533_s18 }
 0x6a5   : > { %v3830_v47 = vpop.permute.xlu2 %3829 }
 0x6a6   : > { %4021 = vrot.lane.b32.xlu0 %v7929_v1, %s6533_s18  ;;  %3875 = vst.msk [vmem:[#allocation5 + $0x18] sm:$0xff] %vm3871_vm6, %v3830_v47  ;;  %v3750_v8 = vpop.permute.xlu1 %3749 }
 0x6a7   : > { %3786 = vst.msk [vmem:[#allocation5 + $0x60] sm:$0xff] %vm3773_vm5, %v3750_v8 }
 0x6a8   : > { %v3742_v17 = vpop.permute.xlu0 %3741 }
 0x6a9   : > { %3782 = vst.msk [vmem:[#allocation5 + $0x40] sm:$0xff] %vm3773_vm5, %v3742_v17 }
 0x6ab   : > { %4031 = vrot.lane.b32.xlu2 %v7994_v19, %s6533_s18 }
 0x6ac   : > { %4035 = vrot.lane.b32.xlu1 %v7986_v37, %s6533_s18 }
 0x6ad   : > { %v3836_v39 = vpop.permute.xlu2 %3835 }
 0x6ae   : > { %4027 = vrot.lane.b32.xlu0 %v7957_v32, %s6533_s18  ;;  %3878 = vst.msk [vmem:[#allocation5 + $0x30] sm:$0xff] %vm3871_vm6, %v3836_v39  ;;  %v3756_v1 = vpop.permute.xlu1 %3755 }
 0x6af   : > { %3789 = vst.msk [vmem:[#allocation5 + $0x78] sm:$0xff] %vm3773_vm5, %v3756_v1 }
 0x6b0   : > { %v3748_v4 = vpop.permute.xlu0 %3747 }
 0x6b1   : > { %3785 = vst.msk [vmem:[#allocation5 + $0x58] sm:$0xff] %vm3773_vm5, %v3748_v4 }
 0x6b3   : > { %4037 = vrot.lane.b32.xlu2 %v8003_v60, %s6533_s18 }
 0x6b4   : > { %4041 = vrot.lane.b32.xlu1 %v8144_v2, %s6533_s18 }
 0x6b5   : > { %v3842_v19 = vpop.permute.xlu2 %3841 }
 0x6b6   : > { %4033 = vrot.lane.b32.xlu0 %v7977_v33, %s6533_s18  ;;  %3881 = vst.msk [vmem:[#allocation5 + $0x48] sm:$0xff] %vm3871_vm6, %v3842_v19  ;;  %v3828_v32 = vpop.permute.xlu1 %3827 }
 0x6b7   : > { %3874 = vst.msk [vmem:[#allocation5 + $0x10] sm:$0xff] %vm3871_vm6, %v3828_v32 }
 0x6b8   : > { %v3754_v37 = vpop.permute.xlu0 %3753 }
 0x6b9   : > { %3788 = vst.msk [vmem:[#allocation5 + $0x70] sm:$0xff] %vm3773_vm5, %v3754_v37 }
 0x6bb   : > { %4043 = vrot.lane.b32.xlu2 %v8131_v25, %s6533_s18 }
 0x6bc   : > { %4047 = vrot.lane.b32.xlu1 %v4000_v40, %s6533_s18  ;;  %v4241_v40 = vld [vmem:[%s10561_s10] sm:$0xf] }
 0x6bd   : > { %v3848_v60 = vpop.permute.xlu2 %3847  ;;  %6380 = vmatpush.msk.msra.mxu2 %vm4156_vm8, %v4241_v40  ;;  %6425 = vmatpush.msk.msra.mxu3 %vm4156_vm8, %v4241_v40 }
 0x6be   : > { %4039 = vrot.lane.b32.xlu0 %v7990_v18, %s6533_s18  ;;  %3884 = vst.msk [vmem:[#allocation5 + $0x60] sm:$0xff] %vm3871_vm6, %v3848_v60  ;;  %v3834_v33 = vpop.permute.xlu1 %3833 }
 0x6bf   : > { %3877 = vst.msk [vmem:[#allocation5 + $0x28] sm:$0xff] %vm3871_vm6, %v3834_v33 }
 0x6c0   : > { %v3826_v55 = vpop.permute.xlu0 %3825 }
 0x6c1   : > { %3873 = vst.msk [vmem:[#allocation5 + $0x8] sm:$0xff] %vm3871_vm6, %v3826_v55  ;;  %v6484_v55 = vld [vmem:[%s10562_s17] ss:$0 sm:$0xff] }
 0x6c5   : > { %v3854_v52 = vpop.permute.xlu2 %3853 }
 0x6c6   : > { %4045 = vrot.lane.b32.xlu0 %v3999_v62, %s6533_s18  ;;  %3887 = vst.msk [vmem:[#allocation5 + $0x78] sm:$0xff] %vm3871_vm6, %v3854_v52  ;;  %v3840_v22 = vpop.permute.xlu1 %3839 }
 0x6c7   : > { %3880 = vst.msk [vmem:[#allocation5 + $0x40] sm:$0xff] %vm3871_vm6, %v3840_v22 }
 0x6c8   : > { %v3832_v51 = vpop.permute.xlu0 %3831 }
 0x6c9   : > { %3876 = vst.msk [vmem:[#allocation5 + $0x20] sm:$0xff] %vm3871_vm6, %v3832_v51 }
 0x6cd   : > { %v3925_v18 = vpop.permute.xlu2 %3924 }
 0x6ce   : > { %3971 = vst.msk [vmem:[#allocation5 + $0x10] sm:$0xff] %vm3968_vm7, %v3925_v18  ;;  %v3846_v25 = vpop.permute.xlu1 %3845 }
 0x6cf   : > { %3883 = vst.msk [vmem:[#allocation5 + $0x58] sm:$0xff] %vm3871_vm6, %v3846_v25 }
 0x6d0   : > { %v3838_v61 = vpop.permute.xlu0 %3837 }
 0x6d1   : > { %3879 = vst.msk [vmem:[#allocation5 + $0x38] sm:$0xff] %vm3871_vm6, %v3838_v61 }
 0x6d5   : > { %v3931_v42 = vpop.permute.xlu2 %3930 }
 0x6d6   : > { %3974 = vst.msk [vmem:[#allocation5 + $0x28] sm:$0xff] %vm3968_vm7, %v3931_v42  ;;  %v3852_v35 = vpop.permute.xlu1 %3851 }
 0x6d7   : > { %3886 = vst.msk [vmem:[#allocation5 + $0x70] sm:$0xff] %vm3871_vm6, %v3852_v35 }
 0x6d8   : > { %v3844_v2 = vpop.permute.xlu0 %3843 }
 0x6d9   : > { %3882 = vst.msk [vmem:[#allocation5 + $0x50] sm:$0xff] %vm3871_vm6, %v3844_v2 }
 0x6dd   : > { %v3937_v21 = vpop.permute.xlu2 %3936 }
 0x6de   : > { %3977 = vst.msk [vmem:[#allocation5 + $0x40] sm:$0xff] %vm3968_vm7, %v3937_v21  ;;  %v3923_v56 = vpop.permute.xlu1 %3922 }
 0x6df   : > { %3970 = vst.msk [vmem:[#allocation5 + $0x8] sm:$0xff] %vm3968_vm7, %v3923_v56 }
 0x6e0   : > { %v3850_v58 = vpop.permute.xlu0 %3849 }
 0x6e1   : > { %3885 = vst.msk [vmem:[#allocation5 + $0x68] sm:$0xff] %vm3871_vm6, %v3850_v58 }
 0x6e5   : > { %v3943_v59 = vpop.permute.xlu2 %3942 }
 0x6e6   : > { %3980 = vst.msk [vmem:[#allocation5 + $0x58] sm:$0xff] %vm3968_vm7, %v3943_v59  ;;  %v3929_v46 = vpop.permute.xlu1 %3928 }
 0x6e7   : > { %3973 = vst.msk [vmem:[#allocation5 + $0x20] sm:$0xff] %vm3968_vm7, %v3929_v46 }
 0x6e8   : > { %v3921_v15 = vpop.permute.xlu0 %3920 }
 0x6e9   : > { %3969 = vst.msk [vmem:[#allocation5] sm:$0xff] %vm3968_vm7, %v3921_v15 }
 0x6ed   : > { %v3949_v9 = vpop.permute.xlu2 %3948 }
 0x6ee   : > { %3983 = vst.msk [vmem:[#allocation5 + $0x70] sm:$0xff] %vm3968_vm7, %v3949_v9  ;;  %v3935_v5 = vpop.permute.xlu1 %3934 }
 0x6ef   : > { %3976 = vst.msk [vmem:[#allocation5 + $0x38] sm:$0xff] %vm3968_vm7, %v3935_v5 }
 0x6f0   : > { %v3927_v16 = vpop.permute.xlu0 %3926 }
 0x6f1   : > { %3972 = vst.msk [vmem:[#allocation5 + $0x18] sm:$0xff] %vm3968_vm7, %v3927_v16 }
 0x6f5   : > { %v4020_v29 = vpop.permute.xlu2 %4019 }
 0x6f6   : > { %4067 = vst.msk [vmem:[#allocation5 + $0x8] sm:$0xff] %vm4065_vm9, %v4020_v29  ;;  %v3941_v57 = vpop.permute.xlu1 %3940 }
 0x6f7   : > { %3979 = vst.msk [vmem:[#allocation5 + $0x50] sm:$0xff] %vm3968_vm7, %v3941_v57 }
 0x6f8   : > { %v3933_v28 = vpop.permute.xlu0 %3932 }
 0x6f9   : > { %3975 = vst.msk [vmem:[#allocation5 + $0x30] sm:$0xff] %vm3968_vm7, %v3933_v28 }
 0x6fd   : > { %v4026_v45 = vpop.permute.xlu2 %4025  ;;  %v4083_v36 = vld [vmem:[#allocation5 + $0x8] sm:$0xff] }
 0x6fe   : > { %4070 = vst.msk [vmem:[#allocation5 + $0x20] sm:$0xff] %vm4065_vm9, %v4026_v45  ;;  %v3947_v34 = vpop.permute.xlu1 %3946 }
 0x6ff   : > { %3982 = vst.msk [vmem:[#allocation5 + $0x68] sm:$0xff] %vm3968_vm7, %v3947_v34 }
 0x700   : > { %v3939_v12 = vpop.permute.xlu0 %3938 }
 0x701   : > { %3978 = vst.msk [vmem:[#allocation5 + $0x48] sm:$0xff] %vm3968_vm7, %v3939_v12 }
 0x705   : > { %v4032_v23 = vpop.permute.xlu2 %4031  ;;  %v4086_v48 = vld [vmem:[#allocation5 + $0x20] sm:$0xff] }
 0x706   : > { %4073 = vst.msk [vmem:[#allocation5 + $0x38] sm:$0xff] %vm4065_vm9, %v4032_v23  ;;  %v4018_v14 = vpop.permute.xlu1 %4017 }
 0x707   : > { %4066 = vst.msk [vmem:[#allocation5] sm:$0xff] %vm4065_vm9, %v4018_v14 }
 0x708   : > { %v3945_v24 = vpop.permute.xlu0 %3944 }
 0x709   : > { %3981 = vst.msk [vmem:[#allocation5 + $0x60] sm:$0xff] %vm3968_vm7, %v3945_v24 }
 0x70d   : > { %v4038_v7 = vpop.permute.xlu2 %4037  ;;  %v4089_v1 = vld [vmem:[#allocation5 + $0x38] sm:$0xff] }
 0x70e   : > { %4076 = vst.msk [vmem:[#allocation5 + $0x50] sm:$0xff] %vm4065_vm9, %v4038_v7  ;;  %v4024_v31 = vpop.permute.xlu1 %4023  ;;  %v4082_v49 = vld [vmem:[#allocation5] sm:$0xff] }
 0x70f   : > { %4069 = vst.msk [vmem:[#allocation5 + $0x18] sm:$0xff] %vm4065_vm9, %v4024_v31  ;;  %6364 = vmatmul.msk.f32.vlgmr.msra.gmra.mxu1 %vm4107_vm10, %v4082_v49 }
 0x710   : > { %v3951_v30 = vpop.permute.xlu0 %3950 }
 0x711   : > { %3984 = vst.msk [vmem:[#allocation5 + $0x78] sm:$0xff] %vm3968_vm7, %v3951_v30 }
 0x715   : > { %v4044_v63 = vpop.permute.xlu2 %4043  ;;  %v4092_v32 = vld [vmem:[#allocation5 + $0x50] sm:$0xff] }
 0x716   : > { %4079 = vst.msk [vmem:[#allocation5 + $0x68] sm:$0xff] %vm4065_vm9, %v4044_v63  ;;  %v4030_v38 = vpop.permute.xlu1 %4029  ;;  %v4085_v27 = vld [vmem:[#allocation5 + $0x18] sm:$0xff] }
 0x717   : > { %4072 = vst.msk [vmem:[#allocation5 + $0x30] sm:$0xff] %vm4065_vm9, %v4030_v38  ;;  %6365 = vmatmul.msk.f32.gmra.mxu1 %vm4107_vm10, %v4083_v36 }
 0x718   : > { %v4022_v20 = vpop.permute.xlu0 %4021 }
 0x719   : > { %4068 = vst.msk [vmem:[#allocation5 + $0x10] sm:$0xff] %vm4065_vm9, %v4022_v20 }
 0x71d   : > { %v4095_v33 = vld [vmem:[#allocation5 + $0x68] sm:$0xff] }
 0x71e   : > { %v4036_v11 = vpop.permute.xlu1 %4035  ;;  %v4088_v17 = vld [vmem:[#allocation5 + $0x30] sm:$0xff] }
 0x71f   : > { %4075 = vst.msk [vmem:[#allocation5 + $0x48] sm:$0xff] %vm4065_vm9, %v4036_v11 }
 0x720   : > { %v4028_v13 = vpop.permute.xlu0 %4027  ;;  %v4084_v10 = vld [vmem:[#allocation5 + $0x10] sm:$0xff] }
 0x721   : > { %4071 = vst.msk [vmem:[#allocation5 + $0x28] sm:$0xff] %vm4065_vm9, %v4028_v13  ;;  %6366 = vmatmul.msk.f32.gmra.mxu1 %vm4107_vm10, %v4084_v10 }
 0x726   : > { %v4042_v43 = vpop.permute.xlu1 %4041  ;;  %v4091_v19 = vld [vmem:[#allocation5 + $0x48] sm:$0xff] }
 0x727   : > { %4078 = vst.msk [vmem:[#allocation5 + $0x60] sm:$0xff] %vm4065_vm9, %v4042_v43 }
 0x728   : > { %v4034_v0 = vpop.permute.xlu0 %4033  ;;  %v4087_v47 = vld [vmem:[#allocation5 + $0x28] sm:$0xff] }
 0x729   : > { %4074 = vst.msk [vmem:[#allocation5 + $0x40] sm:$0xff] %vm4065_vm9, %v4034_v0  ;;  %6367 = vmatmul.msk.f32.gmra.mxu1 %vm4107_vm10, %v4085_v27 }
 0x72e   : > { %v4048_v53 = vpop.permute.xlu1 %4047  ;;  %v4094_v60 = vld [vmem:[#allocation5 + $0x60] sm:$0xff] }
 0x72f   : > { %4081 = vst.msk [vmem:[#allocation5 + $0x78] sm:$0xff] %vm4065_vm9, %v4048_v53 }
 0x730   : > { %v4040_v44 = vpop.permute.xlu0 %4039  ;;  %v4090_v4 = vld [vmem:[#allocation5 + $0x40] sm:$0xff] }
 0x731   : > { %4077 = vst.msk [vmem:[#allocation5 + $0x58] sm:$0xff] %vm4065_vm9, %v4040_v44  ;;  %6368 = vmatmul.msk.f32.gmra.mxu1 %vm4107_vm10, %v4086_v48  ;;  %v8381_v44 = vld [vmem:[%s10563_s21] ss:$0 sm:$0xff] }
 0x736   : > { %v4097_v39 = vld [vmem:[#allocation5 + $0x78] sm:$0xff] }
 0x738   : > { %v4046_v3 = vpop.permute.xlu0 %4045  ;;  %v4093_v37 = vld [vmem:[#allocation5 + $0x58] sm:$0xff] }
 0x739   : > { %4080 = vst.msk [vmem:[#allocation5 + $0x70] sm:$0xff] %vm4065_vm9, %v4046_v3  ;;  %6369 = vmatmul.msk.f32.gmra.mxu1 %vm4107_vm10, %v4087_v47 }
 0x740   : > { %v4096_v8 = vld [vmem:[#allocation5 + $0x70] sm:$0xff] }
 0x741   : > { %6378 = vmatmul.msk.f32.vlgmr.msrb.gmra.mxu3 %vm4107_vm10, %v4096_v8  ;;  %6370 = vmatmul.msk.f32.gmra.mxu1 %vm4107_vm10, %v4088_v17 }
 0x749   : > { %6379 = vmatmul.msk.f32.gmra.mxu3 %vm4107_vm10, %v4097_v39  ;;  %6371 = vmatmul.msk.f32.gmra.mxu1 %vm4107_vm10, %v4089_v1 }
 0x751   : > { %6372 = vmatmul.msk.f32.gmra.mxu1 %vm4107_vm10, %v4090_v4 }
 0x759   : > { %6373 = vmatmul.msk.f32.gmra.mxu1 %vm4107_vm10, %v4091_v19 }
 0x761   : > { %6374 = vmatmul.msk.f32.gmra.mxu1 %vm4107_vm10, %v4092_v32 }
 0x769   : > { %6375 = vmatmul.msk.f32.gmra.mxu1 %vm4107_vm10, %v4093_v37 }
 0x771   : > { %6376 = vmatmul.msk.f32.gmra.mxu1 %vm4107_vm10, %v4094_v60 }
 0x779   : > { %6377 = vmatmul.msk.f32.gmra.mxu1 %vm4107_vm10, %v4095_v33 }
 0x78c   : > { %v4177_v62 = vpop.f32.mrf.mxu1 }
 0x78d   : > { %v4178_v52 = vadd.f32 %v6484_v55, %v4177_v62 }
 0x78f   : > { %v4225_v22 = vmax.f32 %v4178_v52, 0.0 }
 0x791   : > { %6381 = vmatmul.msk.f32.vlgmr.msra.gmra.mxu2 %vm820_vm1, %v4225_v22 }
 0x794   : > { %v4180_v51 = vpop.f32.mrf.mxu1 }
 0x795   : > { %v4181_v18 = vadd.f32 %v6484_v55, %v4180_v51 }
 0x797   : > { %v4226_v25 = vmax.f32 %v4181_v18, 0.0 }
 0x799   : > { %6382 = vmatmul.msk.f32.gmra.mxu2 %vm820_vm1, %v4226_v25 }
 0x79e   : > { %v4183_v61 = vpop.f32.mrf.mxu1 }
 0x79f   : > { %v4184_v42 = vadd.f32 %v6484_v55, %v4183_v61 }
 0x7a1   : > { %v4227_v35 = vmax.f32 %v4184_v42, 0.0 }
 0x7a3   : > { %6383 = vmatmul.msk.f32.gmra.mxu2 %vm820_vm1, %v4227_v35 }
 0x7a6   : > { %v4186_v2 = vpop.f32.mrf.mxu1 }
 0x7a7   : > { %v4187_v21 = vadd.f32 %v6484_v55, %v4186_v2 }
 0x7a9   : > { %v4228_v56 = vmax.f32 %v4187_v21, 0.0 }
 0x7ab   : > { %6384 = vmatmul.msk.f32.gmra.mxu2 %vm820_vm1, %v4228_v56 }
 0x7ae   : > { %v4189_v58 = vpop.f32.mrf.mxu1 }
 0x7af   : > { %v4190_v59 = vadd.f32 %v6484_v55, %v4189_v58 }
 0x7b1   : > { %v4229_v46 = vmax.f32 %v4190_v59, 0.0 }
 0x7b3   : > { %6385 = vmatmul.msk.f32.gmra.mxu2 %vm820_vm1, %v4229_v46 }
 0x7b6   : > { %v4192_v15 = vpop.f32.mrf.mxu1 }
 0x7b7   : > { %v4193_v6 = vadd.f32 %v6484_v55, %v4192_v15 }
 0x7b9   : > { %v4230_v54 = vmax.f32 %v4193_v6, 0.0 }
 0x7bb   : > { %6386 = vmatmul.msk.f32.gmra.mxu2 %vm820_vm1, %v4230_v54 }
 0x7be   : > { %v4195_v41 = vpop.f32.mrf.mxu1 }
 0x7bf   : > { %v4196_v9 = vadd.f32 %v6484_v55, %v4195_v41 }
 0x7c1   : > { %v4231_v50 = vmax.f32 %v4196_v9, 0.0 }
 0x7c3   : > { %6387 = vmatmul.msk.f32.gmra.mxu2 %vm820_vm1, %v4231_v50 }
 0x7c4   : > { %v4219_v5 = vpop.f32.mrf.mxu3 }
 0x7c5   : > { %v4220_v27 = vadd.f32 %v6484_v55, %v4219_v5 }
 0x7c6   : > { %v4198_v16 = vpop.f32.mrf.mxu1 }
 0x7c7   : > { %v4199_v26 = vadd.f32 %v6484_v55, %v4198_v16  ;;  %v4239_v53 = vmax.f32 %v4220_v27, 0.0 }
 0x7c9   : > { %v4232_v29 = vmax.f32 %v4199_v26, 0.0 }
 0x7cb   : > { %6388 = vmatmul.msk.f32.gmra.mxu2 %vm820_vm1, %v4232_v29 }
 0x7cc   : > { %v4222_v57 = vpop.f32.mrf.mxu3 }
 0x7cd   : > { %v4223_v28 = vadd.f32 %v6484_v55, %v4222_v57 }
 0x7ce   : > { %v4201_v45 = vpop.f32.mrf.mxu1 }
 0x7cf   : > { %v4240_v34 = vmax.f32 %v4223_v28, 0.0  ;;  %v4202_v12 = vadd.f32 %v6484_v55, %v4201_v45 }
 0x7d1   : > { %v4233_v23 = vmax.f32 %v4202_v12, 0.0  ;;  %6396 = vmatmul.msk.f32.vlgmr.msra.gmra.mxu3 %vm820_vm1, %v4240_v34 }
 0x7d3   : > { %6389 = vmatmul.msk.f32.gmra.mxu2 %vm820_vm1, %v4233_v23 }
 0x7d6   : > { %v4204_v14 = vpop.f32.mrf.mxu1 }
 0x7d7   : > { %v4205_v24 = vadd.f32 %v6484_v55, %v4204_v14 }
 0x7d9   : > { %v4234_v7 = vmax.f32 %v4205_v24, 0.0 }
 0x7db   : > { %6390 = vmatmul.msk.f32.gmra.mxu2 %vm820_vm1, %v4234_v7 }
 0x7de   : > { %v4207_v31 = vpop.f32.mrf.mxu1 }
 0x7df   : > { %v4208_v49 = vadd.f32 %v6484_v55, %v4207_v31 }
 0x7e1   : > { %v4235_v30 = vmax.f32 %v4208_v49, 0.0 }
 0x7e3   : > { %6391 = vmatmul.msk.f32.gmra.mxu2 %vm820_vm1, %v4235_v30 }
 0x7e6   : > { %v4210_v63 = vpop.f32.mrf.mxu1 }
 0x7e7   : > { %v4211_v38 = vadd.f32 %v6484_v55, %v4210_v63 }
 0x7e9   : > { %v4236_v36 = vmax.f32 %v4211_v38, 0.0 }
 0x7eb   : > { %6392 = vmatmul.msk.f32.gmra.mxu2 %vm820_vm1, %v4236_v36 }
 0x7ee   : > { %v4213_v20 = vpop.f32.mrf.mxu1 }
 0x7ef   : > { %v4214_v11 = vadd.f32 %v6484_v55, %v4213_v20 }
 0x7f1   : > { %v4237_v13 = vmax.f32 %v4214_v11, 0.0 }
 0x7f3   : > { %6393 = vmatmul.msk.f32.gmra.mxu2 %vm820_vm1, %v4237_v13 }
 0x7f6   : > { %v4216_v10 = vpop.f32.mrf.mxu1 }
 0x7f7   : > { %v4217_v43 = vadd.f32 %v6484_v55, %v4216_v10 }
 0x7f9   : > { %v4238_v0 = vmax.f32 %v4217_v43, 0.0 }
 0x7fb   : > { %6394 = vmatmul.msk.f32.gmra.mxu2 %vm820_vm1, %v4238_v0 }
 0x803   : > { %6395 = vmatmul.msk.f32.gmra.mxu2 %vm820_vm1, %v4239_v53  ;;  %vm5114_vm1 = vcmask 1040384  }
 0x814   : > { %v4314_v48 = vpop.f32.mrf.mxu2 }
 0x815   : > { %v8384_v3 = vadd.f32 %v8381_v44, %v4314_v48 }
 0x817   : > { %v4602_v47 = vperm.slane %v8384_v3, 0  ;;  %v4379_v8 = vrot.slane %v8384_v3, 2  ;;  %v4378_v17 = vrot.slane %v8384_v3, 1  ;;  %v4380_v4 = vrot.slane %v8384_v3, 3 }
 0x818   : > { %v4382_v19 = vrot.slane %v8384_v3, 5  ;;  %v4381_v32 = vrot.slane %v8384_v3, 4  ;;  %v4383_v55 = vrot.slane %v8384_v3, 6  ;;  %v4384_v52 = vrot.slane %v8384_v3, 7 }
 0x819   : > { %4730 = vrot.lane.b32.xlu2 %v4602_v47, %s6541_s23  ;;  %v4604_v39 = vperm.slane %v4379_v8, 0  ;;  %v4603_v1 = vperm.slane %v4378_v17, 0  ;;  %v4605_v37 = vperm.slane %v4380_v4, 0 }
 0x81a   : > { %v4607_v40 = vperm.slane %v4382_v19, 0  ;;  %v4606_v60 = vperm.slane %v4381_v32, 0  ;;  %v4608_v22 = vperm.slane %v4383_v55, 0  ;;  %v4609_v18 = vperm.slane %v4384_v52, 0 }
 0x81b   : > { %4734 = vrot.lane.b32.xlu1 %v4604_v39, %s6541_s23  ;;  %4732 = vrot.lane.b32.xlu0 %v4603_v1, %s6541_s23 }
 0x81c   : > { %v4317_v33 = vpop.f32.mrf.mxu2 }
 0x81d   : > { %v8410_v62 = vadd.f32 %v8381_v44, %v4317_v33 }
 0x81f   : > { %v4610_v51 = vperm.slane %v8410_v62, 0  ;;  %v4385_v25 = vrot.slane %v8410_v62, 1  ;;  %v4387_v61 = vrot.slane %v8410_v62, 3  ;;  %v4386_v42 = vrot.slane %v8410_v62, 2 }
 0x820   : > { %v4388_v56 = vrot.slane %v8410_v62, 4  ;;  %v4390_v58 = vrot.slane %v8410_v62, 6  ;;  %v4389_v59 = vrot.slane %v8410_v62, 5  ;;  %v4391_v9 = vrot.slane %v8410_v62, 7 }
 0x821   : > { %4736 = vrot.lane.b32.xlu2 %v4605_v37, %s6541_s23  ;;  %v4611_v35 = vperm.slane %v4385_v25, 0  ;;  %v4613_v2 = vperm.slane %v4387_v61, 0  ;;  %v4612_v21 = vperm.slane %v4386_v42, 0 }
 0x822   : > { %v4614_v15 = vperm.slane %v4388_v56, 0  ;;  %v4616_v54 = vperm.slane %v4390_v58, 0  ;;  %v4615_v41 = vperm.slane %v4389_v59, 0  ;;  %v4617_v5 = vperm.slane %v4391_v9, 0 }
 0x823   : > { %4740 = vrot.lane.b32.xlu1 %v4607_v40, %s6541_s23  ;;  %4738 = vrot.lane.b32.xlu0 %v4606_v60, %s6541_s23 }
 0x826   : > { %v4320_v46 = vpop.f32.mrf.mxu2 }
 0x827   : > { %v8439_v6 = vadd.f32 %v8381_v44, %v4320_v46 }
 0x829   : > { %4742 = vrot.lane.b32.xlu2 %v4608_v22, %s6541_s23  ;;  %v10472_v50 = vrot.slane %v8439_v6, 1  ;;  %v4618_v16 = vperm.slane %v8439_v6, 0  ;;  %v10473_v29 = vrot.slane %v8439_v6, 2  ;;  %v10468_v57 = vrot.slane %v8439_v6, 3 }
 0x82a   : > { %v10466_v28 = vrot.slane %v8439_v6, 4  ;;  %v10467_v23 = vrot.slane %v8439_v6, 5  ;;  %v10465_v14 = vrot.slane %v8439_v6, 6  ;;  %v10462_v24 = vrot.slane %v8439_v6, 7 }
 0x82b   : > { %4746 = vrot.lane.b32.xlu1 %v4610_v51, %s6541_s23  ;;  %4744 = vrot.lane.b32.xlu0 %v4609_v18, %s6541_s23  ;;  %v4619_v26 = vperm.slane %v10472_v50, 0  ;;  %v4620_v45 = vperm.slane %v10473_v29, 0  ;;  %v4621_v34 = vperm.slane %v10468_v57, 0 }
 0x82c   : > { %v4622_v12 = vperm.slane %v10466_v28, 0  ;;  %v4623_v31 = vperm.slane %v10467_v23, 0  ;;  %v4624_v30 = vperm.slane %v10465_v14, 0  ;;  %v4625_v63 = vperm.slane %v10462_v24, 0 }
 0x82e   : > { %v4323_v7 = vpop.f32.mrf.mxu2 }
 0x82f   : > { %v8476_v49 = vadd.f32 %v8381_v44, %v4323_v7 }
 0x831   : > { %4748 = vrot.lane.b32.xlu2 %v4611_v35, %s6541_s23  ;;  %v10461_v38 = vrot.slane %v8476_v49, 1  ;;  %v10456_v36 = vrot.slane %v8476_v49, 2  ;;  %v4626_v20 = vperm.slane %v8476_v49, 0  ;;  %v10460_v10 = vrot.slane %v8476_v49, 3 }
 0x832   : > { %v10455_v43 = vrot.slane %v8476_v49, 4  ;;  %v10451_v0 = vrot.slane %v8476_v49, 5  ;;  %v10454_v39 = vrot.slane %v8476_v49, 6  ;;  %v10450_v37 = vrot.slane %v8476_v49, 7 }
 0x833   : > { %4752 = vrot.lane.b32.xlu1 %v4613_v2, %s6541_s23  ;;  %4750 = vrot.lane.b32.xlu0 %v4612_v21, %s6541_s23  ;;  %v4627_v11 = vperm.slane %v10461_v38, 0  ;;  %v4628_v13 = vperm.slane %v10456_v36, 0  ;;  %v4629_v27 = vperm.slane %v10460_v10, 0 }
 0x834   : > { %v4630_v53 = vperm.slane %v10455_v43, 0  ;;  %v4631_v48 = vperm.slane %v10451_v0, 0  ;;  %v4632_v40 = vperm.slane %v10454_v39, 0  ;;  %v4633_v60 = vperm.slane %v10450_v37, 0 }
 0x836   : > { %v4326_v47 = vpop.f32.mrf.mxu2 }
 0x837   : > { %v8509_v1 = vadd.f32 %v8381_v44, %v4326_v47 }
 0x839   : > { %4754 = vrot.lane.b32.xlu2 %v4614_v15, %s6541_s23  ;;  %v4634_v33 = vperm.slane %v8509_v1, 0  ;;  %v10449_v22 = vrot.slane %v8509_v1, 1  ;;  %v10446_v51 = vrot.slane %v8509_v1, 2  ;;  %v10443_v18 = vrot.slane %v8509_v1, 3 }
 0x83a   : > { %v10444_v15 = vrot.slane %v8509_v1, 4 }
 0x83b   : > { %4758 = vrot.lane.b32.xlu1 %v4616_v54, %s6541_s23  ;;  %4756 = vrot.lane.b32.xlu0 %v4615_v41, %s6541_s23  ;;  %v4635_v35 = vperm.slane %v10449_v22, 0  ;;  %v4636_v2 = vperm.slane %v10446_v51, 0  ;;  %v4637_v21 = vperm.slane %v10443_v18, 0  ;;  %v10442_v41 = vrot.slane %v8509_v1, 5 }
 0x841   : > { %4760 = vrot.lane.b32.xlu2 %v4617_v5, %s6541_s23  ;;  %v10437_v5 = vrot.slane %v8509_v1, 6 }
 0x843   : > { %4762 = vrot.lane.b32.xlu0 %v4618_v16, %s6541_s23  ;;  %4764 = vrot.lane.b32.xlu1 %v4619_v26, %s6541_s23  ;;  %v4329_v16 = vpop.f32.mrf.mxu2  ;;  %v4638_v26 = vperm.slane %v10444_v15, 0 }
 0x849   : > { %4766 = vrot.lane.b32.xlu2 %v4620_v45, %s6541_s23  ;;  %v8543_v45 = vadd.f32 %v8381_v44, %v4329_v16 }
 0x84b   : > { %4768 = vrot.lane.b32.xlu0 %v4621_v34, %s6541_s23  ;;  %4770 = vrot.lane.b32.xlu1 %v4622_v12, %s6541_s23  ;;  %v4639_v34 = vperm.slane %v10442_v41, 0  ;;  %v4640_v12 = vperm.slane %v10437_v5, 0  ;;  %v10430_v47 = vrot.slane %v8543_v45, 4  ;;  %v10425_v16 = vrot.slane %v8543_v45, 7 }
 0x851   : > { %4772 = vrot.lane.b32.xlu2 %v4623_v31, %s6541_s23  ;;  %v10438_v31 = vrot.slane %v8509_v1, 7 }
 0x853   : > { %4774 = vrot.lane.b32.xlu0 %v4624_v30, %s6541_s23  ;;  %4776 = vrot.lane.b32.xlu1 %v4625_v63, %s6541_s23  ;;  %v10434_v63 = vrot.slane %v8543_v45, 1 }
 0x859   : > { %4778 = vrot.lane.b32.xlu2 %v4626_v20, %s6541_s23  ;;  %v4641_v20 = vperm.slane %v10438_v31, 0 }
 0x85b   : > { %4780 = vrot.lane.b32.xlu0 %v4627_v11, %s6541_s23  ;;  %4782 = vrot.lane.b32.xlu1 %v4628_v13, %s6541_s23  ;;  %v4642_v11 = vperm.slane %v8543_v45, 0  ;;  %v4643_v13 = vperm.slane %v10434_v63, 0 }
 0x861   : > { %4784 = vrot.lane.b32.xlu2 %v4629_v27, %s6541_s23 }
 0x863   : > { %4786 = vrot.lane.b32.xlu0 %v4630_v53, %s6541_s23  ;;  %4788 = vrot.lane.b32.xlu1 %v4631_v48, %s6541_s23  ;;  %v10432_v48 = vrot.slane %v8543_v45, 3 }
 0x869   : > { %4790 = vrot.lane.b32.xlu2 %v4632_v40, %s6541_s23 }
 0x86b   : > { %4792 = vrot.lane.b32.xlu0 %v4633_v60, %s6541_s23  ;;  %4794 = vrot.lane.b32.xlu1 %v4634_v33, %s6541_s23  ;;  %v4645_v60 = vperm.slane %v10432_v48, 0  ;;  %v4646_v33 = vperm.slane %v10430_v47, 0 }
 0x871   : > { %4796 = vrot.lane.b32.xlu2 %v4635_v35, %s6541_s23 }
 0x873   : > { %v4731_v46 = vpop.permute.xlu2 %4730  ;;  %4798 = vrot.lane.b32.xlu0 %v4636_v2, %s6541_s23  ;;  %4800 = vrot.lane.b32.xlu1 %v4637_v21, %s6541_s23 }
 0x874   : > { %v8535_v54 = vsel %vm5114_vm1, %v8384_v3, %v4731_v46  ;;  %v10426_v46 = vrot.slane %v8543_v45, 6 }
 0x875   : > { %5627 = vst [vmem:[#allocation1] ss:$4 sm:$0xff] %v8535_v54 }
 0x879   : > { %4802 = vrot.lane.b32.xlu2 %v4638_v26, %s6541_s23  ;;  %v4332_v26 = vpop.f32.mrf.mxu2 }
 0x87b   : > { %v4737_v7 = vpop.permute.xlu2 %4736  ;;  %4804 = vrot.lane.b32.xlu0 %v4639_v34, %s6541_s23  ;;  %4806 = vrot.lane.b32.xlu1 %v4640_v12, %s6541_s23 }
 0x87c   : > { %v8556_v30 = vsel %vm5114_vm1, %v4380_v4, %v4737_v7  ;;  %v10436_v4 = vrot.slane %v8543_v45, 2 }
 0x87d   : > { %5633 = vst [vmem:[#allocation1 + $0x3] ss:$4 sm:$0xff] %v8556_v30 }
 0x87e   : > { %v4644_v40 = vperm.slane %v10436_v4, 0 }
 0x881   : > { %4808 = vrot.lane.b32.xlu2 %v4641_v20, %s6541_s23  ;;  %v8604_v20 = vadd.f32 %v8381_v44, %v4332_v26  ;;  %v4335_v3 = vpop.f32.mrf.mxu2 }
 0x883   : > { %v4743_v27 = vpop.permute.xlu2 %4742  ;;  %4810 = vrot.lane.b32.xlu0 %v4642_v11, %s6541_s23  ;;  %4812 = vrot.lane.b32.xlu1 %v4643_v13, %s6541_s23  ;;  %10564 = vst [vmem:[#allocation11_spill] sm:$0xff] %v8604_v20  ;;  %v4650_v26 = vperm.slane %v8604_v20, 0 }
 0x884   : > { %v8572_v53 = vsel %vm5114_vm1, %v4383_v55, %v4743_v27  ;;  %v10431_v55 = vrot.slane %v8543_v45, 5 }
 0x885   : > { %5639 = vst [vmem:[#allocation1 + $0x22] ss:$4 sm:$0xff] %v8572_v53 }
 0x886   : > { %v4647_v7 = vperm.slane %v10431_v55, 0 }
 0x889   : > { %4814 = vrot.lane.b32.xlu2 %v4644_v40, %s6541_s23  ;;  %v10419_v40 = vrot.slane %v8604_v20, 1 }
 0x88b   : > { %v4749_v35 = vpop.permute.xlu2 %4748  ;;  %4816 = vrot.lane.b32.xlu0 %v4645_v60, %s6541_s23  ;;  %4818 = vrot.lane.b32.xlu1 %v4646_v33, %s6541_s23  ;;  %v10415_v60 = vrot.slane %v8604_v20, 2 }
 0x88d   : > { %v4735_v2 = vpop.permute.xlu1 %4734  ;;  %v4733_v21 = vpop.permute.xlu0 %4732 }
 0x88e   : > { %v8592_v34 = vsel %vm5114_vm1, %v4379_v8, %v4735_v2  ;;  %v8597_v12 = vsel %vm5114_vm1, %v4378_v17, %v4733_v21  ;;  %v4648_v8 = vperm.slane %v10426_v46, 0  ;;  %v4649_v17 = vperm.slane %v10425_v16, 0 }
 0x88f   : > { %5631 = vst [vmem:[#allocation1 + $0x2] ss:$4 sm:$0xff] %v8592_v34 }
 0x890   : > { %5629 = vst [vmem:[#allocation1 + $0x1] ss:$4 sm:$0xff] %v8597_v12 }
 0x891   : > { %4820 = vrot.lane.b32.xlu2 %v4647_v7, %s6541_s23  ;;  %v8630_v7 = vsel %vm5114_vm1, %v4385_v25, %v4749_v35  ;;  %v10416_v25 = vrot.slane %v8604_v20, 3 }
 0x893   : > { %v4755_v11 = vpop.permute.xlu2 %4754  ;;  %4822 = vrot.lane.b32.xlu0 %v4648_v8, %s6541_s23  ;;  %4824 = vrot.lane.b32.xlu1 %v4649_v17, %s6541_s23 }
 0x895   : > { %v4741_v13 = vpop.permute.xlu1 %4740  ;;  %v4739_v27 = vpop.permute.xlu0 %4738 }
 0x896   : > { %v8618_v33 = vsel %vm5114_vm1, %v4382_v19, %v4741_v13  ;;  %v8624_v21 = vsel %vm5114_vm1, %v4381_v32, %v4739_v27  ;;  %v4651_v19 = vperm.slane %v10419_v40, 0  ;;  %v4652_v32 = vperm.slane %v10415_v60, 0 }
 0x897   : > { %v5642_v2 = vld.sshfl [vmem:[#allocation1] sm:$0xff pattern:$0x73625140]  ;;  %5637 = vst [vmem:[#allocation1 + $0x21] ss:$4 sm:$0xff] %v8618_v33  ;;  %v10417_v13 = vrot.slane %v8604_v20, 4 }
 0x898   : > { %6019 = vst.msk [vmem:[%s6686_s22] sm:$0xff] %vm6018_vm11, %v5642_v2  ;;  %v10418_v27 = vrot.slane %v8604_v20, 5 }
 0x899   : > { %5645 = vst [vmem:[#allocation1 + $0x1] ss:$4 sm:$0xff] %v8630_v7  ;;  %4826 = vrot.lane.b32.xlu2 %v4650_v26, %s6541_s23 }
 0x89a   : > { %5635 = vst [vmem:[#allocation1 + $0x20] ss:$4 sm:$0xff] %v8624_v21 }
 0x89b   : > { %v4761_v8 = vpop.permute.xlu2 %4760  ;;  %4828 = vrot.lane.b32.xlu0 %v4651_v19, %s6541_s23  ;;  %4830 = vrot.lane.b32.xlu1 %v4652_v32, %s6541_s23  ;;  %v4653_v19 = vperm.slane %v10416_v25, 0  ;;  %v4654_v32 = vperm.slane %v10417_v13, 0  ;;  %v10420_v13 = vrot.slane %v8604_v20, 7 }
 0x89d   : > { %v4747_v35 = vpop.permute.xlu1 %4746  ;;  %v4745_v17 = vpop.permute.xlu0 %4744 }
 0x89e   : > { %v8648_v2 = vsel %vm5114_vm1, %v8410_v62, %v4747_v35  ;;  %v8653_v26 = vsel %vm5114_vm1, %v4384_v52, %v4745_v17  ;;  %v4655_v35 = vperm.slane %v10418_v27, 0  ;;  %v10424_v52 = vrot.slane %v8604_v20, 6 }
 0x89f   : > { %5644 = vst [vmem:[#allocation1] ss:$4 sm:$0xff] %v8648_v2  ;;  %v8670_v17 = vadd.f32 %v8381_v44, %v4335_v3 }
 0x8a0   : > { %5641 = vst [vmem:[#allocation1 + $0x23] ss:$4 sm:$0xff] %v8653_v26 }
 0x8a1   : > { %4832 = vrot.lane.b32.xlu2 %v4653_v19, %s6541_s23  ;;  %10565 = vst [vmem:[#allocation12_spill] sm:$0xff] %v8670_v17 }
 0x8a3   : > { %v8664_v60 = vpop.permute.xlu2 %4766  ;;  %4834 = vrot.lane.b32.xlu0 %v4654_v32, %s6541_s23  ;;  %4836 = vrot.lane.b32.xlu1 %v4655_v35, %s6541_s23  ;;  %v4656_v32 = vperm.slane %v10424_v52, 0  ;;  %v8684_v35 = vsel %vm5114_vm1, %v4388_v56, %v4755_v11  ;;  %v4657_v56 = vperm.slane %v10420_v13, 0  ;;  %v4658_v11 = vperm.slane %v8670_v17, 0 }
 0x8a5   : > { %v4753_v19 = vpop.permute.xlu1 %4752  ;;  %v4751_v25 = vpop.permute.xlu0 %4750 }
 0x8a6   : > { %v8676_v27 = vsel %vm5114_vm1, %v4387_v61, %v4753_v19  ;;  %v8691_v3 = vsel %vm5114_vm1, %v4386_v42, %v4751_v25  ;;  %v8696_v61 = vsel %vm5114_vm1, %v4391_v9, %v4761_v8  ;;  %v10422_v9 = vrot.slane %v8670_v17, 1 }
 0x8a7   : > { %v5643_v40 = vld.sshfl [vmem:[#allocation1 + $0x20] sm:$0xff pattern:$0x73625140]  ;;  %5647 = vst [vmem:[#allocation1 + $0x3] ss:$4 sm:$0xff] %v8676_v27  ;;  %v10421_v25 = vrot.slane %v8670_v17, 2 }
 0x8a8   : > { %6020 = vst.msk [vmem:[%s6686_s22 + $0x8] sm:$0xff] %vm6018_vm11, %v5643_v40  ;;  %v10423_v19 = vrot.slane %v8670_v17, 3 }
 0x8a9   : > { %5648 = vst [vmem:[#allocation1 + $0x20] ss:$4 sm:$0xff] %v8684_v35  ;;  %4838 = vrot.lane.b32.xlu2 %v4656_v32, %s6541_s23  ;;  %v4660_v13 = vperm.slane %v10421_v25, 0  ;;  %v10428_v25 = vrot.slane %v8670_v17, 5 }
 0x8aa   : > { %5651 = vst [vmem:[#allocation1 + $0x23] ss:$4 sm:$0xff] %v8696_v61 }
 0x8ab   : > { %5646 = vst [vmem:[#allocation1 + $0x2] ss:$4 sm:$0xff] %v8691_v3  ;;  %v8705_v42 = vpop.permute.xlu2 %4772  ;;  %4840 = vrot.lane.b32.xlu0 %v4657_v56, %s6541_s23  ;;  %4842 = vrot.lane.b32.xlu1 %v4658_v11, %s6541_s23  ;;  %v4659_v11 = vperm.slane %v10422_v9, 0  ;;  %v10429_v9 = vrot.slane %v8670_v17, 6 }
 0x8ad   : > { %v4759_v40 = vpop.permute.xlu1 %4758  ;;  %v4757_v8 = vpop.permute.xlu0 %4756  ;;  %v4664_v16 = vperm.slane %v10429_v9, 0 }
 0x8ae   : > { %v8715_v32 = vsel %vm5114_vm1, %v4390_v58, %v4759_v40  ;;  %v8720_v56 = vsel %vm5114_vm1, %v4389_v59, %v4757_v8  ;;  %v4661_v58 = vperm.slane %v10423_v19, 0  ;;  %v10427_v40 = vrot.slane %v8670_v17, 4  ;;  %v4338_v19 = vpop.f32.mrf.mxu2 }
 0x8af   : > { %5650 = vst [vmem:[#allocation1 + $0x22] ss:$4 sm:$0xff] %v8715_v32 }
 0x8b0   : > { %5649 = vst [vmem:[#allocation1 + $0x21] ss:$4 sm:$0xff] %v8720_v56 }
 0x8b1   : > { %4844 = vrot.lane.b32.xlu2 %v4659_v11, %s6541_s23 }
 0x8b2   : > { %v5652_v62 = vld.sshfl [vmem:[#allocation1] sm:$0xff pattern:$0x73625140] }
 0x8b3   : > { %6021 = vst.msk [vmem:[%s6686_s22 + $0x10] sm:$0xff] %vm6018_vm11, %v5652_v62  ;;  %v8733_v59 = vpop.permute.xlu2 %4778  ;;  %4846 = vrot.lane.b32.xlu0 %v4660_v13, %s6541_s23  ;;  %4848 = vrot.lane.b32.xlu1 %v4661_v58, %s6541_s23  ;;  %v4662_v62 = vperm.slane %v10427_v40, 0  ;;  %v8749_v13 = vadd.f32 %v8381_v44, %v4338_v19  ;;  %v4663_v58 = vperm.slane %v10428_v25, 0  ;;  %v10433_v40 = vrot.slane %v8670_v17, 7 }
 0x8b5   : > { %v8738_v8 = vpop.permute.xlu1 %4764  ;;  %v8740_v11 = vpop.permute.xlu0 %4762  ;;  %10566 = vst [vmem:[#allocation13_spill] sm:$0xff] %v8749_v13  ;;  %v4665_v25 = vperm.slane %v10433_v40, 0  ;;  %v4666_v9 = vperm.slane %v8749_v13, 0  ;;  %v10440_v40 = vrot.slane %v8749_v13, 3  ;;  %v10445_v4 = vrot.slane %v8749_v13, 5 }
 0x8b7   : > { %v5653_v52 = vld.sshfl [vmem:[#allocation1 + $0x20] sm:$0xff pattern:$0x73625140] }
 0x8b8   : > { %6022 = vst.msk [vmem:[%s6686_s22 + $0x18] sm:$0xff] %vm6018_vm11, %v5653_v52 }
 0x8b9   : > { %4850 = vrot.lane.b32.xlu2 %v4662_v62, %s6541_s23  ;;  %v10435_v62 = vrot.slane %v8749_v13, 1 }
 0x8bb   : > { %v8756_v46 = vpop.permute.xlu2 %4784  ;;  %4852 = vrot.lane.b32.xlu0 %v4663_v58, %s6541_s23  ;;  %4854 = vrot.lane.b32.xlu1 %v4664_v16, %s6541_s23  ;;  %v4667_v58 = vperm.slane %v10435_v62, 0  ;;  %v10439_v16 = vrot.slane %v8749_v13, 2 }
 0x8bd   : > { %v8761_v52 = vpop.permute.xlu1 %4770  ;;  %v8763_v19 = vpop.permute.xlu0 %4768  ;;  %v4668_v63 = vperm.slane %v10439_v16, 0  ;;  %v10447_v16 = vrot.slane %v8749_v13, 7 }
 0x8c1   : > { %4856 = vrot.lane.b32.xlu2 %v4665_v25, %s6541_s23  ;;  %v10441_v25 = vrot.slane %v8749_v13, 4 }
 0x8c3   : > { %v8772_v47 = vpop.permute.xlu2 %4790  ;;  %4858 = vrot.lane.b32.xlu0 %v4666_v9, %s6541_s23  ;;  %4860 = vrot.lane.b32.xlu1 %v4667_v58, %s6541_s23  ;;  %v4669_v9 = vperm.slane %v10440_v40, 0  ;;  %v4670_v58 = vperm.slane %v10441_v25, 0  ;;  %v4341_v40 = vpop.f32.mrf.mxu2  ;;  %v4671_v25 = vperm.slane %v10445_v4, 0 }
 0x8c4   : > { %v8804_v41 = vadd.f32 %v8381_v44, %v4341_v40 }
 0x8c5   : > { %v8777_v55 = vpop.permute.xlu1 %4776  ;;  %v8779_v48 = vpop.permute.xlu0 %4774 }
 0x8c6   : > { %10567 = vst [vmem:[#allocation14_spill] sm:$0xff] %v8804_v41  ;;  %v10452_v40 = vrot.slane %v8804_v41, 1  ;;  %v4674_v51 = vperm.slane %v8804_v41, 0  ;;  %v10459_v0 = vrot.slane %v8804_v41, 5  ;;  %v10463_v43 = vrot.slane %v8804_v41, 6 }
 0x8c9   : > { %4862 = vrot.lane.b32.xlu2 %v4668_v63, %s6541_s23  ;;  %v10448_v63 = vrot.slane %v8749_v13, 6 }
 0x8cb   : > { %v8790_v62 = vpop.permute.xlu2 %4796  ;;  %4864 = vrot.lane.b32.xlu0 %v4669_v9, %s6541_s23  ;;  %4866 = vrot.lane.b32.xlu1 %v4670_v58, %s6541_s23  ;;  %v4672_v9 = vperm.slane %v10448_v63, 0  ;;  %v4673_v58 = vperm.slane %v10447_v16, 0  ;;  %v4675_v16 = vperm.slane %v10452_v40, 0 }
 0x8cd   : > { %v8795_v5 = vpop.permute.xlu1 %4782  ;;  %v8797_v31 = vpop.permute.xlu0 %4780 }
 0x8d1   : > { %4868 = vrot.lane.b32.xlu2 %v4671_v25, %s6541_s23  ;;  %v10453_v25 = vrot.slane %v8804_v41, 2 }
 0x8d3   : > { %v8811_v18 = vpop.permute.xlu2 %4802  ;;  %4870 = vrot.lane.b32.xlu0 %v4672_v9, %s6541_s23  ;;  %4872 = vrot.lane.b32.xlu1 %v4673_v58, %s6541_s23  ;;  %v4676_v9 = vperm.slane %v10453_v25, 0  ;;  %v10457_v58 = vrot.slane %v8804_v41, 3  ;;  %v4344_v25 = vpop.f32.mrf.mxu2 }
 0x8d4   : > { %v8851_v36 = vadd.f32 %v8381_v44, %v4344_v25 }
 0x8d5   : > { %v8815_v15 = vpop.permute.xlu1 %4788  ;;  %v8817_v4 = vpop.permute.xlu0 %4786  ;;  %v4677_v40 = vperm.slane %v10457_v58, 0 }
 0x8d6   : > { %10568 = vst [vmem:[#allocation15_spill] sm:$0xff] %v8851_v36  ;;  %v10469_v25 = vrot.slane %v8851_v36, 1  ;;  %v10476_v28 = vrot.slane %v8851_v36, 4 }
 0x8d9   : > { %4874 = vrot.lane.b32.xlu2 %v4674_v51, %s6541_s23  ;;  %v10458_v51 = vrot.slane %v8804_v41, 4 }
 0x8db   : > { %v8827_v63 = vpop.permute.xlu2 %4808  ;;  %4876 = vrot.lane.b32.xlu0 %v4675_v16, %s6541_s23  ;;  %4878 = vrot.lane.b32.xlu1 %v4676_v9, %s6541_s23  ;;  %v4678_v16 = vperm.slane %v10458_v51, 0  ;;  %v4679_v9 = vperm.slane %v10459_v0, 0  ;;  %v10464_v51 = vrot.slane %v8804_v41, 7  ;;  %v4680_v0 = vperm.slane %v10463_v43, 0 }
 0x8dc   : > { %v10470_v43 = vrot.slane %v8851_v36, 2  ;;  %v10483_v41 = vrot.slane %v8851_v36, 7 }
 0x8dd   : > { %v8832_v22 = vpop.permute.xlu1 %4794  ;;  %v8834_v37 = vpop.permute.xlu0 %4792 }
 0x8e1   : > { %4880 = vrot.lane.b32.xlu2 %v4677_v40, %s6541_s23 }
 0x8e3   : > { %v8845_v39 = vpop.permute.xlu2 %4814  ;;  %4882 = vrot.lane.b32.xlu0 %v4678_v16, %s6541_s23  ;;  %4884 = vrot.lane.b32.xlu1 %v4679_v9, %s6541_s23  ;;  %v4681_v16 = vperm.slane %v10464_v51, 0  ;;  %v4682_v9 = vperm.slane %v8851_v36, 0  ;;  %v4683_v51 = vperm.slane %v10469_v25, 0  ;;  %v10478_v25 = vrot.slane %v8851_v36, 6 }
 0x8e5   : > { %v8853_v58 = vpop.permute.xlu1 %4800  ;;  %v8855_v40 = vpop.permute.xlu0 %4798 }
 0x8e9   : > { %4886 = vrot.lane.b32.xlu2 %v4680_v0, %s6541_s23  ;;  %v10471_v0 = vrot.slane %v8851_v36, 3 }
 0x8eb   : > { %v8864_v10 = vpop.permute.xlu2 %4820  ;;  %4888 = vrot.lane.b32.xlu0 %v4681_v16, %s6541_s23  ;;  %4890 = vrot.lane.b32.xlu1 %v4682_v9, %s6541_s23  ;;  %v4684_v16 = vperm.slane %v10470_v43, 0  ;;  %v4685_v9 = vperm.slane %v10471_v0, 0  ;;  %v4347_v43 = vpop.f32.mrf.mxu2  ;;  %v4686_v0 = vperm.slane %v10476_v28, 0 }
 0x8ec   : > { %v8896_v50 = vadd.f32 %v8381_v44, %v4347_v43 }
 0x8ed   : > { %v8869_v38 = vpop.permute.xlu1 %4806  ;;  %v8871_v24 = vpop.permute.xlu0 %4804 }
 0x8ee   : > { %10570 = vst [vmem:[#allocation17_spill] sm:$0xff] %v8896_v50 }
 0x8f1   : > { %4892 = vrot.lane.b32.xlu2 %v4683_v51, %s6541_s23  ;;  %v10477_v51 = vrot.slane %v8851_v36, 5 }
 0x8f3   : > { %v8882_v14 = vpop.permute.xlu2 %4826  ;;  %4894 = vrot.lane.b32.xlu0 %v4684_v16, %s6541_s23  ;;  %4896 = vrot.lane.b32.xlu1 %v4685_v9, %s6541_s23  ;;  %v4687_v16 = vperm.slane %v10477_v51, 0  ;;  %v4688_v9 = vperm.slane %v10478_v25, 0  ;;  %v4689_v51 = vperm.slane %v10483_v41, 0  ;;  %v4690_v25 = vperm.slane %v8896_v50, 0 }
 0x8f4   : > { %10569 = vst [vmem:[#allocation16_spill] sm:$0xff] %v8882_v14  ;;  %v10490_v41 = vrot.slane %v8896_v50, 3 }
 0x8f5   : > { %v8887_v23 = vpop.permute.xlu1 %4812  ;;  %v8889_v57 = vpop.permute.xlu0 %4810 }
 0x8f9   : > { %4898 = vrot.lane.b32.xlu2 %v4686_v0, %s6541_s23  ;;  %v10486_v0 = vrot.slane %v8896_v50, 1 }
 0x8fb   : > { %v8903_v29 = vpop.permute.xlu2 %4832  ;;  %4900 = vrot.lane.b32.xlu0 %v4687_v16, %s6541_s23  ;;  %4902 = vrot.lane.b32.xlu1 %v4688_v9, %s6541_s23  ;;  %v4691_v16 = vperm.slane %v10486_v0, 0  ;;  %v10489_v9 = vrot.slane %v8896_v50, 2 }
 0x8fc   : > { %10571 = vst [vmem:[#allocation18_spill] sm:$0xff] %v8903_v29 }
 0x8fd   : > { %v8908_v28 = vpop.permute.xlu1 %4818  ;;  %v8910_v43 = vpop.permute.xlu0 %4816  ;;  %v4692_v36 = vperm.slane %v10489_v9, 0  ;;  %v10493_v9 = vrot.slane %v8896_v50, 7 }
 0x901   : > { %4904 = vrot.lane.b32.xlu2 %v4689_v51, %s6541_s23  ;;  %v10491_v51 = vrot.slane %v8896_v50, 4 }
 0x903   : > { %v8919_v13 = vpop.permute.xlu2 %4838  ;;  %4906 = vrot.lane.b32.xlu0 %v4690_v25, %s6541_s23  ;;  %4908 = vrot.lane.b32.xlu1 %v4691_v16, %s6541_s23  ;;  %v4693_v25 = vperm.slane %v10490_v41, 0  ;;  %v4694_v16 = vperm.slane %v10491_v51, 0  ;;  %v4350_v41 = vpop.f32.mrf.mxu2 }
 0x904   : > { %10572 = vst [vmem:[#allocation19_spill] sm:$0xff] %v8919_v13  ;;  %v10492_v13 = vrot.slane %v8896_v50, 5 }
 0x905   : > { %v8924_v17 = vpop.permute.xlu1 %4824  ;;  %v8926_v29 = vpop.permute.xlu0 %4822 }
 0x906   : > { %10573 = vst [vmem:[#allocation20_spill] sm:$0xff] %v8924_v17  ;;  %v4695_v51 = vperm.slane %v10492_v13, 0 }
 0x909   : > { %4910 = vrot.lane.b32.xlu2 %v4692_v36, %s6541_s23  ;;  %v10494_v36 = vrot.slane %v8896_v50, 6 }
 0x90b   : > { %v8937_v0 = vpop.permute.xlu2 %4844  ;;  %4912 = vrot.lane.b32.xlu0 %v4693_v25, %s6541_s23  ;;  %4914 = vrot.lane.b32.xlu1 %v4694_v16, %s6541_s23  ;;  %v4696_v25 = vperm.slane %v10494_v36, 0  ;;  %v4697_v16 = vperm.slane %v10493_v9, 0 }
 0x90c   : > { %10574 = vst [vmem:[#allocation21_spill] sm:$0xff] %v8937_v0  ;;  %v8951_v0 = vadd.f32 %v8381_v44, %v4350_v41 }
 0x90d   : > { %v8942_v17 = vpop.permute.xlu1 %4830  ;;  %v8944_v20 = vpop.permute.xlu0 %4828 }
 0x90e   : > { %10575 = vst [vmem:[#allocation22_spill] sm:$0xff] %v8942_v17  ;;  %v10497_v41 = vrot.slane %v8951_v0, 1  ;;  %v4698_v14 = vperm.slane %v8951_v0, 0 }
 0x90f   : > { %10576 = vst [vmem:[#allocation23_spill] sm:$0xff] %v8944_v20 }
 0x910   : > { %10577 = vst [vmem:[#allocation24_spill] sm:$0xff] %v8951_v0  ;;  %v4699_v9 = vperm.slane %v10497_v41, 0 }
 0x911   : > { %4916 = vrot.lane.b32.xlu2 %v4695_v51, %s6541_s23  ;;  %v10498_v51 = vrot.slane %v8951_v0, 2 }
 0x913   : > { %v8958_v17 = vpop.permute.xlu2 %4850  ;;  %4918 = vrot.lane.b32.xlu0 %v4696_v25, %s6541_s23  ;;  %4920 = vrot.lane.b32.xlu1 %v4697_v16, %s6541_s23  ;;  %v4700_v25 = vperm.slane %v10498_v51, 0  ;;  %v10499_v16 = vrot.slane %v8951_v0, 3  ;;  %v4353_v51 = vpop.f32.mrf.mxu2 }
 0x914   : > { %10578 = vst [vmem:[#allocation25_spill] sm:$0xff] %v8958_v17 }
 0x915   : > { %v8962_v20 = vpop.permute.xlu1 %4836  ;;  %v8964_v13 = vpop.permute.xlu0 %4834  ;;  %v4701_v41 = vperm.slane %v10499_v16, 0 }
 0x916   : > { %10579 = vst [vmem:[#allocation26_spill] sm:$0xff] %v8962_v20  ;;  %v10501_v20 = vrot.slane %v8951_v0, 5 }
 0x919   : > { %4922 = vrot.lane.b32.xlu2 %v4698_v14, %s6541_s23  ;;  %v10500_v14 = vrot.slane %v8951_v0, 4 }
 0x91b   : > { %v8974_v36 = vpop.permute.xlu2 %4856  ;;  %4924 = vrot.lane.b32.xlu0 %v4699_v9, %s6541_s23  ;;  %4926 = vrot.lane.b32.xlu1 %v4700_v25, %s6541_s23  ;;  %v4702_v9 = vperm.slane %v10500_v14, 0  ;;  %v4703_v25 = vperm.slane %v10501_v20, 0  ;;  %v10503_v14 = vrot.slane %v8951_v0, 7 }
 0x91c   : > { %10580 = vst [vmem:[#allocation27_spill] sm:$0xff] %v8974_v36 }
 0x91d   : > { %v8979_v50 = vpop.permute.xlu1 %4842  ;;  %v8981_v17 = vpop.permute.xlu0 %4840 }
 0x91e   : > { %10581 = vst [vmem:[#allocation28_spill] sm:$0xff] %v8979_v50  ;;  %v10502_v50 = vrot.slane %v8951_v0, 6 }
 0x91f   : > { %10582 = vst [vmem:[#allocation29_spill] sm:$0xff] %v8981_v17  ;;  %v8998_v17 = vadd.f32 %v8381_v44, %v4353_v51 }
 0x920   : > { %v4704_v20 = vperm.slane %v10502_v50, 0 }
 0x921   : > { %4928 = vrot.lane.b32.xlu2 %v4701_v41, %s6541_s23  ;;  %10584 = vst [vmem:[#allocation31_spill] sm:$0xff] %v8998_v17  ;;  %v10506_v51 = vrot.slane %v8998_v17, 1  ;;  %v10507_v50 = vrot.slane %v8998_v17, 2 }
 0x923   : > { %v8992_v36 = vpop.permute.xlu2 %4862  ;;  %4930 = vrot.lane.b32.xlu0 %v4702_v9, %s6541_s23  ;;  %4932 = vrot.lane.b32.xlu1 %v4703_v25, %s6541_s23  ;;  %v4705_v9 = vperm.slane %v10503_v14, 0  ;;  %v4706_v25 = vperm.slane %v8998_v17, 0  ;;  %v4707_v14 = vperm.slane %v10506_v51, 0  ;;  %v10511_v51 = vrot.slane %v8998_v17, 6 }
 0x924   : > { %10583 = vst [vmem:[#allocation30_spill] sm:$0xff] %v8992_v36 }
 0x925   : > { %v9000_v16 = vpop.permute.xlu1 %4848  ;;  %v9002_v41 = vpop.permute.xlu0 %4846 }
 0x926   : > { %10585 = vst [vmem:[#allocation32_spill] sm:$0xff] %v9000_v16 }
 0x927   : > { %10586 = vst [vmem:[#allocation33_spill] sm:$0xff] %v9002_v41 }
 0x929   : > { %4934 = vrot.lane.b32.xlu2 %v4704_v20, %s6541_s23  ;;  %v10508_v20 = vrot.slane %v8998_v17, 3 }
 0x92b   : > { %v9011_v36 = vpop.permute.xlu2 %4868  ;;  %4936 = vrot.lane.b32.xlu0 %v4705_v9, %s6541_s23  ;;  %4938 = vrot.lane.b32.xlu1 %v4706_v25, %s6541_s23  ;;  %v4708_v9 = vperm.slane %v10507_v50, 0  ;;  %v4709_v25 = vperm.slane %v10508_v20, 0  ;;  %v4356_v50 = vpop.f32.mrf.mxu2 }
 0x92c   : > { %10587 = vst [vmem:[#allocation34_spill] sm:$0xff] %v9011_v36  ;;  %v10509_v36 = vrot.slane %v8998_v17, 4 }
 0x92d   : > { %v9016_v16 = vpop.permute.xlu1 %4854  ;;  %v9018_v41 = vpop.permute.xlu0 %4852 }
 0x92e   : > { %10588 = vst [vmem:[#allocation35_spill] sm:$0xff] %v9016_v16  ;;  %v4710_v20 = vperm.slane %v10509_v36, 0 }
 0x92f   : > { %10589 = vst [vmem:[#allocation36_spill] sm:$0xff] %v9018_v41 }
 0x931   : > { %4940 = vrot.lane.b32.xlu2 %v4707_v14, %s6541_s23  ;;  %v10510_v14 = vrot.slane %v8998_v17, 5 }
 0x933   : > { %v9029_v0 = vpop.permute.xlu2 %4874  ;;  %4942 = vrot.lane.b32.xlu0 %v4708_v9, %s6541_s23  ;;  %4944 = vrot.lane.b32.xlu1 %v4709_v25, %s6541_s23  ;;  %v4711_v9 = vperm.slane %v10510_v14, 0  ;;  %v4712_v25 = vperm.slane %v10511_v51, 0 }
 0x934   : > { %10590 = vst [vmem:[#allocation37_spill] sm:$0xff] %v9029_v0  ;;  %v9043_v0 = vadd.f32 %v8381_v44, %v4356_v50 }
 0x935   : > { %v9034_v16 = vpop.permute.xlu1 %4860  ;;  %v9036_v41 = vpop.permute.xlu0 %4858 }
 0x936   : > { %10591 = vst [vmem:[#allocation38_spill] sm:$0xff] %v9034_v16  ;;  %v4714_v51 = vperm.slane %v9043_v0, 0 }
 0x937   : > { %10592 = vst [vmem:[#allocation39_spill] sm:$0xff] %v9036_v41  ;;  %v10512_v41 = vrot.slane %v8998_v17, 7 }
 0x938   : > { %10593 = vst [vmem:[#allocation40_spill] sm:$0xff] %v9043_v0 }
 0x939   : > { %4946 = vrot.lane.b32.xlu2 %v4710_v20, %s6541_s23  ;;  %v10515_v20 = vrot.slane %v9043_v0, 1  ;;  %v4713_v14 = vperm.slane %v10512_v41, 0  ;;  %v10517_v41 = vrot.slane %v9043_v0, 3 }
 0x93b   : > { %v9050_v16 = vpop.permute.xlu2 %4880  ;;  %4948 = vrot.lane.b32.xlu0 %v4711_v9, %s6541_s23  ;;  %4950 = vrot.lane.b32.xlu1 %v4712_v25, %s6541_s23  ;;  %v4715_v9 = vperm.slane %v10515_v20, 0  ;;  %v10516_v25 = vrot.slane %v9043_v0, 2 }
 0x93c   : > { %10594 = vst [vmem:[#allocation41_spill] sm:$0xff] %v9050_v16 }
 0x93d   : > { %v9055_v36 = vpop.permute.xlu1 %4866  ;;  %v9057_v50 = vpop.permute.xlu0 %4864  ;;  %v4716_v17 = vperm.slane %v10516_v25, 0  ;;  %v10520_v25 = vrot.slane %v9043_v0, 7 }
 0x93e   : > { %10595 = vst [vmem:[#allocation42_spill] sm:$0xff] %v9055_v36 }
 0x93f   : > { %10596 = vst [vmem:[#allocation43_spill] sm:$0xff] %v9057_v50 }
 0x941   : > { %4952 = vrot.lane.b32.xlu2 %v4713_v14, %s6541_s23  ;;  %v10518_v14 = vrot.slane %v9043_v0, 4 }
 0x943   : > { %v9066_v16 = vpop.permute.xlu2 %4886  ;;  %4954 = vrot.lane.b32.xlu0 %v4714_v51, %s6541_s23  ;;  %4956 = vrot.lane.b32.xlu1 %v4715_v9, %s6541_s23  ;;  %v4717_v51 = vperm.slane %v10517_v41, 0  ;;  %v4718_v9 = vperm.slane %v10518_v14, 0  ;;  %v4359_v41 = vpop.f32.mrf.mxu3 }
 0x944   : > { %10597 = vst [vmem:[#allocation44_spill] sm:$0xff] %v9066_v16  ;;  %v10519_v16 = vrot.slane %v9043_v0, 5 }
 0x945   : > { %v9071_v36 = vpop.permute.xlu1 %4872  ;;  %v9073_v50 = vpop.permute.xlu0 %4870 }
 0x946   : > { %10598 = vst [vmem:[#allocation45_spill] sm:$0xff] %v9071_v36  ;;  %v4719_v14 = vperm.slane %v10519_v16, 0 }
 0x947   : > { %10599 = vst [vmem:[#allocation46_spill] sm:$0xff] %v9073_v50 }
 0x949   : > { %4958 = vrot.lane.b32.xlu2 %v4716_v17, %s6541_s23  ;;  %v10521_v17 = vrot.slane %v9043_v0, 6 }
 0x94b   : > { %v9084_v20 = vpop.permute.xlu2 %4892  ;;  %4960 = vrot.lane.b32.xlu0 %v4717_v51, %s6541_s23  ;;  %4962 = vrot.lane.b32.xlu1 %v4718_v9, %s6541_s23  ;;  %v4720_v51 = vperm.slane %v10521_v17, 0  ;;  %v4721_v9 = vperm.slane %v10520_v25, 0 }
 0x94c   : > { %10600 = vst [vmem:[#allocation47_spill] sm:$0xff] %v9084_v20  ;;  %v9098_v20 = vadd.f32 %v8381_v44, %v4359_v41 }
 0x94d   : > { %v9089_v36 = vpop.permute.xlu1 %4878  ;;  %v9091_v50 = vpop.permute.xlu0 %4876 }
 0x94e   : > { %10601 = vst [vmem:[#allocation48_spill] sm:$0xff] %v9089_v36  ;;  %v10524_v44 = vrot.slane %v9098_v20, 1  ;;  %v10525_v41 = vrot.slane %v9098_v20, 2 }
 0x94f   : > { %10602 = vst [vmem:[#allocation49_spill] sm:$0xff] %v9091_v50 }
 0x950   : > { %10603 = vst [vmem:[#allocation50_spill] sm:$0xff] %v9098_v20  ;;  %v4723_v25 = vperm.slane %v10524_v44, 0 }
 0x951   : > { %4964 = vrot.lane.b32.xlu2 %v4719_v14, %s6541_s23  ;;  %v4722_v14 = vperm.slane %v9098_v20, 0 }
 0x953   : > { %v9105_v36 = vpop.permute.xlu2 %4898  ;;  %4966 = vrot.lane.b32.xlu0 %v4720_v51, %s6541_s23  ;;  %4968 = vrot.lane.b32.xlu1 %v4721_v9, %s6541_s23  ;;  %v4724_v51 = vperm.slane %v10525_v41, 0  ;;  %v10528_v9 = vrot.slane %v9098_v20, 3 }
 0x954   : > { %10604 = vst [vmem:[#allocation51_spill] sm:$0xff] %v9105_v36 }
 0x955   : > { %v9109_v50 = vpop.permute.xlu1 %4884  ;;  %v9111_v16 = vpop.permute.xlu0 %4882  ;;  %v4725_v44 = vperm.slane %v10528_v9, 0 }
 0x956   : > { %10605 = vst [vmem:[#allocation52_spill] sm:$0xff] %v9109_v50  ;;  %v10527_v50 = vrot.slane %v9098_v20, 5 }
 0x959   : > { %4970 = vrot.lane.b32.xlu2 %v4722_v14, %s6541_s23  ;;  %v10526_v14 = vrot.slane %v9098_v20, 4 }
 0x95b   : > { %v9121_v17 = vpop.permute.xlu2 %4904  ;;  %4972 = vrot.lane.b32.xlu0 %v4723_v25, %s6541_s23  ;;  %4974 = vrot.lane.b32.xlu1 %v4724_v51, %s6541_s23  ;;  %v4726_v25 = vperm.slane %v10526_v14, 0  ;;  %v4727_v51 = vperm.slane %v10527_v50, 0 }
 0x95c   : > { %10606 = vst [vmem:[#allocation53_spill] sm:$0xff] %v9121_v17  ;;  %v10529_v17 = vrot.slane %v9098_v20, 6 }
 0x95d   : > { %v9126_v0 = vpop.permute.xlu1 %4890  ;;  %v9128_v36 = vpop.permute.xlu0 %4888 }
 0x95e   : > { %10607 = vst [vmem:[#allocation54_spill] sm:$0xff] %v9126_v0  ;;  %v4728_v14 = vperm.slane %v10529_v17, 0 }
 0x95f   : > { %10608 = vst [vmem:[#allocation55_spill] sm:$0xff] %v9128_v36 }
 0x961   : > { %4976 = vrot.lane.b32.xlu2 %v4725_v44, %s6541_s23  ;;  %v10530_v44 = vrot.slane %v9098_v20, 7 }
 0x963   : > { %v9139_v41 = vpop.permute.xlu2 %4910  ;;  %4978 = vrot.lane.b32.xlu0 %v4726_v25, %s6541_s23  ;;  %4980 = vrot.lane.b32.xlu1 %v4727_v51, %s6541_s23  ;;  %v4729_v50 = vperm.slane %v10530_v44, 0 }
 0x965   : > { %v9144_v0 = vpop.permute.xlu1 %4896  ;;  %v9146_v36 = vpop.permute.xlu0 %4894 }
 0x969   : > { %4982 = vrot.lane.b32.xlu2 %v4728_v14, %s6541_s23 }
 0x96b   : > { %v9154_v9 = vpop.permute.xlu2 %4916  ;;  %4984 = vrot.lane.b32.xlu0 %v4729_v50, %s6541_s23  ;;  %5371 = vrot.lane.b32.xlu1 %v8535_v54, %s6542_s11 }
 0x96d   : > { %v9159_v25 = vpop.permute.xlu1 %4902  ;;  %v9161_v51 = vpop.permute.xlu0 %4900 }
 0x971   : > { %5373 = vrot.lane.b32.xlu2 %v8597_v12, %s6542_s11 }
 0x973   : > { %v9165_v17 = vpop.permute.xlu2 %4922  ;;  %5375 = vrot.lane.b32.xlu0 %v8592_v34, %s6542_s11  ;;  %5377 = vrot.lane.b32.xlu1 %v8556_v30, %s6542_s11 }
 0x975   : > { %v9171_v50 = vpop.permute.xlu1 %4908  ;;  %v9173_v14 = vpop.permute.xlu0 %4906 }
 0x979   : > { %5379 = vrot.lane.b32.xlu2 %v8624_v21, %s6542_s11 }
 0x97b   : > { %v9177_v54 = vpop.permute.xlu2 %4928  ;;  %5381 = vrot.lane.b32.xlu0 %v8618_v33, %s6542_s11  ;;  %5383 = vrot.lane.b32.xlu1 %v8572_v53, %s6542_s11 }
 0x97d   : > { %v9183_v12 = vpop.permute.xlu1 %4914  ;;  %v9185_v34 = vpop.permute.xlu0 %4912 }
 0x981   : > { %5385 = vrot.lane.b32.xlu2 %v8653_v26, %s6542_s11 }
 0x983   : > { %v9189_v30 = vpop.permute.xlu2 %4934  ;;  %5387 = vrot.lane.b32.xlu0 %v8648_v2, %s6542_s11  ;;  %5389 = vrot.lane.b32.xlu1 %v8630_v7, %s6542_s11 }
 0x984   : > { %10609 = vst [vmem:[#allocation56_spill] sm:$0xff] %v9189_v30 }
 0x985   : > { %v9195_v21 = vpop.permute.xlu1 %4920  ;;  %v9197_v33 = vpop.permute.xlu0 %4918 }
 0x989   : > { %5391 = vrot.lane.b32.xlu2 %v8691_v3, %s6542_s11 }
 0x98b   : > { %v9201_v53 = vpop.permute.xlu2 %4940  ;;  %5393 = vrot.lane.b32.xlu0 %v8676_v27, %s6542_s11  ;;  %5395 = vrot.lane.b32.xlu1 %v8684_v35, %s6542_s11  ;;  %v9226_v35 = vsel %vm5114_vm1, %v8439_v6, %v8740_v11 }
 0x98c   : > { %10610 = vst [vmem:[#allocation57_spill] sm:$0xff] %v9201_v53 }
 0x98d   : > { %v9207_v26 = vpop.permute.xlu1 %4926  ;;  %v9209_v2 = vpop.permute.xlu0 %4924 }
 0x991   : > { %5397 = vrot.lane.b32.xlu2 %v8720_v56, %s6542_s11  ;;  %v10614_v56 = vrot.slane %v8439_v6, 2 }
 0x993   : > { %v9213_v7 = vpop.permute.xlu2 %4946  ;;  %5399 = vrot.lane.b32.xlu0 %v8715_v32, %s6542_s11  ;;  %5401 = vrot.lane.b32.xlu1 %v8696_v61, %s6542_s11  ;;  %v9234_v32 = vsel %vm5114_vm1, %v10614_v56, %v8664_v60  ;;  %v10615_v61 = vrot.slane %v8439_v6, 1  ;;  %v10619_v60 = vrot.slane %v8439_v6, 3 }
 0x994   : > { %10611 = vst [vmem:[#allocation58_spill] sm:$0xff] %v9213_v7 }
 0x995   : > { %v9219_v3 = vpop.permute.xlu1 %4932  ;;  %v9221_v27 = vpop.permute.xlu0 %4930  ;;  %v9240_v44 = vsel %vm5114_vm1, %v10615_v61, %v8738_v8  ;;  %v9256_v56 = vsel %vm5114_vm1, %v10619_v60, %v8763_v19  ;;  %v10620_v8 = vrot.slane %v8439_v6, 5 }
 0x996   : > { %10612 = vst [vmem:[#allocation59_spill] sm:$0xff] %v9219_v3  ;;  %v10673_v3 = vld [vmem:[#allocation22_spill] sm:$0xff] }
 0x997   : > { %10613 = vst [vmem:[#allocation60_spill] sm:$0xff] %v9221_v27  ;;  %v9264_v61 = vsel %vm5114_vm1, %v10620_v8, %v8705_v42  ;;  %v10625_v42 = vrot.slane %v8439_v6, 6 }
 0x999   : > { %5403 = vrot.lane.b32.xlu2 %v9226_v35, %s6542_s11  ;;  %v9286_v8 = vsel %vm5114_vm1, %v10625_v42, %v8779_v48 }
 0x99b   : > { %v9242_v20 = vpop.permute.xlu2 %4952  ;;  %5405 = vrot.lane.b32.xlu0 %v9240_v44, %s6542_s11  ;;  %5407 = vrot.lane.b32.xlu1 %v9234_v32, %s6542_s11 }
 0x99c   : > { %10616 = vst [vmem:[#allocation61_spill] sm:$0xff] %v9242_v20  ;;  %v10621_v20 = vrot.slane %v8439_v6, 4 }
 0x99d   : > { %v9248_v11 = vpop.permute.xlu1 %4938  ;;  %v9250_v7 = vpop.permute.xlu0 %4936 }
 0x99e   : > { %10617 = vst [vmem:[#allocation62_spill] sm:$0xff] %v9248_v11  ;;  %v9270_v11 = vsel %vm5114_vm1, %v10621_v20, %v8761_v52  ;;  %v9293_v52 = vsel %vm5114_vm1, %v8476_v49, %v8733_v59  ;;  %v10626_v20 = vrot.slane %v8439_v6, 7  ;;  %v10630_v59 = vrot.slane %v8476_v49, 1 }
 0x99f   : > { %10618 = vst [vmem:[#allocation63_spill] sm:$0xff] %v9250_v7 }
 0x9a0   : > { %v9315_v6 = vsel %vm5114_vm1, %v10630_v59, %v8797_v31 }
 0x9a1   : > { %5409 = vrot.lane.b32.xlu2 %v9256_v56, %s6542_s11 }
 0x9a3   : > { %v9272_v53 = vpop.permute.xlu2 %4958  ;;  %5413 = vrot.lane.b32.xlu1 %v9264_v61, %s6542_s11  ;;  %5411 = vrot.lane.b32.xlu0 %v9270_v11, %s6542_s11 }
 0x9a4   : > { %10622 = vst [vmem:[#allocation64_spill] sm:$0xff] %v9272_v53  ;;  %v9299_v53 = vsel %vm5114_vm1, %v10626_v20, %v8777_v55  ;;  %v10631_v55 = vrot.slane %v8476_v49, 3 }
 0x9a5   : > { %v9278_v19 = vpop.permute.xlu1 %4944  ;;  %v9280_v60 = vpop.permute.xlu0 %4942 }
 0x9a6   : > { %10623 = vst [vmem:[#allocation65_spill] sm:$0xff] %v9278_v19  ;;  %v9323_v20 = vsel %vm5114_vm1, %v10631_v55, %v8756_v46  ;;  %v10636_v46 = vrot.slane %v8476_v49, 4 }
 0x9a7   : > { %10624 = vst [vmem:[#allocation66_spill] sm:$0xff] %v9280_v60 }
 0x9a8   : > { %v9345_v55 = vsel %vm5114_vm1, %v10636_v46, %v8817_v4 }
 0x9a9   : > { %5415 = vrot.lane.b32.xlu2 %v9286_v8, %s6542_s11 }
 0x9ab   : > { %v9301_v19 = vpop.permute.xlu2 %4964  ;;  %5419 = vrot.lane.b32.xlu1 %v9293_v52, %s6542_s11  ;;  %5417 = vrot.lane.b32.xlu0 %v9299_v53, %s6542_s11 }
 0x9ac   : > { %10627 = vst [vmem:[#allocation67_spill] sm:$0xff] %v9301_v19  ;;  %v10632_v19 = vrot.slane %v8476_v49, 2 }
 0x9ad   : > { %v9307_v48 = vpop.permute.xlu1 %4950  ;;  %v9309_v42 = vpop.permute.xlu0 %4948 }
 0x9ae   : > { %10628 = vst [vmem:[#allocation68_spill] sm:$0xff] %v9307_v48  ;;  %v9329_v48 = vsel %vm5114_vm1, %v10632_v19, %v8795_v5  ;;  %v10637_v5 = vrot.slane %v8476_v49, 6 }
 0x9af   : > { %10629 = vst [vmem:[#allocation69_spill] sm:$0xff] %v9309_v42 }
 0x9b0   : > { %v9353_v19 = vsel %vm5114_vm1, %v10637_v5, %v8772_v47  ;;  %v10642_v47 = vrot.slane %v8476_v49, 7 }
 0x9b1   : > { %5421 = vrot.lane.b32.xlu2 %v9315_v6, %s6542_s11 }
 0x9b2   : > { %v9375_v5 = vsel %vm5114_vm1, %v10642_v47, %v8834_v37 }
 0x9b3   : > { %v9331_v42 = vpop.permute.xlu2 %4970  ;;  %5425 = vrot.lane.b32.xlu1 %v9323_v20, %s6542_s11  ;;  %5423 = vrot.lane.b32.xlu0 %v9329_v48, %s6542_s11 }
 0x9b4   : > { %10633 = vst [vmem:[#allocation70_spill] sm:$0xff] %v9331_v42  ;;  %v10638_v42 = vrot.slane %v8476_v49, 5 }
 0x9b5   : > { %v9337_v31 = vpop.permute.xlu1 %4956  ;;  %v9339_v59 = vpop.permute.xlu0 %4954 }
 0x9b6   : > { %10634 = vst [vmem:[#allocation71_spill] sm:$0xff] %v9337_v31  ;;  %v9359_v31 = vsel %vm5114_vm1, %v10638_v42, %v8815_v15  ;;  %v10643_v15 = vrot.slane %v8509_v1, 1 }
 0x9b7   : > { %10635 = vst [vmem:[#allocation72_spill] sm:$0xff] %v9339_v59 }
 0x9b8   : > { %v9383_v42 = vsel %vm5114_vm1, %v10643_v15, %v8790_v62  ;;  %v10647_v62 = vrot.slane %v8509_v1, 2 }
 0x9b9   : > { %5427 = vrot.lane.b32.xlu2 %v9345_v55, %s6542_s11 }
 0x9ba   : > { %v9404_v47 = vsel %vm5114_vm1, %v10647_v62, %v8855_v40 }
 0x9bb   : > { %v9361_v59 = vpop.permute.xlu2 %4976  ;;  %5431 = vrot.lane.b32.xlu1 %v9353_v19, %s6542_s11  ;;  %5429 = vrot.lane.b32.xlu0 %v9359_v31, %s6542_s11 }
 0x9bc   : > { %10639 = vst [vmem:[#allocation73_spill] sm:$0xff] %v9361_v59  ;;  %v9388_v59 = vsel %vm5114_vm1, %v8509_v1, %v8832_v22  ;;  %v10648_v22 = vrot.slane %v8509_v1, 4 }
 0x9bd   : > { %v9367_v4 = vpop.permute.xlu1 %4962  ;;  %v9369_v46 = vpop.permute.xlu0 %4960 }
 0x9be   : > { %10640 = vst [vmem:[#allocation74_spill] sm:$0xff] %v9367_v4  ;;  %v9412_v15 = vsel %vm5114_vm1, %v10648_v22, %v8811_v18  ;;  %v10652_v18 = vrot.slane %v8509_v1, 5 }
 0x9bf   : > { %10641 = vst [vmem:[#allocation75_spill] sm:$0xff] %v9369_v46  ;;  %v10667_v46 = vrot.slane %v8543_v45, 7 }
 0x9c0   : > { %v9432_v22 = vsel %vm5114_vm1, %v10652_v18, %v8871_v24 }
 0x9c1   : > { %5433 = vrot.lane.b32.xlu2 %v9375_v5, %s6542_s11 }
 0x9c3   : > { %v9390_v4 = vpop.permute.xlu2 %4982  ;;  %5437 = vrot.lane.b32.xlu1 %v9383_v42, %s6542_s11  ;;  %5435 = vrot.lane.b32.xlu0 %v9388_v59, %s6542_s11 }
 0x9c4   : > { %10644 = vst [vmem:[#allocation76_spill] sm:$0xff] %v9390_v4  ;;  %v10649_v4 = vrot.slane %v8509_v1, 3 }
 0x9c5   : > { %v9396_v49 = vpop.permute.xlu1 %4968  ;;  %v9398_v37 = vpop.permute.xlu0 %4966 }
 0x9c6   : > { %10645 = vst [vmem:[#allocation77_spill] sm:$0xff] %v9396_v49  ;;  %v9418_v49 = vsel %vm5114_vm1, %v10649_v4, %v8853_v58  ;;  %v10653_v58 = vrot.slane %v8509_v1, 7 }
 0x9c7   : > { %10646 = vst [vmem:[#allocation78_spill] sm:$0xff] %v9398_v37 }
 0x9c8   : > { %v9440_v4 = vsel %vm5114_vm1, %v10653_v58, %v8827_v63  ;;  %v9459_v63 = vsel %vm5114_vm1, %v8543_v45, %v8889_v57  ;;  %v10658_v58 = vrot.slane %v8543_v45, 1 }
 0x9c9   : > { %5439 = vrot.lane.b32.xlu2 %v9404_v47, %s6542_s11 }
 0x9cb   : > { %5443 = vrot.lane.b32.xlu1 %v9412_v15, %s6542_s11  ;;  %v5374_v40 = vpop.permute.xlu2 %5373  ;;  %5441 = vrot.lane.b32.xlu0 %v9418_v49, %s6542_s11 }
 0x9cc   : > { %5655 = vst [vmem:[#allocation1 + $0x1] ss:$4 sm:$0xff] %v5374_v40  ;;  %v10654_v40 = vrot.slane %v8509_v1, 6 }
 0x9cd   : > { %v9424_v62 = vpop.permute.xlu1 %4974  ;;  %v9426_v37 = vpop.permute.xlu0 %4972 }
 0x9ce   : > { %10650 = vst [vmem:[#allocation79_spill] sm:$0xff] %v9424_v62  ;;  %v9446_v62 = vsel %vm5114_vm1, %v10654_v40, %v8869_v38  ;;  %v10657_v38 = vrot.slane %v8543_v45, 2  ;;  %v9473_v40 = vsel %vm5114_vm1, %v10658_v58, %v8887_v23  ;;  %v10661_v23 = vrot.slane %v8543_v45, 5 }
 0x9cf   : > { %10651 = vst [vmem:[#allocation80_spill] sm:$0xff] %v9426_v37 }
 0x9d0   : > { %v9467_v1 = vsel %vm5114_vm1, %v10657_v38, %v8845_v39  ;;  %v10660_v39 = vrot.slane %v8543_v45, 3  ;;  %v9493_v58 = vsel %vm5114_vm1, %v10661_v23, %v8864_v10  ;;  %v10663_v10 = vrot.slane %v8543_v45, 6 }
 0x9d1   : > { %5445 = vrot.lane.b32.xlu2 %v9432_v22, %s6542_s11 }
 0x9d2   : > { %v9485_v38 = vsel %vm5114_vm1, %v10660_v39, %v8910_v43  ;;  %v9509_v23 = vsel %vm5114_vm1, %v10663_v10, %v8926_v29 }
 0x9d3   : > { %5449 = vrot.lane.b32.xlu1 %v9440_v4, %s6542_s11  ;;  %v5380_v24 = vpop.permute.xlu2 %5379  ;;  %5447 = vrot.lane.b32.xlu0 %v9446_v62, %s6542_s11 }
 0x9d4   : > { %5658 = vst [vmem:[#allocation1 + $0x20] ss:$4 sm:$0xff] %v5380_v24 }
 0x9d5   : > { %v9452_v18 = vpop.permute.xlu1 %4980  ;;  %v9454_v37 = vpop.permute.xlu0 %4978 }
 0x9d6   : > { %10655 = vst [vmem:[#allocation81_spill] sm:$0xff] %v9452_v18 }
 0x9d7   : > { %10656 = vst [vmem:[#allocation82_spill] sm:$0xff] %v9454_v37  ;;  %v10666_v37 = vld [vmem:[#allocation20_spill] sm:$0xff] }
 0x9d9   : > { %5451 = vrot.lane.b32.xlu2 %v9459_v63, %s6542_s11 }
 0x9db   : > { %5455 = vrot.lane.b32.xlu1 %v9467_v1, %s6542_s11  ;;  %v5386_v57 = vpop.permute.xlu2 %5385  ;;  %5453 = vrot.lane.b32.xlu0 %v9473_v40, %s6542_s11 }
 0x9dc   : > { %5661 = vst [vmem:[#allocation1 + $0x23] ss:$4 sm:$0xff] %v5386_v57  ;;  %v10662_v57 = vrot.slane %v8543_v45, 4 }
 0x9dd   : > { %v5372_v24 = vpop.permute.xlu1 %5371  ;;  %v9479_v18 = vpop.permute.xlu0 %4984 }
 0x9de   : > { %10659 = vst [vmem:[#allocation83_spill] sm:$0xff] %v9479_v18 }
 0x9df   : > { %5654 = vst [vmem:[#allocation1] ss:$4 sm:$0xff] %v5372_v24  ;;  %v9499_v24 = vsel %vm5114_vm1, %v10662_v57, %v8908_v28  ;;  %v10664_v28 = vld [vmem:[#allocation16_spill] sm:$0xff]  ;;  %v10665_v57 = vld [vmem:[#allocation11_spill] sm:$0xff] }
 0x9e0   : > { %v9516_v18 = vsel %vm5114_vm1, %v10665_v57, %v10664_v28  ;;  %v10668_v28 = vld [vmem:[#allocation23_spill] sm:$0xff]  ;;  %v10669_v7 = vrot.slane %v10665_v57, 1 }
 0x9e1   : > { %5457 = vrot.lane.b32.xlu2 %v9485_v38, %s6542_s11 }
 0x9e2   : > { %v9534_v45 = vsel %vm5114_vm1, %v10669_v7, %v10668_v28 }
 0x9e3   : > { %5461 = vrot.lane.b32.xlu1 %v9493_v58, %s6542_s11  ;;  %5459 = vrot.lane.b32.xlu0 %v9499_v24, %s6542_s11  ;;  %v5392_v60 = vpop.permute.xlu2 %5391 }
 0x9e5   : > { %v5378_v43 = vpop.permute.xlu1 %5377  ;;  %v5376_v39 = vpop.permute.xlu0 %5375 }
 0x9e6   : > { %5657 = vst [vmem:[#allocation1 + $0x3] ss:$4 sm:$0xff] %v5378_v43  ;;  %v9522_v43 = vsel %vm5114_vm1, %v10667_v46, %v10666_v37  ;;  %v10670_v46 = vld [vmem:[#allocation18_spill] sm:$0xff]  ;;  %v10671_v37 = vrot.slane %v10665_v57, 3 }
 0x9e7   : > { %5656 = vst [vmem:[#allocation1 + $0x2] ss:$4 sm:$0xff] %v5376_v39 }
 0x9e9   : > { %5463 = vrot.lane.b32.xlu2 %v9509_v23, %s6542_s11 }
 0x9eb   : > { %5467 = vrot.lane.b32.xlu1 %v9516_v18, %s6542_s11  ;;  %5465 = vrot.lane.b32.xlu0 %v9522_v43, %s6542_s11 }
 0x9ed   : > { %v5384_v29 = vpop.permute.xlu1 %5383  ;;  %v5382_v39 = vpop.permute.xlu0 %5381 }
 0x9ee   : > { %v5662_v10 = vld.sshfl [vmem:[#allocation1] sm:$0xff pattern:$0x73625140]  ;;  %5660 = vst [vmem:[#allocation1 + $0x22] ss:$4 sm:$0xff] %v5384_v29  ;;  %v9542_v29 = vsel %vm5114_vm1, %v10671_v37, %v10670_v46  ;;  %v5398_v37 = vpop.permute.xlu2 %5397 }
 0x9ef   : > { %6023 = vst.msk [vmem:[%s6686_s22 + $0x20] sm:$0xff] %vm6018_vm11, %v5662_v10  ;;  %v10674_v10 = vrot.slane %v10665_v57, 2 }
 0x9f0   : > { %5666 = vst [vmem:[#allocation1 + $0x2] ss:$4 sm:$0xff] %v5392_v60 }
 0x9f1   : > { %5659 = vst [vmem:[#allocation1 + $0x21] ss:$4 sm:$0xff] %v5382_v39  ;;  %5469 = vrot.lane.b32.xlu2 %v9534_v45, %s6542_s11  ;;  %v9548_v30 = vsel %vm5114_vm1, %v10674_v10, %v10673_v3  ;;  %v10675_v39 = vrot.slane %v10665_v57, 4  ;;  %v10677_v3 = vld [vmem:[#allocation19_spill] sm:$0xff]  ;;  %v10678_v10 = vrot.slane %v10665_v57, 6 }
 0x9f2   : > { %10672 = vst [vmem:[#allocation16_spill] sm:$0xff] %v9542_v29 }
 0x9f3   : > { %5473 = vrot.lane.b32.xlu1 %v9542_v29, %s6542_s11  ;;  %5471 = vrot.lane.b32.xlu0 %v9548_v30, %s6542_s11  ;;  %v9558_v28 = vsel %vm5114_vm1, %v10675_v39, %v8964_v13  ;;  %v9568_v27 = vsel %vm5114_vm1, %v10678_v10, %v10677_v3  ;;  %v10684_v3 = vrot.slane %v10665_v57, 7 }
 0x9f4   : > { %10676 = vst [vmem:[#allocation11_spill] sm:$0xff] %v9558_v28 }
 0x9f5   : > { %v5390_v7 = vpop.permute.xlu1 %5389  ;;  %v5388_v60 = vpop.permute.xlu0 %5387  ;;  %10679 = vst [vmem:[#allocation20_spill] sm:$0xff] %v9568_v27 }
 0x9f6   : > { %5665 = vst [vmem:[#allocation1 + $0x1] ss:$4 sm:$0xff] %v5390_v7  ;;  %v10680_v7 = vld [vmem:[#allocation26_spill] sm:$0xff] }
 0x9f7   : > { %5664 = vst [vmem:[#allocation1] ss:$4 sm:$0xff] %v5388_v60  ;;  %v10681_v60 = vrot.slane %v10665_v57, 5  ;;  %v5404_v57 = vpop.permute.xlu2 %5403 }
 0x9f8   : > { %v5663_v46 = vld.sshfl [vmem:[#allocation1 + $0x20] sm:$0xff pattern:$0x73625140] }
 0x9f9   : > { %6024 = vst.msk [vmem:[%s6686_s22 + $0x28] sm:$0xff] %vm6018_vm11, %v5663_v46  ;;  %5475 = vrot.lane.b32.xlu2 %v9558_v28, %s6542_s11  ;;  %v9574_v29 = vsel %vm5114_vm1, %v10681_v60, %v10680_v7  ;;  %v10683_v46 = vld [vmem:[#allocation29_spill] sm:$0xff]  ;;  %v10687_v7 = vld [vmem:[#allocation12_spill] sm:$0xff] }
 0x9fa   : > { %10682 = vst [vmem:[#allocation23_spill] sm:$0xff] %v9574_v29  ;;  %v9584_v10 = vsel %vm5114_vm1, %v10684_v3, %v10683_v46  ;;  %v10688_v60 = vrot.slane %v10687_v7, 1  ;;  %v10695_v28 = vrot.slane %v10687_v7, 4 }
 0x9fb   : > { %5669 = vst [vmem:[#allocation1 + $0x21] ss:$4 sm:$0xff] %v5398_v37  ;;  %5479 = vrot.lane.b32.xlu1 %v9568_v27, %s6542_s11  ;;  %5477 = vrot.lane.b32.xlu0 %v9574_v29, %s6542_s11  ;;  %v10686_v37 = vld [vmem:[#allocation21_spill] sm:$0xff]  ;;  %v10690_v29 = vld [vmem:[#allocation28_spill] sm:$0xff] }
 0x9fc   : > { %10685 = vst [vmem:[#allocation18_spill] sm:$0xff] %v9584_v10  ;;  %v9592_v27 = vsel %vm5114_vm1, %v10688_v60, %v10686_v37  ;;  %v10692_v37 = vld [vmem:[#allocation33_spill] sm:$0xff]  ;;  %v10693_v60 = vrot.slane %v10687_v7, 2 }
 0x9fd   : > { %v5396_v13 = vpop.permute.xlu1 %5395  ;;  %v5394_v39 = vpop.permute.xlu0 %5393  ;;  %10689 = vst [vmem:[#allocation22_spill] sm:$0xff] %v9592_v27 }
 0x9fe   : > { %5668 = vst [vmem:[#allocation1 + $0x20] ss:$4 sm:$0xff] %v5396_v13  ;;  %v9597_v13 = vsel %vm5114_vm1, %v10687_v7, %v10690_v29  ;;  %v9608_v29 = vsel %vm5114_vm1, %v10693_v60, %v10692_v37  ;;  %v10701_v37 = vrot.slane %v10687_v7, 5  ;;  %v10703_v60 = vrot.slane %v10687_v7, 7 }
 0x9ff   : > { %5667 = vst [vmem:[#allocation1 + $0x3] ss:$4 sm:$0xff] %v5394_v39 }
 0xa00   : > { %10691 = vst [vmem:[#allocation19_spill] sm:$0xff] %v9597_v13 }
 0xa01   : > { %5481 = vrot.lane.b32.xlu2 %v9584_v10, %s6542_s11  ;;  %v10694_v10 = vld [vmem:[#allocation25_spill] sm:$0xff] }
 0xa03   : > { %5485 = vrot.lane.b32.xlu1 %v9592_v27, %s6542_s11  ;;  %5483 = vrot.lane.b32.xlu0 %v9597_v13, %s6542_s11  ;;  %v10698_v27 = vrot.slane %v10687_v7, 3 }
 0xa05   : > { %v5402_v39 = vpop.permute.xlu1 %5401  ;;  %v5400_v46 = vpop.permute.xlu0 %5399 }
 0xa06   : > { %v5672_v3 = vld.sshfl [vmem:[#allocation1] sm:$0xff pattern:$0x73625140]  ;;  %5671 = vst [vmem:[#allocation1 + $0x23] ss:$4 sm:$0xff] %v5402_v39  ;;  %v9618_v39 = vsel %vm5114_vm1, %v10695_v28, %v10694_v10  ;;  %v5410_v28 = vpop.permute.xlu2 %5409  ;;  %v10700_v10 = vld [vmem:[#allocation36_spill] sm:$0xff] }
 0xa07   : > { %5674 = vst [vmem:[#allocation1] ss:$4 sm:$0xff] %v9226_v35  ;;  %v10697_v35 = vld [vmem:[#allocation32_spill] sm:$0xff] }
 0xa08   : > { %5675 = vst [vmem:[#allocation1 + $0x1] ss:$4 sm:$0xff] %v9240_v44  ;;  %v9624_v13 = vsel %vm5114_vm1, %v10698_v27, %v10697_v35  ;;  %v9637_v27 = vsel %vm5114_vm1, %v10701_v37, %v10700_v10 }
 0xa09   : > { %5676 = vst [vmem:[#allocation1 + $0x2] ss:$4 sm:$0xff] %v9234_v32  ;;  %5487 = vrot.lane.b32.xlu2 %v9608_v29, %s6542_s11 }
 0xa0a   : > { %10696 = vst [vmem:[#allocation26_spill] sm:$0xff] %v9618_v39 }
 0xa0b   : > { %10699 = vst [vmem:[#allocation29_spill] sm:$0xff] %v9624_v13  ;;  %5491 = vrot.lane.b32.xlu1 %v9618_v39, %s6542_s11  ;;  %5489 = vrot.lane.b32.xlu0 %v9624_v13, %s6542_s11  ;;  %v10705_v39 = vrot.slane %v10687_v7, 6 }
 0xa0c   : > { %5677 = vst [vmem:[#allocation1 + $0x3] ss:$4 sm:$0xff] %v9256_v56 }
 0xa0d   : > { %6025 = vst.msk [vmem:[%s6686_s22 + $0x30] sm:$0xff] %vm6018_vm11, %v5672_v3  ;;  %v5408_v44 = vpop.permute.xlu1 %5407  ;;  %v5406_v32 = vpop.permute.xlu0 %5405  ;;  %v10702_v3 = vld [vmem:[#allocation27_spill] sm:$0xff] }
 0xa0e   : > { %5670 = vst [vmem:[#allocation1 + $0x22] ss:$4 sm:$0xff] %v5400_v46  ;;  %v9645_v35 = vsel %vm5114_vm1, %v10703_v60, %v10702_v3  ;;  %v10704_v46 = vld [vmem:[#allocation35_spill] sm:$0xff]  ;;  %v5416_v3 = vpop.permute.xlu2 %5415 }
 0xa0f   : > { %v9651_v13 = vsel %vm5114_vm1, %v10705_v39, %v10704_v46 }
 0xa11   : > { %5493 = vrot.lane.b32.xlu2 %v9637_v27, %s6542_s11 }
 0xa13   : > { %v5682_v56 = vld.sshfl [vmem:[#allocation1] sm:$0xff pattern:$0x73625140]  ;;  %5497 = vrot.lane.b32.xlu1 %v9645_v35, %s6542_s11  ;;  %5495 = vrot.lane.b32.xlu0 %v9651_v13, %s6542_s11 }
 0xa14   : > { %5684 = vst [vmem:[#allocation1] ss:$4 sm:$0xff] %v9293_v52  ;;  %v10706_v52 = vld [vmem:[#allocation39_spill] sm:$0xff] }
 0xa15   : > { %5685 = vst [vmem:[#allocation1 + $0x1] ss:$4 sm:$0xff] %v9315_v6  ;;  %v5673_v10 = vld.sshfl [vmem:[#allocation1 + $0x20] sm:$0xff pattern:$0x73625140]  ;;  %v5414_v7 = vpop.permute.xlu1 %5413  ;;  %v5412_v39 = vpop.permute.xlu0 %5411  ;;  %v10707_v6 = vld [vmem:[#allocation13_spill] sm:$0xff] }
 0xa16   : > { %5686 = vst [vmem:[#allocation1 + $0x2] ss:$4 sm:$0xff] %v9329_v48  ;;  %v9667_v37 = vsel %vm5114_vm1, %v10707_v6, %v10706_v52  ;;  %v10708_v48 = vld [vmem:[#allocation30_spill] sm:$0xff]  ;;  %v10711_v60 = vrot.slane %v10707_v6, 1  ;;  %v10712_v52 = vld [vmem:[#allocation43_spill] sm:$0xff] }
 0xa17   : > { %5687 = vst [vmem:[#allocation1 + $0x3] ss:$4 sm:$0xff] %v9323_v20  ;;  %v10709_v20 = vrot.slane %v10707_v6, 2 }
 0xa18   : > { %6027 = vst.msk [vmem:[%s6686_s22 + $0x40] sm:$0xff] %vm6018_vm11, %v5682_v56 }
 0xa19   : > { %5678 = vst [vmem:[#allocation1 + $0x20] ss:$4 sm:$0xff] %v9270_v11  ;;  %5499 = vrot.lane.b32.xlu2 %v9667_v37, %s6542_s11  ;;  %v9677_v56 = vsel %vm5114_vm1, %v10709_v20, %v10708_v48  ;;  %v10710_v11 = vld [vmem:[#allocation38_spill] sm:$0xff]  ;;  %v10713_v48 = vrot.slane %v10707_v6, 3 }
 0xa1a   : > { %5679 = vst [vmem:[#allocation1 + $0x21] ss:$4 sm:$0xff] %v9264_v61  ;;  %v9683_v46 = vsel %vm5114_vm1, %v10711_v60, %v10710_v11  ;;  %v10714_v11 = vld [vmem:[#allocation34_spill] sm:$0xff] }
 0xa1b   : > { %5680 = vst [vmem:[#allocation1 + $0x22] ss:$4 sm:$0xff] %v9286_v8  ;;  %5503 = vrot.lane.b32.xlu1 %v9677_v56, %s6542_s11  ;;  %5501 = vrot.lane.b32.xlu0 %v9683_v46, %s6542_s11  ;;  %v10716_v60 = vld [vmem:[#allocation42_spill] sm:$0xff] }
 0xa1c   : > { %5681 = vst [vmem:[#allocation1 + $0x23] ss:$4 sm:$0xff] %v9299_v53  ;;  %v9698_v53 = vsel %vm5114_vm1, %v10713_v48, %v10712_v52  ;;  %v10719_v48 = vrot.slane %v10707_v6, 6 }
 0xa1d   : > { %6026 = vst.msk [vmem:[%s6686_s22 + $0x38] sm:$0xff] %vm6018_vm11, %v5673_v10  ;;  %v5420_v8 = vpop.permute.xlu1 %5419  ;;  %v5418_v10 = vpop.permute.xlu0 %5417 }
 0xa1e   : > { %v5692_v61 = vld.sshfl [vmem:[#allocation1] sm:$0xff pattern:$0x73625140] }
 0xa1f   : > { %6029 = vst.msk [vmem:[%s6686_s22 + $0x50] sm:$0xff] %vm6018_vm11, %v5692_v61  ;;  %v10717_v61 = vrot.slane %v10707_v6, 4 }
 0xa20   : > { %5694 = vst [vmem:[#allocation1] ss:$4 sm:$0xff] %v5404_v57  ;;  %v10715_v57 = vrot.slane %v10707_v6, 5 }
 0xa21   : > { %5697 = vst [vmem:[#allocation1 + $0x3] ss:$4 sm:$0xff] %v5410_v28  ;;  %5505 = vrot.lane.b32.xlu2 %v9698_v53, %s6542_s11  ;;  %v9712_v52 = vsel %vm5114_vm1, %v10717_v61, %v10716_v60  ;;  %v10723_v60 = vld [vmem:[#allocation45_spill] sm:$0xff] }
 0xa22   : > { %5696 = vst [vmem:[#allocation1 + $0x2] ss:$4 sm:$0xff] %v5408_v44  ;;  %v9706_v28 = vsel %vm5114_vm1, %v10715_v57, %v10714_v11  ;;  %v5422_v44 = vpop.permute.xlu2 %5421  ;;  %v10721_v57 = vld [vmem:[#allocation37_spill] sm:$0xff] }
 0xa23   : > { %v5683_v20 = vld.sshfl [vmem:[#allocation1 + $0x20] sm:$0xff pattern:$0x73625140]  ;;  %5695 = vst [vmem:[#allocation1 + $0x1] ss:$4 sm:$0xff] %v5406_v32  ;;  %5509 = vrot.lane.b32.xlu1 %v9706_v28, %s6542_s11  ;;  %5507 = vrot.lane.b32.xlu0 %v9712_v52, %s6542_s11 }
 0xa24   : > { %5688 = vst [vmem:[#allocation1 + $0x20] ss:$4 sm:$0xff] %v9345_v55  ;;  %v10718_v32 = vld [vmem:[#allocation46_spill] sm:$0xff] }
 0xa25   : > { %5689 = vst [vmem:[#allocation1 + $0x21] ss:$4 sm:$0xff] %v9359_v31  ;;  %v9728_v55 = vsel %vm5114_vm1, %v10719_v48, %v10718_v32  ;;  %v5426_v11 = vpop.permute.xlu1 %5425  ;;  %v5424_v32 = vpop.permute.xlu0 %5423 }
 0xa26   : > { %5690 = vst [vmem:[#allocation1 + $0x22] ss:$4 sm:$0xff] %v9353_v19  ;;  %v10722_v19 = vld [vmem:[#allocation14_spill] sm:$0xff] }
 0xa27   : > { %5691 = vst [vmem:[#allocation1 + $0x23] ss:$4 sm:$0xff] %v9375_v5  ;;  %v9737_v5 = vsel %vm5114_vm1, %v10722_v19, %v10721_v57  ;;  %v10727_v57 = vrot.slane %v10722_v19, 1 }
 0xa28   : > { %6028 = vst.msk [vmem:[%s6686_s22 + $0x48] sm:$0xff] %vm6018_vm11, %v5683_v20  ;;  %v10724_v20 = vrot.slane %v10707_v6, 7  ;;  %v10726_v6 = vld [vmem:[#allocation49_spill] sm:$0xff] }
 0xa29   : > { %10720 = vst [vmem:[#allocation21_spill] sm:$0xff] %v9728_v55  ;;  %5511 = vrot.lane.b32.xlu2 %v9728_v55, %s6542_s11  ;;  %v10736_v55 = vrot.slane %v10722_v19, 5 }
 0xa2a   : > { %v5702_v31 = vld.sshfl [vmem:[#allocation1] sm:$0xff pattern:$0x73625140]  ;;  %v9743_v61 = vsel %vm5114_vm1, %v10724_v20, %v10723_v60 }
 0xa2b   : > { %6031 = vst.msk [vmem:[%s6686_s22 + $0x60] sm:$0xff] %vm6018_vm11, %v5702_v31  ;;  %5515 = vrot.lane.b32.xlu1 %v9737_v5, %s6542_s11  ;;  %5513 = vrot.lane.b32.xlu0 %v9743_v61, %s6542_s11  ;;  %v5428_v31 = vpop.permute.xlu2 %5427 }
 0xa2c   : > { %10725 = vst [vmem:[#allocation12_spill] sm:$0xff] %v9743_v61  ;;  %v10735_v61 = vld [vmem:[#allocation52_spill] sm:$0xff] }
 0xa2d   : > { %5705 = vst [vmem:[#allocation1 + $0x1] ss:$4 sm:$0xff] %v5422_v44  ;;  %v9755_v44 = vsel %vm5114_vm1, %v10727_v57, %v10726_v6  ;;  %v10732_v6 = vrot.slane %v10722_v19, 4 }
 0xa2e   : > { %5704 = vst [vmem:[#allocation1] ss:$4 sm:$0xff] %v5420_v8  ;;  %v5693_v48 = vld.sshfl [vmem:[#allocation1 + $0x20] sm:$0xff pattern:$0x73625140]  ;;  %v10728_v8 = vld [vmem:[#allocation41_spill] sm:$0xff] }
 0xa2f   : > { %5707 = vst [vmem:[#allocation1 + $0x3] ss:$4 sm:$0xff] %v5426_v11  ;;  %v10729_v11 = vrot.slane %v10722_v19, 3  ;;  %v9779_v57 = vsel %vm5114_vm1, %v10732_v6, %v9111_v16  ;;  %v9795_v16 = vsel %vm5114_vm1, %v10736_v55, %v10735_v61  ;;  %v10737_v55 = vld [vmem:[#allocation55_spill] sm:$0xff]  ;;  %v10738_v61 = vrot.slane %v10722_v19, 7 }
 0xa30   : > { %6030 = vst.msk [vmem:[%s6686_s22 + $0x58] sm:$0xff] %vm6018_vm11, %v5693_v48  ;;  %v5432_v48 = vpop.permute.xlu1 %5431 }
 0xa31   : > { %5700 = vst [vmem:[#allocation1 + $0x22] ss:$4 sm:$0xff] %v5416_v3  ;;  %5517 = vrot.lane.b32.xlu2 %v9755_v44, %s6542_s11  ;;  %v9763_v60 = vsel %vm5114_vm1, %v10729_v11, %v10728_v8  ;;  %v10730_v3 = vld [vmem:[#allocation48_spill] sm:$0xff] }
 0xa32   : > { %5699 = vst [vmem:[#allocation1 + $0x21] ss:$4 sm:$0xff] %v5414_v7  ;;  %v10731_v7 = vrot.slane %v10722_v19, 2  ;;  %v10733_v11 = vld [vmem:[#allocation44_spill] sm:$0xff] }
 0xa33   : > { %5698 = vst [vmem:[#allocation1 + $0x20] ss:$4 sm:$0xff] %v5412_v39  ;;  %5521 = vrot.lane.b32.xlu1 %v9763_v60, %s6542_s11  ;;  %v5430_v39 = vpop.permute.xlu0 %5429 }
 0xa34   : > { %5701 = vst [vmem:[#allocation1 + $0x23] ss:$4 sm:$0xff] %v5418_v10  ;;  %v9769_v20 = vsel %vm5114_vm1, %v10731_v7, %v10730_v3  ;;  %v5434_v10 = vpop.permute.xlu2 %5433  ;;  %v10734_v3 = vrot.slane %v10722_v19, 6 }
 0xa35   : > { %5706 = vst [vmem:[#allocation1 + $0x2] ss:$4 sm:$0xff] %v5424_v32  ;;  %5519 = vrot.lane.b32.xlu0 %v9769_v20, %s6542_s11 }
 0xa36   : > { %v9789_v7 = vsel %vm5114_vm1, %v10734_v3, %v10733_v11 }
 0xa38   : > { %v5438_v6 = vpop.permute.xlu1 %5437 }
 0xa39   : > { %5523 = vrot.lane.b32.xlu2 %v9779_v57, %s6542_s11 }
 0xa3b   : > { %v5703_v8 = vld.sshfl [vmem:[#allocation1 + $0x20] sm:$0xff pattern:$0x73625140]  ;;  %5527 = vrot.lane.b32.xlu1 %v9789_v7, %s6542_s11 }
 0xa3c   : > { %6032 = vst.msk [vmem:[%s6686_s22 + $0x68] sm:$0xff] %vm6018_vm11, %v5703_v8  ;;  %v5712_v32 = vld.sshfl [vmem:[#allocation1] sm:$0xff pattern:$0x73625140]  ;;  %v5436_v8 = vpop.permute.xlu0 %5435 }
 0xa3d   : > { %5708 = vst [vmem:[#allocation1 + $0x20] ss:$4 sm:$0xff] %v5428_v31  ;;  %5525 = vrot.lane.b32.xlu0 %v9795_v16, %s6542_s11  ;;  %v9809_v31 = vsel %vm5114_vm1, %v10738_v61, %v10737_v55 }
 0xa3e   : > { %5711 = vst [vmem:[#allocation1 + $0x23] ss:$4 sm:$0xff] %v5434_v10  ;;  %v5440_v10 = vpop.permute.xlu2 %5439 }
 0xa3f   : > { %5714 = vst [vmem:[#allocation1] ss:$4 sm:$0xff] %v9388_v59  ;;  %v10739_v59 = vld [vmem:[#allocation47_spill] sm:$0xff] }
 0xa40   : > { %5715 = vst [vmem:[#allocation1 + $0x1] ss:$4 sm:$0xff] %v9383_v42  ;;  %v10740_v42 = vld [vmem:[#allocation15_spill] sm:$0xff] }
 0xa41   : > { %5716 = vst [vmem:[#allocation1 + $0x2] ss:$4 sm:$0xff] %v9404_v47  ;;  %5529 = vrot.lane.b32.xlu2 %v9809_v31, %s6542_s11  ;;  %v10741_v11 = vrot.slane %v10740_v42, 1  ;;  %v10743_v3 = vrot.slane %v10740_v42, 2 }
 0xa42   : > { %5717 = vst [vmem:[#allocation1 + $0x3] ss:$4 sm:$0xff] %v9418_v49  ;;  %v10742_v49 = vld [vmem:[#allocation54_spill] sm:$0xff] }
 0xa43   : > { %6033 = vst.msk [vmem:[%s6686_s22 + $0x70] sm:$0xff] %vm6018_vm11, %v5712_v32  ;;  %v9819_v47 = vsel %vm5114_vm1, %v10741_v11, %v10739_v59  ;;  %v9824_v19 = vsel %vm5114_vm1, %v10740_v42, %v10742_v49  ;;  %v5444_v32 = vpop.permute.xlu1 %5443  ;;  %v9835_v55 = vsel %vm5114_vm1, %v10743_v3, %v9146_v36  ;;  %v10744_v59 = vld [vmem:[#allocation51_spill] sm:$0xff]  ;;  %v10746_v36 = vrot.slane %v10740_v42, 3 }
 0xa44   : > { %5710 = vst [vmem:[#allocation1 + $0x22] ss:$4 sm:$0xff] %v5432_v48  ;;  %5533 = vrot.lane.b32.xlu1 %v9819_v47, %s6542_s11  ;;  %v5442_v61 = vpop.permute.xlu0 %5441 }
 0xa45   : > { %5709 = vst [vmem:[#allocation1 + $0x21] ss:$4 sm:$0xff] %v5430_v39  ;;  %5531 = vrot.lane.b32.xlu0 %v9824_v19, %s6542_s11  ;;  %v9851_v49 = vsel %vm5114_vm1, %v10746_v36, %v9144_v0  ;;  %v10747_v0 = vrot.slane %v10740_v42, 5 }
 0xa49   : > { %v5722_v48 = vld.sshfl [vmem:[#allocation1] sm:$0xff pattern:$0x73625140]  ;;  %5535 = vrot.lane.b32.xlu2 %v9835_v55, %s6542_s11 }
 0xa4a   : > { %5724 = vst [vmem:[#allocation1] ss:$4 sm:$0xff] %v9459_v63  ;;  %v10745_v63 = vrot.slane %v10740_v42, 4 }
 0xa4b   : > { %5725 = vst [vmem:[#allocation1 + $0x1] ss:$4 sm:$0xff] %v9473_v40  ;;  %v9868_v40 = vsel %vm5114_vm1, %v10747_v0, %v9161_v51 }
 0xa4c   : > { %5726 = vst [vmem:[#allocation1 + $0x2] ss:$4 sm:$0xff] %v9467_v1  ;;  %v5713_v39 = vld.sshfl [vmem:[#allocation1 + $0x20] sm:$0xff pattern:$0x73625140]  ;;  %v9845_v11 = vsel %vm5114_vm1, %v10745_v63, %v10744_v59  ;;  %v5446_v1 = vpop.permute.xlu2 %5445  ;;  %v5448_v51 = vpop.permute.xlu0 %5447 }
 0xa4d   : > { %5727 = vst [vmem:[#allocation1 + $0x3] ss:$4 sm:$0xff] %v9485_v38  ;;  %5539 = vrot.lane.b32.xlu1 %v9845_v11, %s6542_s11  ;;  %5537 = vrot.lane.b32.xlu0 %v9851_v49, %s6542_s11 }
 0xa4e   : > { %6035 = vst.msk [vmem:[%s6686_s22 + $0x80] sm:$0xff] %vm6018_vm11, %v5722_v48  ;;  %v5450_v48 = vpop.permute.xlu1 %5449 }
 0xa4f   : > { %5718 = vst [vmem:[#allocation1 + $0x20] ss:$4 sm:$0xff] %v9412_v15  ;;  %v10748_v15 = vld [vmem:[#allocation53_spill] sm:$0xff] }
 0xa50   : > { %5719 = vst [vmem:[#allocation1 + $0x21] ss:$4 sm:$0xff] %v9432_v22  ;;  %v10749_v22 = vrot.slane %v10740_v42, 7 }
 0xa51   : > { %5720 = vst [vmem:[#allocation1 + $0x22] ss:$4 sm:$0xff] %v9446_v62  ;;  %5541 = vrot.lane.b32.xlu2 %v9868_v40, %s6542_s11 }
 0xa52   : > { %5721 = vst [vmem:[#allocation1 + $0x23] ss:$4 sm:$0xff] %v9440_v4  ;;  %v9878_v62 = vsel %vm5114_vm1, %v10749_v22, %v10748_v15  ;;  %v10750_v4 = vrot.slane %v10740_v42, 6 }
 0xa53   : > { %6034 = vst.msk [vmem:[%s6686_s22 + $0x78] sm:$0xff] %vm6018_vm11, %v5713_v39 }
 0xa54   : > { %v5732_v38 = vld.sshfl [vmem:[#allocation1] sm:$0xff pattern:$0x73625140]  ;;  %v9884_v3 = vsel %vm5114_vm1, %v10750_v4, %v9159_v25  ;;  %v5452_v39 = vpop.permute.xlu2 %5451  ;;  %v10751_v25 = vld [vmem:[#allocation17_spill] sm:$0xff] }
 0xa55   : > { %6037 = vst.msk [vmem:[%s6686_s22 + $0x90] sm:$0xff] %vm6018_vm11, %v5732_v38  ;;  %5545 = vrot.lane.b32.xlu1 %v9878_v62, %s6542_s11  ;;  %5543 = vrot.lane.b32.xlu0 %v9884_v3, %s6542_s11  ;;  %v9896_v42 = vsel %vm5114_vm1, %v10751_v25, %v9173_v14  ;;  %v10755_v63 = vrot.slane %v10751_v25, 5  ;;  %v10756_v0 = vrot.slane %v10751_v25, 4 }
 0xa56   : > { %5736 = vst [vmem:[#allocation1 + $0x2] ss:$4 sm:$0xff] %v5440_v10  ;;  %v5456_v14 = vpop.permute.xlu1 %5455 }
 0xa57   : > { %5735 = vst [vmem:[#allocation1 + $0x1] ss:$4 sm:$0xff] %v5438_v6  ;;  %v10752_v6 = vrot.slane %v10751_v25, 2  ;;  %v9935_v36 = vsel %vm5114_vm1, %v10755_v63, %v9154_v9  ;;  %v9941_v38 = vsel %vm5114_vm1, %v10756_v0, %v9183_v12  ;;  %v10757_v12 = vrot.slane %v10751_v25, 6 }
 0xa58   : > { %5734 = vst [vmem:[#allocation1] ss:$4 sm:$0xff] %v5436_v8 }
 0xa59   : > { %v5723_v59 = vld.sshfl [vmem:[#allocation1 + $0x20] sm:$0xff pattern:$0x73625140]  ;;  %5737 = vst [vmem:[#allocation1 + $0x3] ss:$4 sm:$0xff] %v5442_v61  ;;  %5547 = vrot.lane.b32.xlu2 %v9896_v42, %s6542_s11  ;;  %v9906_v8 = vsel %vm5114_vm1, %v10752_v6, %v9139_v41  ;;  %v5454_v41 = vpop.permute.xlu0 %5453  ;;  %v9953_v15 = vsel %vm5114_vm1, %v10757_v12, %v9197_v33 }
 0xa5a   : > { %5728 = vst [vmem:[#allocation1 + $0x20] ss:$4 sm:$0xff] %v9499_v24  ;;  %v10753_v24 = vrot.slane %v10751_v25, 1  ;;  %v10771_v12 = vld [vmem:[#allocation22_spill] sm:$0xff] }
 0xa5b   : > { %5729 = vst [vmem:[#allocation1 + $0x21] ss:$4 sm:$0xff] %v9493_v58 }
 0xa5c   : > { %5730 = vst [vmem:[#allocation1 + $0x22] ss:$4 sm:$0xff] %v9509_v23  ;;  %v9912_v10 = vsel %vm5114_vm1, %v10753_v24, %v9171_v50  ;;  %v5458_v23 = vpop.permute.xlu2 %5457  ;;  %v10754_v50 = vrot.slane %v10751_v25, 3 }
 0xa5d   : > { %5731 = vst [vmem:[#allocation1 + $0x23] ss:$4 sm:$0xff] %v9522_v43  ;;  %5551 = vrot.lane.b32.xlu1 %v9906_v8, %s6542_s11  ;;  %5549 = vrot.lane.b32.xlu0 %v9912_v10, %s6542_s11 }
 0xa5e   : > { %6036 = vst.msk [vmem:[%s6686_s22 + $0x88] sm:$0xff] %vm6018_vm11, %v5723_v59  ;;  %v9927_v43 = vsel %vm5114_vm1, %v10754_v50, %v9185_v34  ;;  %v5462_v9 = vpop.permute.xlu1 %5461  ;;  %v10768_v50 = vld [vmem:[#allocation59_spill] sm:$0xff] }
 0xa60   : > { %v5742_v58 = vld.sshfl [vmem:[#allocation1] sm:$0xff pattern:$0x73625140] }
 0xa61   : > { %6039 = vst.msk [vmem:[%s6686_s22 + $0xa0] sm:$0xff] %vm6018_vm11, %v5742_v58  ;;  %5553 = vrot.lane.b32.xlu2 %v9927_v43, %s6542_s11  ;;  %v5460_v34 = vpop.permute.xlu0 %5459 }
 0xa62   : > { %5744 = vst [vmem:[#allocation1] ss:$4 sm:$0xff] %v5452_v39 }
 0xa63   : > { %5747 = vst [vmem:[#allocation1 + $0x3] ss:$4 sm:$0xff] %v5458_v23 }
 0xa64   : > { %v5733_v61 = vld.sshfl [vmem:[#allocation1 + $0x20] sm:$0xff pattern:$0x73625140]  ;;  %5746 = vst [vmem:[#allocation1 + $0x2] ss:$4 sm:$0xff] %v5456_v14  ;;  %v5464_v4 = vpop.permute.xlu2 %5463 }
 0xa65   : > { %6038 = vst.msk [vmem:[%s6686_s22 + $0x98] sm:$0xff] %vm6018_vm11, %v5733_v61  ;;  %5557 = vrot.lane.b32.xlu1 %v9935_v36, %s6542_s11  ;;  %5555 = vrot.lane.b32.xlu0 %v9941_v38, %s6542_s11 }
 0xa66   : > { %5739 = vst [vmem:[#allocation1 + $0x21] ss:$4 sm:$0xff] %v5446_v1  ;;  %v10758_v1 = vld [vmem:[#allocation24_spill] sm:$0xff] }
 0xa67   : > { %5738 = vst [vmem:[#allocation1 + $0x20] ss:$4 sm:$0xff] %v5444_v32  ;;  %v9960_v22 = vsel %vm5114_vm1, %v10758_v1, %v9165_v17  ;;  %v10759_v32 = vrot.slane %v10751_v25, 7  ;;  %v5468_v17 = vpop.permute.xlu1 %5467  ;;  %v10760_v39 = vrot.slane %v10758_v1, 1  ;;  %v10761_v25 = vrot.slane %v10758_v1, 3 }
 0xa68   : > { %5741 = vst [vmem:[#allocation1 + $0x23] ss:$4 sm:$0xff] %v5450_v48  ;;  %v10762_v24 = vrot.slane %v10758_v1, 2  ;;  %v10767_v58 = vrot.slane %v10758_v1, 6  ;;  %v10769_v61 = vrot.slane %v10758_v1, 5 }
 0xa69   : > { %5740 = vst [vmem:[#allocation1 + $0x22] ss:$4 sm:$0xff] %v5448_v51  ;;  %5559 = vrot.lane.b32.xlu2 %v9953_v15, %s6542_s11  ;;  %v9966_v48 = vsel %vm5114_vm1, %v10759_v32, %v9195_v21  ;;  %v9978_v21 = vsel %vm5114_vm1, %v10760_v39, %v9209_v2  ;;  %v5466_v59 = vpop.permute.xlu0 %5465  ;;  %v9988_v6 = vsel %vm5114_vm1, %v10761_v25, %v9177_v54  ;;  %v10764_v54 = vld [vmem:[#allocation60_spill] sm:$0xff]  ;;  %v10772_v32 = vld [vmem:[#allocation29_spill] sm:$0xff]  ;;  %v10774_v39 = vrot.slane %v10758_v1, 7  ;;  %v10775_v25 = vld [vmem:[#allocation11_spill] sm:$0xff] }
 0xa6a   : > { %5745 = vst [vmem:[#allocation1 + $0x1] ss:$4 sm:$0xff] %v5454_v41  ;;  %v9994_v2 = vsel %vm5114_vm1, %v10762_v24, %v9207_v26  ;;  %v10765_v26 = vrot.slane %v10758_v1, 4  ;;  %v10766_v41 = vld [vmem:[#allocation56_spill] sm:$0xff]  ;;  %v10022_v63 = vsel %vm5114_vm1, %v10769_v61, %v10768_v50  ;;  %v10776_v24 = vld [vmem:[#allocation23_spill] sm:$0xff]  ;;  %v10782_v50 = vld [vmem:[#allocation18_spill] sm:$0xff] }
 0xa6b   : > { %v10016_v23 = vsel %vm5114_vm1, %v10767_v58, %v10766_v41  ;;  %v10780_v41 = vld [vmem:[#allocation62_spill] sm:$0xff]  ;;  %v10781_v58 = vld [vmem:[#allocation20_spill] sm:$0xff] }
 0xa6d   : > { %5563 = vrot.lane.b32.xlu1 %v9960_v22, %s6542_s11  ;;  %5561 = vrot.lane.b32.xlu0 %v9966_v48, %s6542_s11 }
 0xa6f   : > { %v5474_v14 = vpop.permute.xlu1 %5473 }
 0xa70   : > { %v5743_v33 = vld.sshfl [vmem:[#allocation1 + $0x20] sm:$0xff pattern:$0x73625140] }
 0xa71   : > { %6040 = vst.msk [vmem:[%s6686_s22 + $0xa8] sm:$0xff] %vm6018_vm11, %v5743_v33  ;;  %v5752_v51 = vld.sshfl [vmem:[#allocation1] sm:$0xff pattern:$0x73625140]  ;;  %5565 = vrot.lane.b32.xlu2 %v9978_v21, %s6542_s11 }
 0xa72   : > { %5750 = vst [vmem:[#allocation1 + $0x22] ss:$4 sm:$0xff] %v5464_v4 }
 0xa73   : > { %5754 = vst [vmem:[#allocation1] ss:$4 sm:$0xff] %v9516_v18  ;;  %v10763_v18 = vld [vmem:[#allocation16_spill] sm:$0xff] }
 0xa74   : > { %5755 = vst [vmem:[#allocation1 + $0x1] ss:$4 sm:$0xff] %v9534_v45  ;;  %v5470_v45 = vpop.permute.xlu2 %5469 }
 0xa75   : > { %5756 = vst [vmem:[#allocation1 + $0x2] ss:$4 sm:$0xff] %v9548_v30  ;;  %5569 = vrot.lane.b32.xlu1 %v9988_v6, %s6542_s11  ;;  %5567 = vrot.lane.b32.xlu0 %v9994_v2, %s6542_s11  ;;  %v10008_v30 = vsel %vm5114_vm1, %v10765_v26, %v10764_v54 }
 0xa76   : > { %5757 = vst [vmem:[#allocation1 + $0x3] ss:$4 sm:$0xff] %v10763_v18  ;;  %v10778_v18 = vld [vmem:[#allocation31_spill] sm:$0xff] }
 0xa77   : > { %6041 = vst.msk [vmem:[%s6686_s22 + $0xb0] sm:$0xff] %vm6018_vm11, %v5752_v51  ;;  %v10773_v51 = vld [vmem:[#allocation63_spill] sm:$0xff]  ;;  %v10779_v54 = vrot.slane %v10778_v18, 1  ;;  %v10053_v1 = vsel %vm5114_vm1, %v10778_v18, %v10780_v41  ;;  %v5480_v61 = vpop.permute.xlu1 %5479 }
 0xa78   : > { %5749 = vst [vmem:[#allocation1 + $0x21] ss:$4 sm:$0xff] %v5462_v9  ;;  %v5472_v9 = vpop.permute.xlu0 %5471 }
 0xa79   : > { %5748 = vst [vmem:[#allocation1 + $0x20] ss:$4 sm:$0xff] %v5460_v34  ;;  %5571 = vrot.lane.b32.xlu2 %v10008_v30, %s6542_s11  ;;  %v10770_v34 = vld [vmem:[#allocation19_spill] sm:$0xff] }
 0xa7a   : > { %5751 = vst [vmem:[#allocation1 + $0x23] ss:$4 sm:$0xff] %v5466_v59  ;;  %v10038_v59 = vsel %vm5114_vm1, %v10774_v39, %v10773_v51 }
 0xa7c   : > { %v5476_v4 = vpop.permute.xlu2 %5475 }
 0xa7d   : > { %v5762_v0 = vld.sshfl [vmem:[#allocation1] sm:$0xff pattern:$0x73625140]  ;;  %5575 = vrot.lane.b32.xlu1 %v10016_v23, %s6542_s11  ;;  %5573 = vrot.lane.b32.xlu0 %v10022_v63, %s6542_s11 }
 0xa7e   : > { %5764 = vst [vmem:[#allocation1] ss:$4 sm:$0xff] %v10770_v34 }
 0xa7f   : > { %5765 = vst [vmem:[#allocation1 + $0x1] ss:$4 sm:$0xff] %v10771_v12  ;;  %v10783_v12 = vld [vmem:[#allocation66_spill] sm:$0xff] }
 0xa80   : > { %5766 = vst [vmem:[#allocation1 + $0x2] ss:$4 sm:$0xff] %v9608_v29  ;;  %v10777_v29 = vld [vmem:[#allocation57_spill] sm:$0xff] }
 0xa81   : > { %5767 = vst [vmem:[#allocation1 + $0x3] ss:$4 sm:$0xff] %v10772_v32  ;;  %v5753_v33 = vld.sshfl [vmem:[#allocation1 + $0x20] sm:$0xff pattern:$0x73625140]  ;;  %5577 = vrot.lane.b32.xlu2 %v10038_v59, %s6542_s11  ;;  %v10048_v26 = vsel %vm5114_vm1, %v10779_v54, %v10777_v29  ;;  %v10784_v32 = vrot.slane %v10778_v18, 2 }
 0xa82   : > { %6043 = vst.msk [vmem:[%s6686_s22 + $0xc0] sm:$0xff] %vm6018_vm11, %v5762_v0  ;;  %v5478_v0 = vpop.permute.xlu0 %5477  ;;  %v10788_v29 = vrot.slane %v10778_v18, 3 }
 0xa83   : > { %5758 = vst [vmem:[#allocation1 + $0x20] ss:$4 sm:$0xff] %v10775_v25  ;;  %v10069_v51 = vsel %vm5114_vm1, %v10784_v32, %v10783_v12  ;;  %v10785_v25 = vld [vmem:[#allocation58_spill] sm:$0xff] }
 0xa84   : > { %5759 = vst [vmem:[#allocation1 + $0x21] ss:$4 sm:$0xff] %v10776_v24  ;;  %v5482_v39 = vpop.permute.xlu2 %5481 }
 0xa85   : > { %5760 = vst [vmem:[#allocation1 + $0x22] ss:$4 sm:$0xff] %v10781_v58  ;;  %5581 = vrot.lane.b32.xlu1 %v10048_v26, %s6542_s11  ;;  %5579 = vrot.lane.b32.xlu0 %v10053_v1, %s6542_s11  ;;  %v10789_v58 = vld [vmem:[#allocation26_spill] sm:$0xff] }
 0xa86   : > { %5761 = vst [vmem:[#allocation1 + $0x23] ss:$4 sm:$0xff] %v10782_v50  ;;  %v10791_v50 = vrot.slane %v10778_v18, 5 }
 0xa87   : > { %6042 = vst.msk [vmem:[%s6686_s22 + $0xb8] sm:$0xff] %vm6018_vm11, %v5753_v33  ;;  %v10786_v33 = vrot.slane %v10778_v18, 4 }
 0xa88   : > { %v5772_v34 = vld.sshfl [vmem:[#allocation1] sm:$0xff pattern:$0x73625140] }
 0xa89   : > { %6045 = vst.msk [vmem:[%s6686_s22 + $0xd0] sm:$0xff] %vm6018_vm11, %v5772_v34  ;;  %5583 = vrot.lane.b32.xlu2 %v10069_v51, %s6542_s11  ;;  %v10077_v24 = vsel %vm5114_vm1, %v10786_v33, %v10785_v25  ;;  %v10795_v25 = vrot.slane %v10778_v18, 6 }
 0xa8a   : > { %5775 = vst [vmem:[#allocation1 + $0x1] ss:$4 sm:$0xff] %v5470_v45  ;;  %v10787_v45 = vld [vmem:[#allocation65_spill] sm:$0xff] }
 0xa8b   : > { %5774 = vst [vmem:[#allocation1] ss:$4 sm:$0xff] %v5468_v17  ;;  %v10083_v54 = vsel %vm5114_vm1, %v10788_v29, %v10787_v45  ;;  %v5486_v17 = vpop.permute.xlu1 %5485 }
 0xa8c   : > { %5777 = vst [vmem:[#allocation1 + $0x3] ss:$4 sm:$0xff] %v5474_v14  ;;  %v5484_v14 = vpop.permute.xlu0 %5483  ;;  %v5488_v45 = vpop.permute.xlu2 %5487 }
 0xa8d   : > { %v5763_v41 = vld.sshfl [vmem:[#allocation1 + $0x20] sm:$0xff pattern:$0x73625140]  ;;  %5776 = vst [vmem:[#allocation1 + $0x2] ss:$4 sm:$0xff] %v5472_v9  ;;  %5587 = vrot.lane.b32.xlu1 %v10077_v24, %s6542_s11  ;;  %5585 = vrot.lane.b32.xlu0 %v10083_v54, %s6542_s11  ;;  %v10790_v9 = vld [vmem:[#allocation69_spill] sm:$0xff] }
 0xa8e   : > { %5768 = vst [vmem:[#allocation1 + $0x20] ss:$4 sm:$0xff] %v10789_v58  ;;  %v10099_v34 = vsel %vm5114_vm1, %v10791_v50, %v10790_v9  ;;  %v10797_v58 = vld [vmem:[#allocation40_spill] sm:$0xff] }
 0xa8f   : > { %5769 = vst [vmem:[#allocation1 + $0x21] ss:$4 sm:$0xff] %v9637_v27  ;;  %v10792_v27 = vld [vmem:[#allocation61_spill] sm:$0xff] }
 0xa90   : > { %5770 = vst [vmem:[#allocation1 + $0x22] ss:$4 sm:$0xff] %v9651_v13  ;;  %v10793_v13 = vrot.slane %v10778_v18, 7 }
 0xa91   : > { %5771 = vst [vmem:[#allocation1 + $0x23] ss:$4 sm:$0xff] %v9645_v35  ;;  %5589 = vrot.lane.b32.xlu2 %v10099_v34, %s6542_s11  ;;  %v10794_v35 = vld [vmem:[#allocation68_spill] sm:$0xff] }
 0xa92   : > { %6044 = vst.msk [vmem:[%s6686_s22 + $0xc8] sm:$0xff] %vm6018_vm11, %v5763_v41  ;;  %v10107_v32 = vsel %vm5114_vm1, %v10793_v13, %v10792_v27  ;;  %v10113_v33 = vsel %vm5114_vm1, %v10795_v25, %v10794_v35  ;;  %v10796_v41 = vld [vmem:[#allocation72_spill] sm:$0xff]  ;;  %v10801_v27 = vrot.slane %v10797_v58, 1  ;;  %v10803_v35 = vrot.slane %v10797_v58, 3 }
 0xa93   : > { %v5492_v18 = vpop.permute.xlu1 %5491  ;;  %v10126_v9 = vsel %vm5114_vm1, %v10797_v58, %v10796_v41  ;;  %v10805_v41 = vrot.slane %v10797_v58, 5 }
 0xa94   : > { %v5782_v12 = vld.sshfl [vmem:[#allocation1] sm:$0xff pattern:$0x73625140]  ;;  %v5490_v50 = vpop.permute.xlu0 %5489 }
 0xa95   : > { %6047 = vst.msk [vmem:[%s6686_s22 + $0xe0] sm:$0xff] %vm6018_vm11, %v5782_v12  ;;  %5593 = vrot.lane.b32.xlu1 %v10107_v32, %s6542_s11  ;;  %5591 = vrot.lane.b32.xlu0 %v10113_v33, %s6542_s11  ;;  %v10798_v12 = vld [vmem:[#allocation64_spill] sm:$0xff] }
 0xa96   : > { %5786 = vst [vmem:[#allocation1 + $0x2] ss:$4 sm:$0xff] %v5488_v45 }
 0xa97   : > { %5785 = vst [vmem:[#allocation1 + $0x1] ss:$4 sm:$0xff] %v5486_v17  ;;  %v10799_v17 = vrot.slane %v10797_v58, 2 }
 0xa98   : > { %v5773_v29 = vld.sshfl [vmem:[#allocation1 + $0x20] sm:$0xff pattern:$0x73625140]  ;;  %5784 = vst [vmem:[#allocation1] ss:$4 sm:$0xff] %v5484_v14 }
 0xa99   : > { %6046 = vst.msk [vmem:[%s6686_s22 + $0xd8] sm:$0xff] %vm6018_vm11, %v5773_v29  ;;  %5595 = vrot.lane.b32.xlu2 %v10126_v9, %s6542_s11  ;;  %v10134_v14 = vsel %vm5114_vm1, %v10799_v17, %v10798_v12  ;;  %v10806_v12 = vld [vmem:[#allocation74_spill] sm:$0xff]  ;;  %v10807_v17 = vrot.slane %v10797_v58, 4 }
 0xa9a   : > { %5778 = vst [vmem:[#allocation1 + $0x20] ss:$4 sm:$0xff] %v5476_v4  ;;  %v10800_v4 = vld [vmem:[#allocation71_spill] sm:$0xff] }
 0xa9b   : > { %5781 = vst [vmem:[#allocation1 + $0x23] ss:$4 sm:$0xff] %v5482_v39  ;;  %v10140_v13 = vsel %vm5114_vm1, %v10801_v27, %v10800_v4  ;;  %v10802_v39 = vld [vmem:[#allocation75_spill] sm:$0xff]  ;;  %v5498_v29 = vpop.permute.xlu1 %5497  ;;  %v10164_v4 = vsel %vm5114_vm1, %v10807_v17, %v10806_v12 }
 0xa9c   : > { %5780 = vst [vmem:[#allocation1 + $0x22] ss:$4 sm:$0xff] %v5480_v61  ;;  %v5494_v61 = vpop.permute.xlu2 %5493  ;;  %v10150_v25 = vsel %vm5114_vm1, %v10803_v35, %v10802_v39  ;;  %v5496_v39 = vpop.permute.xlu0 %5495 }
 0xa9d   : > { %5779 = vst [vmem:[#allocation1 + $0x21] ss:$4 sm:$0xff] %v5478_v0  ;;  %5599 = vrot.lane.b32.xlu1 %v10134_v14, %s6542_s11  ;;  %5597 = vrot.lane.b32.xlu0 %v10140_v13, %s6542_s11  ;;  %v10804_v0 = vld [vmem:[#allocation67_spill] sm:$0xff] }
 0xa9e   : > { %5787 = vst [vmem:[#allocation1 + $0x3] ss:$4 sm:$0xff] %v5490_v50  ;;  %v10158_v50 = vsel %vm5114_vm1, %v10805_v41, %v10804_v0  ;;  %v10808_v0 = vld [vmem:[#allocation78_spill] sm:$0xff]  ;;  %v10812_v41 = vld [vmem:[#allocation77_spill] sm:$0xff] }
 0xaa1   : > { %5601 = vrot.lane.b32.xlu2 %v10150_v25, %s6542_s11 }
 0xaa3   : > { %v5504_v17 = vpop.permute.xlu1 %5503 }
 0xaa4   : > { %v5783_v45 = vld.sshfl [vmem:[#allocation1 + $0x20] sm:$0xff pattern:$0x73625140]  ;;  %v5500_v35 = vpop.permute.xlu2 %5499 }
 0xaa5   : > { %6048 = vst.msk [vmem:[%s6686_s22 + $0xe8] sm:$0xff] %vm6018_vm11, %v5783_v45  ;;  %v5792_v27 = vld.sshfl [vmem:[#allocation1] sm:$0xff pattern:$0x73625140]  ;;  %5605 = vrot.lane.b32.xlu1 %v10158_v50, %s6542_s11  ;;  %5603 = vrot.lane.b32.xlu0 %v10164_v4, %s6542_s11  ;;  %v10809_v45 = vrot.slane %v10797_v58, 6 }
 0xaa6   : > { %5789 = vst [vmem:[#allocation1 + $0x21] ss:$4 sm:$0xff] %v5494_v61 }
 0xaa7   : > { %5788 = vst [vmem:[#allocation1 + $0x20] ss:$4 sm:$0xff] %v5492_v18  ;;  %v10179_v61 = vsel %vm5114_vm1, %v10809_v45, %v10808_v0  ;;  %v10811_v18 = vld [vmem:[#allocation50_spill] sm:$0xff]  ;;  %v10815_v0 = vld [vmem:[#allocation80_spill] sm:$0xff] }
 0xaa8   : > { %5794 = vst [vmem:[#allocation1] ss:$4 sm:$0xff] %v9667_v37  ;;  %v10810_v37 = vld [vmem:[#allocation70_spill] sm:$0xff]  ;;  %v10816_v45 = vrot.slane %v10811_v18, 1 }
 0xaa9   : > { %5795 = vst [vmem:[#allocation1 + $0x1] ss:$4 sm:$0xff] %v9683_v46  ;;  %5607 = vrot.lane.b32.xlu2 %v10179_v61, %s6542_s11  ;;  %v10189_v46 = vsel %vm5114_vm1, %v10811_v18, %v10810_v37 }
 0xaaa   : > { %5796 = vst [vmem:[#allocation1 + $0x2] ss:$4 sm:$0xff] %v9677_v56  ;;  %v10813_v56 = vrot.slane %v10797_v58, 7  ;;  %v10205_v37 = vsel %vm5114_vm1, %v10816_v45, %v10815_v0  ;;  %v10823_v45 = vrot.slane %v10811_v18, 4 }
 0xaab   : > { %5797 = vst [vmem:[#allocation1 + $0x3] ss:$4 sm:$0xff] %v9698_v53  ;;  %v5502_v53 = vpop.permute.xlu0 %5501 }
 0xaac   : > { %6049 = vst.msk [vmem:[%s6686_s22 + $0xf0] sm:$0xff] %vm6018_vm11, %v5792_v27  ;;  %v10195_v12 = vsel %vm5114_vm1, %v10813_v56, %v10812_v41  ;;  %v5506_v58 = vpop.permute.xlu2 %5505  ;;  %v10819_v56 = vld [vmem:[#allocation79_spill] sm:$0xff] }
 0xaad   : > { %10814 = vst [vmem:[#allocation28_spill] sm:$0xff] %v10195_v12  ;;  %5611 = vrot.lane.b32.xlu1 %v10189_v46, %s6542_s11  ;;  %5609 = vrot.lane.b32.xlu0 %v10195_v12, %s6542_s11  ;;  %v10820_v12 = vrot.slane %v10811_v18, 2 }
 0xaae   : > { %5791 = vst [vmem:[#allocation1 + $0x23] ss:$4 sm:$0xff] %v5498_v29  ;;  %v10817_v29 = vld [vmem:[#allocation73_spill] sm:$0xff] }
 0xaaf   : > { %5790 = vst [vmem:[#allocation1 + $0x22] ss:$4 sm:$0xff] %v5496_v39  ;;  %v10818_v39 = vrot.slane %v10811_v18, 3  ;;  %v10222_v0 = vsel %vm5114_vm1, %v10820_v12, %v10819_v56  ;;  %v10821_v12 = vld [vmem:[#allocation21_spill] sm:$0xff] }
 0xab0   : > { %v10828_v56 = vld [vmem:[#allocation81_spill] sm:$0xff] }
 0xab1   : > { %5613 = vrot.lane.b32.xlu2 %v10205_v37, %s6542_s11  ;;  %v10216_v41 = vsel %vm5114_vm1, %v10818_v39, %v10817_v29  ;;  %v10825_v29 = vld [vmem:[#allocation12_spill] sm:$0xff] }
 0xab2   : > { %v5802_v27 = vld.sshfl [vmem:[#allocation1] sm:$0xff pattern:$0x73625140] }
 0xab3   : > { %6051 = vst.msk [vmem:[%s6686_s22 + $0x100] sm:$0xff] %vm6018_vm11, %v5802_v27  ;;  %v5508_v39 = vpop.permute.xlu0 %5507 }
 0xab4   : > { %5804 = vst [vmem:[#allocation1] ss:$4 sm:$0xff] %v9737_v5  ;;  %v5510_v5 = vpop.permute.xlu1 %5509 }
 0xab5   : > { %5805 = vst [vmem:[#allocation1 + $0x1] ss:$4 sm:$0xff] %v9755_v44  ;;  %5617 = vrot.lane.b32.xlu1 %v10216_v41, %s6542_s11  ;;  %5615 = vrot.lane.b32.xlu0 %v10222_v0, %s6542_s11  ;;  %v10822_v44 = vld [vmem:[#allocation82_spill] sm:$0xff] }
 0xab6   : > { %v5793_v27 = vld.sshfl [vmem:[#allocation1 + $0x20] sm:$0xff pattern:$0x73625140]  ;;  %5806 = vst [vmem:[#allocation1 + $0x2] ss:$4 sm:$0xff] %v9769_v20  ;;  %v10238_v20 = vsel %vm5114_vm1, %v10823_v45, %v10822_v44  ;;  %v5512_v45 = vpop.permute.xlu2 %5511 }
 0xab7   : > { %5807 = vst [vmem:[#allocation1 + $0x3] ss:$4 sm:$0xff] %v9763_v60 }
 0xab8   : > { %5798 = vst [vmem:[#allocation1 + $0x20] ss:$4 sm:$0xff] %v9712_v52  ;;  %v10826_v52 = vld [vmem:[#allocation76_spill] sm:$0xff] }
 0xab9   : > { %5799 = vst [vmem:[#allocation1 + $0x21] ss:$4 sm:$0xff] %v9706_v28  ;;  %5619 = vrot.lane.b32.xlu2 %v10238_v20, %s6542_s11  ;;  %v10827_v28 = vrot.slane %v10811_v18, 6 }
 0xaba   : > { %5800 = vst [vmem:[#allocation1 + $0x22] ss:$4 sm:$0xff] %v10821_v12  ;;  %v10829_v12 = vrot.slane %v10811_v18, 5 }
 0xabb   : > { %10824 = vst [vmem:[#allocation33_spill] sm:$0xff] %v10238_v20  ;;  %v10249_v60 = vsel %vm5114_vm1, %v10827_v28, %v10826_v52  ;;  %v10830_v28 = vld [vmem:[#allocation83_spill] sm:$0xff]  ;;  %v10831_v20 = vrot.slane %v10811_v18, 7 }
 0xabc   : > { %5801 = vst [vmem:[#allocation1 + $0x23] ss:$4 sm:$0xff] %v10825_v29  ;;  %v10255_v44 = vsel %vm5114_vm1, %v10829_v12, %v10828_v56  ;;  %v5516_v52 = vpop.permute.xlu1 %5515 }
 0xabd   : > { %6050 = vst.msk [vmem:[%s6686_s22 + $0xf8] sm:$0xff] %vm6018_vm11, %v5793_v27  ;;  %5623 = vrot.lane.b32.xlu1 %v10249_v60, %s6542_s11  ;;  %5621 = vrot.lane.b32.xlu0 %v10255_v44, %s6542_s11  ;;  %v10267_v56 = vsel %vm5114_vm1, %v10831_v20, %v10830_v28 }
 0xabe   : > { %v5812_v29 = vld.sshfl [vmem:[#allocation1] sm:$0xff pattern:$0x73625140]  ;;  %v5518_v18 = vpop.permute.xlu2 %5517 }
 0xabf   : > { %5816 = vst [vmem:[#allocation1 + $0x2] ss:$4 sm:$0xff] %v5504_v17 }
 0xac0   : > { %6053 = vst.msk [vmem:[%s6686_s22 + $0x110] sm:$0xff] %vm6018_vm11, %v5812_v29 }
 0xac1   : > { %5814 = vst [vmem:[#allocation1] ss:$4 sm:$0xff] %v5500_v35  ;;  %5625 = vrot.lane.b32.xlu2 %v10267_v56, %s6542_s11  ;;  %v5514_v35 = vpop.permute.xlu0 %5513 }
 0xac2   : > { %5817 = vst [vmem:[#allocation1 + $0x3] ss:$4 sm:$0xff] %v5506_v58 }
 0xac3   : > { %v5803_v27 = vld.sshfl [vmem:[#allocation1 + $0x20] sm:$0xff pattern:$0x73625140]  ;;  %5815 = vst [vmem:[#allocation1 + $0x1] ss:$4 sm:$0xff] %v5502_v53 }
 0xac4   : > { %6052 = vst.msk [vmem:[%s6686_s22 + $0x108] sm:$0xff] %vm6018_vm11, %v5803_v27  ;;  %v5522_v17 = vpop.permute.xlu1 %5521 }
 0xac5   : > { %5808 = vst [vmem:[#allocation1 + $0x20] ss:$4 sm:$0xff] %v9779_v57 }
 0xac6   : > { %5809 = vst [vmem:[#allocation1 + $0x21] ss:$4 sm:$0xff] %v9795_v16  ;;  %v5524_v57 = vpop.permute.xlu2 %5523 }
 0xac7   : > { %5810 = vst [vmem:[#allocation1 + $0x22] ss:$4 sm:$0xff] %v9789_v7 }
 0xac8   : > { %5811 = vst [vmem:[#allocation1 + $0x23] ss:$4 sm:$0xff] %v9809_v31 }
 0xac9   : > { %v5520_v12 = vpop.permute.xlu0 %5519 }
 0xaca   : > { %v5822_v20 = vld.sshfl [vmem:[#allocation1] sm:$0xff pattern:$0x73625140] }
 0xacb   : > { %6055 = vst.msk [vmem:[%s6686_s22 + $0x120] sm:$0xff] %vm6018_vm11, %v5822_v20 }
 0xacc   : > { %5825 = vst [vmem:[#allocation1 + $0x1] ss:$4 sm:$0xff] %v5518_v18  ;;  %v5528_v7 = vpop.permute.xlu1 %5527 }
 0xacd   : > { %5824 = vst [vmem:[#allocation1] ss:$4 sm:$0xff] %v5516_v52 }
 0xace   : > { %5827 = vst [vmem:[#allocation1 + $0x3] ss:$4 sm:$0xff] %v5522_v17  ;;  %v5530_v31 = vpop.permute.xlu2 %5529 }
 0xacf   : > { %v5813_v58 = vld.sshfl [vmem:[#allocation1 + $0x20] sm:$0xff pattern:$0x73625140]  ;;  %5826 = vst [vmem:[#allocation1 + $0x2] ss:$4 sm:$0xff] %v5520_v12 }
 0xad0   : > { %5819 = vst [vmem:[#allocation1 + $0x21] ss:$4 sm:$0xff] %v5510_v5 }
 0xad1   : > { %5820 = vst [vmem:[#allocation1 + $0x22] ss:$4 sm:$0xff] %v5512_v45  ;;  %v5526_v16 = vpop.permute.xlu0 %5525 }
 0xad2   : > { %6054 = vst.msk [vmem:[%s6686_s22 + $0x118] sm:$0xff] %vm6018_vm11, %v5813_v58 }
 0xad3   : > { %5818 = vst [vmem:[#allocation1 + $0x20] ss:$4 sm:$0xff] %v5508_v39 }
 0xad4   : > { %5821 = vst [vmem:[#allocation1 + $0x23] ss:$4 sm:$0xff] %v5514_v35  ;;  %v5534_v29 = vpop.permute.xlu1 %5533 }
 0xad6   : > { %v5832_v5 = vld.sshfl [vmem:[#allocation1] sm:$0xff pattern:$0x73625140]  ;;  %v5536_v45 = vpop.permute.xlu2 %5535 }
 0xad7   : > { %5834 = vst [vmem:[#allocation1] ss:$4 sm:$0xff] %v9824_v19 }
 0xad8   : > { %5835 = vst [vmem:[#allocation1 + $0x1] ss:$4 sm:$0xff] %v9819_v47 }
 0xad9   : > { %5836 = vst [vmem:[#allocation1 + $0x2] ss:$4 sm:$0xff] %v9835_v55  ;;  %v5532_v39 = vpop.permute.xlu0 %5531 }
 0xada   : > { %5837 = vst [vmem:[#allocation1 + $0x3] ss:$4 sm:$0xff] %v9851_v49 }
 0xadb   : > { %v5823_v53 = vld.sshfl [vmem:[#allocation1 + $0x20] sm:$0xff pattern:$0x73625140]  ;;  %6057 = vst.msk [vmem:[%s6686_s22 + $0x130] sm:$0xff] %vm6018_vm11, %v5832_v5 }
 0xadc   : > { %6056 = vst.msk [vmem:[%s6686_s22 + $0x128] sm:$0xff] %vm6018_vm11, %v5823_v53  ;;  %v5540_v27 = vpop.permute.xlu1 %5539 }
 0xadd   : > { %5828 = vst [vmem:[#allocation1 + $0x20] ss:$4 sm:$0xff] %v5524_v57 }
 0xade   : > { %5831 = vst [vmem:[#allocation1 + $0x23] ss:$4 sm:$0xff] %v5530_v31  ;;  %v5542_v55 = vpop.permute.xlu2 %5541 }
 0xadf   : > { %5830 = vst [vmem:[#allocation1 + $0x22] ss:$4 sm:$0xff] %v5528_v7 }
 0xae0   : > { %5829 = vst [vmem:[#allocation1 + $0x21] ss:$4 sm:$0xff] %v5526_v16 }
 0xae1   : > { %v5842_v52 = vld.sshfl [vmem:[#allocation1] sm:$0xff pattern:$0x73625140]  ;;  %v5538_v47 = vpop.permute.xlu0 %5537 }
 0xae2   : > { %5844 = vst [vmem:[#allocation1] ss:$4 sm:$0xff] %v9896_v42 }
 0xae3   : > { %5845 = vst [vmem:[#allocation1 + $0x1] ss:$4 sm:$0xff] %v9912_v10 }
 0xae4   : > { %5846 = vst [vmem:[#allocation1 + $0x2] ss:$4 sm:$0xff] %v9906_v8  ;;  %v5546_v49 = vpop.permute.xlu1 %5545 }
 0xae5   : > { %5847 = vst [vmem:[#allocation1 + $0x3] ss:$4 sm:$0xff] %v9927_v43 }
 0xae6   : > { %6059 = vst.msk [vmem:[%s6686_s22 + $0x140] sm:$0xff] %vm6018_vm11, %v5842_v52  ;;  %v5548_v10 = vpop.permute.xlu2 %5547 }
 0xae7   : > { %v5833_v19 = vld.sshfl [vmem:[#allocation1 + $0x20] sm:$0xff pattern:$0x73625140] }
 0xae8   : > { %5838 = vst [vmem:[#allocation1 + $0x20] ss:$4 sm:$0xff] %v9845_v11 }
 0xae9   : > { %5839 = vst [vmem:[#allocation1 + $0x21] ss:$4 sm:$0xff] %v9868_v40  ;;  %v5544_v8 = vpop.permute.xlu0 %5543 }
 0xaea   : > { %5840 = vst [vmem:[#allocation1 + $0x22] ss:$4 sm:$0xff] %v9884_v3 }
 0xaeb   : > { %5841 = vst [vmem:[#allocation1 + $0x23] ss:$4 sm:$0xff] %v9878_v62 }
 0xaec   : > { %6058 = vst.msk [vmem:[%s6686_s22 + $0x138] sm:$0xff] %vm6018_vm11, %v5833_v19  ;;  %v5852_v42 = vld.sshfl [vmem:[#allocation1] sm:$0xff pattern:$0x73625140]  ;;  %v5552_v40 = vpop.permute.xlu1 %5551 }
 0xaed   : > { %6061 = vst.msk [vmem:[%s6686_s22 + $0x150] sm:$0xff] %vm6018_vm11, %v5852_v42 }
 0xaee   : > { %5856 = vst [vmem:[#allocation1 + $0x2] ss:$4 sm:$0xff] %v5536_v45  ;;  %v5554_v43 = vpop.permute.xlu2 %5553 }
 0xaef   : > { %5855 = vst [vmem:[#allocation1 + $0x1] ss:$4 sm:$0xff] %v5534_v29 }
 0xaf0   : > { %5854 = vst [vmem:[#allocation1] ss:$4 sm:$0xff] %v5532_v39 }
 0xaf1   : > { %5857 = vst [vmem:[#allocation1 + $0x3] ss:$4 sm:$0xff] %v5538_v47  ;;  %v5550_v62 = vpop.permute.xlu0 %5549 }
 0xaf2   : > { %v5843_v11 = vld.sshfl [vmem:[#allocation1 + $0x20] sm:$0xff pattern:$0x73625140] }
 0xaf3   : > { %5848 = vst [vmem:[#allocation1 + $0x20] ss:$4 sm:$0xff] %v9941_v38 }
 0xaf4   : > { %5849 = vst [vmem:[#allocation1 + $0x21] ss:$4 sm:$0xff] %v9935_v36  ;;  %v5558_v36 = vpop.permute.xlu1 %5557 }
 0xaf5   : > { %5850 = vst [vmem:[#allocation1 + $0x22] ss:$4 sm:$0xff] %v9953_v15 }
 0xaf6   : > { %5851 = vst [vmem:[#allocation1 + $0x23] ss:$4 sm:$0xff] %v9966_v48  ;;  %v5560_v15 = vpop.permute.xlu2 %5559 }
 0xaf7   : > { %6060 = vst.msk [vmem:[%s6686_s22 + $0x148] sm:$0xff] %vm6018_vm11, %v5843_v11 }
 0xaf8   : > { %v5862_v3 = vld.sshfl [vmem:[#allocation1] sm:$0xff pattern:$0x73625140] }
 0xaf9   : > { %6063 = vst.msk [vmem:[%s6686_s22 + $0x160] sm:$0xff] %vm6018_vm11, %v5862_v3  ;;  %v5556_v38 = vpop.permute.xlu0 %5555 }
 0xafa   : > { %5864 = vst [vmem:[#allocation1] ss:$4 sm:$0xff] %v5548_v10 }
 0xafb   : > { %5867 = vst [vmem:[#allocation1 + $0x3] ss:$4 sm:$0xff] %v5554_v43 }
 0xafc   : > { %5866 = vst [vmem:[#allocation1 + $0x2] ss:$4 sm:$0xff] %v5552_v40  ;;  %v5564_v35 = vpop.permute.xlu1 %5563 }
 0xafd   : > { %v5853_v28 = vld.sshfl [vmem:[#allocation1 + $0x20] sm:$0xff pattern:$0x73625140]  ;;  %5865 = vst [vmem:[#allocation1 + $0x1] ss:$4 sm:$0xff] %v5550_v62 }
 0xafe   : > { %6062 = vst.msk [vmem:[%s6686_s22 + $0x158] sm:$0xff] %vm6018_vm11, %v5853_v28  ;;  %v5566_v58 = vpop.permute.xlu2 %5565 }
 0xaff   : > { %5859 = vst [vmem:[#allocation1 + $0x21] ss:$4 sm:$0xff] %v5542_v55 }
 0xb00   : > { %5858 = vst [vmem:[#allocation1 + $0x20] ss:$4 sm:$0xff] %v5540_v27 }
 0xb01   : > { %5861 = vst [vmem:[#allocation1 + $0x23] ss:$4 sm:$0xff] %v5546_v49  ;;  %v5562_v17 = vpop.permute.xlu0 %5561 }
 0xb02   : > { %5860 = vst [vmem:[#allocation1 + $0x22] ss:$4 sm:$0xff] %v5544_v8 }
 0xb04   : > { %v5872_v18 = vld.sshfl [vmem:[#allocation1] sm:$0xff pattern:$0x73625140]  ;;  %v5570_v20 = vpop.permute.xlu1 %5569 }
 0xb05   : > { %5874 = vst [vmem:[#allocation1] ss:$4 sm:$0xff] %v9960_v22 }
 0xb06   : > { %5875 = vst [vmem:[#allocation1 + $0x1] ss:$4 sm:$0xff] %v9978_v21  ;;  %v5572_v22 = vpop.permute.xlu2 %5571 }
 0xb07   : > { %5876 = vst [vmem:[#allocation1 + $0x2] ss:$4 sm:$0xff] %v9994_v2 }
 0xb08   : > { %5877 = vst [vmem:[#allocation1 + $0x3] ss:$4 sm:$0xff] %v9988_v6 }
 0xb09   : > { %v5863_v48 = vld.sshfl [vmem:[#allocation1 + $0x20] sm:$0xff pattern:$0x73625140]  ;;  %6065 = vst.msk [vmem:[%s6686_s22 + $0x170] sm:$0xff] %vm6018_vm11, %v5872_v18  ;;  %v5568_v57 = vpop.permute.xlu0 %5567 }
 0xb0a   : > { %6064 = vst.msk [vmem:[%s6686_s22 + $0x168] sm:$0xff] %vm6018_vm11, %v5863_v48 }
 0xb0b   : > { %5870 = vst [vmem:[#allocation1 + $0x22] ss:$4 sm:$0xff] %v5560_v15 }
 0xb0c   : > { %5869 = vst [vmem:[#allocation1 + $0x21] ss:$4 sm:$0xff] %v5558_v36  ;;  %v5576_v6 = vpop.permute.xlu1 %5575 }
 0xb0d   : > { %5868 = vst [vmem:[#allocation1 + $0x20] ss:$4 sm:$0xff] %v5556_v38 }
 0xb0e   : > { %5871 = vst [vmem:[#allocation1 + $0x23] ss:$4 sm:$0xff] %v5562_v17 }
 0xb0f   : > { %v5882_v12 = vld.sshfl [vmem:[#allocation1] sm:$0xff pattern:$0x73625140] }
 0xb10   : > { %5884 = vst [vmem:[#allocation1] ss:$4 sm:$0xff] %v10053_v1  ;;  %v5578_v1 = vpop.permute.xlu2 %5577 }
 0xb11   : > { %5885 = vst [vmem:[#allocation1 + $0x1] ss:$4 sm:$0xff] %v10048_v26  ;;  %v5574_v2 = vpop.permute.xlu0 %5573 }
 0xb12   : > { %5886 = vst [vmem:[#allocation1 + $0x2] ss:$4 sm:$0xff] %v10069_v51 }
 0xb13   : > { %5887 = vst [vmem:[#allocation1 + $0x3] ss:$4 sm:$0xff] %v10083_v54 }
 0xb14   : > { %6067 = vst.msk [vmem:[%s6686_s22 + $0x180] sm:$0xff] %vm6018_vm11, %v5882_v12 }
 0xb15   : > { %v5873_v21 = vld.sshfl [vmem:[#allocation1 + $0x20] sm:$0xff pattern:$0x73625140] }
 0xb16   : > { %5878 = vst [vmem:[#allocation1 + $0x20] ss:$4 sm:$0xff] %v10008_v30 }
 0xb17   : > { %5879 = vst [vmem:[#allocation1 + $0x21] ss:$4 sm:$0xff] %v10022_v63 }
 0xb18   : > { %5880 = vst [vmem:[#allocation1 + $0x22] ss:$4 sm:$0xff] %v10016_v23  ;;  %v5582_v23 = vpop.permute.xlu1 %5581  ;;  %v5584_v51 = vpop.permute.xlu2 %5583 }
 0xb19   : > { %5881 = vst [vmem:[#allocation1 + $0x23] ss:$4 sm:$0xff] %v10038_v59  ;;  %v5580_v63 = vpop.permute.xlu0 %5579 }
 0xb1a   : > { %6066 = vst.msk [vmem:[%s6686_s22 + $0x178] sm:$0xff] %vm6018_vm11, %v5873_v21  ;;  %v5892_v26 = vld.sshfl [vmem:[#allocation1] sm:$0xff pattern:$0x73625140] }
 0xb1b   : > { %6069 = vst.msk [vmem:[%s6686_s22 + $0x190] sm:$0xff] %vm6018_vm11, %v5892_v26 }
 0xb1c   : > { %5895 = vst [vmem:[#allocation1 + $0x1] ss:$4 sm:$0xff] %v5566_v58 }
 0xb1d   : > { %5894 = vst [vmem:[#allocation1] ss:$4 sm:$0xff] %v5564_v35 }
 0xb1e   : > { %5897 = vst [vmem:[#allocation1 + $0x3] ss:$4 sm:$0xff] %v5570_v20 }
 0xb1f   : > { %5896 = vst [vmem:[#allocation1 + $0x2] ss:$4 sm:$0xff] %v5568_v57 }
 0xb20   : > { %v5883_v30 = vld.sshfl [vmem:[#allocation1 + $0x20] sm:$0xff pattern:$0x73625140] }
 0xb21   : > { %5888 = vst [vmem:[#allocation1 + $0x20] ss:$4 sm:$0xff] %v10077_v24  ;;  %v5588_v24 = vpop.permute.xlu1 %5587 }
 0xb22   : > { %5889 = vst [vmem:[#allocation1 + $0x21] ss:$4 sm:$0xff] %v10099_v34  ;;  %v5586_v34 = vpop.permute.xlu0 %5585 }
 0xb23   : > { %5890 = vst [vmem:[#allocation1 + $0x22] ss:$4 sm:$0xff] %v10113_v33 }
 0xb24   : > { %5891 = vst [vmem:[#allocation1 + $0x23] ss:$4 sm:$0xff] %v10107_v32  ;;  %v5590_v32 = vpop.permute.xlu2 %5589 }
 0xb25   : > { %6068 = vst.msk [vmem:[%s6686_s22 + $0x188] sm:$0xff] %vm6018_vm11, %v5883_v30 }
 0xb26   : > { %v5902_v59 = vld.sshfl [vmem:[#allocation1] sm:$0xff pattern:$0x73625140] }
 0xb27   : > { %6071 = vst.msk [vmem:[%s6686_s22 + $0x1a0] sm:$0xff] %vm6018_vm11, %v5902_v59 }
 0xb28   : > { %5906 = vst [vmem:[#allocation1 + $0x2] ss:$4 sm:$0xff] %v5584_v51 }
 0xb29   : > { %5905 = vst [vmem:[#allocation1 + $0x1] ss:$4 sm:$0xff] %v5582_v23  ;;  %v5594_v33 = vpop.permute.xlu1 %5593 }
 0xb2a   : > { %5904 = vst [vmem:[#allocation1] ss:$4 sm:$0xff] %v5580_v63  ;;  %v5592_v31 = vpop.permute.xlu0 %5591 }
 0xb2b   : > { %v5893_v54 = vld.sshfl [vmem:[#allocation1 + $0x20] sm:$0xff pattern:$0x73625140]  ;;  %5907 = vst [vmem:[#allocation1 + $0x3] ss:$4 sm:$0xff] %v5586_v34 }
 0xb2c   : > { %6070 = vst.msk [vmem:[%s6686_s22 + $0x198] sm:$0xff] %vm6018_vm11, %v5893_v54  ;;  %v5596_v53 = vpop.permute.xlu2 %5595 }
 0xb2d   : > { %5898 = vst [vmem:[#allocation1 + $0x20] ss:$4 sm:$0xff] %v5572_v22 }
 0xb2e   : > { %5901 = vst [vmem:[#allocation1 + $0x23] ss:$4 sm:$0xff] %v5578_v1 }
 0xb2f   : > { %5900 = vst [vmem:[#allocation1 + $0x22] ss:$4 sm:$0xff] %v5576_v6 }
 0xb30   : > { %5899 = vst [vmem:[#allocation1 + $0x21] ss:$4 sm:$0xff] %v5574_v2 }
 0xb31   : > { %v5600_v5 = vpop.permute.xlu1 %5599 }
 0xb32   : > { %v5912_v16 = vld.sshfl [vmem:[#allocation1] sm:$0xff pattern:$0x73625140]  ;;  %v5598_v39 = vpop.permute.xlu0 %5597 }
 0xb33   : > { %5914 = vst [vmem:[#allocation1] ss:$4 sm:$0xff] %v10126_v9 }
 0xb34   : > { %5915 = vst [vmem:[#allocation1 + $0x1] ss:$4 sm:$0xff] %v10140_v13  ;;  %v5602_v45 = vpop.permute.xlu2 %5601  ;;  %v10832_v13 = vld [vmem:[#allocation28_spill] sm:$0xff] }
 0xb35   : > { %5916 = vst [vmem:[#allocation1 + $0x2] ss:$4 sm:$0xff] %v10134_v14 }
 0xb36   : > { %5917 = vst [vmem:[#allocation1 + $0x3] ss:$4 sm:$0xff] %v10150_v25 }
 0xb37   : > { %v5903_v7 = vld.sshfl [vmem:[#allocation1 + $0x20] sm:$0xff pattern:$0x73625140]  ;;  %6073 = vst.msk [vmem:[%s6686_s22 + $0x1b0] sm:$0xff] %vm6018_vm11, %v5912_v16 }
 0xb38   : > { %6072 = vst.msk [vmem:[%s6686_s22 + $0x1a8] sm:$0xff] %vm6018_vm11, %v5903_v7 }
 0xb39   : > { %5909 = vst [vmem:[#allocation1 + $0x21] ss:$4 sm:$0xff] %v5590_v32  ;;  %v5606_v14 = vpop.permute.xlu1 %5605 }
 0xb3a   : > { %5908 = vst [vmem:[#allocation1 + $0x20] ss:$4 sm:$0xff] %v5588_v24  ;;  %v5604_v25 = vpop.permute.xlu0 %5603 }
 0xb3b   : > { %5911 = vst [vmem:[#allocation1 + $0x23] ss:$4 sm:$0xff] %v5594_v33 }
 0xb3c   : > { %5910 = vst [vmem:[#allocation1 + $0x22] ss:$4 sm:$0xff] %v5592_v31 }
 0xb3d   : > { %v5922_v29 = vld.sshfl [vmem:[#allocation1] sm:$0xff pattern:$0x73625140] }
 0xb3e   : > { %5924 = vst [vmem:[#allocation1] ss:$4 sm:$0xff] %v10189_v46 }
 0xb3f   : > { %5925 = vst [vmem:[#allocation1 + $0x1] ss:$4 sm:$0xff] %v10205_v37  ;;  %v5608_v37 = vpop.permute.xlu2 %5607 }
 0xb40   : > { %5926 = vst [vmem:[#allocation1 + $0x2] ss:$4 sm:$0xff] %v10222_v0 }
 0xb41   : > { %5927 = vst [vmem:[#allocation1 + $0x3] ss:$4 sm:$0xff] %v10216_v41  ;;  %v5612_v41 = vpop.permute.xlu1 %5611 }
 0xb42   : > { %6075 = vst.msk [vmem:[%s6686_s22 + $0x1c0] sm:$0xff] %vm6018_vm11, %v5922_v29 }
 0xb43   : > { %v5913_v9 = vld.sshfl [vmem:[#allocation1 + $0x20] sm:$0xff pattern:$0x73625140] }
 0xb44   : > { %5918 = vst [vmem:[#allocation1 + $0x20] ss:$4 sm:$0xff] %v10164_v4 }
 0xb45   : > { %5919 = vst [vmem:[#allocation1 + $0x21] ss:$4 sm:$0xff] %v10158_v50  ;;  %v10833_v50 = vld [vmem:[#allocation33_spill] sm:$0xff] }
 0xb46   : > { %5920 = vst [vmem:[#allocation1 + $0x22] ss:$4 sm:$0xff] %v10179_v61  ;;  %v5610_v61 = vpop.permute.xlu0 %5609 }
 0xb47   : > { %5921 = vst [vmem:[#allocation1 + $0x23] ss:$4 sm:$0xff] %v10832_v13  ;;  %v5614_v0 = vpop.permute.xlu2 %5613 }
 0xb48   : > { %6074 = vst.msk [vmem:[%s6686_s22 + $0x1b8] sm:$0xff] %vm6018_vm11, %v5913_v9  ;;  %v5932_v46 = vld.sshfl [vmem:[#allocation1] sm:$0xff pattern:$0x73625140] }
 0xb49   : > { %6077 = vst.msk [vmem:[%s6686_s22 + $0x1d0] sm:$0xff] %vm6018_vm11, %v5932_v46  ;;  %v5618_v52 = vpop.permute.xlu1 %5617 }
 0xb4a   : > { %5934 = vst [vmem:[#allocation1] ss:$4 sm:$0xff] %v5596_v53 }
 0xb4b   : > { %5937 = vst [vmem:[#allocation1 + $0x3] ss:$4 sm:$0xff] %v5602_v45 }
 0xb4c   : > { %5936 = vst [vmem:[#allocation1 + $0x2] ss:$4 sm:$0xff] %v5600_v5 }
 0xb4d   : > { %5935 = vst [vmem:[#allocation1 + $0x1] ss:$4 sm:$0xff] %v5598_v39 }
 0xb4e   : > { %v5923_v4 = vld.sshfl [vmem:[#allocation1 + $0x20] sm:$0xff pattern:$0x73625140] }
 0xb4f   : > { %5928 = vst [vmem:[#allocation1 + $0x20] ss:$4 sm:$0xff] %v10833_v50 }
 0xb50   : > { %5929 = vst [vmem:[#allocation1 + $0x21] ss:$4 sm:$0xff] %v10255_v44  ;;  %v5620_v44 = vpop.permute.xlu2 %5619 }
 0xb51   : > { %5930 = vst [vmem:[#allocation1 + $0x22] ss:$4 sm:$0xff] %v10249_v60  ;;  %v5616_v60 = vpop.permute.xlu0 %5615  ;;  %v5624_v49 = vpop.permute.xlu1 %5623 }
 0xb52   : > { %5931 = vst [vmem:[#allocation1 + $0x23] ss:$4 sm:$0xff] %v10267_v56 }
 0xb53   : > { %6076 = vst.msk [vmem:[%s6686_s22 + $0x1c8] sm:$0xff] %vm6018_vm11, %v5923_v4 }
 0xb54   : > { %v5942_v27 = vld.sshfl [vmem:[#allocation1] sm:$0xff pattern:$0x73625140] }
 0xb55   : > { %6079 = vst.msk [vmem:[%s6686_s22 + $0x1e0] sm:$0xff] %vm6018_vm11, %v5942_v27 }
 0xb56   : > { %5945 = vst [vmem:[#allocation1 + $0x1] ss:$4 sm:$0xff] %v5614_v0 }
 0xb57   : > { %5944 = vst [vmem:[#allocation1] ss:$4 sm:$0xff] %v5612_v41 }
 0xb58   : > { %5947 = vst [vmem:[#allocation1 + $0x3] ss:$4 sm:$0xff] %v5618_v52  ;;  %v5626_v55 = vpop.permute.xlu2 %5625 }
 0xb59   : > { %v5933_v47 = vld.sshfl [vmem:[#allocation1 + $0x20] sm:$0xff pattern:$0x73625140]  ;;  %5946 = vst [vmem:[#allocation1 + $0x2] ss:$4 sm:$0xff] %v5616_v60  ;;  %v5622_v42 = vpop.permute.xlu0 %5621 }
 0xb5a   : > { %6078 = vst.msk [vmem:[%s6686_s22 + $0x1d8] sm:$0xff] %vm6018_vm11, %v5933_v47 }
 0xb5b   : > { %5940 = vst [vmem:[#allocation1 + $0x22] ss:$4 sm:$0xff] %v5608_v37 }
 0xb5c   : > { %5939 = vst [vmem:[#allocation1 + $0x21] ss:$4 sm:$0xff] %v5606_v14 }
 0xb5d   : > { %5938 = vst [vmem:[#allocation1 + $0x20] ss:$4 sm:$0xff] %v5604_v25 }
 0xb5e   : > { %5941 = vst [vmem:[#allocation1 + $0x23] ss:$4 sm:$0xff] %v5610_v61 }
 0xb60   : > { %v5952_v19 = vld.sshfl [vmem:[#allocation1] sm:$0xff pattern:$0x73625140] }
 0xb61   : > { %6081 = vst.msk [vmem:[%s6686_s22 + $0x1f0] sm:$0xff] %vm6018_vm11, %v5952_v19 }
 0xb65   : > { %v5943_v56 = vld.sshfl [vmem:[#allocation1 + $0x20] sm:$0xff pattern:$0x73625140] }
 0xb66   : > { %6080 = vst.msk [vmem:[%s6686_s22 + $0x1e8] sm:$0xff] %vm6018_vm11, %v5943_v56 }
 0xb67   : > { %5948 = vst [vmem:[#allocation1 + $0x20] ss:$4 sm:$0xff] %v5620_v44 }
 0xb68   : > { %5951 = vst [vmem:[#allocation1 + $0x23] ss:$4 sm:$0xff] %v5626_v55 }
 0xb69   : > { %5950 = vst [vmem:[#allocation1 + $0x22] ss:$4 sm:$0xff] %v5624_v49 }
 0xb6a   : > { %5949 = vst [vmem:[#allocation1 + $0x21] ss:$4 sm:$0xff] %v5622_v42 }
 0xb71   : > { %v5953_v8 = vld.sshfl [vmem:[#allocation1 + $0x20] sm:$0xff pattern:$0x73625140] }
 0xb72   : > { %6082 = vst.msk [vmem:[%s6686_s22 + $0x1f8] sm:$0xff] %vm6018_vm11, %v5953_v8 }
 0xb73 PF: > { %s10834_s20 = sld [smem:[#allocation8_spill]] }
 0xb74   : > { %s10835_s21 = sld [smem:[#allocation6_spill]] }
 0xb75   : > { %s10836_s22 = sld [smem:[#allocation7_spill]] }
 0xb76   : > { %s10837_s23 = sld [smem:[#allocation9_spill]] }
 0xb77   : > { %s10838_s24 = sld [smem:[#allocation10_spill]] }
 0xb79   : > { %s22_s25 = sadd.s32 1, %s10834_s20  }
 0xb7a   : > { %p19_p2 = scmp.ge.s32.totalorder %s22_s25, 6  }
 0xb7c   :  { %21 = sbr.rel (!%p19_p2) target bundleno = 5 (0x5), region = 147 }

</bundles_post_ra>
